<compile_context>
chip_gen: v5e
topology: v5e:2x2
jax: 0.10.0
libtpu: 0.0.40
codegen_flags: <defaults>
</compile_context>

<pallas_src>
import math

import jax
import jax.numpy as jnp
from jax.experimental import pallas as pl
from jax.experimental.pallas import tpu as pltpu


# ---------------------------------------------------------------------------
# exact GELU (erf based, matches torch nn.GELU()) helpers
# ---------------------------------------------------------------------------

_ERF_P = 0.3275911
_ERF_A = (0.254829592, -0.284496736, 1.421413741, -1.453152027, 1.061405429)
_INV_SQRT2 = 1.0 / math.sqrt(2.0)


def _erf_in_kernel(x):
    # Abramowitz & Stegun 7.1.26, |err| < 1.5e-7 vs erf.  The divide uses the
    # EUP approx reciprocal + one Newton step (rel err ~1e-7, off the VALU).
    s = jnp.where(x < 0.0, -1.0, 1.0)
    a = jnp.abs(x)
    d = 1.0 + _ERF_P * a
    t = pl.reciprocal(d, approx=True)
    t = t * (2.0 - d * t)                     # one NR refinement
    a1, a2, a3, a4, a5 = _ERF_A
    poly = t * (a1 + t * (a2 + t * (a3 + t * (a4 + t * a5))))
    return s * (1.0 - poly * jnp.exp(-a * a))


def _gelu_exact(x, erf_fn):
    return 0.5 * x * (1.0 + erf_fn(x * _INV_SQRT2))


# ---------------------------------------------------------------------------
# lane-group reduction over the W groups of a (1, W*C) row (result replicated
# per group).  Uses circular lane rolls; direction-insensitive for sum/max.
# ---------------------------------------------------------------------------

def _roll_lanes(x, shift):
    n = x.shape[-1]
    s = shift % n
    if s == 0:
        return x
    return pltpu.roll(x, s, axis=1)


def _reduce_w_groups(v, W, C, op):
    if W & (W - 1) == 0:                      # log-tree for power-of-two W
        step = 1
        while step < W:
            v = op(v, _roll_lanes(v, step * C))
            step *= 2
        return v
    acc = v                                   # linear fallback
    for k in range(1, W):
        acc = op(acc, _roll_lanes(v, k * C))
    return acc


# ---------------------------------------------------------------------------
# fused RepBlock kernel (one batch element per grid step)
# ---------------------------------------------------------------------------

def _make_repblock_kernel(H, W, C):
    WC = W * C
    PR, PC = 16, 256                          # halo: >=10 rows / >=10*C lanes, aligned
    R0, C0 = PR, PC                           # aligned interior offsets
    inv_hw = 1.0 / float(H * W)

    def kernel(x_ref, wblk_ref, bblk_ref,
               w1blk_ref, b1blk_ref, w2blk_ref, b2blk_ref,
               w55_ref, b55_ref,
               w17_ref, b17_ref, w1_11_ref, b1_11_ref, w1_21_ref, b1_21_ref,
               w71_ref, w11_1_ref, w21_1_ref, bvert_ref,
               o_ref, xpad_ref, att_ref):
        # ---- zero the padded scratch ONCE.  Invariant: every later write
        # targets only the [R0:R0+H, C0:C0+WC] interior, so the halo stays 0
        # across all grid steps (grid axis is "arbitrary" -> sequential). ----
        @pl.when(pl.program_id(0) == 0)
        def _():
            xpad_ref[...] = jnp.zeros_like(xpad_ref)

        # ---- shared 1x1 conv (block-diag MXU matmul) + exact GELU ----
        h = jnp.dot(x_ref[0], wblk_ref[...],
                    preferred_element_type=jnp.float32) + bblk_ref[...]
        h = _gelu_exact(h, _erf_in_kernel)

        # ---- channel attention: pool over H (sublane reduce) and over the W
        # lane groups (roll tree), then the tiny MLP as block-diag matmuls ----
        col_sum = jnp.sum(h, axis=0, keepdims=True)          # (1, WC)
        col_max = jnp.max(h, axis=0, keepdims=True)
        ch_avg = _reduce_w_groups(col_sum, W, C, jnp.add) * inv_hw
        ch_max = _reduce_w_groups(col_max, W, C, jnp.maximum)

        stats = jnp.concatenate([jnp.broadcast_to(ch_avg, (4, WC)),
                                 jnp.broadcast_to(ch_max, (4, WC))], axis=0)
        hid = jnp.maximum(
            jnp.dot(stats, w1blk_ref[...],
                    preferred_element_type=jnp.float32) + b1blk_ref[...], 0.0)
        gate = jax.nn.sigmoid(
            jnp.dot(hid, w2blk_ref[...],
                    preferred_element_type=jnp.float32) + b2blk_ref[...])
        ca = gate[0:1, :] + gate[4:5, :]                      # (1, WC)

        att = h * ca
        att_ref[...] = att          # park it in VMEM; reloaded for the gate

        # ---- dconv5_5: padded slab read once, 25 static windows of it ----
        xpad_ref[R0:R0 + H, C0:C0 + WC] = att
        v55 = xpad_ref[R0 - 8:R0 + H + 8, C0 - 128:C0 + WC + 128]  # (H+16, WC+256)
        x_init = b55_ref[...]
        k = 0
        for dy in range(-2, 3):
            for dx in range(-2, 3):
                tap = v55[8 + dy:8 + dy + H, 128 + dx * C:128 + dx * C + WC]
                x_init = x_init + tap * w55_ref[k:k + 1, :]
                k += 1

        # ---- dconv1_7 / dconv1_11 / dconv1_21: share the 21 lane shifts ----
        xpad_ref[R0:R0 + H, C0:C0 + WC] = x_init
        xsum = x_init + bvert_ref[...]        # hoisted b71 + b11_1 + b21_1
        vh = xpad_ref[R0:R0 + H, :]                                # (H, WC+512)
        acc1 = b17_ref[...]
        acc2 = b1_11_ref[...]
        acc3 = b1_21_ref[...]
        for dx in range(-10, 11):
            s = vh[:, C0 + dx * C:C0 + dx * C + WC]
            if -3 <= dx <= 3:
                acc1 = acc1 + s * w17_ref[dx + 3:dx + 4, :]
            if -5 <= dx <= 5:
                acc2 = acc2 + s * w1_11_ref[dx + 5:dx + 6, :]
            acc3 = acc3 + s * w1_21_ref[dx + 10:dx + 11, :]

        # ---- dconv7_1 / dconv11_1 / dconv21_1 accumulate into the sum ----
        for acc, wv_ref, kh, pr in ((acc1, w71_ref, 7, 8),
                                    (acc2, w11_1_ref, 11, 8),
                                    (acc3, w21_1_ref, 21, 16)):
            xpad_ref[R0:R0 + H, C0:C0 + WC] = acc
            vv = xpad_ref[R0 - pr:R0 + H + pr, C0:C0 + WC]         # (H+2pr, WC)
            r = kh // 2
            for t in range(kh):
                tap = vv[pr + t - r:pr + t - r + H, :]
                xsum = xsum + tap * wv_ref[t:t + 1, :]

        # ---- spatial attention (shared 1x1 conv), gate, final 1x1 conv ----
        wblk = wblk_ref[...]
        bblk = bblk_ref[...]
        spatial_att = jnp.dot(xsum, wblk,
                              preferred_element_type=jnp.float32) + bblk
        att2 = att_ref[...]
        out = jnp.dot(spatial_att * att2, wblk,
                      preferred_element_type=jnp.float32) + bblk
        o_ref[0] = out

    return kernel


# ---------------------------------------------------------------------------
# wrapper
# ---------------------------------------------------------------------------

def _const_spec(a):
    n = a.ndim
    return pl.BlockSpec(a.shape, lambda *_, n=n: (0,) * n)


def repblock_forward(x, params):
    """RepBlock forward.  x: (B, H, W, C) float32 (NHWC)."""
    B, H, W, C = x.shape
    WC = W * C
    assert H % 8 == 0 and WC % 128 == 0, "kernel assumes aligned H and W*C"

    x_packed = x.reshape(B, H, WC)            # lane-dense, C innermost

    # ---- pack parameters for the (H, W*C) layout (wrapper side only) ----
    eye_w = jnp.eye(W, dtype=jnp.float32)
    wblk = jnp.kron(eye_w, params["wc"])                 # (WC, WC)
    bblk = jnp.tile(params["bc"], (1, W))                # (1, WC)
    w1blk = jnp.kron(eye_w, params["w1"])                # (WC, W*Ci)
    b1blk = jnp.tile(params["b1"], (1, W))               # (1, W*Ci)
    w2blk = jnp.kron(eye_w, params["w2"])                # (W*Ci, WC)
    b2blk = jnp.tile(params["b2"], (1, W))               # (1, WC)

    def tile_w(a):
        return jnp.tile(a, (1, W))

    consts = [
        wblk, bblk, w1blk, b1blk, w2blk, b2blk,
        tile_w(params["w55"]), tile_w(params["b55"]),
        tile_w(params["w17"]), tile_w(params["b17"]),
        tile_w(params["w1_11"]), tile_w(params["b1_11"]),
        tile_w(params["w1_21"]), tile_w(params["b1_21"]),
        tile_w(params["w71"]), tile_w(params["w11_1"]), tile_w(params["w21_1"]),
        tile_w(params["b71"] + params["b11_1"] + params["b21_1"]),   # hoisted
    ]

    PR, PC = 16, 256
    HP, WPC = H + 2 * PR, WC + 2 * PC

    kernel = _make_repblock_kernel(H, W, C)
    out = pl.pallas_call(
        kernel,
        out_shape=jax.ShapeDtypeStruct((B, H, WC), jnp.float32),
        grid=(B,),
        in_specs=([pl.BlockSpec((1, H, WC), lambda b: (b, 0, 0))]
                  + [_const_spec(a) for a in consts]),
        out_specs=pl.BlockSpec((1, H, WC), lambda b: (b, 0, 0)),
        scratch_shapes=[pltpu.VMEM((HP, WPC), jnp.float32),   # padded dw slab
                        pltpu.VMEM((H, WC), jnp.float32)],    # parked `att`
        compiler_params=pltpu.CompilerParams(
            # "arbitrary": sequential grid so the zero-once halo init is safe.
            dimension_semantics=("arbitrary",)),
    )(x_packed, *consts)

    return out.reshape(B, H, W, C)


# ---------------------------------------------------------------------------
# deterministic parameter init (natural / PyTorch-equivalent shapes)
# ---------------------------------------------------------------------------

def init_params(key, C, ca_reduce=4):
    Ci = C // ca_reduce
    keys = iter(jax.random.split(key, 32))

    def nrm(shape, scale=0.1):
        return (scale * jax.random.normal(next(keys), shape)).astype(jnp.float32)

    p = {}
    p["wc"], p["bc"] = nrm((C, C)), nrm((1, C))      # shared 1x1 conv (Cin,Cout)
    p["w1"], p["b1"] = nrm((C, Ci)), nrm((1, Ci))    # ca.fc1
    p["w2"], p["b2"] = nrm((Ci, C)), nrm((1, C))     # ca.fc2
    for name, kh, kw in (("55", 5, 5), ("17", 1, 7), ("71", 7, 1),
                         ("1_11", 1, 11), ("11_1", 11, 1),
                         ("1_21", 1, 21), ("21_1", 21, 1)):
        p["w" + name] = nrm((kh * kw, C))            # depthwise taps
        p["b" + name] = nrm((1, C))
    return p


# ---------------------------------------------------------------------------
# plain-JAX reference (lax.erf exact GELU, HIGHEST-precision matmuls)
# ---------------------------------------------------------------------------

def _pad_hw(x, ph, pw):
    H, W, C = x.shape
    if ph:
        z = jnp.zeros((ph, W, C), x.dtype)
        x = jnp.concatenate([z, x, z], axis=0)
    if pw:
        z = jnp.zeros((x.shape[0], pw, C), x.dtype)
        x = jnp.concatenate([z, x, z], axis=1)
    return x


def _dwconv(x, w, b, kh, kw):
    H, W, C = x.shape
    xp = _pad_hw(x, kh // 2, kw // 2)
    out = jnp.zeros((H, W, C), x.dtype) + b
    for i in range(kh):
        for j in range(kw):
            tap = w[i * kw + j:i * kw + j + 1, :]
            out = out + xp[i:i + H, j:j + W, :] * tap
    return out


def _pw_ref(x2d, w, b):
    return jax.lax.dot(x2d, w, precision=jax.lax.Precision.HIGHEST) + b


def repblock_reference(x, p):
    B, H, W, C = x.shape

    def one(xb):
        h = _pw_ref(xb.reshape(H * W, C), p["wc"], p["bc"])
        h = _gelu_exact(h, jax.lax.erf)
        avg = jnp.mean(h, axis=0, keepdims=True)
        mx = jnp.max(h, axis=0, keepdims=True)

        def ca_mlp(v):
            v = jnp.maximum(_pw_ref(v, p["w1"], p["b1"]), 0.0)
            return jax.nn.sigmoid(_pw_ref(v, p["w2"], p["b2"]))

        ca = ca_mlp(avg) + ca_mlp(mx)
        att2d = h * ca
        att = att2d.reshape(H, W, C)
        x_init = _dwconv(att, p["w55"], p["b55"], 5, 5)
        x_1 = _dwconv(_dwconv(x_init, p["w17"], p["b17"], 1, 7),
                      p["w71"], p["b71"], 7, 1)
        x_2 = _dwconv(_dwconv(x_init, p["w1_11"], p["b1_11"], 1, 11),
                      p["w11_1"], p["b11_1"], 11, 1)
        x_3 = _dwconv(_dwconv(x_init, p["w1_21"], p["b1_21"], 1, 21),
                      p["w21_1"], p["b21_1"], 21, 1)
        xs = x_1 + x_2 + x_3 + x_init
        sa = _pw_ref(xs.reshape(H * W, C), p["wc"], p["bc"])
        out = _pw_ref(sa * att2d, p["wc"], p["bc"])
        return out.reshape(H, W, C)

    return jax.vmap(one)(x)


if __name__ == "__main__":
    B, C, H, W = 2, 16, 16, 16        # C divisible by channelAttention_reduce=4
    key = jax.random.PRNGKey(0)
    kx, kp = jax.random.split(key)
    x = jax.random.normal(kx, (B, H, W, C), jnp.float32)   # NHWC
    params = init_params(kp, C)

    out = repblock_forward(x, params)
    out = jax.block_until_ready(out)
    assert out.shape == (B, H, W, C)

    ref = repblock_reference(x, params)
    assert bool(jnp.all(jnp.isfinite(out)))
    assert bool(jnp.allclose(out, ref, rtol=1e-3, atol=1e-3)), "mismatch vs reference"

    print("KERNEL_OK")
</pallas_src>

<mosaic_0001>
module attributes {stable_mosaic.version = 11 : i64} {
  func.func @kernel(%arg0: i32, %arg1: memref<1x16x256xf32, #tpu.memory_space<vmem>>, %arg2: memref<256x256xf32, #tpu.memory_space<vmem>>, %arg3: memref<1x256xf32, #tpu.memory_space<vmem>>, %arg4: memref<256x64xf32, #tpu.memory_space<vmem>>, %arg5: memref<1x64xf32, #tpu.memory_space<vmem>>, %arg6: memref<64x256xf32, #tpu.memory_space<vmem>>, %arg7: memref<1x256xf32, #tpu.memory_space<vmem>>, %arg8: memref<25x256xf32, #tpu.memory_space<vmem>>, %arg9: memref<1x256xf32, #tpu.memory_space<vmem>>, %arg10: memref<7x256xf32, #tpu.memory_space<vmem>>, %arg11: memref<1x256xf32, #tpu.memory_space<vmem>>, %arg12: memref<11x256xf32, #tpu.memory_space<vmem>>, %arg13: memref<1x256xf32, #tpu.memory_space<vmem>>, %arg14: memref<21x256xf32, #tpu.memory_space<vmem>>, %arg15: memref<1x256xf32, #tpu.memory_space<vmem>>, %arg16: memref<7x256xf32, #tpu.memory_space<vmem>>, %arg17: memref<11x256xf32, #tpu.memory_space<vmem>>, %arg18: memref<21x256xf32, #tpu.memory_space<vmem>>, %arg19: memref<1x256xf32, #tpu.memory_space<vmem>>, %arg20: memref<1x16x256xf32, #tpu.memory_space<vmem>>, %arg21: memref<48x768xf32, #tpu.memory_space<vmem>>, %arg22: memref<16x256xf32, #tpu.memory_space<vmem>>) attributes {dimension_semantics = [#tpu.dimension_semantics<arbitrary>], iteration_bounds = array<i64: 2>, scalar_prefetch = 0 : i64, scratch_operands = 2 : i64, tpu.core_type = #tpu.core_type<tc>, window_params = [{transform_indices = @transform_0, window_bounds = array<i64: 1, 16, 256>}, {pipeline_mode = #tpu.pipeline_mode<synchronous>, transform_indices = @transform_1, window_bounds = array<i64: 256, 256>}, {pipeline_mode = #tpu.pipeline_mode<synchronous>, transform_indices = @transform_2, window_bounds = array<i64: 1, 256>}, {pipeline_mode = #tpu.pipeline_mode<synchronous>, transform_indices = @transform_3, window_bounds = array<i64: 256, 64>}, {pipeline_mode = #tpu.pipeline_mode<synchronous>, transform_indices = @transform_4, window_bounds = array<i64: 1, 64>}, {pipeline_mode = #tpu.pipeline_mode<synchronous>, transform_indices = @transform_5, window_bounds = array<i64: 64, 256>}, {pipeline_mode = #tpu.pipeline_mode<synchronous>, transform_indices = @transform_6, window_bounds = array<i64: 1, 256>}, {pipeline_mode = #tpu.pipeline_mode<synchronous>, transform_indices = @transform_7, window_bounds = array<i64: 25, 256>}, {pipeline_mode = #tpu.pipeline_mode<synchronous>, transform_indices = @transform_8, window_bounds = array<i64: 1, 256>}, {pipeline_mode = #tpu.pipeline_mode<synchronous>, transform_indices = @transform_9, window_bounds = array<i64: 7, 256>}, {pipeline_mode = #tpu.pipeline_mode<synchronous>, transform_indices = @transform_10, window_bounds = array<i64: 1, 256>}, {pipeline_mode = #tpu.pipeline_mode<synchronous>, transform_indices = @transform_11, window_bounds = array<i64: 11, 256>}, {pipeline_mode = #tpu.pipeline_mode<synchronous>, transform_indices = @transform_12, window_bounds = array<i64: 1, 256>}, {pipeline_mode = #tpu.pipeline_mode<synchronous>, transform_indices = @transform_13, window_bounds = array<i64: 21, 256>}, {pipeline_mode = #tpu.pipeline_mode<synchronous>, transform_indices = @transform_14, window_bounds = array<i64: 1, 256>}, {pipeline_mode = #tpu.pipeline_mode<synchronous>, transform_indices = @transform_15, window_bounds = array<i64: 7, 256>}, {pipeline_mode = #tpu.pipeline_mode<synchronous>, transform_indices = @transform_16, window_bounds = array<i64: 11, 256>}, {pipeline_mode = #tpu.pipeline_mode<synchronous>, transform_indices = @transform_17, window_bounds = array<i64: 21, 256>}, {pipeline_mode = #tpu.pipeline_mode<synchronous>, transform_indices = @transform_18, window_bounds = array<i64: 1, 256>}, {transform_indices = @transform_19, window_bounds = array<i64: 1, 16, 256>}]} {
    %c0_i32 = arith.constant 0 : i32
    %0 = arith.cmpi eq, %arg0, %c0_i32 : i32
    %1 = arith.extui %0 : i1 to i32
    %c0_i32_0 = arith.constant 0 : i32
    %2 = arith.cmpi ne, %1, %c0_i32_0 : i32
    scf.if %2 {
      %cst_265 = arith.constant 0.000000e+00 : f32
      %635 = vector.broadcast %cst_265 : f32 to vector<48x768xf32>
      %c0_266 = arith.constant 0 : index
      %c0_267 = arith.constant 0 : index
      %636 = vector.load %arg21[%c0_266, %c0_267] : memref<48x768xf32, #tpu.memory_space<vmem>>, vector<48x768xf32>
      tpu.vector_store %arg21[%c0_266, %c0_267], %635 {strides = array<i32>} : memref<48x768xf32, #tpu.memory_space<vmem>>, vector<48x768xf32>,
    } else {
    }
    %c0 = arith.constant 0 : index
    %c0_1 = arith.constant 0 : index
    %c0_2 = arith.constant 0 : index
    %3 = vector.load %arg1[%c0, %c0_1, %c0_2] : memref<1x16x256xf32, #tpu.memory_space<vmem>>, vector<1x16x256xf32>
    %4 = vector.shape_cast %3 : vector<1x16x256xf32> to vector<16x256xf32>
    %c0_3 = arith.constant 0 : index
    %c0_4 = arith.constant 0 : index
    %5 = vector.load %arg2[%c0_3, %c0_4] : memref<256x256xf32, #tpu.memory_space<vmem>>, vector<256x256xf32>
    %cst = arith.constant dense<0.000000e+00> : vector<16x256xf32>
    %6 = tpu.matmul %4, %5, %cst {dimension_numbers = #tpu.dot_dimension_numbers<[1], [0], [0], [1], [0, 0, 1, 1], [], []>} : vector<16x256xf32>, vector<256x256xf32>, vector<16x256xf32> -> vector<16x256xf32>
    %c0_5 = arith.constant 0 : index
    %c0_6 = arith.constant 0 : index
    %7 = vector.load %arg3[%c0_5, %c0_6] : memref<1x256xf32, #tpu.memory_space<vmem>>, vector<1x256xf32>
    %8 = vector.broadcast %7 : vector<1x256xf32> to vector<16x256xf32>
    %9 = arith.addf %6, %8 : vector<16x256xf32>
    %cst_7 = arith.constant 5.000000e-01 : f32
    %10 = vector.broadcast %cst_7 : f32 to vector<16x256xf32>
    %11 = arith.mulf %10, %9 : vector<16x256xf32>
    %cst_8 = arith.constant 0.707106769 : f32
    %12 = vector.broadcast %cst_8 : f32 to vector<16x256xf32>
    %13 = arith.mulf %9, %12 : vector<16x256xf32>
    %cst_9 = arith.constant 0.000000e+00 : f32
    %14 = vector.broadcast %cst_9 : f32 to vector<16x256xf32>
    %15 = arith.cmpf olt, %13, %14 : vector<16x256xf32>
    %cst_10 = arith.constant -1.000000e+00 : f32
    %cst_11 = arith.constant 1.000000e+00 : f32
    %16 = vector.broadcast %cst_10 : f32 to vector<16x256xf32>
    %17 = vector.broadcast %cst_11 : f32 to vector<16x256xf32>
    %18 = arith.select %15, %16, %17 : vector<16x256xi1>, vector<16x256xf32>
    %19 = math.absf %13 : vector<16x256xf32>
    %cst_12 = arith.constant 0.327591091 : f32
    %20 = vector.broadcast %cst_12 : f32 to vector<16x256xf32>
    %21 = arith.mulf %20, %19 : vector<16x256xf32>
    %cst_13 = arith.constant 1.000000e+00 : f32
    %22 = vector.broadcast %cst_13 : f32 to vector<16x256xf32>
    %23 = arith.addf %22, %21 : vector<16x256xf32>
    %24 = tpu.reciprocal %23 {approx = true} : vector<16x256xf32> -> vector<16x256xf32>
    %25 = arith.mulf %23, %24 : vector<16x256xf32>
    %cst_14 = arith.constant 2.000000e+00 : f32
    %26 = vector.broadcast %cst_14 : f32 to vector<16x256xf32>
    %27 = arith.subf %26, %25 : vector<16x256xf32>
    %28 = arith.mulf %24, %27 : vector<16x256xf32>
    %cst_15 = arith.constant 1.06140542 : f32
    %29 = vector.broadcast %cst_15 : f32 to vector<16x256xf32>
    %30 = arith.mulf %28, %29 : vector<16x256xf32>
    %cst_16 = arith.constant -1.45315206 : f32
    %31 = vector.broadcast %cst_16 : f32 to vector<16x256xf32>
    %32 = arith.addf %31, %30 : vector<16x256xf32>
    %33 = arith.mulf %28, %32 : vector<16x256xf32>
    %cst_17 = arith.constant 1.42141378 : f32
    %34 = vector.broadcast %cst_17 : f32 to vector<16x256xf32>
    %35 = arith.addf %34, %33 : vector<16x256xf32>
    %36 = arith.mulf %28, %35 : vector<16x256xf32>
    %cst_18 = arith.constant -0.284496725 : f32
    %37 = vector.broadcast %cst_18 : f32 to vector<16x256xf32>
    %38 = arith.addf %37, %36 : vector<16x256xf32>
    %39 = arith.mulf %28, %38 : vector<16x256xf32>
    %cst_19 = arith.constant 0.254829586 : f32
    %40 = vector.broadcast %cst_19 : f32 to vector<16x256xf32>
    %41 = arith.addf %40, %39 : vector<16x256xf32>
    %42 = arith.mulf %28, %41 : vector<16x256xf32>
    %cst_20 = arith.constant 0.000000e+00 : f32
    %43 = vector.broadcast %cst_20 : f32 to vector<16x256xf32>
    %44 = arith.subf %43, %19 : vector<16x256xf32>
    %45 = arith.mulf %44, %19 : vector<16x256xf32>
    %46 = math.exp %45 : vector<16x256xf32>
    %47 = arith.mulf %42, %46 : vector<16x256xf32>
    %cst_21 = arith.constant 1.000000e+00 : f32
    %48 = vector.broadcast %cst_21 : f32 to vector<16x256xf32>
    %49 = arith.subf %48, %47 : vector<16x256xf32>
    %50 = arith.mulf %18, %49 : vector<16x256xf32>
    %cst_22 = arith.constant 1.000000e+00 : f32
    %51 = vector.broadcast %cst_22 : f32 to vector<16x256xf32>
    %52 = arith.addf %51, %50 : vector<16x256xf32>
    %53 = arith.mulf %11, %52 : vector<16x256xf32>
    %cst_23 = arith.constant dense<0.000000e+00> : vector<256xf32>
    %54 = vector.multi_reduction <add>, %53, %cst_23 [0] : vector<16x256xf32> to vector<256xf32>
    %55 = vector.shape_cast %54 : vector<256xf32> to vector<1x256xf32>
    %cst_24 = arith.constant dense<0xFF800000> : vector<256xf32>
    %56 = vector.multi_reduction <maximumf>, %53, %cst_24 [0] : vector<16x256xf32> to vector<256xf32>
    %57 = vector.shape_cast %56 : vector<256xf32> to vector<1x256xf32>
    %c16_i32 = arith.constant 16 : i32
    %58 = tpu.dynamic_rotate %55 by %c16_i32 dim 1 : vector<1x256xf32>, i32 -> vector<1x256xf32>
    %59 = arith.addf %55, %58 : vector<1x256xf32>
    %c32_i32 = arith.constant 32 : i32
    %60 = tpu.dynamic_rotate %59 by %c32_i32 dim 1 : vector<1x256xf32>, i32 -> vector<1x256xf32>
    %61 = arith.addf %59, %60 : vector<1x256xf32>
    %c64_i32 = arith.constant 64 : i32
    %62 = tpu.dynamic_rotate %61 by %c64_i32 dim 1 : vector<1x256xf32>, i32 -> vector<1x256xf32>
    %63 = arith.addf %61, %62 : vector<1x256xf32>
    %c128_i32 = arith.constant 128 : i32
    %64 = tpu.dynamic_rotate %63 by %c128_i32 dim 1 : vector<1x256xf32>, i32 -> vector<1x256xf32>
    %65 = arith.addf %63, %64 : vector<1x256xf32>
    %cst_25 = arith.constant 3.906250e-03 : f32
    %66 = vector.broadcast %cst_25 : f32 to vector<1x256xf32>
    %67 = arith.mulf %65, %66 : vector<1x256xf32>
    %c16_i32_26 = arith.constant 16 : i32
    %68 = tpu.dynamic_rotate %57 by %c16_i32_26 dim 1 : vector<1x256xf32>, i32 -> vector<1x256xf32>
    %69 = arith.maximumf %57, %68 : vector<1x256xf32>
    %c32_i32_27 = arith.constant 32 : i32
    %70 = tpu.dynamic_rotate %69 by %c32_i32_27 dim 1 : vector<1x256xf32>, i32 -> vector<1x256xf32>
    %71 = arith.maximumf %69, %70 : vector<1x256xf32>
    %c64_i32_28 = arith.constant 64 : i32
    %72 = tpu.dynamic_rotate %71 by %c64_i32_28 dim 1 : vector<1x256xf32>, i32 -> vector<1x256xf32>
    %73 = arith.maximumf %71, %72 : vector<1x256xf32>
    %c128_i32_29 = arith.constant 128 : i32
    %74 = tpu.dynamic_rotate %73 by %c128_i32_29 dim 1 : vector<1x256xf32>, i32 -> vector<1x256xf32>
    %75 = arith.maximumf %73, %74 : vector<1x256xf32>
    %76 = vector.shape_cast %67 : vector<1x256xf32> to vector<1x256xf32>
    %77 = vector.broadcast %76 : vector<1x256xf32> to vector<4x256xf32>
    %78 = vector.shape_cast %75 : vector<1x256xf32> to vector<1x256xf32>
    %79 = vector.broadcast %78 : vector<1x256xf32> to vector<4x256xf32>
    %80 = tpu.concatenate %77, %79 in 0 : vector<4x256xf32>, vector<4x256xf32> -> vector<8x256xf32>
    %c0_30 = arith.constant 0 : index
    %c0_31 = arith.constant 0 : index
    %81 = vector.load %arg4[%c0_30, %c0_31] : memref<256x64xf32, #tpu.memory_space<vmem>>, vector<256x64xf32>
    %cst_32 = arith.constant dense<0.000000e+00> : vector<8x64xf32>
    %82 = tpu.matmul %80, %81, %cst_32 {dimension_numbers = #tpu.dot_dimension_numbers<[1], [0], [0], [1], [0, 0, 1, 1], [], []>} : vector<8x256xf32>, vector<256x64xf32>, vector<8x64xf32> -> vector<8x64xf32>
    %c0_33 = arith.constant 0 : index
    %c0_34 = arith.constant 0 : index
    %83 = vector.load %arg5[%c0_33, %c0_34] : memref<1x64xf32, #tpu.memory_space<vmem>>, vector<1x64xf32>
    %84 = vector.broadcast %83 : vector<1x64xf32> to vector<8x64xf32>
    %85 = arith.addf %82, %84 : vector<8x64xf32>
    %cst_35 = arith.constant 0.000000e+00 : f32
    %86 = vector.broadcast %cst_35 : f32 to vector<8x64xf32>
    %87 = arith.maximumf %85, %86 : vector<8x64xf32>
    %c0_36 = arith.constant 0 : index
    %c0_37 = arith.constant 0 : index
    %88 = vector.load %arg6[%c0_36, %c0_37] : memref<64x256xf32, #tpu.memory_space<vmem>>, vector<64x256xf32>
    %cst_38 = arith.constant dense<0.000000e+00> : vector<8x256xf32>
    %89 = tpu.matmul %87, %88, %cst_38 {dimension_numbers = #tpu.dot_dimension_numbers<[1], [0], [0], [1], [0, 0, 1, 1], [], []>} : vector<8x64xf32>, vector<64x256xf32>, vector<8x256xf32> -> vector<8x256xf32>
    %c0_39 = arith.constant 0 : index
    %c0_40 = arith.constant 0 : index
    %90 = vector.load %arg7[%c0_39, %c0_40] : memref<1x256xf32, #tpu.memory_space<vmem>>, vector<1x256xf32>
    %91 = vector.broadcast %90 : vector<1x256xf32> to vector<8x256xf32>
    %92 = arith.addf %89, %91 : vector<8x256xf32>
    %93 = arith.negf %92 : vector<8x256xf32>
    %94 = math.exp %93 : vector<8x256xf32>
    %cst_41 = arith.constant 1.000000e+00 : f32
    %95 = vector.broadcast %cst_41 : f32 to vector<8x256xf32>
    %96 = arith.addf %95, %94 : vector<8x256xf32>
    %97 = arith.divf %95, %96 : vector<8x256xf32>
    %98 = vector.extract_strided_slice %97 {offsets = [0, 0], sizes = [1, 256], strides = [1, 1]} : vector<8x256xf32> to vector<1x256xf32>
    %99 = vector.extract_strided_slice %97 {offsets = [4, 0], sizes = [1, 256], strides = [1, 1]} : vector<8x256xf32> to vector<1x256xf32>
    %100 = arith.addf %98, %99 : vector<1x256xf32>
    %101 = vector.broadcast %100 : vector<1x256xf32> to vector<16x256xf32>
    %102 = arith.mulf %53, %101 : vector<16x256xf32>
    %c0_42 = arith.constant 0 : index
    %c0_43 = arith.constant 0 : index
    %103 = vector.load %arg22[%c0_42, %c0_43] : memref<16x256xf32, #tpu.memory_space<vmem>>, vector<16x256xf32>
    tpu.vector_store %arg22[%c0_42, %c0_43], %102 {strides = array<i32>} : memref<16x256xf32, #tpu.memory_space<vmem>>, vector<16x256xf32>,
    %c16 = arith.constant 16 : index
    %c256 = arith.constant 256 : index
    %104 = vector.load %arg21[%c16, %c256] : memref<48x768xf32, #tpu.memory_space<vmem>>, vector<16x256xf32>
    tpu.vector_store %arg21[%c16, %c256], %102 {strides = array<i32>} : memref<48x768xf32, #tpu.memory_space<vmem>>, vector<16x256xf32>,
    %c8 = arith.constant 8 : index
    %c128 = arith.constant 128 : index
    %105 = vector.load %arg21[%c8, %c128] : memref<48x768xf32, #tpu.memory_space<vmem>>, vector<32x512xf32>
    %c0_44 = arith.constant 0 : index
    %c0_45 = arith.constant 0 : index
    %106 = vector.load %arg9[%c0_44, %c0_45] : memref<1x256xf32, #tpu.memory_space<vmem>>, vector<1x256xf32>
    %107 = vector.extract_strided_slice %105 {offsets = [6, 96], sizes = [16, 256], strides = [1, 1]} : vector<32x512xf32> to vector<16x256xf32>
    %c0_46 = arith.constant 0 : index
    %c0_47 = arith.constant 0 : index
    %108 = vector.load %arg8[%c0_46, %c0_47] : memref<25x256xf32, #tpu.memory_space<vmem>>, vector<1x256xf32>
    %109 = vector.broadcast %108 : vector<1x256xf32> to vector<16x256xf32>
    %110 = arith.mulf %107, %109 : vector<16x256xf32>
    %111 = vector.broadcast %106 : vector<1x256xf32> to vector<16x256xf32>
    %112 = arith.addf %111, %110 : vector<16x256xf32>
    %113 = vector.extract_strided_slice %105 {offsets = [6, 112], sizes = [16, 256], strides = [1, 1]} : vector<32x512xf32> to vector<16x256xf32>
    %c1 = arith.constant 1 : index
    %c0_48 = arith.constant 0 : index
    %114 = vector.load %arg8[%c1, %c0_48] : memref<25x256xf32, #tpu.memory_space<vmem>>, vector<1x256xf32>
    %115 = vector.broadcast %114 : vector<1x256xf32> to vector<16x256xf32>
    %116 = arith.mulf %113, %115 : vector<16x256xf32>
    %117 = arith.addf %112, %116 : vector<16x256xf32>
    %118 = vector.extract_strided_slice %105 {offsets = [6, 128], sizes = [16, 256], strides = [1, 1]} : vector<32x512xf32> to vector<16x256xf32>
    %c2 = arith.constant 2 : index
    %c0_49 = arith.constant 0 : index
    %119 = vector.load %arg8[%c2, %c0_49] : memref<25x256xf32, #tpu.memory_space<vmem>>, vector<1x256xf32>
    %120 = vector.broadcast %119 : vector<1x256xf32> to vector<16x256xf32>
    %121 = arith.mulf %118, %120 : vector<16x256xf32>
    %122 = arith.addf %117, %121 : vector<16x256xf32>
    %123 = vector.extract_strided_slice %105 {offsets = [6, 144], sizes = [16, 256], strides = [1, 1]} : vector<32x512xf32> to vector<16x256xf32>
    %c3 = arith.constant 3 : index
    %c0_50 = arith.constant 0 : index
    %124 = vector.load %arg8[%c3, %c0_50] : memref<25x256xf32, #tpu.memory_space<vmem>>, vector<1x256xf32>
    %125 = vector.broadcast %124 : vector<1x256xf32> to vector<16x256xf32>
    %126 = arith.mulf %123, %125 : vector<16x256xf32>
    %127 = arith.addf %122, %126 : vector<16x256xf32>
    %128 = vector.extract_strided_slice %105 {offsets = [6, 160], sizes = [16, 256], strides = [1, 1]} : vector<32x512xf32> to vector<16x256xf32>
    %c4 = arith.constant 4 : index
    %c0_51 = arith.constant 0 : index
    %129 = vector.load %arg8[%c4, %c0_51] : memref<25x256xf32, #tpu.memory_space<vmem>>, vector<1x256xf32>
    %130 = vector.broadcast %129 : vector<1x256xf32> to vector<16x256xf32>
    %131 = arith.mulf %128, %130 : vector<16x256xf32>
    %132 = arith.addf %127, %131 : vector<16x256xf32>
    %133 = vector.extract_strided_slice %105 {offsets = [7, 96], sizes = [16, 256], strides = [1, 1]} : vector<32x512xf32> to vector<16x256xf32>
    %c5 = arith.constant 5 : index
    %c0_52 = arith.constant 0 : index
    %134 = vector.load %arg8[%c5, %c0_52] : memref<25x256xf32, #tpu.memory_space<vmem>>, vector<1x256xf32>
    %135 = vector.broadcast %134 : vector<1x256xf32> to vector<16x256xf32>
    %136 = arith.mulf %133, %135 : vector<16x256xf32>
    %137 = arith.addf %132, %136 : vector<16x256xf32>
    %138 = vector.extract_strided_slice %105 {offsets = [7, 112], sizes = [16, 256], strides = [1, 1]} : vector<32x512xf32> to vector<16x256xf32>
    %c6 = arith.constant 6 : index
    %c0_53 = arith.constant 0 : index
    %139 = vector.load %arg8[%c6, %c0_53] : memref<25x256xf32, #tpu.memory_space<vmem>>, vector<1x256xf32>
    %140 = vector.broadcast %139 : vector<1x256xf32> to vector<16x256xf32>
    %141 = arith.mulf %138, %140 : vector<16x256xf32>
    %142 = arith.addf %137, %141 : vector<16x256xf32>
    %143 = vector.extract_strided_slice %105 {offsets = [7, 128], sizes = [16, 256], strides = [1, 1]} : vector<32x512xf32> to vector<16x256xf32>
    %c7 = arith.constant 7 : index
    %c0_54 = arith.constant 0 : index
    %144 = vector.load %arg8[%c7, %c0_54] : memref<25x256xf32, #tpu.memory_space<vmem>>, vector<1x256xf32>
    %145 = vector.broadcast %144 : vector<1x256xf32> to vector<16x256xf32>
    %146 = arith.mulf %143, %145 : vector<16x256xf32>
    %147 = arith.addf %142, %146 : vector<16x256xf32>
    %148 = vector.extract_strided_slice %105 {offsets = [7, 144], sizes = [16, 256], strides = [1, 1]} : vector<32x512xf32> to vector<16x256xf32>
    %c8_55 = arith.constant 8 : index
    %c0_56 = arith.constant 0 : index
    %149 = vector.load %arg8[%c8_55, %c0_56] : memref<25x256xf32, #tpu.memory_space<vmem>>, vector<1x256xf32>
    %150 = vector.broadcast %149 : vector<1x256xf32> to vector<16x256xf32>
    %151 = arith.mulf %148, %150 : vector<16x256xf32>
    %152 = arith.addf %147, %151 : vector<16x256xf32>
    %153 = vector.extract_strided_slice %105 {offsets = [7, 160], sizes = [16, 256], strides = [1, 1]} : vector<32x512xf32> to vector<16x256xf32>
    %c9 = arith.constant 9 : index
    %c0_57 = arith.constant 0 : index
    %154 = vector.load %arg8[%c9, %c0_57] : memref<25x256xf32, #tpu.memory_space<vmem>>, vector<1x256xf32>
    %155 = vector.broadcast %154 : vector<1x256xf32> to vector<16x256xf32>
    %156 = arith.mulf %153, %155 : vector<16x256xf32>
    %157 = arith.addf %152, %156 : vector<16x256xf32>
    %158 = vector.extract_strided_slice %105 {offsets = [8, 96], sizes = [16, 256], strides = [1, 1]} : vector<32x512xf32> to vector<16x256xf32>
    %c10 = arith.constant 10 : index
    %c0_58 = arith.constant 0 : index
    %159 = vector.load %arg8[%c10, %c0_58] : memref<25x256xf32, #tpu.memory_space<vmem>>, vector<1x256xf32>
    %160 = vector.broadcast %159 : vector<1x256xf32> to vector<16x256xf32>
    %161 = arith.mulf %158, %160 : vector<16x256xf32>
    %162 = arith.addf %157, %161 : vector<16x256xf32>
    %163 = vector.extract_strided_slice %105 {offsets = [8, 112], sizes = [16, 256], strides = [1, 1]} : vector<32x512xf32> to vector<16x256xf32>
    %c11 = arith.constant 11 : index
    %c0_59 = arith.constant 0 : index
    %164 = vector.load %arg8[%c11, %c0_59] : memref<25x256xf32, #tpu.memory_space<vmem>>, vector<1x256xf32>
    %165 = vector.broadcast %164 : vector<1x256xf32> to vector<16x256xf32>
    %166 = arith.mulf %163, %165 : vector<16x256xf32>
    %167 = arith.addf %162, %166 : vector<16x256xf32>
    %168 = vector.extract_strided_slice %105 {offsets = [8, 128], sizes = [16, 256], strides = [1, 1]} : vector<32x512xf32> to vector<16x256xf32>
    %c12 = arith.constant 12 : index
    %c0_60 = arith.constant 0 : index
    %169 = vector.load %arg8[%c12, %c0_60] : memref<25x256xf32, #tpu.memory_space<vmem>>, vector<1x256xf32>
    %170 = vector.broadcast %169 : vector<1x256xf32> to vector<16x256xf32>
    %171 = arith.mulf %168, %170 : vector<16x256xf32>
    %172 = arith.addf %167, %171 : vector<16x256xf32>
    %173 = vector.extract_strided_slice %105 {offsets = [8, 144], sizes = [16, 256], strides = [1, 1]} : vector<32x512xf32> to vector<16x256xf32>
    %c13 = arith.constant 13 : index
    %c0_61 = arith.constant 0 : index
    %174 = vector.load %arg8[%c13, %c0_61] : memref<25x256xf32, #tpu.memory_space<vmem>>, vector<1x256xf32>
    %175 = vector.broadcast %174 : vector<1x256xf32> to vector<16x256xf32>
    %176 = arith.mulf %173, %175 : vector<16x256xf32>
    %177 = arith.addf %172, %176 : vector<16x256xf32>
    %178 = vector.extract_strided_slice %105 {offsets = [8, 160], sizes = [16, 256], strides = [1, 1]} : vector<32x512xf32> to vector<16x256xf32>
    %c14 = arith.constant 14 : index
    %c0_62 = arith.constant 0 : index
    %179 = vector.load %arg8[%c14, %c0_62] : memref<25x256xf32, #tpu.memory_space<vmem>>, vector<1x256xf32>
    %180 = vector.broadcast %179 : vector<1x256xf32> to vector<16x256xf32>
    %181 = arith.mulf %178, %180 : vector<16x256xf32>
    %182 = arith.addf %177, %181 : vector<16x256xf32>
    %183 = vector.extract_strided_slice %105 {offsets = [9, 96], sizes = [16, 256], strides = [1, 1]} : vector<32x512xf32> to vector<16x256xf32>
    %c15 = arith.constant 15 : index
    %c0_63 = arith.constant 0 : index
    %184 = vector.load %arg8[%c15, %c0_63] : memref<25x256xf32, #tpu.memory_space<vmem>>, vector<1x256xf32>
    %185 = vector.broadcast %184 : vector<1x256xf32> to vector<16x256xf32>
    %186 = arith.mulf %183, %185 : vector<16x256xf32>
    %187 = arith.addf %182, %186 : vector<16x256xf32>
    %188 = vector.extract_strided_slice %105 {offsets = [9, 112], sizes = [16, 256], strides = [1, 1]} : vector<32x512xf32> to vector<16x256xf32>
    %c16_64 = arith.constant 16 : index
    %c0_65 = arith.constant 0 : index
    %189 = vector.load %arg8[%c16_64, %c0_65] : memref<25x256xf32, #tpu.memory_space<vmem>>, vector<1x256xf32>
    %190 = vector.broadcast %189 : vector<1x256xf32> to vector<16x256xf32>
    %191 = arith.mulf %188, %190 : vector<16x256xf32>
    %192 = arith.addf %187, %191 : vector<16x256xf32>
    %193 = vector.extract_strided_slice %105 {offsets = [9, 128], sizes = [16, 256], strides = [1, 1]} : vector<32x512xf32> to vector<16x256xf32>
    %c17 = arith.constant 17 : index
    %c0_66 = arith.constant 0 : index
    %194 = vector.load %arg8[%c17, %c0_66] : memref<25x256xf32, #tpu.memory_space<vmem>>, vector<1x256xf32>
    %195 = vector.broadcast %194 : vector<1x256xf32> to vector<16x256xf32>
    %196 = arith.mulf %193, %195 : vector<16x256xf32>
    %197 = arith.addf %192, %196 : vector<16x256xf32>
    %198 = vector.extract_strided_slice %105 {offsets = [9, 144], sizes = [16, 256], strides = [1, 1]} : vector<32x512xf32> to vector<16x256xf32>
    %c18 = arith.constant 18 : index
    %c0_67 = arith.constant 0 : index
    %199 = vector.load %arg8[%c18, %c0_67] : memref<25x256xf32, #tpu.memory_space<vmem>>, vector<1x256xf32>
    %200 = vector.broadcast %199 : vector<1x256xf32> to vector<16x256xf32>
    %201 = arith.mulf %198, %200 : vector<16x256xf32>
    %202 = arith.addf %197, %201 : vector<16x256xf32>
    %203 = vector.extract_strided_slice %105 {offsets = [9, 160], sizes = [16, 256], strides = [1, 1]} : vector<32x512xf32> to vector<16x256xf32>
    %c19 = arith.constant 19 : index
    %c0_68 = arith.constant 0 : index
    %204 = vector.load %arg8[%c19, %c0_68] : memref<25x256xf32, #tpu.memory_space<vmem>>, vector<1x256xf32>
    %205 = vector.broadcast %204 : vector<1x256xf32> to vector<16x256xf32>
    %206 = arith.mulf %203, %205 : vector<16x256xf32>
    %207 = arith.addf %202, %206 : vector<16x256xf32>
    %208 = vector.extract_strided_slice %105 {offsets = [10, 96], sizes = [16, 256], strides = [1, 1]} : vector<32x512xf32> to vector<16x256xf32>
    %c20 = arith.constant 20 : index
    %c0_69 = arith.constant 0 : index
    %209 = vector.load %arg8[%c20, %c0_69] : memref<25x256xf32, #tpu.memory_space<vmem>>, vector<1x256xf32>
    %210 = vector.broadcast %209 : vector<1x256xf32> to vector<16x256xf32>
    %211 = arith.mulf %208, %210 : vector<16x256xf32>
    %212 = arith.addf %207, %211 : vector<16x256xf32>
    %213 = vector.extract_strided_slice %105 {offsets = [10, 112], sizes = [16, 256], strides = [1, 1]} : vector<32x512xf32> to vector<16x256xf32>
    %c21 = arith.constant 21 : index
    %c0_70 = arith.constant 0 : index
    %214 = vector.load %arg8[%c21, %c0_70] : memref<25x256xf32, #tpu.memory_space<vmem>>, vector<1x256xf32>
    %215 = vector.broadcast %214 : vector<1x256xf32> to vector<16x256xf32>
    %216 = arith.mulf %213, %215 : vector<16x256xf32>
    %217 = arith.addf %212, %216 : vector<16x256xf32>
    %218 = vector.extract_strided_slice %105 {offsets = [10, 128], sizes = [16, 256], strides = [1, 1]} : vector<32x512xf32> to vector<16x256xf32>
    %c22 = arith.constant 22 : index
    %c0_71 = arith.constant 0 : index
    %219 = vector.load %arg8[%c22, %c0_71] : memref<25x256xf32, #tpu.memory_space<vmem>>, vector<1x256xf32>
    %220 = vector.broadcast %219 : vector<1x256xf32> to vector<16x256xf32>
    %221 = arith.mulf %218, %220 : vector<16x256xf32>
    %222 = arith.addf %217, %221 : vector<16x256xf32>
    %223 = vector.extract_strided_slice %105 {offsets = [10, 144], sizes = [16, 256], strides = [1, 1]} : vector<32x512xf32> to vector<16x256xf32>
    %c23 = arith.constant 23 : index
    %c0_72 = arith.constant 0 : index
    %224 = vector.load %arg8[%c23, %c0_72] : memref<25x256xf32, #tpu.memory_space<vmem>>, vector<1x256xf32>
    %225 = vector.broadcast %224 : vector<1x256xf32> to vector<16x256xf32>
    %226 = arith.mulf %223, %225 : vector<16x256xf32>
    %227 = arith.addf %222, %226 : vector<16x256xf32>
    %228 = vector.extract_strided_slice %105 {offsets = [10, 160], sizes = [16, 256], strides = [1, 1]} : vector<32x512xf32> to vector<16x256xf32>
    %c24 = arith.constant 24 : index
    %c0_73 = arith.constant 0 : index
    %229 = vector.load %arg8[%c24, %c0_73] : memref<25x256xf32, #tpu.memory_space<vmem>>, vector<1x256xf32>
    %230 = vector.broadcast %229 : vector<1x256xf32> to vector<16x256xf32>
    %231 = arith.mulf %228, %230 : vector<16x256xf32>
    %232 = arith.addf %227, %231 : vector<16x256xf32>
    %c16_74 = arith.constant 16 : index
    %c256_75 = arith.constant 256 : index
    %233 = vector.load %arg21[%c16_74, %c256_75] : memref<48x768xf32, #tpu.memory_space<vmem>>, vector<16x256xf32>
    tpu.vector_store %arg21[%c16_74, %c256_75], %232 {strides = array<i32>} : memref<48x768xf32, #tpu.memory_space<vmem>>, vector<16x256xf32>,
    %c0_76 = arith.constant 0 : index
    %c0_77 = arith.constant 0 : index
    %234 = vector.load %arg19[%c0_76, %c0_77] : memref<1x256xf32, #tpu.memory_space<vmem>>, vector<1x256xf32>
    %235 = vector.broadcast %234 : vector<1x256xf32> to vector<16x256xf32>
    %236 = arith.addf %232, %235 : vector<16x256xf32>
    %c16_78 = arith.constant 16 : index
    %c0_79 = arith.constant 0 : index
    %237 = vector.load %arg21[%c16_78, %c0_79] : memref<48x768xf32, #tpu.memory_space<vmem>>, vector<16x768xf32>
    %c0_80 = arith.constant 0 : index
    %c0_81 = arith.constant 0 : index
    %238 = vector.load %arg11[%c0_80, %c0_81] : memref<1x256xf32, #tpu.memory_space<vmem>>, vector<1x256xf32>
    %c0_82 = arith.constant 0 : index
    %c0_83 = arith.constant 0 : index
    %239 = vector.load %arg13[%c0_82, %c0_83] : memref<1x256xf32, #tpu.memory_space<vmem>>, vector<1x256xf32>
    %c0_84 = arith.constant 0 : index
    %c0_85 = arith.constant 0 : index
    %240 = vector.load %arg15[%c0_84, %c0_85] : memref<1x256xf32, #tpu.memory_space<vmem>>, vector<1x256xf32>
    %241 = vector.extract_strided_slice %237 {offsets = [0, 96], sizes = [16, 256], strides = [1, 1]} : vector<16x768xf32> to vector<16x256xf32>
    %c0_86 = arith.constant 0 : index
    %c0_87 = arith.constant 0 : index
    %242 = vector.load %arg14[%c0_86, %c0_87] : memref<21x256xf32, #tpu.memory_space<vmem>>, vector<1x256xf32>
    %243 = vector.broadcast %242 : vector<1x256xf32> to vector<16x256xf32>
    %244 = arith.mulf %241, %243 : vector<16x256xf32>
    %245 = vector.broadcast %240 : vector<1x256xf32> to vector<16x256xf32>
    %246 = arith.addf %245, %244 : vector<16x256xf32>
    %247 = vector.extract_strided_slice %237 {offsets = [0, 112], sizes = [16, 256], strides = [1, 1]} : vector<16x768xf32> to vector<16x256xf32>
    %c1_88 = arith.constant 1 : index
    %c0_89 = arith.constant 0 : index
    %248 = vector.load %arg14[%c1_88, %c0_89] : memref<21x256xf32, #tpu.memory_space<vmem>>, vector<1x256xf32>
    %249 = vector.broadcast %248 : vector<1x256xf32> to vector<16x256xf32>
    %250 = arith.mulf %247, %249 : vector<16x256xf32>
    %251 = arith.addf %246, %250 : vector<16x256xf32>
    %252 = vector.extract_strided_slice %237 {offsets = [0, 128], sizes = [16, 256], strides = [1, 1]} : vector<16x768xf32> to vector<16x256xf32>
    %c2_90 = arith.constant 2 : index
    %c0_91 = arith.constant 0 : index
    %253 = vector.load %arg14[%c2_90, %c0_91] : memref<21x256xf32, #tpu.memory_space<vmem>>, vector<1x256xf32>
    %254 = vector.broadcast %253 : vector<1x256xf32> to vector<16x256xf32>
    %255 = arith.mulf %252, %254 : vector<16x256xf32>
    %256 = arith.addf %251, %255 : vector<16x256xf32>
    %257 = vector.extract_strided_slice %237 {offsets = [0, 144], sizes = [16, 256], strides = [1, 1]} : vector<16x768xf32> to vector<16x256xf32>
    %c3_92 = arith.constant 3 : index
    %c0_93 = arith.constant 0 : index
    %258 = vector.load %arg14[%c3_92, %c0_93] : memref<21x256xf32, #tpu.memory_space<vmem>>, vector<1x256xf32>
    %259 = vector.broadcast %258 : vector<1x256xf32> to vector<16x256xf32>
    %260 = arith.mulf %257, %259 : vector<16x256xf32>
    %261 = arith.addf %256, %260 : vector<16x256xf32>
    %262 = vector.extract_strided_slice %237 {offsets = [0, 160], sizes = [16, 256], strides = [1, 1]} : vector<16x768xf32> to vector<16x256xf32>
    %c4_94 = arith.constant 4 : index
    %c0_95 = arith.constant 0 : index
    %263 = vector.load %arg14[%c4_94, %c0_95] : memref<21x256xf32, #tpu.memory_space<vmem>>, vector<1x256xf32>
    %264 = vector.broadcast %263 : vector<1x256xf32> to vector<16x256xf32>
    %265 = arith.mulf %262, %264 : vector<16x256xf32>
    %266 = arith.addf %261, %265 : vector<16x256xf32>
    %267 = vector.extract_strided_slice %237 {offsets = [0, 176], sizes = [16, 256], strides = [1, 1]} : vector<16x768xf32> to vector<16x256xf32>
    %c0_96 = arith.constant 0 : index
    %c0_97 = arith.constant 0 : index
    %268 = vector.load %arg12[%c0_96, %c0_97] : memref<11x256xf32, #tpu.memory_space<vmem>>, vector<1x256xf32>
    %269 = vector.broadcast %268 : vector<1x256xf32> to vector<16x256xf32>
    %270 = arith.mulf %267, %269 : vector<16x256xf32>
    %271 = vector.broadcast %239 : vector<1x256xf32> to vector<16x256xf32>
    %272 = arith.addf %271, %270 : vector<16x256xf32>
    %c5_98 = arith.constant 5 : index
    %c0_99 = arith.constant 0 : index
    %273 = vector.load %arg14[%c5_98, %c0_99] : memref<21x256xf32, #tpu.memory_space<vmem>>, vector<1x256xf32>
    %274 = vector.broadcast %273 : vector<1x256xf32> to vector<16x256xf32>
    %275 = arith.mulf %267, %274 : vector<16x256xf32>
    %276 = arith.addf %266, %275 : vector<16x256xf32>
    %277 = vector.extract_strided_slice %237 {offsets = [0, 192], sizes = [16, 256], strides = [1, 1]} : vector<16x768xf32> to vector<16x256xf32>
    %c1_100 = arith.constant 1 : index
    %c0_101 = arith.constant 0 : index
    %278 = vector.load %arg12[%c1_100, %c0_101] : memref<11x256xf32, #tpu.memory_space<vmem>>, vector<1x256xf32>
    %279 = vector.broadcast %278 : vector<1x256xf32> to vector<16x256xf32>
    %280 = arith.mulf %277, %279 : vector<16x256xf32>
    %281 = arith.addf %272, %280 : vector<16x256xf32>
    %c6_102 = arith.constant 6 : index
    %c0_103 = arith.constant 0 : index
    %282 = vector.load %arg14[%c6_102, %c0_103] : memref<21x256xf32, #tpu.memory_space<vmem>>, vector<1x256xf32>
    %283 = vector.broadcast %282 : vector<1x256xf32> to vector<16x256xf32>
    %284 = arith.mulf %277, %283 : vector<16x256xf32>
    %285 = arith.addf %276, %284 : vector<16x256xf32>
    %286 = vector.extract_strided_slice %237 {offsets = [0, 208], sizes = [16, 256], strides = [1, 1]} : vector<16x768xf32> to vector<16x256xf32>
    %c0_104 = arith.constant 0 : index
    %c0_105 = arith.constant 0 : index
    %287 = vector.load %arg10[%c0_104, %c0_105] : memref<7x256xf32, #tpu.memory_space<vmem>>, vector<1x256xf32>
    %288 = vector.broadcast %287 : vector<1x256xf32> to vector<16x256xf32>
    %289 = arith.mulf %286, %288 : vector<16x256xf32>
    %290 = vector.broadcast %238 : vector<1x256xf32> to vector<16x256xf32>
    %291 = arith.addf %290, %289 : vector<16x256xf32>
    %c2_106 = arith.constant 2 : index
    %c0_107 = arith.constant 0 : index
    %292 = vector.load %arg12[%c2_106, %c0_107] : memref<11x256xf32, #tpu.memory_space<vmem>>, vector<1x256xf32>
    %293 = vector.broadcast %292 : vector<1x256xf32> to vector<16x256xf32>
    %294 = arith.mulf %286, %293 : vector<16x256xf32>
    %295 = arith.addf %281, %294 : vector<16x256xf32>
    %c7_108 = arith.constant 7 : index
    %c0_109 = arith.constant 0 : index
    %296 = vector.load %arg14[%c7_108, %c0_109] : memref<21x256xf32, #tpu.memory_space<vmem>>, vector<1x256xf32>
    %297 = vector.broadcast %296 : vector<1x256xf32> to vector<16x256xf32>
    %298 = arith.mulf %286, %297 : vector<16x256xf32>
    %299 = arith.addf %285, %298 : vector<16x256xf32>
    %300 = vector.extract_strided_slice %237 {offsets = [0, 224], sizes = [16, 256], strides = [1, 1]} : vector<16x768xf32> to vector<16x256xf32>
    %c1_110 = arith.constant 1 : index
    %c0_111 = arith.constant 0 : index
    %301 = vector.load %arg10[%c1_110, %c0_111] : memref<7x256xf32, #tpu.memory_space<vmem>>, vector<1x256xf32>
    %302 = vector.broadcast %301 : vector<1x256xf32> to vector<16x256xf32>
    %303 = arith.mulf %300, %302 : vector<16x256xf32>
    %304 = arith.addf %291, %303 : vector<16x256xf32>
    %c3_112 = arith.constant 3 : index
    %c0_113 = arith.constant 0 : index
    %305 = vector.load %arg12[%c3_112, %c0_113] : memref<11x256xf32, #tpu.memory_space<vmem>>, vector<1x256xf32>
    %306 = vector.broadcast %305 : vector<1x256xf32> to vector<16x256xf32>
    %307 = arith.mulf %300, %306 : vector<16x256xf32>
    %308 = arith.addf %295, %307 : vector<16x256xf32>
    %c8_114 = arith.constant 8 : index
    %c0_115 = arith.constant 0 : index
    %309 = vector.load %arg14[%c8_114, %c0_115] : memref<21x256xf32, #tpu.memory_space<vmem>>, vector<1x256xf32>
    %310 = vector.broadcast %309 : vector<1x256xf32> to vector<16x256xf32>
    %311 = arith.mulf %300, %310 : vector<16x256xf32>
    %312 = arith.addf %299, %311 : vector<16x256xf32>
    %313 = vector.extract_strided_slice %237 {offsets = [0, 240], sizes = [16, 256], strides = [1, 1]} : vector<16x768xf32> to vector<16x256xf32>
    %c2_116 = arith.constant 2 : index
    %c0_117 = arith.constant 0 : index
    %314 = vector.load %arg10[%c2_116, %c0_117] : memref<7x256xf32, #tpu.memory_space<vmem>>, vector<1x256xf32>
    %315 = vector.broadcast %314 : vector<1x256xf32> to vector<16x256xf32>
    %316 = arith.mulf %313, %315 : vector<16x256xf32>
    %317 = arith.addf %304, %316 : vector<16x256xf32>
    %c4_118 = arith.constant 4 : index
    %c0_119 = arith.constant 0 : index
    %318 = vector.load %arg12[%c4_118, %c0_119] : memref<11x256xf32, #tpu.memory_space<vmem>>, vector<1x256xf32>
    %319 = vector.broadcast %318 : vector<1x256xf32> to vector<16x256xf32>
    %320 = arith.mulf %313, %319 : vector<16x256xf32>
    %321 = arith.addf %308, %320 : vector<16x256xf32>
    %c9_120 = arith.constant 9 : index
    %c0_121 = arith.constant 0 : index
    %322 = vector.load %arg14[%c9_120, %c0_121] : memref<21x256xf32, #tpu.memory_space<vmem>>, vector<1x256xf32>
    %323 = vector.broadcast %322 : vector<1x256xf32> to vector<16x256xf32>
    %324 = arith.mulf %313, %323 : vector<16x256xf32>
    %325 = arith.addf %312, %324 : vector<16x256xf32>
    %326 = vector.extract_strided_slice %237 {offsets = [0, 256], sizes = [16, 256], strides = [1, 1]} : vector<16x768xf32> to vector<16x256xf32>
    %c3_122 = arith.constant 3 : index
    %c0_123 = arith.constant 0 : index
    %327 = vector.load %arg10[%c3_122, %c0_123] : memref<7x256xf32, #tpu.memory_space<vmem>>, vector<1x256xf32>
    %328 = vector.broadcast %327 : vector<1x256xf32> to vector<16x256xf32>
    %329 = arith.mulf %326, %328 : vector<16x256xf32>
    %330 = arith.addf %317, %329 : vector<16x256xf32>
    %c5_124 = arith.constant 5 : index
    %c0_125 = arith.constant 0 : index
    %331 = vector.load %arg12[%c5_124, %c0_125] : memref<11x256xf32, #tpu.memory_space<vmem>>, vector<1x256xf32>
    %332 = vector.broadcast %331 : vector<1x256xf32> to vector<16x256xf32>
    %333 = arith.mulf %326, %332 : vector<16x256xf32>
    %334 = arith.addf %321, %333 : vector<16x256xf32>
    %c10_126 = arith.constant 10 : index
    %c0_127 = arith.constant 0 : index
    %335 = vector.load %arg14[%c10_126, %c0_127] : memref<21x256xf32, #tpu.memory_space<vmem>>, vector<1x256xf32>
    %336 = vector.broadcast %335 : vector<1x256xf32> to vector<16x256xf32>
    %337 = arith.mulf %326, %336 : vector<16x256xf32>
    %338 = arith.addf %325, %337 : vector<16x256xf32>
    %339 = vector.extract_strided_slice %237 {offsets = [0, 272], sizes = [16, 256], strides = [1, 1]} : vector<16x768xf32> to vector<16x256xf32>
    %c4_128 = arith.constant 4 : index
    %c0_129 = arith.constant 0 : index
    %340 = vector.load %arg10[%c4_128, %c0_129] : memref<7x256xf32, #tpu.memory_space<vmem>>, vector<1x256xf32>
    %341 = vector.broadcast %340 : vector<1x256xf32> to vector<16x256xf32>
    %342 = arith.mulf %339, %341 : vector<16x256xf32>
    %343 = arith.addf %330, %342 : vector<16x256xf32>
    %c6_130 = arith.constant 6 : index
    %c0_131 = arith.constant 0 : index
    %344 = vector.load %arg12[%c6_130, %c0_131] : memref<11x256xf32, #tpu.memory_space<vmem>>, vector<1x256xf32>
    %345 = vector.broadcast %344 : vector<1x256xf32> to vector<16x256xf32>
    %346 = arith.mulf %339, %345 : vector<16x256xf32>
    %347 = arith.addf %334, %346 : vector<16x256xf32>
    %c11_132 = arith.constant 11 : index
    %c0_133 = arith.constant 0 : index
    %348 = vector.load %arg14[%c11_132, %c0_133] : memref<21x256xf32, #tpu.memory_space<vmem>>, vector<1x256xf32>
    %349 = vector.broadcast %348 : vector<1x256xf32> to vector<16x256xf32>
    %350 = arith.mulf %339, %349 : vector<16x256xf32>
    %351 = arith.addf %338, %350 : vector<16x256xf32>
    %352 = vector.extract_strided_slice %237 {offsets = [0, 288], sizes = [16, 256], strides = [1, 1]} : vector<16x768xf32> to vector<16x256xf32>
    %c5_134 = arith.constant 5 : index
    %c0_135 = arith.constant 0 : index
    %353 = vector.load %arg10[%c5_134, %c0_135] : memref<7x256xf32, #tpu.memory_space<vmem>>, vector<1x256xf32>
    %354 = vector.broadcast %353 : vector<1x256xf32> to vector<16x256xf32>
    %355 = arith.mulf %352, %354 : vector<16x256xf32>
    %356 = arith.addf %343, %355 : vector<16x256xf32>
    %c7_136 = arith.constant 7 : index
    %c0_137 = arith.constant 0 : index
    %357 = vector.load %arg12[%c7_136, %c0_137] : memref<11x256xf32, #tpu.memory_space<vmem>>, vector<1x256xf32>
    %358 = vector.broadcast %357 : vector<1x256xf32> to vector<16x256xf32>
    %359 = arith.mulf %352, %358 : vector<16x256xf32>
    %360 = arith.addf %347, %359 : vector<16x256xf32>
    %c12_138 = arith.constant 12 : index
    %c0_139 = arith.constant 0 : index
    %361 = vector.load %arg14[%c12_138, %c0_139] : memref<21x256xf32, #tpu.memory_space<vmem>>, vector<1x256xf32>
    %362 = vector.broadcast %361 : vector<1x256xf32> to vector<16x256xf32>
    %363 = arith.mulf %352, %362 : vector<16x256xf32>
    %364 = arith.addf %351, %363 : vector<16x256xf32>
    %365 = vector.extract_strided_slice %237 {offsets = [0, 304], sizes = [16, 256], strides = [1, 1]} : vector<16x768xf32> to vector<16x256xf32>
    %c6_140 = arith.constant 6 : index
    %c0_141 = arith.constant 0 : index
    %366 = vector.load %arg10[%c6_140, %c0_141] : memref<7x256xf32, #tpu.memory_space<vmem>>, vector<1x256xf32>
    %367 = vector.broadcast %366 : vector<1x256xf32> to vector<16x256xf32>
    %368 = arith.mulf %365, %367 : vector<16x256xf32>
    %369 = arith.addf %356, %368 : vector<16x256xf32>
    %c8_142 = arith.constant 8 : index
    %c0_143 = arith.constant 0 : index
    %370 = vector.load %arg12[%c8_142, %c0_143] : memref<11x256xf32, #tpu.memory_space<vmem>>, vector<1x256xf32>
    %371 = vector.broadcast %370 : vector<1x256xf32> to vector<16x256xf32>
    %372 = arith.mulf %365, %371 : vector<16x256xf32>
    %373 = arith.addf %360, %372 : vector<16x256xf32>
    %c13_144 = arith.constant 13 : index
    %c0_145 = arith.constant 0 : index
    %374 = vector.load %arg14[%c13_144, %c0_145] : memref<21x256xf32, #tpu.memory_space<vmem>>, vector<1x256xf32>
    %375 = vector.broadcast %374 : vector<1x256xf32> to vector<16x256xf32>
    %376 = arith.mulf %365, %375 : vector<16x256xf32>
    %377 = arith.addf %364, %376 : vector<16x256xf32>
    %378 = vector.extract_strided_slice %237 {offsets = [0, 320], sizes = [16, 256], strides = [1, 1]} : vector<16x768xf32> to vector<16x256xf32>
    %c9_146 = arith.constant 9 : index
    %c0_147 = arith.constant 0 : index
    %379 = vector.load %arg12[%c9_146, %c0_147] : memref<11x256xf32, #tpu.memory_space<vmem>>, vector<1x256xf32>
    %380 = vector.broadcast %379 : vector<1x256xf32> to vector<16x256xf32>
    %381 = arith.mulf %378, %380 : vector<16x256xf32>
    %382 = arith.addf %373, %381 : vector<16x256xf32>
    %c14_148 = arith.constant 14 : index
    %c0_149 = arith.constant 0 : index
    %383 = vector.load %arg14[%c14_148, %c0_149] : memref<21x256xf32, #tpu.memory_space<vmem>>, vector<1x256xf32>
    %384 = vector.broadcast %383 : vector<1x256xf32> to vector<16x256xf32>
    %385 = arith.mulf %378, %384 : vector<16x256xf32>
    %386 = arith.addf %377, %385 : vector<16x256xf32>
    %387 = vector.extract_strided_slice %237 {offsets = [0, 336], sizes = [16, 256], strides = [1, 1]} : vector<16x768xf32> to vector<16x256xf32>
    %c10_150 = arith.constant 10 : index
    %c0_151 = arith.constant 0 : index
    %388 = vector.load %arg12[%c10_150, %c0_151] : memref<11x256xf32, #tpu.memory_space<vmem>>, vector<1x256xf32>
    %389 = vector.broadcast %388 : vector<1x256xf32> to vector<16x256xf32>
    %390 = arith.mulf %387, %389 : vector<16x256xf32>
    %391 = arith.addf %382, %390 : vector<16x256xf32>
    %c15_152 = arith.constant 15 : index
    %c0_153 = arith.constant 0 : index
    %392 = vector.load %arg14[%c15_152, %c0_153] : memref<21x256xf32, #tpu.memory_space<vmem>>, vector<1x256xf32>
    %393 = vector.broadcast %392 : vector<1x256xf32> to vector<16x256xf32>
    %394 = arith.mulf %387, %393 : vector<16x256xf32>
    %395 = arith.addf %386, %394 : vector<16x256xf32>
    %396 = vector.extract_strided_slice %237 {offsets = [0, 352], sizes = [16, 256], strides = [1, 1]} : vector<16x768xf32> to vector<16x256xf32>
    %c16_154 = arith.constant 16 : index
    %c0_155 = arith.constant 0 : index
    %397 = vector.load %arg14[%c16_154, %c0_155] : memref<21x256xf32, #tpu.memory_space<vmem>>, vector<1x256xf32>
    %398 = vector.broadcast %397 : vector<1x256xf32> to vector<16x256xf32>
    %399 = arith.mulf %396, %398 : vector<16x256xf32>
    %400 = arith.addf %395, %399 : vector<16x256xf32>
    %401 = vector.extract_strided_slice %237 {offsets = [0, 368], sizes = [16, 256], strides = [1, 1]} : vector<16x768xf32> to vector<16x256xf32>
    %c17_156 = arith.constant 17 : index
    %c0_157 = arith.constant 0 : index
    %402 = vector.load %arg14[%c17_156, %c0_157] : memref<21x256xf32, #tpu.memory_space<vmem>>, vector<1x256xf32>
    %403 = vector.broadcast %402 : vector<1x256xf32> to vector<16x256xf32>
    %404 = arith.mulf %401, %403 : vector<16x256xf32>
    %405 = arith.addf %400, %404 : vector<16x256xf32>
    %406 = vector.extract_strided_slice %237 {offsets = [0, 384], sizes = [16, 256], strides = [1, 1]} : vector<16x768xf32> to vector<16x256xf32>
    %c18_158 = arith.constant 18 : index
    %c0_159 = arith.constant 0 : index
    %407 = vector.load %arg14[%c18_158, %c0_159] : memref<21x256xf32, #tpu.memory_space<vmem>>, vector<1x256xf32>
    %408 = vector.broadcast %407 : vector<1x256xf32> to vector<16x256xf32>
    %409 = arith.mulf %406, %408 : vector<16x256xf32>
    %410 = arith.addf %405, %409 : vector<16x256xf32>
    %411 = vector.extract_strided_slice %237 {offsets = [0, 400], sizes = [16, 256], strides = [1, 1]} : vector<16x768xf32> to vector<16x256xf32>
    %c19_160 = arith.constant 19 : index
    %c0_161 = arith.constant 0 : index
    %412 = vector.load %arg14[%c19_160, %c0_161] : memref<21x256xf32, #tpu.memory_space<vmem>>, vector<1x256xf32>
    %413 = vector.broadcast %412 : vector<1x256xf32> to vector<16x256xf32>
    %414 = arith.mulf %411, %413 : vector<16x256xf32>
    %415 = arith.addf %410, %414 : vector<16x256xf32>
    %416 = vector.extract_strided_slice %237 {offsets = [0, 416], sizes = [16, 256], strides = [1, 1]} : vector<16x768xf32> to vector<16x256xf32>
    %c20_162 = arith.constant 20 : index
    %c0_163 = arith.constant 0 : index
    %417 = vector.load %arg14[%c20_162, %c0_163] : memref<21x256xf32, #tpu.memory_space<vmem>>, vector<1x256xf32>
    %418 = vector.broadcast %417 : vector<1x256xf32> to vector<16x256xf32>
    %419 = arith.mulf %416, %418 : vector<16x256xf32>
    %420 = arith.addf %415, %419 : vector<16x256xf32>
    %c16_164 = arith.constant 16 : index
    %c256_165 = arith.constant 256 : index
    %421 = vector.load %arg21[%c16_164, %c256_165] : memref<48x768xf32, #tpu.memory_space<vmem>>, vector<16x256xf32>
    tpu.vector_store %arg21[%c16_164, %c256_165], %369 {strides = array<i32>} : memref<48x768xf32, #tpu.memory_space<vmem>>, vector<16x256xf32>,
    %c8_166 = arith.constant 8 : index
    %c256_167 = arith.constant 256 : index
    %422 = vector.load %arg21[%c8_166, %c256_167] : memref<48x768xf32, #tpu.memory_space<vmem>>, vector<32x256xf32>
    %423 = vector.extract_strided_slice %422 {offsets = [5, 0], sizes = [16, 256], strides = [1, 1]} : vector<32x256xf32> to vector<16x256xf32>
    %c0_168 = arith.constant 0 : index
    %c0_169 = arith.constant 0 : index
    %424 = vector.load %arg16[%c0_168, %c0_169] : memref<7x256xf32, #tpu.memory_space<vmem>>, vector<1x256xf32>
    %425 = vector.broadcast %424 : vector<1x256xf32> to vector<16x256xf32>
    %426 = arith.mulf %423, %425 : vector<16x256xf32>
    %427 = arith.addf %236, %426 : vector<16x256xf32>
    %428 = vector.extract_strided_slice %422 {offsets = [6, 0], sizes = [16, 256], strides = [1, 1]} : vector<32x256xf32> to vector<16x256xf32>
    %c1_170 = arith.constant 1 : index
    %c0_171 = arith.constant 0 : index
    %429 = vector.load %arg16[%c1_170, %c0_171] : memref<7x256xf32, #tpu.memory_space<vmem>>, vector<1x256xf32>
    %430 = vector.broadcast %429 : vector<1x256xf32> to vector<16x256xf32>
    %431 = arith.mulf %428, %430 : vector<16x256xf32>
    %432 = arith.addf %427, %431 : vector<16x256xf32>
    %433 = vector.extract_strided_slice %422 {offsets = [7, 0], sizes = [16, 256], strides = [1, 1]} : vector<32x256xf32> to vector<16x256xf32>
    %c2_172 = arith.constant 2 : index
    %c0_173 = arith.constant 0 : index
    %434 = vector.load %arg16[%c2_172, %c0_173] : memref<7x256xf32, #tpu.memory_space<vmem>>, vector<1x256xf32>
    %435 = vector.broadcast %434 : vector<1x256xf32> to vector<16x256xf32>
    %436 = arith.mulf %433, %435 : vector<16x256xf32>
    %437 = arith.addf %432, %436 : vector<16x256xf32>
    %438 = vector.extract_strided_slice %422 {offsets = [8, 0], sizes = [16, 256], strides = [1, 1]} : vector<32x256xf32> to vector<16x256xf32>
    %c3_174 = arith.constant 3 : index
    %c0_175 = arith.constant 0 : index
    %439 = vector.load %arg16[%c3_174, %c0_175] : memref<7x256xf32, #tpu.memory_space<vmem>>, vector<1x256xf32>
    %440 = vector.broadcast %439 : vector<1x256xf32> to vector<16x256xf32>
    %441 = arith.mulf %438, %440 : vector<16x256xf32>
    %442 = arith.addf %437, %441 : vector<16x256xf32>
    %443 = vector.extract_strided_slice %422 {offsets = [9, 0], sizes = [16, 256], strides = [1, 1]} : vector<32x256xf32> to vector<16x256xf32>
    %c4_176 = arith.constant 4 : index
    %c0_177 = arith.constant 0 : index
    %444 = vector.load %arg16[%c4_176, %c0_177] : memref<7x256xf32, #tpu.memory_space<vmem>>, vector<1x256xf32>
    %445 = vector.broadcast %444 : vector<1x256xf32> to vector<16x256xf32>
    %446 = arith.mulf %443, %445 : vector<16x256xf32>
    %447 = arith.addf %442, %446 : vector<16x256xf32>
    %448 = vector.extract_strided_slice %422 {offsets = [10, 0], sizes = [16, 256], strides = [1, 1]} : vector<32x256xf32> to vector<16x256xf32>
    %c5_178 = arith.constant 5 : index
    %c0_179 = arith.constant 0 : index
    %449 = vector.load %arg16[%c5_178, %c0_179] : memref<7x256xf32, #tpu.memory_space<vmem>>, vector<1x256xf32>
    %450 = vector.broadcast %449 : vector<1x256xf32> to vector<16x256xf32>
    %451 = arith.mulf %448, %450 : vector<16x256xf32>
    %452 = arith.addf %447, %451 : vector<16x256xf32>
    %453 = vector.extract_strided_slice %422 {offsets = [11, 0], sizes = [16, 256], strides = [1, 1]} : vector<32x256xf32> to vector<16x256xf32>
    %c6_180 = arith.constant 6 : index
    %c0_181 = arith.constant 0 : index
    %454 = vector.load %arg16[%c6_180, %c0_181] : memref<7x256xf32, #tpu.memory_space<vmem>>, vector<1x256xf32>
    %455 = vector.broadcast %454 : vector<1x256xf32> to vector<16x256xf32>
    %456 = arith.mulf %453, %455 : vector<16x256xf32>
    %457 = arith.addf %452, %456 : vector<16x256xf32>
    %c16_182 = arith.constant 16 : index
    %c256_183 = arith.constant 256 : index
    %458 = vector.load %arg21[%c16_182, %c256_183] : memref<48x768xf32, #tpu.memory_space<vmem>>, vector<16x256xf32>
    tpu.vector_store %arg21[%c16_182, %c256_183], %391 {strides = array<i32>} : memref<48x768xf32, #tpu.memory_space<vmem>>, vector<16x256xf32>,
    %c8_184 = arith.constant 8 : index
    %c256_185 = arith.constant 256 : index
    %459 = vector.load %arg21[%c8_184, %c256_185] : memref<48x768xf32, #tpu.memory_space<vmem>>, vector<32x256xf32>
    %460 = vector.extract_strided_slice %459 {offsets = [3, 0], sizes = [16, 256], strides = [1, 1]} : vector<32x256xf32> to vector<16x256xf32>
    %c0_186 = arith.constant 0 : index
    %c0_187 = arith.constant 0 : index
    %461 = vector.load %arg17[%c0_186, %c0_187] : memref<11x256xf32, #tpu.memory_space<vmem>>, vector<1x256xf32>
    %462 = vector.broadcast %461 : vector<1x256xf32> to vector<16x256xf32>
    %463 = arith.mulf %460, %462 : vector<16x256xf32>
    %464 = arith.addf %457, %463 : vector<16x256xf32>
    %465 = vector.extract_strided_slice %459 {offsets = [4, 0], sizes = [16, 256], strides = [1, 1]} : vector<32x256xf32> to vector<16x256xf32>
    %c1_188 = arith.constant 1 : index
    %c0_189 = arith.constant 0 : index
    %466 = vector.load %arg17[%c1_188, %c0_189] : memref<11x256xf32, #tpu.memory_space<vmem>>, vector<1x256xf32>
    %467 = vector.broadcast %466 : vector<1x256xf32> to vector<16x256xf32>
    %468 = arith.mulf %465, %467 : vector<16x256xf32>
    %469 = arith.addf %464, %468 : vector<16x256xf32>
    %470 = vector.extract_strided_slice %459 {offsets = [5, 0], sizes = [16, 256], strides = [1, 1]} : vector<32x256xf32> to vector<16x256xf32>
    %c2_190 = arith.constant 2 : index
    %c0_191 = arith.constant 0 : index
    %471 = vector.load %arg17[%c2_190, %c0_191] : memref<11x256xf32, #tpu.memory_space<vmem>>, vector<1x256xf32>
    %472 = vector.broadcast %471 : vector<1x256xf32> to vector<16x256xf32>
    %473 = arith.mulf %470, %472 : vector<16x256xf32>
    %474 = arith.addf %469, %473 : vector<16x256xf32>
    %475 = vector.extract_strided_slice %459 {offsets = [6, 0], sizes = [16, 256], strides = [1, 1]} : vector<32x256xf32> to vector<16x256xf32>
    %c3_192 = arith.constant 3 : index
    %c0_193 = arith.constant 0 : index
    %476 = vector.load %arg17[%c3_192, %c0_193] : memref<11x256xf32, #tpu.memory_space<vmem>>, vector<1x256xf32>
    %477 = vector.broadcast %476 : vector<1x256xf32> to vector<16x256xf32>
    %478 = arith.mulf %475, %477 : vector<16x256xf32>
    %479 = arith.addf %474, %478 : vector<16x256xf32>
    %480 = vector.extract_strided_slice %459 {offsets = [7, 0], sizes = [16, 256], strides = [1, 1]} : vector<32x256xf32> to vector<16x256xf32>
    %c4_194 = arith.constant 4 : index
    %c0_195 = arith.constant 0 : index
    %481 = vector.load %arg17[%c4_194, %c0_195] : memref<11x256xf32, #tpu.memory_space<vmem>>, vector<1x256xf32>
    %482 = vector.broadcast %481 : vector<1x256xf32> to vector<16x256xf32>
    %483 = arith.mulf %480, %482 : vector<16x256xf32>
    %484 = arith.addf %479, %483 : vector<16x256xf32>
    %485 = vector.extract_strided_slice %459 {offsets = [8, 0], sizes = [16, 256], strides = [1, 1]} : vector<32x256xf32> to vector<16x256xf32>
    %c5_196 = arith.constant 5 : index
    %c0_197 = arith.constant 0 : index
    %486 = vector.load %arg17[%c5_196, %c0_197] : memref<11x256xf32, #tpu.memory_space<vmem>>, vector<1x256xf32>
    %487 = vector.broadcast %486 : vector<1x256xf32> to vector<16x256xf32>
    %488 = arith.mulf %485, %487 : vector<16x256xf32>
    %489 = arith.addf %484, %488 : vector<16x256xf32>
    %490 = vector.extract_strided_slice %459 {offsets = [9, 0], sizes = [16, 256], strides = [1, 1]} : vector<32x256xf32> to vector<16x256xf32>
    %c6_198 = arith.constant 6 : index
    %c0_199 = arith.constant 0 : index
    %491 = vector.load %arg17[%c6_198, %c0_199] : memref<11x256xf32, #tpu.memory_space<vmem>>, vector<1x256xf32>
    %492 = vector.broadcast %491 : vector<1x256xf32> to vector<16x256xf32>
    %493 = arith.mulf %490, %492 : vector<16x256xf32>
    %494 = arith.addf %489, %493 : vector<16x256xf32>
    %495 = vector.extract_strided_slice %459 {offsets = [10, 0], sizes = [16, 256], strides = [1, 1]} : vector<32x256xf32> to vector<16x256xf32>
    %c7_200 = arith.constant 7 : index
    %c0_201 = arith.constant 0 : index
    %496 = vector.load %arg17[%c7_200, %c0_201] : memref<11x256xf32, #tpu.memory_space<vmem>>, vector<1x256xf32>
    %497 = vector.broadcast %496 : vector<1x256xf32> to vector<16x256xf32>
    %498 = arith.mulf %495, %497 : vector<16x256xf32>
    %499 = arith.addf %494, %498 : vector<16x256xf32>
    %500 = vector.extract_strided_slice %459 {offsets = [11, 0], sizes = [16, 256], strides = [1, 1]} : vector<32x256xf32> to vector<16x256xf32>
    %c8_202 = arith.constant 8 : index
    %c0_203 = arith.constant 0 : index
    %501 = vector.load %arg17[%c8_202, %c0_203] : memref<11x256xf32, #tpu.memory_space<vmem>>, vector<1x256xf32>
    %502 = vector.broadcast %501 : vector<1x256xf32> to vector<16x256xf32>
    %503 = arith.mulf %500, %502 : vector<16x256xf32>
    %504 = arith.addf %499, %503 : vector<16x256xf32>
    %505 = vector.extract_strided_slice %459 {offsets = [12, 0], sizes = [16, 256], strides = [1, 1]} : vector<32x256xf32> to vector<16x256xf32>
    %c9_204 = arith.constant 9 : index
    %c0_205 = arith.constant 0 : index
    %506 = vector.load %arg17[%c9_204, %c0_205] : memref<11x256xf32, #tpu.memory_space<vmem>>, vector<1x256xf32>
    %507 = vector.broadcast %506 : vector<1x256xf32> to vector<16x256xf32>
    %508 = arith.mulf %505, %507 : vector<16x256xf32>
    %509 = arith.addf %504, %508 : vector<16x256xf32>
    %510 = vector.extract_strided_slice %459 {offsets = [13, 0], sizes = [16, 256], strides = [1, 1]} : vector<32x256xf32> to vector<16x256xf32>
    %c10_206 = arith.constant 10 : index
    %c0_207 = arith.constant 0 : index
    %511 = vector.load %arg17[%c10_206, %c0_207] : memref<11x256xf32, #tpu.memory_space<vmem>>, vector<1x256xf32>
    %512 = vector.broadcast %511 : vector<1x256xf32> to vector<16x256xf32>
    %513 = arith.mulf %510, %512 : vector<16x256xf32>
    %514 = arith.addf %509, %513 : vector<16x256xf32>
    %c16_208 = arith.constant 16 : index
    %c256_209 = arith.constant 256 : index
    %515 = vector.load %arg21[%c16_208, %c256_209] : memref<48x768xf32, #tpu.memory_space<vmem>>, vector<16x256xf32>
    tpu.vector_store %arg21[%c16_208, %c256_209], %420 {strides = array<i32>} : memref<48x768xf32, #tpu.memory_space<vmem>>, vector<16x256xf32>,
    %c0_210 = arith.constant 0 : index
    %c256_211 = arith.constant 256 : index
    %516 = vector.load %arg21[%c0_210, %c256_211] : memref<48x768xf32, #tpu.memory_space<vmem>>, vector<48x256xf32>
    %517 = vector.extract_strided_slice %516 {offsets = [6, 0], sizes = [16, 256], strides = [1, 1]} : vector<48x256xf32> to vector<16x256xf32>
    %c0_212 = arith.constant 0 : index
    %c0_213 = arith.constant 0 : index
    %518 = vector.load %arg18[%c0_212, %c0_213] : memref<21x256xf32, #tpu.memory_space<vmem>>, vector<1x256xf32>
    %519 = vector.broadcast %518 : vector<1x256xf32> to vector<16x256xf32>
    %520 = arith.mulf %517, %519 : vector<16x256xf32>
    %521 = arith.addf %514, %520 : vector<16x256xf32>
    %522 = vector.extract_strided_slice %516 {offsets = [7, 0], sizes = [16, 256], strides = [1, 1]} : vector<48x256xf32> to vector<16x256xf32>
    %c1_214 = arith.constant 1 : index
    %c0_215 = arith.constant 0 : index
    %523 = vector.load %arg18[%c1_214, %c0_215] : memref<21x256xf32, #tpu.memory_space<vmem>>, vector<1x256xf32>
    %524 = vector.broadcast %523 : vector<1x256xf32> to vector<16x256xf32>
    %525 = arith.mulf %522, %524 : vector<16x256xf32>
    %526 = arith.addf %521, %525 : vector<16x256xf32>
    %527 = vector.extract_strided_slice %516 {offsets = [8, 0], sizes = [16, 256], strides = [1, 1]} : vector<48x256xf32> to vector<16x256xf32>
    %c2_216 = arith.constant 2 : index
    %c0_217 = arith.constant 0 : index
    %528 = vector.load %arg18[%c2_216, %c0_217] : memref<21x256xf32, #tpu.memory_space<vmem>>, vector<1x256xf32>
    %529 = vector.broadcast %528 : vector<1x256xf32> to vector<16x256xf32>
    %530 = arith.mulf %527, %529 : vector<16x256xf32>
    %531 = arith.addf %526, %530 : vector<16x256xf32>
    %532 = vector.extract_strided_slice %516 {offsets = [9, 0], sizes = [16, 256], strides = [1, 1]} : vector<48x256xf32> to vector<16x256xf32>
    %c3_218 = arith.constant 3 : index
    %c0_219 = arith.constant 0 : index
    %533 = vector.load %arg18[%c3_218, %c0_219] : memref<21x256xf32, #tpu.memory_space<vmem>>, vector<1x256xf32>
    %534 = vector.broadcast %533 : vector<1x256xf32> to vector<16x256xf32>
    %535 = arith.mulf %532, %534 : vector<16x256xf32>
    %536 = arith.addf %531, %535 : vector<16x256xf32>
    %537 = vector.extract_strided_slice %516 {offsets = [10, 0], sizes = [16, 256], strides = [1, 1]} : vector<48x256xf32> to vector<16x256xf32>
    %c4_220 = arith.constant 4 : index
    %c0_221 = arith.constant 0 : index
    %538 = vector.load %arg18[%c4_220, %c0_221] : memref<21x256xf32, #tpu.memory_space<vmem>>, vector<1x256xf32>
    %539 = vector.broadcast %538 : vector<1x256xf32> to vector<16x256xf32>
    %540 = arith.mulf %537, %539 : vector<16x256xf32>
    %541 = arith.addf %536, %540 : vector<16x256xf32>
    %542 = vector.extract_strided_slice %516 {offsets = [11, 0], sizes = [16, 256], strides = [1, 1]} : vector<48x256xf32> to vector<16x256xf32>
    %c5_222 = arith.constant 5 : index
    %c0_223 = arith.constant 0 : index
    %543 = vector.load %arg18[%c5_222, %c0_223] : memref<21x256xf32, #tpu.memory_space<vmem>>, vector<1x256xf32>
    %544 = vector.broadcast %543 : vector<1x256xf32> to vector<16x256xf32>
    %545 = arith.mulf %542, %544 : vector<16x256xf32>
    %546 = arith.addf %541, %545 : vector<16x256xf32>
    %547 = vector.extract_strided_slice %516 {offsets = [12, 0], sizes = [16, 256], strides = [1, 1]} : vector<48x256xf32> to vector<16x256xf32>
    %c6_224 = arith.constant 6 : index
    %c0_225 = arith.constant 0 : index
    %548 = vector.load %arg18[%c6_224, %c0_225] : memref<21x256xf32, #tpu.memory_space<vmem>>, vector<1x256xf32>
    %549 = vector.broadcast %548 : vector<1x256xf32> to vector<16x256xf32>
    %550 = arith.mulf %547, %549 : vector<16x256xf32>
    %551 = arith.addf %546, %550 : vector<16x256xf32>
    %552 = vector.extract_strided_slice %516 {offsets = [13, 0], sizes = [16, 256], strides = [1, 1]} : vector<48x256xf32> to vector<16x256xf32>
    %c7_226 = arith.constant 7 : index
    %c0_227 = arith.constant 0 : index
    %553 = vector.load %arg18[%c7_226, %c0_227] : memref<21x256xf32, #tpu.memory_space<vmem>>, vector<1x256xf32>
    %554 = vector.broadcast %553 : vector<1x256xf32> to vector<16x256xf32>
    %555 = arith.mulf %552, %554 : vector<16x256xf32>
    %556 = arith.addf %551, %555 : vector<16x256xf32>
    %557 = vector.extract_strided_slice %516 {offsets = [14, 0], sizes = [16, 256], strides = [1, 1]} : vector<48x256xf32> to vector<16x256xf32>
    %c8_228 = arith.constant 8 : index
    %c0_229 = arith.constant 0 : index
    %558 = vector.load %arg18[%c8_228, %c0_229] : memref<21x256xf32, #tpu.memory_space<vmem>>, vector<1x256xf32>
    %559 = vector.broadcast %558 : vector<1x256xf32> to vector<16x256xf32>
    %560 = arith.mulf %557, %559 : vector<16x256xf32>
    %561 = arith.addf %556, %560 : vector<16x256xf32>
    %562 = vector.extract_strided_slice %516 {offsets = [15, 0], sizes = [16, 256], strides = [1, 1]} : vector<48x256xf32> to vector<16x256xf32>
    %c9_230 = arith.constant 9 : index
    %c0_231 = arith.constant 0 : index
    %563 = vector.load %arg18[%c9_230, %c0_231] : memref<21x256xf32, #tpu.memory_space<vmem>>, vector<1x256xf32>
    %564 = vector.broadcast %563 : vector<1x256xf32> to vector<16x256xf32>
    %565 = arith.mulf %562, %564 : vector<16x256xf32>
    %566 = arith.addf %561, %565 : vector<16x256xf32>
    %567 = vector.extract_strided_slice %516 {offsets = [16, 0], sizes = [16, 256], strides = [1, 1]} : vector<48x256xf32> to vector<16x256xf32>
    %c10_232 = arith.constant 10 : index
    %c0_233 = arith.constant 0 : index
    %568 = vector.load %arg18[%c10_232, %c0_233] : memref<21x256xf32, #tpu.memory_space<vmem>>, vector<1x256xf32>
    %569 = vector.broadcast %568 : vector<1x256xf32> to vector<16x256xf32>
    %570 = arith.mulf %567, %569 : vector<16x256xf32>
    %571 = arith.addf %566, %570 : vector<16x256xf32>
    %572 = vector.extract_strided_slice %516 {offsets = [17, 0], sizes = [16, 256], strides = [1, 1]} : vector<48x256xf32> to vector<16x256xf32>
    %c11_234 = arith.constant 11 : index
    %c0_235 = arith.constant 0 : index
    %573 = vector.load %arg18[%c11_234, %c0_235] : memref<21x256xf32, #tpu.memory_space<vmem>>, vector<1x256xf32>
    %574 = vector.broadcast %573 : vector<1x256xf32> to vector<16x256xf32>
    %575 = arith.mulf %572, %574 : vector<16x256xf32>
    %576 = arith.addf %571, %575 : vector<16x256xf32>
    %577 = vector.extract_strided_slice %516 {offsets = [18, 0], sizes = [16, 256], strides = [1, 1]} : vector<48x256xf32> to vector<16x256xf32>
    %c12_236 = arith.constant 12 : index
    %c0_237 = arith.constant 0 : index
    %578 = vector.load %arg18[%c12_236, %c0_237] : memref<21x256xf32, #tpu.memory_space<vmem>>, vector<1x256xf32>
    %579 = vector.broadcast %578 : vector<1x256xf32> to vector<16x256xf32>
    %580 = arith.mulf %577, %579 : vector<16x256xf32>
    %581 = arith.addf %576, %580 : vector<16x256xf32>
    %582 = vector.extract_strided_slice %516 {offsets = [19, 0], sizes = [16, 256], strides = [1, 1]} : vector<48x256xf32> to vector<16x256xf32>
    %c13_238 = arith.constant 13 : index
    %c0_239 = arith.constant 0 : index
    %583 = vector.load %arg18[%c13_238, %c0_239] : memref<21x256xf32, #tpu.memory_space<vmem>>, vector<1x256xf32>
    %584 = vector.broadcast %583 : vector<1x256xf32> to vector<16x256xf32>
    %585 = arith.mulf %582, %584 : vector<16x256xf32>
    %586 = arith.addf %581, %585 : vector<16x256xf32>
    %587 = vector.extract_strided_slice %516 {offsets = [20, 0], sizes = [16, 256], strides = [1, 1]} : vector<48x256xf32> to vector<16x256xf32>
    %c14_240 = arith.constant 14 : index
    %c0_241 = arith.constant 0 : index
    %588 = vector.load %arg18[%c14_240, %c0_241] : memref<21x256xf32, #tpu.memory_space<vmem>>, vector<1x256xf32>
    %589 = vector.broadcast %588 : vector<1x256xf32> to vector<16x256xf32>
    %590 = arith.mulf %587, %589 : vector<16x256xf32>
    %591 = arith.addf %586, %590 : vector<16x256xf32>
    %592 = vector.extract_strided_slice %516 {offsets = [21, 0], sizes = [16, 256], strides = [1, 1]} : vector<48x256xf32> to vector<16x256xf32>
    %c15_242 = arith.constant 15 : index
    %c0_243 = arith.constant 0 : index
    %593 = vector.load %arg18[%c15_242, %c0_243] : memref<21x256xf32, #tpu.memory_space<vmem>>, vector<1x256xf32>
    %594 = vector.broadcast %593 : vector<1x256xf32> to vector<16x256xf32>
    %595 = arith.mulf %592, %594 : vector<16x256xf32>
    %596 = arith.addf %591, %595 : vector<16x256xf32>
    %597 = vector.extract_strided_slice %516 {offsets = [22, 0], sizes = [16, 256], strides = [1, 1]} : vector<48x256xf32> to vector<16x256xf32>
    %c16_244 = arith.constant 16 : index
    %c0_245 = arith.constant 0 : index
    %598 = vector.load %arg18[%c16_244, %c0_245] : memref<21x256xf32, #tpu.memory_space<vmem>>, vector<1x256xf32>
    %599 = vector.broadcast %598 : vector<1x256xf32> to vector<16x256xf32>
    %600 = arith.mulf %597, %599 : vector<16x256xf32>
    %601 = arith.addf %596, %600 : vector<16x256xf32>
    %602 = vector.extract_strided_slice %516 {offsets = [23, 0], sizes = [16, 256], strides = [1, 1]} : vector<48x256xf32> to vector<16x256xf32>
    %c17_246 = arith.constant 17 : index
    %c0_247 = arith.constant 0 : index
    %603 = vector.load %arg18[%c17_246, %c0_247] : memref<21x256xf32, #tpu.memory_space<vmem>>, vector<1x256xf32>
    %604 = vector.broadcast %603 : vector<1x256xf32> to vector<16x256xf32>
    %605 = arith.mulf %602, %604 : vector<16x256xf32>
    %606 = arith.addf %601, %605 : vector<16x256xf32>
    %607 = vector.extract_strided_slice %516 {offsets = [24, 0], sizes = [16, 256], strides = [1, 1]} : vector<48x256xf32> to vector<16x256xf32>
    %c18_248 = arith.constant 18 : index
    %c0_249 = arith.constant 0 : index
    %608 = vector.load %arg18[%c18_248, %c0_249] : memref<21x256xf32, #tpu.memory_space<vmem>>, vector<1x256xf32>
    %609 = vector.broadcast %608 : vector<1x256xf32> to vector<16x256xf32>
    %610 = arith.mulf %607, %609 : vector<16x256xf32>
    %611 = arith.addf %606, %610 : vector<16x256xf32>
    %612 = vector.extract_strided_slice %516 {offsets = [25, 0], sizes = [16, 256], strides = [1, 1]} : vector<48x256xf32> to vector<16x256xf32>
    %c19_250 = arith.constant 19 : index
    %c0_251 = arith.constant 0 : index
    %613 = vector.load %arg18[%c19_250, %c0_251] : memref<21x256xf32, #tpu.memory_space<vmem>>, vector<1x256xf32>
    %614 = vector.broadcast %613 : vector<1x256xf32> to vector<16x256xf32>
    %615 = arith.mulf %612, %614 : vector<16x256xf32>
    %616 = arith.addf %611, %615 : vector<16x256xf32>
    %617 = vector.extract_strided_slice %516 {offsets = [26, 0], sizes = [16, 256], strides = [1, 1]} : vector<48x256xf32> to vector<16x256xf32>
    %c20_252 = arith.constant 20 : index
    %c0_253 = arith.constant 0 : index
    %618 = vector.load %arg18[%c20_252, %c0_253] : memref<21x256xf32, #tpu.memory_space<vmem>>, vector<1x256xf32>
    %619 = vector.broadcast %618 : vector<1x256xf32> to vector<16x256xf32>
    %620 = arith.mulf %617, %619 : vector<16x256xf32>
    %621 = arith.addf %616, %620 : vector<16x256xf32>
    %c0_254 = arith.constant 0 : index
    %c0_255 = arith.constant 0 : index
    %622 = vector.load %arg2[%c0_254, %c0_255] : memref<256x256xf32, #tpu.memory_space<vmem>>, vector<256x256xf32>
    %c0_256 = arith.constant 0 : index
    %c0_257 = arith.constant 0 : index
    %623 = vector.load %arg3[%c0_256, %c0_257] : memref<1x256xf32, #tpu.memory_space<vmem>>, vector<1x256xf32>
    %cst_258 = arith.constant dense<0.000000e+00> : vector<16x256xf32>
    %624 = tpu.matmul %621, %622, %cst_258 {dimension_numbers = #tpu.dot_dimension_numbers<[1], [0], [0], [1], [0, 0, 1, 1], [], []>} : vector<16x256xf32>, vector<256x256xf32>, vector<16x256xf32> -> vector<16x256xf32>
    %625 = vector.broadcast %623 : vector<1x256xf32> to vector<16x256xf32>
    %626 = arith.addf %624, %625 : vector<16x256xf32>
    %c0_259 = arith.constant 0 : index
    %c0_260 = arith.constant 0 : index
    %627 = vector.load %arg22[%c0_259, %c0_260] : memref<16x256xf32, #tpu.memory_space<vmem>>, vector<16x256xf32>
    %628 = arith.mulf %626, %627 : vector<16x256xf32>
    %cst_261 = arith.constant dense<0.000000e+00> : vector<16x256xf32>
    %629 = tpu.matmul %628, %622, %cst_261 {dimension_numbers = #tpu.dot_dimension_numbers<[1], [0], [0], [1], [0, 0, 1, 1], [], []>} : vector<16x256xf32>, vector<256x256xf32>, vector<16x256xf32> -> vector<16x256xf32>
    %630 = vector.broadcast %623 : vector<1x256xf32> to vector<16x256xf32>
    %631 = arith.addf %629, %630 : vector<16x256xf32>
    %c0_262 = arith.constant 0 : index
    %c0_263 = arith.constant 0 : index
    %c0_264 = arith.constant 0 : index
    %632 = vector.load %arg20[%c0_262, %c0_263, %c0_264] : memref<1x16x256xf32, #tpu.memory_space<vmem>>, vector<1x16x256xf32>
    %633 = vector.shape_cast %632 : vector<1x16x256xf32> to vector<16x256xf32>
    %634 = vector.shape_cast %631 : vector<16x256xf32> to vector<1x16x256xf32>
    tpu.vector_store %arg20[%c0_262, %c0_263, %c0_264], %634 {strides = array<i32>} : memref<1x16x256xf32, #tpu.memory_space<vmem>>, vector<1x16x256xf32>,
    return
  }
  func.func @transform_0(%arg0: i32) -> (i32, i32, i32) {
    %c0_i32 = arith.constant 0 : i32
    %c0_i32_0 = arith.constant 0 : i32
    %c0_i32_1 = arith.constant 0 : i32
    return %arg0, %c0_i32, %c0_i32_0 : i32, i32, i32
  }
  func.func @transform_1(%arg0: i32) -> (i32, i32) {
    %c0_i32 = arith.constant 0 : i32
    %c0_i32_0 = arith.constant 0 : i32
    %c0_i32_1 = arith.constant 0 : i32
    return %c0_i32, %c0_i32_0 : i32, i32
  }
  func.func @transform_2(%arg0: i32) -> (i32, i32) {
    %c0_i32 = arith.constant 0 : i32
    %c0_i32_0 = arith.constant 0 : i32
    %c0_i32_1 = arith.constant 0 : i32
    return %c0_i32, %c0_i32_0 : i32, i32
  }
  func.func @transform_3(%arg0: i32) -> (i32, i32) {
    %c0_i32 = arith.constant 0 : i32
    %c0_i32_0 = arith.constant 0 : i32
    %c0_i32_1 = arith.constant 0 : i32
    return %c0_i32, %c0_i32_0 : i32, i32
  }
  func.func @transform_4(%arg0: i32) -> (i32, i32) {
    %c0_i32 = arith.constant 0 : i32
    %c0_i32_0 = arith.constant 0 : i32
    %c0_i32_1 = arith.constant 0 : i32
    return %c0_i32, %c0_i32_0 : i32, i32
  }
  func.func @transform_5(%arg0: i32) -> (i32, i32) {
    %c0_i32 = arith.constant 0 : i32
    %c0_i32_0 = arith.constant 0 : i32
    %c0_i32_1 = arith.constant 0 : i32
    return %c0_i32, %c0_i32_0 : i32, i32
  }
  func.func @transform_6(%arg0: i32) -> (i32, i32) {
    %c0_i32 = arith.constant 0 : i32
    %c0_i32_0 = arith.constant 0 : i32
    %c0_i32_1 = arith.constant 0 : i32
    return %c0_i32, %c0_i32_0 : i32, i32
  }
  func.func @transform_7(%arg0: i32) -> (i32, i32) {
    %c0_i32 = arith.constant 0 : i32
    %c0_i32_0 = arith.constant 0 : i32
    %c0_i32_1 = arith.constant 0 : i32
    return %c0_i32, %c0_i32_0 : i32, i32
  }
  func.func @transform_8(%arg0: i32) -> (i32, i32) {
    %c0_i32 = arith.constant 0 : i32
    %c0_i32_0 = arith.constant 0 : i32
    %c0_i32_1 = arith.constant 0 : i32
    return %c0_i32, %c0_i32_0 : i32, i32
  }
  func.func @transform_9(%arg0: i32) -> (i32, i32) {
    %c0_i32 = arith.constant 0 : i32
    %c0_i32_0 = arith.constant 0 : i32
    %c0_i32_1 = arith.constant 0 : i32
    return %c0_i32, %c0_i32_0 : i32, i32
  }
  func.func @transform_10(%arg0: i32) -> (i32, i32) {
    %c0_i32 = arith.constant 0 : i32
    %c0_i32_0 = arith.constant 0 : i32
    %c0_i32_1 = arith.constant 0 : i32
    return %c0_i32, %c0_i32_0 : i32, i32
  }
  func.func @transform_11(%arg0: i32) -> (i32, i32) {
    %c0_i32 = arith.constant 0 : i32
    %c0_i32_0 = arith.constant 0 : i32
    %c0_i32_1 = arith.constant 0 : i32
    return %c0_i32, %c0_i32_0 : i32, i32
  }
  func.func @transform_12(%arg0: i32) -> (i32, i32) {
    %c0_i32 = arith.constant 0 : i32
    %c0_i32_0 = arith.constant 0 : i32
    %c0_i32_1 = arith.constant 0 : i32
    return %c0_i32, %c0_i32_0 : i32, i32
  }
  func.func @transform_13(%arg0: i32) -> (i32, i32) {
    %c0_i32 = arith.constant 0 : i32
    %c0_i32_0 = arith.constant 0 : i32
    %c0_i32_1 = arith.constant 0 : i32
    return %c0_i32, %c0_i32_0 : i32, i32
  }
  func.func @transform_14(%arg0: i32) -> (i32, i32) {
    %c0_i32 = arith.constant 0 : i32
    %c0_i32_0 = arith.constant 0 : i32
    %c0_i32_1 = arith.constant 0 : i32
    return %c0_i32, %c0_i32_0 : i32, i32
  }
  func.func @transform_15(%arg0: i32) -> (i32, i32) {
    %c0_i32 = arith.constant 0 : i32
    %c0_i32_0 = arith.constant 0 : i32
    %c0_i32_1 = arith.constant 0 : i32
    return %c0_i32, %c0_i32_0 : i32, i32
  }
  func.func @transform_16(%arg0: i32) -> (i32, i32) {
    %c0_i32 = arith.constant 0 : i32
    %c0_i32_0 = arith.constant 0 : i32
    %c0_i32_1 = arith.constant 0 : i32
    return %c0_i32, %c0_i32_0 : i32, i32
  }
  func.func @transform_17(%arg0: i32) -> (i32, i32) {
    %c0_i32 = arith.constant 0 : i32
    %c0_i32_0 = arith.constant 0 : i32
    %c0_i32_1 = arith.constant 0 : i32
    return %c0_i32, %c0_i32_0 : i32, i32
  }
  func.func @transform_18(%arg0: i32) -> (i32, i32) {
    %c0_i32 = arith.constant 0 : i32
    %c0_i32_0 = arith.constant 0 : i32
    %c0_i32_1 = arith.constant 0 : i32
    return %c0_i32, %c0_i32_0 : i32, i32
  }
  func.func @transform_19(%arg0: i32) -> (i32, i32, i32) {
    %c0_i32 = arith.constant 0 : i32
    %c0_i32_0 = arith.constant 0 : i32
    %c0_i32_1 = arith.constant 0 : i32
    return %arg0, %c0_i32, %c0_i32_0 : i32, i32, i32
  }
}

</mosaic_0001>

<bundles_post_ra>
// kernel: tpu_custom_call.1
= control target key start
LH: loop header
LB: loop body
LE: loop exit
PB: predicated region body
PF: predicated region fallthrough
CT: control target
= control target key end

     0   :  { %s12398_s0 = inlined_call_operand.vmem [shape: f32[2,16,256], index: 0, kind: input, shape index: {}]   ;;  %s12399_s1 = inlined_call_operand.hbm [shape: f32[256,256], index: 1, kind: input, shape index: {}]   ;;  %s12400_s2 = inlined_call_operand.hbm [shape: f32[1,256], index: 2, kind: input, shape index: {}]   ;;  %s12401_s3 = inlined_call_operand.vmem [shape: f32[256,64], index: 3, kind: input, shape index: {}]   ;;  %s12402_s4 = inlined_call_operand.hbm [shape: f32[1,64], index: 4, kind: input, shape index: {}]   ;;  %s12403_s5 = inlined_call_operand.vmem [shape: f32[64,256], index: 5, kind: input, shape index: {}]   ;;  %s12404_s6 = inlined_call_operand.vmem [shape: f32[1,256], index: 6, kind: input, shape index: {}]   ;;  %s12405_s7 = inlined_call_operand.vmem [shape: f32[25,256], index: 7, kind: input, shape index: {}]   ;;  %s12406_s8 = inlined_call_operand.vmem [shape: f32[1,256], index: 8, kind: input, shape index: {}]   ;;  %s12407_s9 = inlined_call_operand.hbm [shape: f32[7,256], index: 9, kind: input, shape index: {}]   ;;  %s12408_s10 = inlined_call_operand.vmem [shape: f32[1,256], index: 10, kind: input, shape index: {}]   ;;  %s12409_s11 = inlined_call_operand.vmem [shape: f32[11,256], index: 11, kind: input, shape index: {}]   ;;  %s12410_s12 = inlined_call_operand.vmem [shape: f32[1,256], index: 12, kind: input, shape index: {}]   ;;  %s12411_s13 = inlined_call_operand.vmem [shape: f32[21,256], index: 13, kind: input, shape index: {}]   ;;  %s12412_s14 = inlined_call_operand.hbm [shape: f32[1,256], index: 14, kind: input, shape index: {}]   ;;  %s12413_s15 = inlined_call_operand.hbm [shape: f32[7,256], index: 15, kind: input, shape index: {}]   ;;  %s12414_s16 = inlined_call_operand.hbm [shape: f32[11,256], index: 16, kind: input, shape index: {}]   ;;  %s12415_s17 = inlined_call_operand.vmem [shape: f32[21,256], index: 17, kind: input, shape index: {}]   ;;  %s12416_s18 = inlined_call_operand.vmem [shape: f32[1,256], index: 18, kind: input, shape index: {}]   ;;  %s12417_s19 = inlined_call_operand.hbm [shape: f32[2,16,256], index: 19, kind: output, shape index: {}]  }
   0x1   :  { %12671 = sst [smem:[#allocation216_spill]] %s12398_s0 }
   0x2   :  { %12672 = sst [smem:[#allocation217_spill]] %s12399_s1 }
   0x3   :  { %12673 = sst [smem:[#allocation218_spill]] %s12400_s2 }
   0x4   :  { %12674 = sst [smem:[#allocation219_spill]] %s12401_s3 }
   0x5   :  { %12675 = sst [smem:[#allocation220_spill]] %s12402_s4 }
   0x6   :  { %12676 = sst [smem:[#allocation221_spill]] %s12407_s9 }
   0x7   :  { %12677 = sst [smem:[#allocation222_spill]] %s12413_s15 }
   0x8   :  { %12678 = sst [smem:[#allocation223_spill]] %s12415_s17 }
   0x9   :  { %12679 = sst [smem:[#allocation224_spill]] %s12417_s19 }
   0xa   :  { %24 = vsyncpa [#allocation5], 0 }
   0xb   :  { %25 = vsyncpa [#allocation8], 0 }
   0xc   :  { %26 = vsyncpa [#allocation11], 0 }
   0xd   :  { %27 = vsyncpa [#allocation14], 0 }
   0xe   :  { %28 = vsyncpa [#allocation6], 0 }
   0xf   :  { %30 = vsyncpa [#allocation6 + $0x1], 0  ;;  %s7088_s0 = smov 0   ;;  %s7090_s30 = smov 0  }
  0x10   :  { %s7092_s20 = smov 0   ;;  %s7094_s21 = smov 0  }
  0x11 LB: > { %12680 = sst [smem:[#allocation22_spill]] %s6955_s0  ;;  %s7109_s1 = sadd.s32 4294967295, %s6967_s21   ;;  %s6967_s21 = sphi %s7094_s21, %s13385_s21   ;;  %s6963_s20 = sphi %s7092_s20, %s13387_s20   ;;  %s6959_s30 = sphi %s7090_s30, %s13389_s30   ;;  %s6955_s0 = sphi %s7088_s0, %s13388_s0  }
  0x12   : > { %12681 = sst [smem:[#allocation23_spill]] %s6963_s20  ;;  %s6397_s22 = sadd.s32 4294967294, %s6967_s21  }
  0x13   : > { %12682 = sst [smem:[#allocation24_spill]] %s6967_s21  ;;  %s7113_s2 = sadd.s32 1, %s6967_s21  }
  0x14   : > { %12683 = sst [smem:[#allocation25_spill]] %s7113_s2  ;;  %s447_s23 = sadd.s32 1, %s6963_s20 }
  0x15   : > { %s444_s24 = ssub.s32 %s6967_s21, %s7113_s2  ;;  %p457_p0 = scmp.ne.s32.totalorder %s6963_s20, %s6959_s30 }
  0x16   : > { %p445_p1 = scmp.eq.s32.totalorder %s444_s24, 0  ;;  %p458_p2 = scmp.eq.s32.totalorder %s7109_s1, 1 }
  0x17   : > { %p463_p3 = scmp.ne.s32.totalorder %s6959_s30, %s6955_s0  ;;  %p464_p4 = scmp.eq.s32.totalorder %s6397_s22, 1 }
  0x18   : > { %s7124_s25 = scalar_select %p445_p1, %s6963_s20, %s447_s23  }
  0x19   : > { %p7126_p5 = por %p458_p2, %p457_p0  ;;  %p7130_p6 = por %p464_p4, %p463_p3 }
  0x1a   : > { %12684 = sst [smem:[#allocation26_spill]] %s7124_s25  ;;  %p6398_p7 = scmp.ge.s32.totalorder %s6967_s21, 1 }
  0x1b   : > { %s12685_s3 = scalar_select %p7126_p5, 1, 0 }
  0x1c   : > { %s12687_s26 = scalar_select %p7130_p6, 1, 0 }
  0x1d   : > { %12686 = sst [smem:[#allocation27_spill]] %s12685_s3  ;;  %p471_p8 = scmp.lt.s32.totalorder %s6967_s21, 3 }
  0x1e   : > { %12688 = sst [smem:[#allocation28_spill]] %s12687_s26  ;;  %p6399_p9 = scmp.ne.s32.totalorder %s7109_s1, 0 }
  0x1f   : > { %p6560_p10 = scmp.eq.s32.totalorder %s7109_s1, 0  ;;  %p7138_p11 = pnand %p6398_p7, %p471_p8 }
  0x20   : > { %s12690_s22 = sld [smem:[#allocation218_spill]]  ;;  %s6969_s24 = smov [#allocation7]  }
  0x21   : > { %p6534_p12 = pneg %p7138_p11  ;;  %s499_s25 = sshll.u32 %s6969_s24, 4  ;;  %s500_s25 = int_to_ptr.vmem [resolvable:$true] %s499_s25 }
  0x22   : > { %s12691_s9 = sld [smem:[#allocation221_spill]]  ;;  %s6970_s21 = smov [#allocation10]  }
  0x23   : > { %p7152_p13 = pnand %p6560_p10, %p6534_p12  ;;  %s12693_s15 = sld [smem:[#allocation222_spill]] }
  0x24   : > { %s538_s24 = sshll.u32 %s6970_s21, 4  ;;  %s6971_s19 = smov [#allocation13]   ;;  %s539_s24 = int_to_ptr.vmem [resolvable:$true] %s538_s24 }
  0x25   : > { %s574_s17 = sshll.u32 %s6971_s19, 4  ;;  %s6972_s28 = smov [#allocation4]   ;;  %s575_s17 = int_to_ptr.vmem [resolvable:$true] %s574_s17 }
  0x26   : > { %s497_s23 = sshll.u32 %s12690_s22, 4  ;;  %s484_s21 = sshll.u32 %s6972_s28, 4  ;;  %s498_s23 = int_to_ptr.hbm [resolvable:$true] %s497_s23  ;;  %s485_s21 = int_to_ptr.vmem [resolvable:$true] %s484_s21 }
  0x27   : > { %6540 = dma.hbm_to_vmem [thread:$0]  (!%p7152_p13), %s498_s23, 32, %s500_s25, [#allocation8]  }
  0x28   : > { %s536_s26 = sshll.u32 %s12691_s9, 4  ;;  %s12694_s9 = sld [smem:[#allocation217_spill]]  ;;  %s537_s26 = int_to_ptr.hbm [resolvable:$true] %s536_s26 }
  0x29   : > { %s572_s22 = sshll.u32 %s12693_s15, 4  ;;  %s6973_s25 = smov 256   ;;  %s573_s22 = int_to_ptr.hbm [resolvable:$true] %s572_s22 }
  0x2a   : > { %6546 = dma.hbm_to_vmem [thread:$0]  (!%p7152_p13), %s537_s26, 256, %s539_s24, [#allocation11]  }
  0x2b   : > { %6552 = dma.hbm_to_vmem [thread:$0]  (!%p7152_p13), %s573_s22, 256, %s575_s17, [#allocation14]  }
  0x2c   : > { %s6974_s23 = smov 16   ;;  %s12695_s4 = sld [smem:[#allocation220_spill]] }
  0x2d   : > { %s560_s17 = sshll.u32 %s12412_s14, 4  ;;  %s6976_s22 = smov [#allocation12]   ;;  %s561_s17 = int_to_ptr.hbm [resolvable:$true] %s560_s17 }
  0x2e   : > { %s482_s3 = sshll.u32 %s12694_s9, 4  ;;  %s6975_s9 = smov [#allocation9]   ;;  %s483_s3 = int_to_ptr.hbm [resolvable:$true] %s482_s3 }
  0x2f   : > { %6537 = dma.hbm_to_vmem [thread:$0]  (!%p7152_p13), %s483_s3, 8192, %s485_s21, [#allocation5], %s6973_s25, %s6973_s25, %s6974_s23  }
  0x30   : > { %s514_s19 = sshll.u32 %s6975_s9, 4  ;;  %s562_s28 = sshll.u32 %s6976_s22, 4  ;;  %s515_s19 = int_to_ptr.vmem [resolvable:$true] %s514_s19  ;;  %s563_s28 = int_to_ptr.vmem [resolvable:$true] %s562_s28 }
  0x31   : > { %s583_s21 = sshll.u32 %s12414_s16, 4  ;;  %s6977_s26 = smov [#allocation15]   ;;  %s584_s21 = int_to_ptr.hbm [resolvable:$true] %s583_s21 }
  0x32   : > { %s512_s24 = sshll.u32 %s12695_s4, 4  ;;  %s585_s29 = sshll.u32 %s6977_s26, 4  ;;  %s513_s24 = int_to_ptr.hbm [resolvable:$true] %s512_s24  ;;  %s586_s29 = int_to_ptr.vmem [resolvable:$true] %s585_s29 }
  0x33   : > { %6543 = dma.hbm_to_vmem [thread:$0]  (!%p7152_p13), %s513_s24, 16, %s515_s19, [#allocation8]  }
  0x34   : > { %6549 = dma.hbm_to_vmem [thread:$0]  (!%p7152_p13), %s561_s17, 32, %s563_s28, [#allocation11]  }
  0x35   : > { %6555 = dma.hbm_to_vmem [thread:$0]  (!%p7152_p13), %s584_s21, 512, %s586_s29, [#allocation14], %s6973_s25, %s6973_s25, %s6974_s23  }
  0x36   : > { %615 = sbr.rel (%p7138_p11) target bundleno = 4511 (0x119f), region = 96 }
  0x3b   : > { %6934 = dma.done.wait (%p6560_p10), [#allocation5], 8192  }
  0x3c   : > { %6936 = vsyncadd (%p6560_p10), [#allocation5], 4294959104 }
  0x3d   : > { %6938 = dma.done.wait (%p6560_p10), [#allocation8], 48  }
  0x3e   : > { %6940 = vsyncadd (%p6560_p10), [#allocation8], 4294967248 }
  0x3f   : > { %6942 = dma.done.wait (%p6560_p10), [#allocation11], 288  }
  0x40   : > { %6944 = vsyncadd (%p6560_p10), [#allocation11], 4294967008 }
  0x41   : > { %6946 = dma.done.wait (%p6560_p10), [#allocation14], 768  }
  0x42   : > { %6948 = vsyncadd (%p6560_p10), [#allocation14], 4294966528  ;;  %s12473_s15 = sand.u32 1, %s6959_s30   ;;  %p702_p0 = scmp.lt.s32.totalorder %s7109_s1, 1 }
  0x43   : > { %s6415_s0 = sshll.u32 %s12473_s15, 5  ;;  %s12696_s9 = sld [smem:[#allocation216_spill]] }
  0x44   : > { %s703_s27 = scalar_select %p702_p0, %s7109_s1, 1 }
  0x45   : > { %s7213_s20 = scalar_lea.vmem [#allocation16], %s6415_s0  ;;  %710 = sbr.rel (%p6399_p9) target bundleno = 96 (0x60), region = 128 }
  0x46   : > { %s6502_s25 = sshll.u32 %s703_s27, 5 }
  0x49   : > { %s7211_s19 = scalar_lea.vmem %s12696_s9, %s6502_s25 }
  0x4a   : > { %v6978_v0 = vmov 0.0  }
  0x4b   : > { %713 = vst [vmem:[#allocation2 + $0x10] sm:$0xff] %v6978_v0 }
  0x4c   : > { %714 = vst [vmem:[#allocation2 + $0x48] sm:$0xff] %v6978_v0 }
  0x4d   : > { %718 = vst [vmem:[#allocation2 + $0x18] sm:$0xff] %v6978_v0 }
  0x4e   : > { %719 = vst [vmem:[#allocation2 + $0x80] sm:$0xff] %v6978_v0 }
  0x4f   : > { %720 = vst [vmem:[#allocation2 + $0x110] sm:$0xff] %v6978_v0 }
  0x50   : > { %721 = vst [vmem:[#allocation2 + $0x118] sm:$0xff] %v6978_v0 }
  0x51   : > { %723 = vst [vmem:[#allocation2 + $0xf8] sm:$0xff] %v6978_v0 }
  0x52   : > { %724 = vst [vmem:[#allocation2 + $0x38] sm:$0xff] %v6978_v0 }
  0x53   : > { %725 = vst [vmem:[#allocation2 + $0x8] sm:$0xff] %v6978_v0 }
  0x54   : > { %727 = vst [vmem:[#allocation2 + $0x20] sm:$0xff] %v6978_v0 }
  0x55   : > { %728 = vst [vmem:[#allocation2 + $0xc8] sm:$0xff] %v6978_v0 }
  0x56   : > { %729 = vst [vmem:[#allocation2 + $0x90] sm:$0xff] %v6978_v0 }
  0x57   : > { %730 = vst [vmem:[#allocation2 + $0xa0] sm:$0xff] %v6978_v0 }
  0x58   : > { %733 = vst [vmem:[#allocation2 + $0xe0] sm:$0xff] %v6978_v0 }
  0x59   : > { %734 = vst [vmem:[#allocation2 + $0x60] sm:$0xff] %v6978_v0 }
  0x5a   : > { %736 = vst [vmem:[#allocation2 + $0x88] sm:$0xff] %v6978_v0 }
  0x5b   : > { %737 = vst [vmem:[#allocation2 + $0xd8] sm:$0xff] %v6978_v0 }
  0x5c   : > { %738 = vst [vmem:[#allocation2 + $0xc0] sm:$0xff] %v6978_v0 }
  0x5d   : > { %739 = vst [vmem:[#allocation2 + $0x50] sm:$0xff] %v6978_v0 }
  0x5e   : > { %743 = vst [vmem:[#allocation2 + $0x100] sm:$0xff] %v6978_v0 }
  0x5f   : > { %744 = vst [vmem:[#allocation2] sm:$0xff] %v6978_v0 }
  0x60 PF: > { %v1337_v1 = vld [vmem:[%s12405_s7] ss:$8 sm:$0x3]  ;;  %v6423_v4 = vld [vmem:[%s12405_s7 + $0x1] ss:$8 sm:$0x3] }
  0x61   : > { %v1340_v2 = vperm.slane %v1337_v1, 1  ;;  %v1339_v3 = vperm.slane %v1337_v1, 0  ;;  %v1417_v5 = vperm.slane %v6423_v4, 0  ;;  %s6979_s3 = smov 96   ;;  %s6980_s29 = smov 112   ;;  %v1418_v7 = vperm.slane %v6423_v4, 1 }
  0x62   : > { %v6425_v6 = vld [vmem:[%s12405_s7 + $0x3] ss:$8 sm:$0x3]  ;;  %s6981_s0 = smov 16   ;;  %s12478_s9 = smov 32   ;;  %v7272_v34 = vld [vmem:[#allocation2 + $0x18] sm:$0xff] }
  0x63   : > { %1343 = vrot.lane.b32.xlu1 %v1340_v2, %s6979_s3  ;;  %1341 = vrot.lane.b32.xlu0 %v1339_v3, %s6979_s3  ;;  %v1526_v8 = vperm.slane %v6425_v6, 0  ;;  %v1527_v9 = vperm.slane %v6425_v6, 1  ;;  %v6426_v10 = vld [vmem:[%s12405_s7 + $0x4] ss:$8 sm:$0x3]  ;;  %v7274_v35 = vld [vmem:[#allocation2 + $0x38] sm:$0xff] }
  0x64   : > { %1419 = vrot.lane.b32.xlu2 %v1417_v5, %s6980_s29  ;;  %v1596_v11 = vperm.slane %v6426_v10, 0  ;;  %v1597_v12 = vperm.slane %v6426_v10, 1  ;;  %v6427_v13 = vld [vmem:[%s12405_s7 + $0x5] ss:$8 sm:$0x3]  ;;  %vm1373_vm0 = vcmask 1041408  }
  0x65   : > { %v1666_v14 = vperm.slane %v6427_v13, 0  ;;  %v6428_v15 = vld [vmem:[%s12405_s7 + $0x6] ss:$8 sm:$0x3]  ;;  %v1667_v16 = vperm.slane %v6427_v13, 1  ;;  %v7298_v50 = vld [vmem:[#allocation2 + $0x118] sm:$0xff] }
  0x66   : > { %v1737_v17 = vperm.slane %v6428_v15, 0  ;;  %v1738_v18 = vperm.slane %v6428_v15, 1  ;;  %v6430_v19 = vld [vmem:[%s12405_s7 + $0x10] ss:$8 sm:$0x3]  ;;  %v7282_v39 = vld [vmem:[#allocation2 + $0xa0] sm:$0xff] }
  0x67   : > { %v1844_v20 = vperm.slane %v6430_v19, 0  ;;  %v1845_v21 = vperm.slane %v6430_v19, 1  ;;  %v6431_v22 = vld [vmem:[%s12405_s7 + $0x11] ss:$8 sm:$0x3]  ;;  %v7300_v51 = vld [vmem:[#allocation2 + $0x20] sm:$0xff] }
  0x68   : > { %v1914_v23 = vperm.slane %v6431_v22, 0  ;;  %v6432_v24 = vld [vmem:[%s12405_s7 + $0x12] ss:$8 sm:$0x3]  ;;  %v1915_v25 = vperm.slane %v6431_v22, 1  ;;  %v7312_v57 = vld [vmem:[#allocation2 + $0xe0] sm:$0xff] }
  0x69   : > { %v1984_v26 = vperm.slane %v6432_v24, 0  ;;  %v1985_v27 = vperm.slane %v6432_v24, 1  ;;  %v6433_v28 = vld [vmem:[%s12405_s7 + $0x13] ss:$8 sm:$0x3]  ;;  %vm1694_vm1 = vcmask 1040384  }
  0x6a   : > { %v2033_v29 = vperm.slane %v6433_v28, 0  ;;  %v2034_v30 = vperm.slane %v6433_v28, 1  ;;  %v6435_v31 = vld [vmem:[%s12405_s7 + $0x15] ss:$8 sm:$0x3]  ;;  %vm2223_vm2 = vcmask 1046528  }
  0x6b   : > { %1421 = vrot.lane.b32.xlu0 %v1418_v7, %s6980_s29  ;;  %1528 = vrot.lane.b32.xlu1 %v1526_v8, %s6981_s0  ;;  %v2097_v32 = vperm.slane %v6435_v31, 0  ;;  %v2098_v33 = vperm.slane %v6435_v31, 1  ;;  %vm2541_vm3 = vcmask 1045504   ;;  %vm1345_vm8 = vcmask 785408   ;;  %s12480_s23 = smov 48   ;;  %s12491_s17 = smov 80  }
  0x6c   : > { %1530 = vrot.lane.b32.xlu2 %v1527_v9, %s6981_s0  ;;  %vm1423_vm9 = vcmask 916480   ;;  %s6986_s21 = smov 64   ;;  %s12819_s24 = sld [smem:[#allocation219_spill]]  ;;  %vm1115_vm13 = vcmask 1043456   ;;  %vm1216_vm14 = vcmask 523264  }
  0x6d   : > { %s12839_s2 = smov 48   ;;  %s6503_s28 = sshll.u32 %s7109_s1, 5 }
  0x6e   : > { %s13379_s25 = sld [smem:[#allocation224_spill]]  ;;  %s6263_s22 = sshll.u32 %s7213_s20, 4  ;;  %s6264_s22 = int_to_ptr.vmem [resolvable:$true] %s6263_s22 }
  0x73   : > { %1598 = vrot.lane.b32.xlu0 %v1596_v11, %s12478_s9  ;;  %1600 = vrot.lane.b32.xlu1 %v1597_v12, %s12478_s9 }
  0x74   : > { %1668 = vrot.lane.b32.xlu2 %v1666_v14, %s6979_s3 }
  0x7b   : > { %1670 = vrot.lane.b32.xlu0 %v1667_v16, %s6979_s3  ;;  %1739 = vrot.lane.b32.xlu1 %v1737_v17, %s6980_s29 }
  0x7c   : > { %1741 = vrot.lane.b32.xlu2 %v1738_v18, %s6980_s29 }
  0x83   : > { %1846 = vrot.lane.b32.xlu0 %v1844_v20, %s6981_s0  ;;  %1848 = vrot.lane.b32.xlu1 %v1845_v21, %s6981_s0 }
  0x84   : > { %1916 = vrot.lane.b32.xlu2 %v1914_v23, %s12478_s9 }
  0x8b   : > { %1918 = vrot.lane.b32.xlu0 %v1915_v25, %s12478_s9  ;;  %1986 = vrot.lane.b32.xlu1 %v1984_v26, %s6979_s3 }
  0x8c   : > { %1988 = vrot.lane.b32.xlu2 %v1985_v27, %s6979_s3 }
  0x93   : > { %2035 = vrot.lane.b32.xlu0 %v2033_v29, %s6980_s29  ;;  %2037 = vrot.lane.b32.xlu1 %v2034_v30, %s6980_s29 }
  0x94   : > { %2099 = vrot.lane.b32.xlu2 %v2097_v32, %s6981_s0 }
  0x9b   : > { %2101 = vrot.lane.b32.xlu0 %v2098_v33, %s6981_s0 }
  0xbe   : > { %v7276_v36 = vpop.permute.xlu2 %1419 }
  0xbf   : > { %v1428_v37 = vmul.f32 %v7276_v36, %v7272_v34  ;;  %v1431_v38 = vmul.f32 %v7276_v36, %v7274_v35  ;;  %v1434_v42 = vmul.f32 %v7276_v36, %v7282_v39 }
  0xc1   : > { %v1446_v40 = vrot.slane %v1428_v37, 6  ;;  %v1447_v41 = vrot.slane %v1431_v38, 6  ;;  %v1455_v44 = vrot.slane %v1434_v42, 6  ;;  %v6436_v42 = vld [vmem:[%s12405_s7 + $0x16] ss:$8 sm:$0x3] }
  0xc3   : > { %v1448_v43 = vsel %vm1373_vm0, %v1446_v40, %v1447_v41  ;;  %v1456_v45 = vsel %vm1373_vm0, %v1447_v41, %v1455_v44 }
  0xc4   : > { %1461 = vrot.lane.b32.xlu1 %v1448_v43, %s6981_s0 }
  0xc6   : > { %v7302_v52 = vpop.permute.xlu2 %1530 }
  0xcc   : > { %1467 = vrot.lane.b32.xlu1 %v1456_v45, %s6981_s0 }
  0xce   : > { %v7322_v1 = vpop.permute.xlu2 %1668 }
  0xcf   : > { %v1676_v2 = vmul.f32 %v7322_v1, %v7272_v34  ;;  %v1679_v3 = vmul.f32 %v7322_v1, %v7274_v35  ;;  %v1682_v10 = vmul.f32 %v7322_v1, %v7282_v39 }
  0xd1   : > { %v1695_v5 = vrot.slane %v1676_v2, 7  ;;  %v1696_v6 = vrot.slane %v1679_v3, 7  ;;  %v1704_v11 = vrot.slane %v1682_v10, 7 }
  0xd3   : > { %v1697_v9 = vsel %vm1694_vm1, %v1695_v5, %v1696_v6  ;;  %v1705_v15 = vsel %vm1694_vm1, %v1696_v6, %v1704_v11 }
  0xd5   : > { %v7290_v46 = vpop.permute.xlu1 %1343  ;;  %v7292_v47 = vpop.permute.xlu0 %1341 }
  0xd6   : > { %v1350_v29 = vmul.f32 %v7292_v47, %v7272_v34  ;;  %v1353_v30 = vmul.f32 %v7292_v47, %v7274_v35 }
  0xd8   : > { %v1374_v37 = vrot.slane %v1350_v29, 6  ;;  %v1375_v38 = vrot.slane %v1353_v30, 6 }
  0xda   : > { %v1376_v43 = vsel %vm1373_vm0, %v1374_v37, %v1375_v38 }
  0xdd   : > { %v7294_v48 = vpop.permute.xlu0 %1421  ;;  %v7296_v49 = vpop.permute.xlu1 %1528 }
  0xe5   : > { %v7304_v53 = vpop.permute.xlu0 %1598  ;;  %v7306_v54 = vpop.permute.xlu1 %1600 }
  0xe6   : > { %v1608_v55 = vmul.f32 %v7306_v54, %v7298_v50  ;;  %v1611_v56 = vmul.f32 %v7306_v54, %v7300_v51  ;;  %v1614_v61 = vmul.f32 %v7306_v54, %v7312_v57 }
  0xe8   : > { %v1630_v58 = vrot.slane %v1608_v55, 6  ;;  %v1631_v59 = vrot.slane %v1611_v56, 6  ;;  %v1637_v0 = vrot.slane %v1614_v61, 6  ;;  %v2146_v55 = vperm.slane %v6436_v42, 0 }
  0xe9   : > { %v1541_v61 = vmul.f32 %v7302_v52, %v7300_v51 }
  0xea   : > { %v1632_v60 = vsel %vm1373_vm0, %v1630_v58, %v1631_v59  ;;  %v1638_v4 = vsel %vm1373_vm0, %v1631_v59, %v1637_v0  ;;  %v6437_v59 = vld [vmem:[%s12405_s7 + $0x17] ss:$8 sm:$0x3] }
  0xeb   : > { %1643 = vrot.lane.b32.xlu1 %v1632_v60, %s6979_s3  ;;  %v1538_v60 = vmul.f32 %v7302_v52, %v7298_v50  ;;  %v2196_v5 = vperm.slane %v6437_v59, 1 }
  0xed   : > { %v7318_v62 = vpop.permute.xlu0 %1670  ;;  %v7320_v63 = vpop.permute.xlu1 %1739  ;;  %v1560_v6 = vrot.slane %v1538_v60, 6 }
  0xee   : > { %v1747_v31 = vmul.f32 %v7320_v63, %v7272_v34  ;;  %v1750_v32 = vmul.f32 %v7320_v63, %v7274_v35  ;;  %v1356_v34 = vmul.f32 %v7292_v47, %v7282_v39  ;;  %v1753_v45 = vmul.f32 %v7320_v63, %v7282_v39 }
  0xf0   : > { %v1765_v40 = vrot.slane %v1747_v31, 7  ;;  %v1766_v41 = vrot.slane %v1750_v32, 7  ;;  %v1383_v56 = vrot.slane %v1356_v34, 6  ;;  %v1774_v58 = vrot.slane %v1753_v45, 7 }
  0xf2   : > { %v1767_v44 = vsel %vm1694_vm1, %v1765_v40, %v1766_v41  ;;  %v1384_v0 = vsel %vm1373_vm0, %v1375_v38, %v1383_v56  ;;  %v1775_v2 = vsel %vm1694_vm1, %v1766_v41, %v1774_v58 }
  0xf3   : > { %1649 = vrot.lane.b32.xlu1 %v1638_v4, %s6979_s3 }
  0xf5   : > { %v7330_v7 = vpop.permute.xlu0 %1846  ;;  %v7332_v8 = vpop.permute.xlu1 %1848 }
  0xf6   : > { %v1856_v16 = vmul.f32 %v7332_v8, %v7298_v50  ;;  %v1859_v17 = vmul.f32 %v7332_v8, %v7300_v51  ;;  %v1862_v24 = vmul.f32 %v7332_v8, %v7312_v57 }
  0xf8   : > { %v1878_v21 = vrot.slane %v1856_v16, 7  ;;  %v1879_v22 = vrot.slane %v1859_v17, 7  ;;  %v1885_v28 = vrot.slane %v1862_v24, 7  ;;  %v2195_v24 = vperm.slane %v6437_v59, 0 }
  0xfa   : > { %v1880_v23 = vsel %vm1694_vm1, %v1878_v21, %v1879_v22  ;;  %v1886_v33 = vsel %vm1694_vm1, %v1879_v22, %v1885_v28  ;;  %v2147_v22 = vperm.slane %v6436_v42, 1 }
  0xfb   : > { %1710 = vrot.lane.b32.xlu1 %v1697_v9, %s12478_s9  ;;  %v1561_v9 = vrot.slane %v1541_v61, 6 }
  0xfd   : > { %v7338_v12 = vpop.permute.xlu0 %1918  ;;  %v7340_v13 = vpop.permute.xlu1 %1986 }
  0xfe   : > { %v1994_v14 = vmul.f32 %v7340_v13, %v7274_v35  ;;  %v1997_v20 = vmul.f32 %v7340_v13, %v7282_v39  ;;  %v1926_v3 = vmul.f32 %v7338_v12, %v7298_v50  ;;  %v1929_v4 = vmul.f32 %v7338_v12, %v7300_v51 }
  0xff   : > { %v1932_v16 = vmul.f32 %v7338_v12, %v7312_v57 }
 0x100   : > { %2006 = vrot.lane.b32.xlu0 %v1994_v14, %s12478_s9  ;;  %v1948_v10 = vrot.slane %v1926_v3, 7  ;;  %v1949_v11 = vrot.slane %v1929_v4, 7  ;;  %v1562_v14 = vsel %vm1373_vm0, %v1560_v6, %v1561_v9  ;;  %v7480_v4 = vld [vmem:[#allocation2 + $0x88] sm:$0xff] }
 0x102   : > { %v1950_v50 = vsel %vm1694_vm1, %v1948_v10, %v1949_v11 }
 0x103   : > { %1716 = vrot.lane.b32.xlu1 %v1705_v15, %s12478_s9  ;;  %v1544_v15 = vmul.f32 %v7302_v52, %v7312_v57 }
 0x105   : > { %v7351_v18 = vpop.permute.xlu0 %2035  ;;  %v1567_v17 = vrot.slane %v1544_v15, 6 }
 0x106   : > { %v2043_v19 = vmul.f32 %v7351_v18, %v7274_v35  ;;  %v2046_v26 = vmul.f32 %v7351_v18, %v7282_v39 }
 0x108   : > { %2055 = vrot.lane.b32.xlu2 %v2043_v19, %s6981_s0  ;;  %2012 = vrot.lane.b32.xlu0 %v1997_v20, %s12478_s9  ;;  %v1955_v19 = vrot.slane %v1932_v16, 7  ;;  %v1568_v20 = vsel %vm1373_vm0, %v1561_v9, %v1567_v17 }
 0x10a   : > { %v1956_v21 = vsel %vm1694_vm1, %v1949_v11, %v1955_v19 }
 0x10b   : > { %1891 = vrot.lane.b32.xlu1 %v1880_v23, %s6980_s29 }
 0x10d   : > { %v7363_v25 = vpop.permute.xlu0 %2101 }
 0x10e   : > { %v2109_v27 = vmul.f32 %v7363_v25, %v7300_v51  ;;  %v2112_v23 = vmul.f32 %v7363_v25, %v7312_v57 }
 0x110   : > { %2061 = vrot.lane.b32.xlu2 %v2046_v26, %s6981_s0  ;;  %2123 = vrot.lane.b32.xlu0 %v2109_v27, %s6980_s29  ;;  %v7425_v26 = vpop.permute.xlu2 %1741 }
 0x113   : > { %1897 = vrot.lane.b32.xlu1 %v1886_v33, %s6980_s29 }
 0x118   : > { %1389 = vrot.lane.b32.xlu2 %v1376_v43, %s12478_s9  ;;  %1780 = vrot.lane.b32.xlu0 %v1767_v44, %s6981_s0  ;;  %v7428_v27 = vpop.permute.xlu2 %1916  ;;  %v6438_v43 = vld [vmem:[%s12405_s7 + $0x20] ss:$8 sm:$0x3] }
 0x119   : > { %v2267_v44 = vperm.slane %v6438_v43, 1  ;;  %v2266_v15 = vperm.slane %v6438_v43, 0 }
 0x11b   : > { %2148 = vrot.lane.b32.xlu1 %v2146_v55, %s12478_s9 }
 0x120   : > { %1395 = vrot.lane.b32.xlu2 %v1384_v0, %s12478_s9  ;;  %1786 = vrot.lane.b32.xlu0 %v1775_v2, %s6981_s0  ;;  %v7430_v28 = vpop.permute.xlu2 %1988 }
 0x123   : > { %2199 = vrot.lane.b32.xlu1 %v2196_v5, %s6979_s3 }
 0x128   : > { %1961 = vrot.lane.b32.xlu0 %v1950_v50, %s6979_s3  ;;  %1573 = vrot.lane.b32.xlu2 %v1562_v14, %s6980_s29  ;;  %v7432_v29 = vpop.permute.xlu2 %2099  ;;  %v6440_v50 = vld [vmem:[%s12405_s7 + $0x22] ss:$8 sm:$0x3] }
 0x129   : > { %v2374_v16 = vperm.slane %v6440_v50, 1 }
 0x130   : > { %1967 = vrot.lane.b32.xlu0 %v1956_v21, %s6979_s3  ;;  %1579 = vrot.lane.b32.xlu2 %v1568_v20, %s6980_s29  ;;  %v6441_v21 = vld [vmem:[%s12405_s7 + $0x23] ss:$8 sm:$0x3] }
 0x138   : > { %2129 = vrot.lane.b32.xlu0 %v2112_v23, %s6980_s29  ;;  %2150 = vrot.lane.b32.xlu2 %v2147_v22, %s12478_s9  ;;  %v2443_v22 = vperm.slane %v6441_v21, 0 }
 0x140   : > { %2197 = vrot.lane.b32.xlu0 %v2195_v24, %s6979_s3  ;;  %v6442_v24 = vld [vmem:[%s12405_s7 + $0x24] ss:$8 sm:$0x3] }
 0x141   : > { %v2514_v43 = vperm.slane %v6442_v24, 1 }
 0x148   : > { %2270 = vrot.lane.b32.xlu0 %v2267_v44, %s6980_s29 }
 0x150   : > { %2445 = vrot.lane.b32.xlu0 %v2443_v22, %s12478_s9 }
 0x158   : > { %2517 = vrot.lane.b32.xlu0 %v2514_v43, %s6979_s3 }
 0x162   : > { %v7434_v30 = vpop.permute.xlu2 %2055 }
 0x163   : > { %12697 = vst [vmem:[#allocation29_spill] sm:$0xff] %v7434_v30  ;;  %v811_v30 = vld [vmem:[#allocation4 + $0x1e0] sm:$0xff] }
 0x16a   : > { %v7436_v31 = vpop.permute.xlu2 %2061 }
 0x16b   : > { %12698 = vst [vmem:[#allocation30_spill] sm:$0xff] %v7436_v31  ;;  %v778_v31 = vld [vmem:[#allocation4 + $0xd8] sm:$0xff] }
 0x172   : > { %v7438_v32 = vpop.permute.xlu2 %1389  ;;  %v7440_v33 = vpop.permute.xlu0 %2006 }
 0x173   : > { %12699 = vst [vmem:[#allocation31_spill] sm:$0xff] %v7438_v32 }
 0x174   : > { %12700 = vst [vmem:[#allocation32_spill] sm:$0xff] %v7440_v33 }
 0x17a   : > { %v7442_v37 = vpop.permute.xlu2 %1395  ;;  %v7444_v38 = vpop.permute.xlu0 %2012 }
 0x17b   : > { %12701 = vst [vmem:[#allocation33_spill] sm:$0xff] %v7442_v37 }
 0x17c   : > { %12702 = vst [vmem:[#allocation34_spill] sm:$0xff] %v7444_v38  ;;  %v812_v38 = vld [vmem:[#allocation4 + $0x1e8] sm:$0xff] }
 0x182   : > { %v7446_v40 = vpop.permute.xlu0 %2123  ;;  %v7448_v41 = vpop.permute.xlu2 %1573 }
 0x183   : > { %12703 = vst [vmem:[#allocation35_spill] sm:$0xff] %v7446_v40  ;;  %v813_v40 = vld [vmem:[#allocation4 + $0x1f0] sm:$0xff] }
 0x184   : > { %12704 = vst [vmem:[#allocation36_spill] sm:$0xff] %v7448_v41  ;;  %844 = vmatpush.msra.mxu1 %v813_v40 }
 0x186   : > { %845 = vmatpush.msra.mxu1 %v811_v30  ;;  %v805_v30 = vld [vmem:[#allocation4 + $0x1b0] sm:$0xff] }
 0x18a   : > { %v7450_v42 = vpop.permute.xlu0 %1780  ;;  %v7452_v34 = vpop.permute.xlu2 %1579 }
 0x18b   : > { %12705 = vst [vmem:[#allocation37_spill] sm:$0xff] %v7450_v42 }
 0x18c   : > { %12706 = vst [vmem:[#allocation38_spill] sm:$0xff] %v7452_v34  ;;  %v767_v34 = vld [vmem:[#allocation4 + $0x80] sm:$0xff] }
 0x192   : > { %v7458_v45 = vpop.permute.xlu0 %1786  ;;  %v7460_v55 = vpop.permute.xlu2 %2150 }
 0x193   : > { %12707 = vst [vmem:[#allocation39_spill] sm:$0xff] %v7458_v45  ;;  %v2158_v56 = vmul.f32 %v7460_v55, %v7300_v51  ;;  %v2161_v58 = vmul.f32 %v7460_v55, %v7312_v57 }
 0x195   : > { %2172 = vrot.lane.b32.xlu2 %v2158_v56, %s6979_s3 }
 0x19a   : > { %v7467_v59 = vpop.permute.xlu0 %1961 }
 0x19b   : > { %12708 = vst [vmem:[#allocation40_spill] sm:$0xff] %v7467_v59  ;;  %v798_v59 = vld [vmem:[#allocation4 + $0x178] sm:$0xff] }
 0x19d   : > { %2178 = vrot.lane.b32.xlu2 %v2161_v58, %s6979_s3 }
 0x1a2   : > { %v7470_v60 = vpop.permute.xlu0 %1967 }
 0x1a3   : > { %12709 = vst [vmem:[#allocation41_spill] sm:$0xff] %v7470_v60  ;;  %v781_v60 = vld [vmem:[#allocation4 + $0xf0] sm:$0xff] }
 0x1a4   : > { %821 = vmatpush.msra.mxu0 %v781_v60 }
 0x1aa   : > { %v7472_v61 = vpop.permute.xlu0 %2129 }
 0x1ab   : > { %12710 = vst [vmem:[#allocation42_spill] sm:$0xff] %v7472_v61  ;;  %v814_v61 = vld [vmem:[#allocation4 + $0x1f8] sm:$0xff] }
 0x1ac   : > { %890 = vmatpush.msra.mxu3 %v814_v61  ;;  %v774_v61 = vld [vmem:[#allocation4 + $0xb8] sm:$0xff] }
 0x1ae   : > { %891 = vmatpush.msra.mxu3 %v812_v38  ;;  %v772_v38 = vld [vmem:[#allocation4 + $0xa8] sm:$0xff] }
 0x1b2   : > { %v7474_v0 = vpop.permute.xlu0 %2197 }
 0x1b3   : > { %12711 = vst [vmem:[#allocation43_spill] sm:$0xff] %v7474_v0  ;;  %v2205_v2 = vmul.f32 %v7474_v0, %v7274_v35  ;;  %v2208_v3 = vmul.f32 %v7474_v0, %v7282_v39  ;;  %v2211_v10 = vmul.f32 %v7474_v0, %v7480_v4 }
 0x1b5   : > { %v2224_v5 = vrot.slane %v2205_v2, 1  ;;  %v2225_v6 = vrot.slane %v2208_v3, 1  ;;  %v2233_v11 = vrot.slane %v2211_v10, 1  ;;  %v7521_v10 = vld [vmem:[#allocation2 + $0x50] sm:$0xff] }
 0x1b7   : > { %v2226_v9 = vsel %vm2223_vm2, %v2224_v5, %v2225_v6  ;;  %v2234_v14 = vsel %vm2223_vm2, %v2225_v6, %v2233_v11 }
 0x1b8   : > { %2239 = vrot.lane.b32.xlu2 %v2226_v9, %s12478_s9 }
 0x1c0   : > { %2245 = vrot.lane.b32.xlu2 %v2234_v14, %s12478_s9 }
 0x1c8   : > { %2268 = vrot.lane.b32.xlu2 %v2266_v15, %s6980_s29 }
 0x1d0   : > { %2377 = vrot.lane.b32.xlu2 %v2374_v16, %s6981_s0 }
 0x1ef   : > { %v7493_v17 = vpop.permute.xlu2 %2172 }
 0x1f0   : > { %12712 = vst [vmem:[#allocation44_spill] sm:$0xff] %v7493_v17 }
 0x1f7   : > { %v7495_v19 = vpop.permute.xlu2 %2178 }
 0x1f8   : > { %12713 = vst [vmem:[#allocation45_spill] sm:$0xff] %v7495_v19 }
 0x212   : > { %v7497_v20 = vpop.permute.xlu2 %2239 }
 0x213   : > { %12714 = vst [vmem:[#allocation46_spill] sm:$0xff] %v7497_v20 }
 0x21a   : > { %v7502_v23 = vpop.permute.xlu2 %2245 }
 0x21b   : > { %12715 = vst [vmem:[#allocation47_spill] sm:$0xff] %v7502_v23  ;;  %v780_v23 = vld [vmem:[#allocation4 + $0xe8] sm:$0xff] }
 0x222   : > { %v7508_v44 = vpop.permute.xlu2 %2268 }
 0x223   : > { %12716 = vst [vmem:[#allocation48_spill] sm:$0xff] %v7508_v44  ;;  %v2276_v56 = vmul.f32 %v7508_v44, %v7274_v35  ;;  %v2279_v58 = vmul.f32 %v7508_v44, %v7282_v39  ;;  %v2282_v6 = vmul.f32 %v7508_v44, %v7480_v4 }
 0x225   : > { %v2294_v2 = vrot.slane %v2276_v56, 1  ;;  %v2295_v3 = vrot.slane %v2279_v58, 1  ;;  %v2303_v11 = vrot.slane %v2282_v6, 1  ;;  %v2373_v6 = vperm.slane %v6440_v50, 0 }
 0x227   : > { %v2296_v5 = vsel %vm2223_vm2, %v2294_v2, %v2295_v3  ;;  %v2304_v56 = vsel %vm2223_vm2, %v2295_v3, %v2303_v11  ;;  %v2513_v3 = vperm.slane %v6442_v24, 0 }
 0x228   : > { %2309 = vrot.lane.b32.xlu1 %v2296_v5, %s6981_s0  ;;  %v7533_v5 = vpop.permute.xlu1 %2037 }
 0x22a   : > { %v7519_v9 = vpop.permute.xlu2 %2377 }
 0x22b   : > { %12717 = vst [vmem:[#allocation49_spill] sm:$0xff] %v7519_v9  ;;  %v2385_v14 = vmul.f32 %v7519_v9, %v7300_v51  ;;  %v2388_v15 = vmul.f32 %v7519_v9, %v7312_v57  ;;  %v2391_v43 = vmul.f32 %v7519_v9, %v7521_v10 }
 0x22d   : > { %v2407_v16 = vrot.slane %v2385_v14, 1  ;;  %v2408_v22 = vrot.slane %v2388_v15, 1  ;;  %v2414_v2 = vrot.slane %v2391_v43, 1  ;;  %v2444_v15 = vperm.slane %v6441_v21, 1 }
 0x22f   : > { %v2409_v58 = vsel %vm2223_vm2, %v2407_v16, %v2408_v22  ;;  %v2415_v19 = vsel %vm2223_vm2, %v2408_v22, %v2414_v2 }
 0x230   : > { %2315 = vrot.lane.b32.xlu1 %v2304_v56, %s6981_s0  ;;  %2420 = vrot.lane.b32.xlu2 %v2409_v58, %s6980_s29  ;;  %v7538_v14 = vpop.permute.xlu1 %1461 }
 0x231   : > { %12718 = vst [vmem:[#allocation50_spill] sm:$0xff] %v7538_v14 }
 0x238   : > { %2375 = vrot.lane.b32.xlu1 %v2373_v6, %s6981_s0  ;;  %2426 = vrot.lane.b32.xlu2 %v2415_v19, %s6980_s29  ;;  %v7542_v11 = vpop.permute.xlu1 %1467 }
 0x239   : > { %12719 = vst [vmem:[#allocation51_spill] sm:$0xff] %v7542_v11 }
 0x240   : > { %2447 = vrot.lane.b32.xlu1 %v2444_v15, %s12478_s9  ;;  %2515 = vrot.lane.b32.xlu2 %v2513_v3, %s6979_s3  ;;  %v7544_v16 = vpop.permute.xlu1 %1643  ;;  %v782_v15 = vld [vmem:[#allocation4 + $0xf8] sm:$0xff] }
 0x241   : > { %12720 = vst [vmem:[#allocation52_spill] sm:$0xff] %v7544_v16  ;;  %867 = vmatpush.msra.mxu2 %v782_v15 }
 0x243   : > { %868 = vmatpush.msra.mxu2 %v780_v23 }
 0x245   : > { %869 = vmatpush.msra.mxu2 %v778_v31  ;;  %v777_v31 = vld [vmem:[#allocation4 + $0xd0] sm:$0xff] }
 0x248   : > { %v7546_v43 = vpop.permute.xlu1 %1649 }
 0x249   : > { %12721 = vst [vmem:[#allocation53_spill] sm:$0xff] %v7546_v43 }
 0x250   : > { %v7548_v50 = vpop.permute.xlu1 %1710 }
 0x251   : > { %12722 = vst [vmem:[#allocation54_spill] sm:$0xff] %v7548_v50 }
 0x258   : > { %v7550_v22 = vpop.permute.xlu1 %1716 }
 0x259   : > { %12723 = vst [vmem:[#allocation55_spill] sm:$0xff] %v7550_v22 }
 0x260   : > { %v7552_v56 = vpop.permute.xlu1 %1891 }
 0x261   : > { %12724 = vst [vmem:[#allocation56_spill] sm:$0xff] %v7552_v56 }
 0x268   : > { %v7554_v19 = vpop.permute.xlu1 %1897 }
 0x269   : > { %12725 = vst [vmem:[#allocation57_spill] sm:$0xff] %v7554_v19  ;;  %v810_v19 = vld [vmem:[#allocation4 + $0x1d8] sm:$0xff] }
 0x26a   : > { %892 = vmatpush.msra.mxu3 %v810_v19  ;;  %v770_v19 = vld [vmem:[#allocation4 + $0x98] sm:$0xff] }
 0x270   : > { %v7556_v21 = vpop.permute.xlu1 %2148 }
 0x278   : > { %v7558_v24 = vpop.permute.xlu1 %2199 }
 0x28a   : > { %v7564_v6 = vpop.permute.xlu2 %2420 }
 0x28b   : > { %12728 = vst [vmem:[#allocation60_spill] sm:$0xff] %v7564_v6 }
 0x292   : > { %v7568_v17 = vpop.permute.xlu2 %2426 }
 0x293   : > { %12730 = vst [vmem:[#allocation62_spill] sm:$0xff] %v7568_v17  ;;  %v808_v17 = vld [vmem:[#allocation4 + $0x1c8] sm:$0xff] }
 0x294   : > { %893 = vmatpush.msra.mxu3 %v808_v17  ;;  %v768_v17 = vld [vmem:[#allocation4 + $0x88] sm:$0xff] }
 0x29a   : > { %v7560_v58 = vpop.permute.xlu1 %2309  ;;  %v7580_v40 = vpop.permute.xlu2 %2515 }
 0x29b   : > { %12726 = vst [vmem:[#allocation58_spill] sm:$0xff] %v7560_v58  ;;  %v776_v58 = vld [vmem:[#allocation4 + $0xc8] sm:$0xff]  ;;  %v2523_v33 = vmul.f32 %v7580_v40, %v7274_v35 }
 0x29c   : > { %870 = vmatpush.msra.mxu2 %v776_v58  ;;  %v809_v58 = vld [vmem:[#allocation4 + $0x1d0] sm:$0xff]  ;;  %12732 = vst [vmem:[#allocation64_spill] sm:$0xff] %v7580_v40 }
 0x29d   : > { %846 = vmatpush.msra.mxu1 %v809_v58  ;;  %v2542_v56 = vrot.slane %v2523_v33, 2 }
 0x29e   : > { %871 = vmatpush.msra.mxu2 %v774_v61  ;;  %v807_v61 = vld [vmem:[#allocation4 + $0x1c0] sm:$0xff] }
 0x29f   : > { %847 = vmatpush.msra.mxu1 %v807_v61  ;;  %v801_v61 = vld [vmem:[#allocation4 + $0x190] sm:$0xff] }
 0x2a0   : > { %872 = vmatpush.msra.mxu2 %v772_v38  ;;  %v7586_v38 = vmul.f32 %v7580_v40, %v7282_v39 }
 0x2a1   : > { %848 = vmatpush.msra.mxu1 %v805_v30  ;;  %v794_v30 = vld [vmem:[#allocation4 + $0x158] sm:$0xff] }
 0x2a2   : > { %v7562_v2 = vpop.permute.xlu1 %2315  ;;  %873 = vmatpush.msra.mxu2 %v770_v19  ;;  %v803_v19 = vld [vmem:[#allocation4 + $0x1a0] sm:$0xff] }
 0x2a3   : > { %12727 = vst [vmem:[#allocation59_spill] sm:$0xff] %v7562_v2  ;;  %v779_v2 = vld [vmem:[#allocation4 + $0xe0] sm:$0xff]  ;;  %849 = vmatpush.msra.mxu1 %v803_v19  ;;  %v756_v19 = vld [vmem:[#allocation4 + $0x28] sm:$0xff] }
 0x2a4   : > { %822 = vmatpush.msra.mxu0 %v779_v2  ;;  %v806_v2 = vld [vmem:[#allocation4 + $0x1b8] sm:$0xff]  ;;  %874 = vmatpush.msra.mxu2 %v768_v17 }
 0x2a5   : > { %894 = vmatpush.msra.mxu3 %v806_v2  ;;  %v766_v2 = vld [vmem:[#allocation4 + $0x78] sm:$0xff]  ;;  %850 = vmatpush.msra.mxu1 %v801_v61  ;;  %v793_v61 = vld [vmem:[#allocation4 + $0x150] sm:$0xff] }
 0x2a6   : > { %823 = vmatpush.msra.mxu0 %v777_v31  ;;  %v771_v31 = vld [vmem:[#allocation4 + $0xa0] sm:$0xff]  ;;  %875 = vmatpush.msra.mxu2 %v766_v2  ;;  %v762_v17 = vld [vmem:[#allocation4 + $0x58] sm:$0xff] }
 0x2a7   : > { %v763_v2 = vld [vmem:[#allocation4 + $0x60] sm:$0xff] }
 0x2aa   : > { %v7566_v3 = vpop.permute.xlu1 %2375 }
 0x2ab   : > { %12729 = vst [vmem:[#allocation61_spill] sm:$0xff] %v7566_v3  ;;  %v7683_v3 = vpop.permute.xlu0 %2270 }
 0x2ac   : > { %12739 = vst [vmem:[#allocation71_spill] sm:$0xff] %v7683_v3 }
 0x2b2   : > { %v7570_v20 = vpop.permute.xlu1 %2447 }
 0x2b3   : > { %12731 = vst [vmem:[#allocation63_spill] sm:$0xff] %v7570_v20  ;;  %v2455_v15 = vmul.f32 %v7570_v20, %v7300_v51  ;;  %v2458_v6 = vmul.f32 %v7570_v20, %v7312_v57  ;;  %v2461_v22 = vmul.f32 %v7570_v20, %v7521_v10 }
 0x2b5   : > { %v2477_v23 = vrot.slane %v2455_v15, 1  ;;  %v2478_v45 = vrot.slane %v2458_v6, 1  ;;  %v775_v6 = vld [vmem:[#allocation4 + $0xc0] sm:$0xff]  ;;  %v804_v15 = vld [vmem:[#allocation4 + $0x1a8] sm:$0xff]  ;;  %v2484_v43 = vrot.slane %v2461_v22, 1 }
 0x2b6   : > { %824 = vmatpush.msra.mxu0 %v775_v6  ;;  %895 = vmatpush.msra.mxu3 %v804_v15  ;;  %v800_v22 = vld [vmem:[#allocation4 + $0x188] sm:$0xff]  ;;  %v769_v6 = vld [vmem:[#allocation4 + $0x90] sm:$0xff] }
 0x2b7   : > { %v2479_v60 = vsel %vm2223_vm2, %v2477_v23, %v2478_v45  ;;  %v773_v23 = vld [vmem:[#allocation4 + $0xb0] sm:$0xff]  ;;  %v2485_v58 = vsel %vm2223_vm2, %v2478_v45, %v2484_v43  ;;  %v764_v15 = vld [vmem:[#allocation4 + $0x68] sm:$0xff] }
 0x2b8   : > { %2490 = vrot.lane.b32.xlu1 %v2479_v60, %s6979_s3  ;;  %v802_v60 = vld [vmem:[#allocation4 + $0x198] sm:$0xff]  ;;  %825 = vmatpush.msra.mxu0 %v773_v23  ;;  %v2543_v23 = vrot.slane %v7586_v38, 2  ;;  %v796_v45 = vld [vmem:[#allocation4 + $0x168] sm:$0xff]  ;;  %v765_v43 = vld [vmem:[#allocation4 + $0x70] sm:$0xff] }
 0x2b9   : > { %896 = vmatpush.msra.mxu3 %v802_v60  ;;  %876 = vmatpush.msra.mxu2 %v764_v15  ;;  %v799_v60 = vld [vmem:[#allocation4 + $0x180] sm:$0xff]  ;;  %v797_v38 = vld [vmem:[#allocation4 + $0x170] sm:$0xff]  ;;  %v790_v15 = vld [vmem:[#allocation4 + $0x138] sm:$0xff] }
 0x2ba   : > { %826 = vmatpush.msra.mxu0 %v771_v31  ;;  %v760_v31 = vld [vmem:[#allocation4 + $0x48] sm:$0xff]  ;;  %v2544_v33 = vsel %vm2541_vm3, %v2542_v56, %v2543_v23  ;;  %851 = vmatpush.msra.mxu1 %v799_v60  ;;  %v759_v56 = vld [vmem:[#allocation4 + $0x40] sm:$0xff]  ;;  %v757_v60 = vld [vmem:[#allocation4 + $0x30] sm:$0xff] }
 0x2bb   : > { %897 = vmatpush.msra.mxu3 %v800_v22  ;;  %877 = vmatpush.msra.mxu2 %v762_v17  ;;  %v758_v22 = vld [vmem:[#allocation4 + $0x38] sm:$0xff] }
 0x2bc   : > { %827 = vmatpush.msra.mxu0 %v769_v6  ;;  %v792_v6 = vld [vmem:[#allocation4 + $0x148] sm:$0xff]  ;;  %852 = vmatpush.msra.mxu1 %v797_v38  ;;  %v754_v17 = vld [vmem:[#allocation4 + $0x18] sm:$0xff]  ;;  %v747_v38 = vld [vmem:[%s7211_s19] sm:$0xff] }
 0x2bd   : > { %898 = vmatpush.msra.mxu3 %v798_v59  ;;  %878 = vmatpush.msra.mxu2 %v760_v31  ;;  %v795_v59 = vld [vmem:[#allocation4 + $0x160] sm:$0xff] }
 0x2be   : > { %828 = vmatpush.msra.mxu0 %v767_v34  ;;  %v761_v34 = vld [vmem:[#allocation4 + $0x50] sm:$0xff]  ;;  %853 = vmatpush.msra.mxu1 %v795_v59  ;;  %v791_v31 = vld [vmem:[#allocation4 + $0x140] sm:$0xff]  ;;  %v784_v59 = vld [vmem:[#allocation4 + $0x108] sm:$0xff] }
 0x2bf   : > { %899 = vmatpush.msra.mxu3 %v796_v45  ;;  %879 = vmatpush.msra.mxu2 %v758_v22  ;;  %v788_v45 = vld [vmem:[#allocation4 + $0x128] sm:$0xff]  ;;  %v755_v22 = vld [vmem:[#allocation4 + $0x20] sm:$0xff] }
 0x2c0   : > { %2496 = vrot.lane.b32.xlu1 %v2485_v58, %s6979_s3  ;;  %829 = vmatpush.msra.mxu0 %v765_v43  ;;  %v2529_v58 = vmul.f32 %v7580_v40, %v7480_v4 }
 0x2c1   : > { %900 = vmatpush.msra.mxu3 %v794_v30  ;;  %880 = vmatpush.msra.mxu2 %v756_v19  ;;  %v752_v30 = vld [vmem:[#allocation4 + $0x8] sm:$0xff] }
 0x2c2   : > { %830 = vmatpush.msra.mxu0 %v763_v2  ;;  %v2551_v43 = vrot.slane %v2529_v58, 2  ;;  %854 = vmatpush.msra.mxu1 %v793_v61  ;;  %v786_v2 = vld [vmem:[#allocation4 + $0x118] sm:$0xff]  ;;  %v748_v19 = vld [vmem:[%s7211_s19 + $0x8] sm:$0xff]  ;;  %v751_v61 = vld [vmem:[#allocation4] sm:$0xff] }
 0x2c3   : > { %901 = vmatpush.msra.mxu3 %v792_v6  ;;  %881 = vmatpush.msra.mxu2 %v754_v17  ;;  %v789_v6 = vld [vmem:[#allocation4 + $0x130] sm:$0xff] }
 0x2c4   : > { %831 = vmatpush.msra.mxu0 %v761_v34  ;;  %855 = vmatpush.msra.mxu1 %v791_v31  ;;  %v2552_v34 = vsel %vm2541_vm3, %v2543_v23, %v2551_v43  ;;  %v785_v23 = vld [vmem:[#allocation4 + $0x110] sm:$0xff]  ;;  %v6445_v31 = vld [vmem:[%s12405_s7 + $0x27] ss:$8 sm:$0x3] }
 0x2c5   : > { %902 = vmatpush.msra.mxu3 %v790_v15  ;;  %882 = vmatpush.msra.mxu2 %v752_v30  ;;  %v753_v15 = vld [vmem:[#allocation4 + $0x10] sm:$0xff]  ;;  %v2692_v30 = vperm.slane %v6445_v31, 1 }
 0x2c6   : > { %832 = vmatpush.msra.mxu0 %v759_v56  ;;  %883 = vmatmul.f32.vlgmr.msra.gmra.mxu2 %v747_v38  ;;  %v787_v56 = vld [vmem:[#allocation4 + $0x120] sm:$0xff]  ;;  %v749_v43 = vld [vmem:[%s7211_s19 + $0x10] sm:$0xff] }
 0x2c7   : > { %903 = vmatpush.msra.mxu3 %v788_v45  ;;  %856 = vmatpush.msra.mxu1 %v789_v6  ;;  %v783_v45 = vld [vmem:[#allocation4 + $0x100] sm:$0xff] }
 0x2c8   : > { %2557 = vrot.lane.b32.xlu1 %v2544_v33, %s12478_s9  ;;  %v6443_v33 = vld [vmem:[%s12405_s7 + $0x25] ss:$8 sm:$0x3]  ;;  %833 = vmatpush.msra.mxu0 %v757_v60  ;;  %v750_v60 = vld [vmem:[%s7211_s19 + $0x18] sm:$0xff]  ;;  %s12985_s19 = smov 80  }
 0x2c9   : > { %v2585_v58 = vperm.slane %v6443_v33, 1  ;;  %904 = vmatpush.msra.mxu3 %v786_v2  ;;  %v2584_v17 = vperm.slane %v6443_v33, 0  ;;  %857 = vmatpush.msra.mxu1 %v787_v56 }
 0x2ca   : > { %834 = vmatpush.msra.mxu0 %v755_v22 }
 0x2cb   : > { %905 = vmatpush.msra.mxu3 %v784_v59  ;;  %2588 = vrot.lane.b32.xlu2 %v2585_v58, %s6980_s29 }
 0x2cc   : > { %906 = vmatmul.f32.vlgmr.msra.gmra.mxu3 %v748_v19  ;;  %835 = vmatpush.msra.mxu0 %v753_v15 }
 0x2cd   : > { %858 = vmatpush.msra.mxu1 %v785_v23 }
 0x2ce   : > { %836 = vmatpush.msra.mxu0 %v751_v61  ;;  %886 = vmatmul.f32.gmra.mxu2 %v749_v43 }
 0x2cf   : > { %837 = vmatmul.f32.vlgmr.msra.gmra.mxu0 %v747_v38  ;;  %859 = vmatpush.msra.mxu1 %v783_v45 }
 0x2d0   : > { %2563 = vrot.lane.b32.xlu1 %v2552_v34, %s12478_s9  ;;  %860 = vmatmul.f32.vlgmr.msra.gmra.mxu1 %v748_v19 }
 0x2d4   : > { %909 = vmatmul.f32.gmra.mxu3 %v750_v60 }
 0x2d7   : > { %840 = vmatmul.f32.gmra.mxu0 %v749_v43 }
 0x2d8   : > { %2586 = vrot.lane.b32.xlu1 %v2584_v17, %s6980_s29  ;;  %863 = vmatmul.f32.gmra.mxu1 %v750_v60 }
 0x2e0   : > { %2695 = vrot.lane.b32.xlu1 %v2692_v30, %s6981_s0 }
 0x32a   : > { %v7610_v2 = vpop.permute.xlu1 %2490 }
 0x32b   : > { %12733 = vst [vmem:[#allocation65_spill] sm:$0xff] %v7610_v2 }
 0x332   : > { %v7612_v33 = vpop.permute.xlu1 %2496 }
 0x333   : > { %12734 = vst [vmem:[#allocation66_spill] sm:$0xff] %v7612_v33 }
 0x33a   : > { %v7614_v38 = vpop.permute.xlu1 %2557 }
 0x33b   : > { %12735 = vst [vmem:[#allocation67_spill] sm:$0xff] %v7614_v38 }
 0x342   : > { %v7616_v22 = vpop.permute.xlu1 %2563 }
 0x343   : > { %12736 = vst [vmem:[#allocation68_spill] sm:$0xff] %v7616_v22 }
 0x34a   : > { %v7618_v6 = vpop.permute.xlu1 %2586 }
 0x34b   : > { %12737 = vst [vmem:[#allocation69_spill] sm:$0xff] %v7618_v6  ;;  %v2594_v58 = vmul.f32 %v7618_v6, %v7274_v35  ;;  %v2597_v34 = vmul.f32 %v7618_v6, %v7282_v39  ;;  %v2600_v56 = vmul.f32 %v7618_v6, %v7480_v4 }
 0x34d   : > { %v2612_v59 = vrot.slane %v2594_v58, 2  ;;  %v2613_v19 = vrot.slane %v2597_v34, 2  ;;  %v2621_v23 = vrot.slane %v2600_v56, 2  ;;  %v2691_v58 = vperm.slane %v6445_v31, 0  ;;  %v838_v56 = vpop.f32.mrf.mxu0 }
 0x34f   : > { %v2614_v15 = vsel %vm2541_vm3, %v2612_v59, %v2613_v19  ;;  %v2622_v60 = vsel %vm2541_vm3, %v2613_v19, %v2621_v23  ;;  %v2857_v59 = vld [vmem:[%s12411_s13] ss:$8 sm:$0x3]  ;;  %v861_v23 = vpop.f32.mrf.mxu1 }
 0x350   : > { %2627 = vrot.lane.b32.xlu0 %v2614_v15, %s6981_s0  ;;  %v2859_v15 = vperm.slane %v2857_v59, 0  ;;  %v2860_v31 = vperm.slane %v2857_v59, 1 }
 0x352   : > { %v7628_v61 = vpop.permute.xlu1 %2695 }
 0x353   : > { %12738 = vst [vmem:[#allocation70_spill] sm:$0xff] %v7628_v61  ;;  %v2703_v17 = vmul.f32 %v7628_v61, %v7300_v51  ;;  %v2706_v35 = vmul.f32 %v7628_v61, %v7312_v57  ;;  %v2709_v43 = vmul.f32 %v7628_v61, %v7521_v10  ;;  %v6446_v57 = vld [vmem:[%s12405_s7 + $0x30] ss:$8 sm:$0x3] }
 0x354   : > { %v2761_v34 = vperm.slane %v6446_v57, 0  ;;  %v2762_v19 = vperm.slane %v6446_v57, 1 }
 0x355   : > { %v2725_v45 = vrot.slane %v2703_v17, 2  ;;  %v2726_v39 = vrot.slane %v2706_v35, 2  ;;  %v2732_v30 = vrot.slane %v2709_v43, 2  ;;  %v815_v17 = vld [vmem:[#allocation7] sm:$0x3] }
 0x356   : > { %2763 = vrot.lane.b32.xlu2 %v2761_v34, %s12478_s9  ;;  %v817_v35 = vperm.slane %v815_v17, 0  ;;  %v818_v57 = vperm.slane %v815_v17, 1 }
 0x357   : > { %v2727_v4 = vsel %vm2541_vm3, %v2725_v45, %v2726_v39  ;;  %v2733_v51 = vsel %vm2541_vm3, %v2726_v39, %v2732_v30  ;;  %v884_v45 = vpop.f32.mrf.mxu2  ;;  %v841_v39 = vpop.f32.mrf.mxu0 }
 0x358   : > { %2633 = vrot.lane.b32.xlu0 %v2622_v60, %s6981_s0  ;;  %2738 = vrot.lane.b32.xlu1 %v2727_v4, %s6980_s29  ;;  %v839_v43 = vadd.f32 %v838_v56, %v817_v35  ;;  %v842_v60 = vadd.f32 %v841_v39, %v817_v35  ;;  %v907_v4 = vpop.f32.mrf.mxu3  ;;  %v864_v30 = vpop.f32.mrf.mxu1 }
 0x35e   : > { %2863 = vrot.lane.b32.xlu2 %v2860_v31, %s6979_s3 }
 0x35f   : > { %v887_v59 = vpop.f32.mrf.mxu2 }
 0x360   : > { %2693 = vrot.lane.b32.xlu0 %v2691_v58, %s6981_s0  ;;  %2744 = vrot.lane.b32.xlu1 %v2733_v51, %s6980_s29  ;;  %v7653_v58 = vadd.f32 %v861_v23, %v839_v43  ;;  %v7655_v51 = vadd.f32 %v864_v30, %v842_v60  ;;  %v888_v31 = vadd.f32 %v887_v59, %v818_v57  ;;  %v910_v56 = vpop.f32.mrf.mxu3 }
 0x362   : > { %v7658_v34 = vmul.f32 0.70710677, %v7653_v58  ;;  %v7667_v23 = vadd.f32 %v910_v56, %v888_v31 }
 0x364   : > { %v929_v22 = vand.u32 2147483647, %v7658_v34  ;;  %v7673_v30 = vmul.f32 0.70710677, %v7667_v23  ;;  %vm921_vm4 = vcmp.lt.f32.partialorder %v7658_v34, 0.0 }
 0x366   : > { %v933_v43 = vmul.f32 0.3275911, %v929_v22  ;;  %v7679_v59 = vand.u32 2147483647, %v7673_v30  ;;  %vm924_vm7 = vcmp.lt.f32.partialorder %v7673_v30, 0.0 }
 0x368   : > { %2765 = vrot.lane.b32.xlu0 %v2762_v19, %s12478_s9  ;;  %2861 = vrot.lane.b32.xlu1 %v2859_v15, %s6979_s3  ;;  %v7661_v19 = vmul.f32 0.70710677, %v7655_v51  ;;  %v885_v15 = vadd.f32 %v884_v45, %v818_v57  ;;  %v937_v33 = vadd.f32 1.0, %v933_v43 }
 0x36a   : > { %v931_v35 = vand.u32 2147483647, %v7661_v19  ;;  %v7665_v39 = vadd.f32 %v907_v4, %v885_v15  ;;  %6642 = vrcp.f32 %v937_v33  ;;  %v936_v15 = vmul.f32 0.3275911, %v7679_v59 }
 0x36b   : > { %vm923_vm5 = vcmp.lt.f32.partialorder %v7661_v19, 0.0 }
 0x36c   : > { %v935_v17 = vmul.f32 0.3275911, %v931_v35  ;;  %v7670_v60 = vmul.f32 0.70710677, %v7665_v39  ;;  %v940_v2 = vadd.f32 1.0, %v936_v15 }
 0x36e   : > { %v939_v45 = vadd.f32 1.0, %v935_v17  ;;  %v7676_v57 = vand.u32 2147483647, %v7670_v60  ;;  %vm922_vm6 = vcmp.lt.f32.partialorder %v7670_v60, 0.0  ;;  %v7737_v60 = vld [vmem:[#allocation2 + $0x38] sm:$0xff] }
 0x370   : > { %6644 = vrcp.f32 %v939_v45  ;;  %v934_v4 = vmul.f32 0.3275911, %v7676_v57  ;;  %v6643_v31 = vpop.eup %6642 }
 0x371   : > { %v945_v11 = vmul.f32 %v6643_v31, %v937_v33 }
 0x372   : > { %v938_v56 = vadd.f32 1.0, %v934_v4 }
 0x373   : > { %v949_v17 = vsub.f32 2.0, %v945_v11 }
 0x374   : > { %6646 = vrcp.f32 %v938_v56 }
 0x375   : > { %6648 = vrcp.f32 %v940_v2  ;;  %v953_v16 = vmul.f32 %v6643_v31, %v949_v17  ;;  %v995_v17 = vsub.f32 0.0, %v931_v35 }
 0x376   : > { %v6645_v38 = vpop.eup %6644 }
 0x377   : > { %v947_v43 = vmul.f32 %v6645_v38, %v939_v45  ;;  %v957_v61 = vmul.f32 1.0614054, %v953_v16 }
 0x379   : > { %v951_v37 = vsub.f32 2.0, %v947_v43  ;;  %v961_v4 = vadd.f32 -1.4531521, %v957_v61 }
 0x37a   : > { %v6647_v42 = vpop.eup %6646 }
 0x37b   : > { %v6649_v50 = vpop.eup %6648  ;;  %v955_v41 = vmul.f32 %v6645_v38, %v951_v37  ;;  %v946_v14 = vmul.f32 %v6647_v42, %v938_v56  ;;  %v965_v11 = vmul.f32 %v961_v4, %v953_v16  ;;  %v7691_v38 = vpop.permute.xlu0 %2445 }
 0x37c   : > { %v948_v32 = vmul.f32 %v6649_v50, %v940_v2  ;;  %12740 = vst [vmem:[#allocation72_spill] sm:$0xff] %v7691_v38 }
 0x37d   : > { %v959_v20 = vmul.f32 1.0614054, %v955_v41  ;;  %v950_v40 = vsub.f32 2.0, %v946_v14  ;;  %v969_v2 = vadd.f32 1.4214138, %v965_v11  ;;  %v993_v14 = vsub.f32 0.0, %v929_v22 }
 0x37e   : > { %v952_v6 = vsub.f32 2.0, %v948_v32 }
 0x37f   : > { %v963_v15 = vadd.f32 -1.4531521, %v959_v20  ;;  %v7685_v33 = vmul.f32 %v6647_v42, %v950_v40  ;;  %v973_v61 = vmul.f32 %v969_v2, %v953_v16  ;;  %v997_v42 = vmul.f32 %v993_v14, %v929_v22 }
 0x380   : > { %v7687_v45 = vmul.f32 %v6649_v50, %v952_v6  ;;  %v999_v6 = vmul.f32 %v995_v17, %v931_v35  ;;  %v996_v2 = vsub.f32 0.0, %v7679_v59 }
 0x381   : > { %v967_v43 = vmul.f32 %v963_v15, %v955_v41  ;;  %v958_v9 = vmul.f32 1.0614054, %v7685_v33  ;;  %v977_v15 = vadd.f32 -0.28449672, %v973_v61  ;;  %v1001_v3 = vmul.f32 1.442695, %v997_v42 }
 0x382   : > { %v960_v37 = vmul.f32 1.0614054, %v7687_v45  ;;  %v1000_v17 = vmul.f32 %v996_v2, %v7679_v59  ;;  %v6983_v2 = vmov 1.0  }
 0x383   : > { %v971_v31 = vadd.f32 1.4214138, %v967_v43  ;;  %v962_v32 = vadd.f32 -1.4531521, %v958_v9  ;;  %v7695_v4 = vpop.permute.xlu0 %2517  ;;  %v1005_v43 = vmul.f32 1.442695, %v999_v6  ;;  %v981_v0 = vmul.f32 %v977_v15, %v953_v16 }
 0x384   : > { %v964_v56 = vadd.f32 -1.4531521, %v960_v37  ;;  %v994_v9 = vsub.f32 0.0, %v7676_v57  ;;  %6650 = vpow2.f32 %v1001_v3  ;;  %v1007_v6 = vmul.f32 1.442695, %v1000_v17 }
 0x385   : > { %v975_v20 = vmul.f32 %v971_v31, %v955_v41  ;;  %v966_v50 = vmul.f32 %v962_v32, %v7685_v33  ;;  %6652 = vpow2.f32 %v1005_v43  ;;  %v985_v35 = vadd.f32 0.2548296, %v981_v0  ;;  %v7707_v0 = vpop.permute.xlu2 %2588 }
 0x386   : > { %v968_v40 = vmul.f32 %v964_v56, %v7687_v45  ;;  %v998_v14 = vmul.f32 %v994_v9, %v7676_v57 }
 0x387   : > { %v979_v44 = vadd.f32 -0.28449672, %v975_v20  ;;  %v970_v38 = vadd.f32 1.4214138, %v966_v50 }
 0x388   : > { %v972_v11 = vadd.f32 1.4214138, %v968_v40  ;;  %v1003_v50 = vmul.f32 1.442695, %v998_v14 }
 0x389   : > { %v983_v37 = vmul.f32 %v979_v44, %v955_v41  ;;  %v974_v22 = vmul.f32 %v970_v38, %v7685_v33  ;;  %v989_v44 = vmul.f32 %v985_v35, %v953_v16 }
 0x38a   : > { %v976_v31 = vmul.f32 %v972_v11, %v7687_v45  ;;  %v6651_v42 = vpop.eup %6650  ;;  %6654 = vpow2.f32 %v1003_v50 }
 0x38b   : > { %v987_v32 = vadd.f32 0.2548296, %v983_v37  ;;  %v978_v61 = vadd.f32 -0.28449672, %v974_v22  ;;  %v6653_v3 = vpop.eup %6652  ;;  %v1009_v57 = vmul.f32 %v6651_v42, %v989_v44  ;;  %6656 = vpow2.f32 %v1007_v6 }
 0x38c   : > { %v980_v20 = vadd.f32 -0.28449672, %v976_v31  ;;  %v925_v22 = vsel %vm921_vm4, -1.0, %v6983_v2  ;;  %v927_v31 = vsel %vm923_vm5, -1.0, %v6983_v2 }
 0x38d   : > { %v991_v40 = vmul.f32 %v987_v32, %v955_v41  ;;  %v982_v38 = vmul.f32 %v978_v61, %v7685_v33  ;;  %v1013_v9 = vsub.f32 1.0, %v1009_v57  ;;  %v928_v57 = vsel %vm924_vm7, -1.0, %v6983_v2 }
 0x38e   : > { %v984_v15 = vmul.f32 %v980_v20, %v7687_v45 }
 0x38f   : > { %v1011_v11 = vmul.f32 %v6653_v3, %v991_v40  ;;  %v986_v16 = vadd.f32 0.2548296, %v982_v38  ;;  %v1017_v20 = vmul.f32 %v1013_v9, %v925_v22  ;;  %v913_v40 = vmul.f32 0.5, %v7653_v58 }
 0x390   : > { %v988_v41 = vadd.f32 0.2548296, %v984_v15  ;;  %v6655_v35 = vpop.eup %6654  ;;  %v926_v15 = vsel %vm922_vm6, -1.0, %v6983_v2 }
 0x391   : > { %v1015_v37 = vsub.f32 1.0, %v1011_v11  ;;  %v990_v14 = vmul.f32 %v986_v16, %v7685_v33  ;;  %v6657_v17 = vpop.eup %6656  ;;  %v1021_v3 = vadd.f32 1.0, %v1017_v20  ;;  %v915_v33 = vmul.f32 0.5, %v7655_v51  ;;  %v6666_v51 = vld [vmem:[#allocation2 + $0x20] sm:$0xff] }
 0x392   : > { %v992_v32 = vmul.f32 %v988_v41, %v7687_v45 }
 0x393   : > { %v1019_v42 = vmul.f32 %v1015_v37, %v927_v31  ;;  %v1010_v19 = vmul.f32 %v6655_v35, %v990_v14  ;;  %v7729_v16 = vmul.f32 %v1021_v3, %v913_v40  ;;  %v6667_v37 = vld [vmem:[#allocation2 + $0xe0] sm:$0xff]  ;;  %v916_v3 = vmul.f32 0.5, %v7667_v23  ;;  %v2842_v23 = vld [vmem:[#allocation2 + $0xf8] sm:$0xff] }
 0x394   : > { %v1012_v50 = vmul.f32 %v6657_v17, %v992_v32 }
 0x395   : > { %v1023_v6 = vadd.f32 1.0, %v1019_v42  ;;  %v1014_v45 = vsub.f32 1.0, %v1010_v19 }
 0x396   : > { %v1016_v38 = vsub.f32 1.0, %v1012_v50  ;;  %v914_v50 = vmul.f32 0.5, %v7665_v39 }
 0x397   : > { %v7731_v41 = vmul.f32 %v1023_v6, %v915_v33  ;;  %v1018_v2 = vmul.f32 %v1014_v45, %v926_v15  ;;  %v7754_v6 = vld [vmem:[#allocation2 + $0xa0] sm:$0xff] }
 0x398   : > { %v1020_v31 = vmul.f32 %v1016_v38, %v928_v57 }
 0x399   : > { %v1029_v20 = vadd.f32 %v7731_v41, %v7729_v16  ;;  %v1022_v40 = vadd.f32 1.0, %v1018_v2 }
 0x39a   : > { %v1024_v33 = vadd.f32 1.0, %v1020_v31 }
 0x39b   : > { %v1030_v45 = vrot.slane %v1029_v20, 4  ;;  %v7757_v57 = vmul.f32 %v1022_v40, %v914_v50 }
 0x39d   : > { %v1031_v39 = vadd.f32 %v1030_v45, %v1029_v20 }
 0x39f   : > { %v1032_v2 = vrot.slane %v1031_v39, 2 }
 0x3a1   : > { %v1033_v20 = vadd.f32 %v1032_v2, %v1031_v39 }
 0x3a3   : > { %v1034_v50 = vrot.slane %v1033_v20, 1 }
 0x3a5   : > { %v7776_v45 = vadd.f32 %v1034_v50, %v1033_v20 }
 0x3b0   : > { %v7717_v61 = vpop.permute.xlu2 %2763 }
 0x3b1   : > { %12744 = vst [vmem:[#allocation76_spill] sm:$0xff] %v7717_v61 }
 0x3b8   : > { %v7727_v11 = vpop.permute.xlu2 %2863 }
 0x3b9   : > { %12747 = vst [vmem:[#allocation79_spill] sm:$0xff] %v7727_v11 }
 0x3c2   : > { %v7702_v56 = vpop.permute.xlu0 %2627 }
 0x3c3   : > { %12741 = vst [vmem:[#allocation73_spill] sm:$0xff] %v7702_v56 }
 0x3ca   : > { %v7709_v43 = vpop.permute.xlu0 %2633  ;;  %v7711_v59 = vpop.permute.xlu1 %2738 }
 0x3cb   : > { %12742 = vst [vmem:[#allocation74_spill] sm:$0xff] %v7709_v43  ;;  %v8114_v43 = vld [vmem:[%s12411_s13 + $0x14] ss:$8 sm:$0x3] }
 0x3cc   : > { %12743 = vst [vmem:[#allocation75_spill] sm:$0xff] %v7711_v59 }
 0x3d2   : > { %v7719_v34 = vpop.permute.xlu0 %2693  ;;  %v7721_v44 = vpop.permute.xlu1 %2744 }
 0x3d3   : > { %12745 = vst [vmem:[#allocation77_spill] sm:$0xff] %v7719_v34 }
 0x3d4   : > { %12746 = vst [vmem:[#allocation78_spill] sm:$0xff] %v7721_v44 }
 0x3da   : > { %v7733_v9 = vpop.permute.xlu0 %2765  ;;  %v7735_v58 = vpop.permute.xlu1 %2861 }
 0x3db   : > { %12748 = vst [vmem:[#allocation80_spill] sm:$0xff] %v7733_v9  ;;  %v2773_v30 = vmul.f32 %v6666_v51, %v7733_v9  ;;  %v2776_v22 = vmul.f32 %v6667_v37, %v7733_v9  ;;  %v2865_v35 = vsel %vm1345_vm8, %v7735_v58, %v7727_v11  ;;  %v2779_v19 = vmul.f32 %v7733_v9, %v7521_v10 }
 0x3dc   : > { %v2870_v17 = vmul.f32 %v2865_v35, %v7737_v60  ;;  %v2873_v15 = vmul.f32 %v2865_v35, %v7754_v6  ;;  %v7759_v51 = vmul.f32 %v1024_v33, %v916_v3  ;;  %v1043_v37 = vmax.f32 %v7729_v16, %v7731_v41 }
 0x3dd   : > { %v2795_v14 = vrot.slane %v2773_v30, 2  ;;  %v2796_v32 = vrot.slane %v2776_v22, 2  ;;  %v2802_v38 = vrot.slane %v2779_v19, 2  ;;  %v2869_v35 = vmul.f32 %v7735_v58, %v2842_v23 }
 0x3de   : > { %2888 = vrot.lane.b32.xlu1 %v2870_v17, %s12478_s9  ;;  %v1036_v10 = vadd.f32 %v7759_v51, %v7757_v57  ;;  %v1050_v22 = vmax.f32 %v7757_v57, %v7759_v51 }
 0x3df   : > { %v2797_v42 = vsel %vm2541_vm3, %v2795_v14, %v2796_v32  ;;  %v2803_v30 = vsel %vm2541_vm3, %v2796_v32, %v2802_v38  ;;  %v1044_v14 = vrot.slane %v1043_v37, 4  ;;  %v6447_v32 = vld [vmem:[%s12411_s13 + $0x1] ss:$8 sm:$0x3] }
 0x3e0   : > { %2808 = vrot.lane.b32.xlu0 %v2797_v42, %s6979_s3  ;;  %v1037_v31 = vrot.slane %v1036_v10, 4  ;;  %v1051_v17 = vrot.slane %v1050_v22, 4  ;;  %v2914_v19 = vperm.slane %v6447_v32, 1 }
 0x3e1   : > { %v1045_v3 = vmax.f32 %v1043_v37, %v1044_v14 }
 0x3e2   : > { %v1038_v42 = vadd.f32 %v1037_v31, %v1036_v10  ;;  %v1052_v33 = vmax.f32 %v1050_v22, %v1051_v17  ;;  %v2848_v17 = vld [vmem:[#allocation2 + $0x90] sm:$0xff] }
 0x3e3   : > { %v2872_v20 = vmul.f32 %v7735_v58, %v2848_v17 }
 0x3e4   : > { %v1039_v40 = vrot.slane %v1038_v42, 2 }
 0x3e6   : > { %2894 = vrot.lane.b32.xlu1 %v2873_v15, %s12478_s9  ;;  %v1040_v38 = vadd.f32 %v1039_v40, %v1038_v42  ;;  %v1046_v15 = vrot.slane %v1045_v3, 2  ;;  %v2913_v42 = vperm.slane %v6447_v32, 0 }
 0x3e8   : > { %2814 = vrot.lane.b32.xlu0 %v2803_v30, %s6979_s3  ;;  %v1053_v30 = vrot.slane %v1052_v33, 2  ;;  %v1041_v10 = vrot.slane %v1040_v38, 1  ;;  %v1047_v39 = vmax.f32 %v1045_v3, %v1046_v15 }
 0x3ea   : > { %v1054_v2 = vmax.f32 %v1052_v33, %v1053_v30  ;;  %v7780_v31 = vadd.f32 %v1041_v10, %v1040_v38 }
 0x3ec   : > { %v1055_v44 = vrot.slane %v1054_v2, 1 }
 0x3ee   : > { %2917 = vrot.lane.b32.xlu1 %v2914_v19, %s6980_s29  ;;  %v7786_v22 = vmax.f32 %v1054_v2, %v1055_v44 }
 0x3f0   : > { %2886 = vrot.lane.b32.xlu0 %v2869_v35, %s12478_s9  ;;  %v1048_v35 = vrot.slane %v1047_v39, 1 }
 0x3f2   : > { %v7784_v37 = vmax.f32 %v1047_v39, %v1048_v35 }
 0x3f4   : > { %v6626_v14 = vpack.i.bf16 %v7786_v22, %v7784_v37 }
 0x3f8   : > { %1057 = vrot.lane.b32.xlu0 %v7776_v45, %s6981_s0 }
 0x400   : > { %1059 = vrot.lane.b32.xlu0 %v7780_v31, %s6981_s0 }
 0x408   : > { %6627 = vrot.lane.b32.xlu0 %v6626_v14, %s6981_s0 }
 0x410   : > { %2892 = vrot.lane.b32.xlu0 %v2872_v20, %s12478_s9 }
 0x418   : > { %2915 = vrot.lane.b32.xlu0 %v2913_v42, %s6980_s29 }
 0x450   : > { %v7804_v33 = vpop.permute.xlu1 %2888 }
 0x451   : > { %12752 = vst [vmem:[#allocation84_spill] sm:$0xff] %v7804_v33 }
 0x452   : > { %v7794_v19 = vpop.permute.xlu0 %2808 }
 0x453   : > { %12749 = vst [vmem:[#allocation81_spill] sm:$0xff] %v7794_v19 }
 0x458   : > { %v7808_v58 = vpop.permute.xlu1 %2894 }
 0x459   : > { %12753 = vst [vmem:[#allocation85_spill] sm:$0xff] %v7808_v58 }
 0x45a   : > { %v7796_v50 = vpop.permute.xlu0 %2814 }
 0x45b   : > { %12750 = vst [vmem:[#allocation82_spill] sm:$0xff] %v7796_v50 }
 0x460   : > { %v7812_v32 = vpop.permute.xlu1 %2917 }
 0x461   : > { %12755 = vst [vmem:[#allocation87_spill] sm:$0xff] %v7812_v32 }
 0x462   : > { %v7798_v40 = vpop.permute.xlu0 %2886 }
 0x463   : > { %12751 = vst [vmem:[#allocation83_spill] sm:$0xff] %v7798_v40 }
 0x46a   : > { %v7800_v44 = vpop.permute.xlu0 %1057 }
 0x472   : > { %v7802_v3 = vpop.permute.xlu0 %1059 }
 0x47a   : > { %v7806_v38 = vpop.permute.xlu0 %6627 }
 0x482   : > { %v7810_v15 = vpop.permute.xlu0 %2892 }
 0x483   : > { %12754 = vst [vmem:[#allocation86_spill] sm:$0xff] %v7810_v15 }
 0x48a   : > { %v2916_v30 = vpop.permute.xlu0 %2915 }
 0x48b   : > { %v2923_v10 = vmul.f32 %v2916_v30, %v2842_v23  ;;  %v2919_v39 = vsel %vm1423_vm9, %v2916_v30, %v7812_v32  ;;  %v2926_v35 = vmul.f32 %v2916_v30, %v2848_v17  ;;  %v6449_v23 = vld [vmem:[%s12411_s13 + $0x3] ss:$8 sm:$0x3]  ;;  %v6450_v17 = vld [vmem:[%s12411_s13 + $0x4] ss:$8 sm:$0x3] }
 0x48c   : > { %v2924_v2 = vmul.f32 %v2919_v39, %v7737_v60  ;;  %v2927_v14 = vmul.f32 %v2919_v39, %v7754_v6  ;;  %v2977_v20 = vperm.slane %v6449_v23, 0  ;;  %v2978_v42 = vperm.slane %v6449_v23, 1 }
 0x48d   : > { %2935 = vrot.lane.b32.xlu2 %v2923_v10, %s6981_s0  ;;  %v3027_v30 = vperm.slane %v6450_v17, 1  ;;  %v3026_v23 = vperm.slane %v6450_v17, 0 }
 0x48e   : > { %2937 = vrot.lane.b32.xlu0 %v2924_v2, %s6981_s0 }
 0x495   : > { %2941 = vrot.lane.b32.xlu2 %v2926_v35, %s6981_s0 }
 0x496   : > { %2943 = vrot.lane.b32.xlu0 %v2927_v14, %s6981_s0 }
 0x49d   : > { %2979 = vrot.lane.b32.xlu2 %v2977_v20, %s6981_s0  ;;  %v3072_v20 = vld [vmem:[%s12409_s11] ss:$8 sm:$0x3] }
 0x49e   : > { %2981 = vrot.lane.b32.xlu0 %v2978_v42, %s6981_s0  ;;  %v3075_v42 = vperm.slane %v3072_v20, 1 }
 0x4a5   : > { %3030 = vrot.lane.b32.xlu2 %v3027_v30, %s12478_s9 }
 0x4e7   : > { %v7827_v10 = vpop.permute.xlu2 %2935 }
 0x4e8   : > { %12756 = vst [vmem:[#allocation88_spill] sm:$0xff] %v7827_v10 }
 0x4ef   : > { %v7829_v2 = vpop.permute.xlu2 %2941 }
 0x4f0   : > { %12757 = vst [vmem:[#allocation89_spill] sm:$0xff] %v7829_v2 }
 0x4f7   : > { %v7835_v39 = vpop.permute.xlu2 %2979 }
 0x4f8   : > { %12758 = vst [vmem:[#allocation90_spill] sm:$0xff] %v7835_v39  ;;  %v2987_v35 = vmul.f32 %v7835_v39, %v7737_v60  ;;  %v2990_v14 = vmul.f32 %v7835_v39, %v7754_v6 }
 0x4fa   : > { %2999 = vrot.lane.b32.xlu1 %v2987_v35, %s6980_s29 }
 0x502   : > { %3005 = vrot.lane.b32.xlu1 %v2990_v14, %s6980_s29 }
 0x50a   : > { %3028 = vrot.lane.b32.xlu1 %v3026_v23, %s12478_s9  ;;  %v3074_v23 = vperm.slane %v3072_v20, 0 }
 0x512   : > { %3078 = vrot.lane.b32.xlu1 %v3075_v42, %s12480_s23  ;;  %v7861_v42 = vpop.permute.xlu0 %2937 }
 0x513   : > { %12762 = vst [vmem:[#allocation94_spill] sm:$0xff] %v7861_v42 }
 0x51a   : > { %v7867_v15 = vpop.permute.xlu0 %2943 }
 0x51b   : > { %12763 = vst [vmem:[#allocation95_spill] sm:$0xff] %v7867_v15  ;;  %v7884_v15 = vpop.permute.xlu2 %3030 }
 0x51c   : > { %12768 = vst [vmem:[#allocation100_spill] sm:$0xff] %v7884_v15 }
 0x56c   : > { %v7848_v30 = vpop.permute.xlu1 %2999 }
 0x56d   : > { %12759 = vst [vmem:[#allocation91_spill] sm:$0xff] %v7848_v30 }
 0x574   : > { %v7850_v2 = vpop.permute.xlu1 %3005 }
 0x575   : > { %12760 = vst [vmem:[#allocation92_spill] sm:$0xff] %v7850_v2  ;;  %v6451_v2 = vld [vmem:[%s12411_s13 + $0x5] ss:$8 sm:$0x3] }
 0x576   : > { %v3131_v30 = vperm.slane %v6451_v2, 1 }
 0x57c   : > { %v7852_v35 = vpop.permute.xlu1 %3028 }
 0x57d   : > { %12761 = vst [vmem:[#allocation93_spill] sm:$0xff] %v7852_v35  ;;  %v3036_v14 = vmul.f32 %v7852_v35, %v7737_v60  ;;  %v3039_v17 = vmul.f32 %v7852_v35, %v7754_v6 }
 0x57f   : > { %3048 = vrot.lane.b32.xlu0 %v3036_v14, %s6979_s3  ;;  %v7869_v14 = vpop.permute.xlu0 %2981 }
 0x580   : > { %12764 = vst [vmem:[#allocation96_spill] sm:$0xff] %v7869_v14 }
 0x587   : > { %3054 = vrot.lane.b32.xlu0 %v3039_v17, %s6979_s3 }
 0x58f   : > { %3076 = vrot.lane.b32.xlu0 %v3074_v23, %s12480_s23 }
 0x597   : > { %3134 = vrot.lane.b32.xlu0 %v3131_v30, %s12480_s23  ;;  %v3130_v30 = vperm.slane %v6451_v2, 0 }
 0x5f1   : > { %v7871_v10 = vpop.permute.xlu0 %3048 }
 0x5f2   : > { %12765 = vst [vmem:[#allocation97_spill] sm:$0xff] %v7871_v10 }
 0x5f9   : > { %v7873_v58 = vpop.permute.xlu0 %3054 }
 0x5fa   : > { %12766 = vst [vmem:[#allocation98_spill] sm:$0xff] %v7873_v58  ;;  %v6452_v58 = vld [vmem:[%s12409_s11 + $0x1] ss:$8 sm:$0x3] }
 0x5fb   : > { %v3180_v40 = vperm.slane %v6452_v58, 1 }
 0x601   : > { %v7875_v20 = vpop.permute.xlu0 %3076 }
 0x602   : > { %12767 = vst [vmem:[#allocation99_spill] sm:$0xff] %v7875_v20  ;;  %v3085_v17 = vmul.f32 %v7875_v20, %v7737_v60  ;;  %v3088_v23 = vmul.f32 %v7875_v20, %v7754_v6 }
 0x604   : > { %3102 = vrot.lane.b32.xlu2 %v3085_v17, %s12491_s17 }
 0x60c   : > { %3108 = vrot.lane.b32.xlu2 %v3088_v23, %s12491_s17 }
 0x614   : > { %3132 = vrot.lane.b32.xlu2 %v3130_v30, %s12480_s23  ;;  %v3179_v30 = vperm.slane %v6452_v58, 0 }
 0x61c   : > { %3183 = vrot.lane.b32.xlu2 %v3180_v40, %s6986_s21  ;;  %v6453_v40 = vld [vmem:[%s12411_s13 + $0x6] ss:$8 sm:$0x3] }
 0x65e   : > { %v7886_v10 = vpop.permute.xlu2 %3102 }
 0x65f   : > { %12769 = vst [vmem:[#allocation101_spill] sm:$0xff] %v7886_v10  ;;  %v7903_v10 = vpop.permute.xlu1 %3078 }
 0x660   : > { %12772 = vst [vmem:[#allocation104_spill] sm:$0xff] %v7903_v10 }
 0x666   : > { %v7892_v17 = vpop.permute.xlu2 %3108 }
 0x667   : > { %12770 = vst [vmem:[#allocation102_spill] sm:$0xff] %v7892_v17  ;;  %v3229_v17 = vperm.slane %v6453_v40, 1 }
 0x66e   : > { %v7894_v42 = vpop.permute.xlu2 %3132 }
 0x66f   : > { %12771 = vst [vmem:[#allocation103_spill] sm:$0xff] %v7894_v42  ;;  %v3140_v2 = vmul.f32 %v7894_v42, %v7737_v60  ;;  %v3143_v23 = vmul.f32 %v7894_v42, %v7754_v6 }
 0x671   : > { %3152 = vrot.lane.b32.xlu1 %v3140_v2, %s12491_s17 }
 0x679   : > { %3158 = vrot.lane.b32.xlu1 %v3143_v23, %s12491_s17 }
 0x681   : > { %3181 = vrot.lane.b32.xlu1 %v3179_v30, %s6986_s21  ;;  %v3228_v30 = vperm.slane %v6453_v40, 0 }
 0x689   : > { %3232 = vrot.lane.b32.xlu1 %v3229_v17, %s6986_s21  ;;  %v3274_v17 = vld [vmem:[#allocation10] ss:$8 sm:$0x3] }
 0x68a   : > { %v3277_v42 = vperm.slane %v3274_v17, 1 }
 0x6e3   : > { %v7909_v33 = vpop.permute.xlu1 %3152 }
 0x6e4   : > { %12773 = vst [vmem:[#allocation105_spill] sm:$0xff] %v7909_v33 }
 0x6eb   : > { %v7911_v2 = vpop.permute.xlu1 %3158 }
 0x6ec   : > { %12774 = vst [vmem:[#allocation106_spill] sm:$0xff] %v7911_v2  ;;  %v7923_v2 = vpop.permute.xlu0 %3134 }
 0x6ed   : > { %12776 = vst [vmem:[#allocation108_spill] sm:$0xff] %v7923_v2 }
 0x6f3   : > { %v7913_v39 = vpop.permute.xlu1 %3181 }
 0x6f4   : > { %12775 = vst [vmem:[#allocation107_spill] sm:$0xff] %v7913_v39  ;;  %v3189_v58 = vmul.f32 %v7913_v39, %v7737_v60  ;;  %v3192_v23 = vmul.f32 %v7913_v39, %v7754_v6 }
 0x6f6   : > { %3201 = vrot.lane.b32.xlu0 %v3189_v58, %s6986_s21 }
 0x6fe   : > { %3207 = vrot.lane.b32.xlu0 %v3192_v23, %s6986_s21  ;;  %v3276_v23 = vperm.slane %v3274_v17, 0 }
 0x706   : > { %3230 = vrot.lane.b32.xlu0 %v3228_v30, %s6986_s21 }
 0x70e   : > { %3280 = vrot.lane.b32.xlu0 %v3277_v42, %s12491_s17  ;;  %v7938_v42 = vpop.permute.xlu2 %3183 }
 0x70f   : > { %12780 = vst [vmem:[#allocation112_spill] sm:$0xff] %v7938_v42 }
 0x768   : > { %v7925_v33 = vpop.permute.xlu0 %3201 }
 0x769   : > { %12777 = vst [vmem:[#allocation109_spill] sm:$0xff] %v7925_v33  ;;  %v1061_v33 = vlaneseq }
 0x76b   : > { %v7944_v39 = vand.u32 127, %v1061_v33  ;;  %v6454_v33 = vld [vmem:[%s12409_s11 + $0x2] ss:$8 sm:$0x3] }
 0x76d   : > { %vm1063_vm10 = vcmp.lt.s32.totalorder %v7944_v39, 16  ;;  %vm1072_vm11 = vcmp.lt.s32.totalorder %v7944_v39, 32  ;;  %vm1081_vm12 = vcmp.lt.s32.totalorder %v7944_v39, 64 }
 0x76e   : > { %v1065_v17 = vsel %vm1063_vm10, %v7802_v3, %v7800_v44 }
 0x770   : > { %v7927_v20 = vpop.permute.xlu0 %3207 }
 0x771   : > { %12778 = vst [vmem:[#allocation110_spill] sm:$0xff] %v7927_v20 }
 0x778   : > { %v7929_v10 = vpop.permute.xlu0 %3230 }
 0x779   : > { %12779 = vst [vmem:[#allocation111_spill] sm:$0xff] %v7929_v10  ;;  %v3238_v58 = vmul.f32 %v7929_v10, %v7737_v60  ;;  %v3241_v40 = vmul.f32 %v7929_v10, %v7754_v6 }
 0x77b   : > { %3250 = vrot.lane.b32.xlu2 %v3238_v58, %s6986_s21 }
 0x783   : > { %3256 = vrot.lane.b32.xlu2 %v3241_v40, %s6986_s21  ;;  %v7955_v40 = vadd.f32 %v1065_v17, %v7776_v45 }
 0x78b   : > { %3278 = vrot.lane.b32.xlu2 %v3276_v23, %s12491_s17  ;;  %v3331_v23 = vperm.slane %v6454_v33, 1 }
 0x793   : > { %3334 = vrot.lane.b32.xlu2 %v3331_v23, %s12491_s17 }
 0x7d5   : > { %v7940_v30 = vpop.permute.xlu2 %3250 }
 0x7d6   : > { %12781 = vst [vmem:[#allocation113_spill] sm:$0xff] %v7940_v30  ;;  %v6629_v30 = vunpack.i.l.bf16 %v7806_v38 }
 0x7dd   : > { %v7942_v20 = vpop.permute.xlu2 %3256 }
 0x7de   : > { %12782 = vst [vmem:[#allocation114_spill] sm:$0xff] %v7942_v20  ;;  %v1064_v20 = vsel %vm1063_vm10, %v7800_v44, %v7802_v3  ;;  %v3330_v3 = vperm.slane %v6454_v33, 0 }
 0x7df   : > { %v7968_v45 = vadd.f32 %v1064_v20, %v7780_v31  ;;  %v6455_v20 = vld [vmem:[%s12411_s13 + $0x7] ss:$8 sm:$0x3] }
 0x7e5   : > { %v7946_v2 = vpop.permute.xlu2 %3278 }
 0x7e6   : > { %12783 = vst [vmem:[#allocation115_spill] sm:$0xff] %v7946_v2  ;;  %v3286_v58 = vmul.f32 %v7946_v2, %v7737_v60  ;;  %v3289_v31 = vmul.f32 %v7946_v2, %v7754_v6 }
 0x7e8   : > { %3303 = vrot.lane.b32.xlu1 %v3286_v58, %s12480_s23  ;;  %v6630_v58 = vunpack.i.h.bf16 %v7806_v38  ;;  %v7985_v38 = vpop.permute.xlu1 %3232 }
 0x7e9   : > { %12784 = vst [vmem:[#allocation116_spill] sm:$0xff] %v7985_v38 }
 0x7ea   : > { %v1092_v17 = vsel %vm1063_vm10, %v6629_v30, %v6630_v58  ;;  %v1093_v10 = vsel %vm1063_vm10, %v6630_v58, %v6629_v30  ;;  %v3380_v30 = vperm.slane %v6455_v20, 1 }
 0x7eb   : > { %v7973_v42 = vmax.f32 %v7784_v37, %v1093_v10  ;;  %v7976_v23 = vmax.f32 %v7786_v22, %v1092_v17 }
 0x7ed   : > { %v6631_v44 = vpack.i.bf16 %v7976_v23, %v7973_v42 }
 0x7f0   : > { %1068 = vrot.lane.b32.xlu1 %v7955_v40, %s12478_s9 }
 0x7f8   : > { %1070 = vrot.lane.b32.xlu1 %v7968_v45, %s12478_s9 }
 0x800   : > { %6632 = vrot.lane.b32.xlu1 %v6631_v44, %s12478_s9 }
 0x808   : > { %3309 = vrot.lane.b32.xlu1 %v3289_v31, %s12480_s23 }
 0x810   : > { %3332 = vrot.lane.b32.xlu1 %v3330_v3, %s12491_s17  ;;  %v3379_v3 = vperm.slane %v6455_v20, 0 }
 0x818   : > { %3383 = vrot.lane.b32.xlu1 %v3380_v30, %s12491_s17  ;;  %v3426_v30 = vld [vmem:[#allocation10 + $0x1] ss:$8 sm:$0x3] }
 0x85a   : > { %v7987_v37 = vpop.permute.xlu1 %3303 }
 0x85b   : > { %12785 = vst [vmem:[#allocation117_spill] sm:$0xff] %v7987_v37  ;;  %v3429_v37 = vperm.slane %v3426_v30, 1 }
 0x862   : > { %v7989_v10 = vpop.permute.xlu1 %1068 }
 0x86a   : > { %v7991_v22 = vpop.permute.xlu1 %1070 }
 0x872   : > { %v7997_v58 = vpop.permute.xlu1 %6632 }
 0x87a   : > { %v7999_v33 = vpop.permute.xlu1 %3309 }
 0x87b   : > { %12786 = vst [vmem:[#allocation118_spill] sm:$0xff] %v7999_v33  ;;  %v8011_v33 = vpop.permute.xlu0 %3280 }
 0x87c   : > { %12788 = vst [vmem:[#allocation120_spill] sm:$0xff] %v8011_v33 }
 0x882   : > { %v8001_v17 = vpop.permute.xlu1 %3332 }
 0x883   : > { %12787 = vst [vmem:[#allocation119_spill] sm:$0xff] %v8001_v17  ;;  %v3340_v44 = vmul.f32 %v8001_v17, %v7737_v60  ;;  %v3343_v31 = vmul.f32 %v8001_v17, %v7754_v6 }
 0x885   : > { %3352 = vrot.lane.b32.xlu0 %v3340_v44, %s12480_s23 }
 0x88d   : > { %3358 = vrot.lane.b32.xlu0 %v3343_v31, %s12480_s23  ;;  %v3428_v31 = vperm.slane %v3426_v30, 0 }
 0x895   : > { %3381 = vrot.lane.b32.xlu0 %v3379_v3, %s12491_s17 }
 0x89d   : > { %3432 = vrot.lane.b32.xlu0 %v3429_v37, %s6979_s3  ;;  %v8026_v37 = vpop.permute.xlu2 %3334 }
 0x89e   : > { %12792 = vst [vmem:[#allocation124_spill] sm:$0xff] %v8026_v37 }
 0x8f7   : > { %v8013_v2 = vpop.permute.xlu0 %3352 }
 0x8f8   : > { %12789 = vst [vmem:[#allocation121_spill] sm:$0xff] %v8013_v2 }
 0x8ff   : > { %v8015_v38 = vpop.permute.xlu0 %3358 }
 0x900   : > { %12790 = vst [vmem:[#allocation122_spill] sm:$0xff] %v8015_v38  ;;  %v6456_v38 = vld [vmem:[%s12409_s11 + $0x3] ss:$8 sm:$0x3] }
 0x901   : > { %v3478_v2 = vperm.slane %v6456_v38, 1 }
 0x907   : > { %v8017_v35 = vpop.permute.xlu0 %3381 }
 0x908   : > { %12791 = vst [vmem:[#allocation123_spill] sm:$0xff] %v8017_v35  ;;  %v3389_v44 = vmul.f32 %v8017_v35, %v7737_v60  ;;  %v3392_v20 = vmul.f32 %v8017_v35, %v7754_v6 }
 0x90a   : > { %3401 = vrot.lane.b32.xlu2 %v3389_v44, %s12480_s23 }
 0x90f   : > { %v8068_v33 = vpop.permute.xlu0 %3432 }
 0x910   : > { %12800 = vst [vmem:[#allocation132_spill] sm:$0xff] %v8068_v33 }
 0x912   : > { %3407 = vrot.lane.b32.xlu2 %v3392_v20, %s12480_s23 }
 0x91a   : > { %3430 = vrot.lane.b32.xlu2 %v3428_v31, %s6979_s3  ;;  %v3477_v31 = vperm.slane %v6456_v38, 0 }
 0x922   : > { %3481 = vrot.lane.b32.xlu2 %v3478_v2, %s6979_s3  ;;  %v6457_v2 = vld [vmem:[%s12411_s13 + $0x10] ss:$8 sm:$0x3] }
 0x964   : > { %v8028_v3 = vpop.permute.xlu2 %3401 }
 0x965   : > { %12793 = vst [vmem:[#allocation125_spill] sm:$0xff] %v8028_v3  ;;  %v8045_v3 = vpop.permute.xlu1 %3383 }
 0x966   : > { %12796 = vst [vmem:[#allocation128_spill] sm:$0xff] %v8045_v3  ;;  %v8066_v3 = vld [vmem:[#allocation10 + $0x6] ss:$8 sm:$0x3] }
 0x96c   : > { %v8034_v44 = vpop.permute.xlu2 %3407 }
 0x96d   : > { %12794 = vst [vmem:[#allocation126_spill] sm:$0xff] %v8034_v44  ;;  %v3527_v44 = vperm.slane %v6457_v2, 1 }
 0x974   : > { %v8036_v17 = vpop.permute.xlu2 %3430 }
 0x975   : > { %12795 = vst [vmem:[#allocation127_spill] sm:$0xff] %v8036_v17  ;;  %v3438_v30 = vmul.f32 %v8036_v17, %v7737_v60  ;;  %v3441_v20 = vmul.f32 %v8036_v17, %v7754_v6 }
 0x977   : > { %3450 = vrot.lane.b32.xlu1 %v3438_v30, %s12478_s9 }
 0x97f   : > { %3456 = vrot.lane.b32.xlu1 %v3441_v20, %s12478_s9 }
 0x987   : > { %3479 = vrot.lane.b32.xlu1 %v3477_v31, %s6979_s3  ;;  %v3526_v31 = vperm.slane %v6457_v2, 0  ;;  %v6458_v2 = vld [vmem:[%s12409_s11 + $0x4] ss:$8 sm:$0x3] }
 0x98f   : > { %3530 = vrot.lane.b32.xlu1 %v3527_v44, %s6979_s3  ;;  %v3573_v44 = vld [vmem:[#allocation10 + $0x2] ss:$8 sm:$0x3] }
 0x990   : > { %v3576_v17 = vperm.slane %v3573_v44, 1  ;;  %v3575_v50 = vperm.slane %v3573_v44, 0  ;;  %v6467_v44 = vld [vmem:[%s12411_s13 + $0x15] ss:$8 sm:$0x3] }
 0x991   : > { %v4160_v14 = vperm.slane %v6467_v44, 1 }
 0x9e9   : > { %v8051_v35 = vpop.permute.xlu1 %3450 }
 0x9ea   : > { %12797 = vst [vmem:[#allocation129_spill] sm:$0xff] %v8051_v35 }
 0x9f1   : > { %v8053_v30 = vpop.permute.xlu1 %3456 }
 0x9f2   : > { %12798 = vst [vmem:[#allocation130_spill] sm:$0xff] %v8053_v30  ;;  %v3765_v30 = vld [vmem:[#allocation10 + $0x4] ss:$8 sm:$0x3] }
 0x9f3   : > { %v3768_v35 = vperm.slane %v3765_v30, 1 }
 0x9f9   : > { %v8055_v37 = vpop.permute.xlu1 %3479 }
 0x9fa   : > { %12799 = vst [vmem:[#allocation131_spill] sm:$0xff] %v8055_v37  ;;  %v3487_v38 = vmul.f32 %v8055_v37, %v7737_v60  ;;  %v3490_v20 = vmul.f32 %v8055_v37, %v7754_v6 }
 0x9fc   : > { %3499 = vrot.lane.b32.xlu0 %v3487_v38, %s12478_s9  ;;  %v4061_v38 = vperm.slane %v8066_v3, 0 }
 0xa04   : > { %3505 = vrot.lane.b32.xlu0 %v3490_v20, %s12478_s9 }
 0xa0c   : > { %3528 = vrot.lane.b32.xlu0 %v3526_v31, %s6979_s3  ;;  %v3625_v31 = vperm.slane %v6458_v2, 1 }
 0xa14   : > { %3579 = vrot.lane.b32.xlu0 %v3576_v17, %s6980_s29 }
 0xa1c   : > { %3771 = vrot.lane.b32.xlu0 %v3768_v35, %s6981_s0  ;;  %v8081_v35 = vld [vmem:[%s12409_s11 + $0x7] ss:$8 sm:$0x3] }
 0xa1d   : > { %v3963_v37 = vperm.slane %v8081_v35, 0 }
 0xa24   : > { %4063 = vrot.lane.b32.xlu0 %v4061_v38, %s12480_s23  ;;  %v6466_v38 = vld [vmem:[%s12409_s11 + $0x10] ss:$8 sm:$0x3] }
 0xa2c   : > { %3628 = vrot.lane.b32.xlu0 %v3625_v31, %s6980_s29 }
 0xa34   : > { %3965 = vrot.lane.b32.xlu0 %v3963_v37, %s12478_s9 }
 0xa6e   : > { %v8075_v20 = vpop.permute.xlu0 %3499 }
 0xa6f   : > { %12801 = vst [vmem:[#allocation133_spill] sm:$0xff] %v8075_v20  ;;  %v4111_v20 = vperm.slane %v6466_v38, 1 }
 0xa71   : > { %4114 = vrot.lane.b32.xlu0 %v4111_v20, %s12480_s23 }
 0xa76   : > { %v8083_v17 = vpop.permute.xlu0 %3505 }
 0xa77   : > { %12802 = vst [vmem:[#allocation134_spill] sm:$0xff] %v8083_v17  ;;  %v8099_v17 = vld [vmem:[%s12409_s11 + $0x12] ss:$8 sm:$0x3] }
 0xa78   : > { %v4306_v37 = vperm.slane %v8099_v17, 0 }
 0xa7a   : > { %4308 = vrot.lane.b32.xlu0 %v4306_v37, %s12491_s17  ;;  %v3912_v37 = vld [vmem:[#allocation10 + $0x5] ss:$8 sm:$0x3] }
 0xa7e   : > { %v8090_v33 = vpop.permute.xlu0 %3528 }
 0xa7f   : > { %12803 = vst [vmem:[#allocation135_spill] sm:$0xff] %v8090_v33  ;;  %v3536_v31 = vmul.f32 %v8090_v33, %v7737_v60  ;;  %v3539_v15 = vmul.f32 %v8090_v33, %v7754_v6  ;;  %v3767_v33 = vperm.slane %v3765_v30, 0  ;;  %v8127_v30 = vld [vmem:[%s12411_s13 + $0x17] ss:$8 sm:$0x3] }
 0xa81   : > { %3548 = vrot.lane.b32.xlu2 %v3536_v31, %s12478_s9  ;;  %v6459_v31 = vld [vmem:[%s12411_s13 + $0x11] ss:$8 sm:$0x3] }
 0xa82   : > { %v3674_v20 = vperm.slane %v6459_v31, 1  ;;  %v3673_v11 = vperm.slane %v6459_v31, 0  ;;  %v8165_v31 = vld [vmem:[%s12411_s13 + $0x16] ss:$8 sm:$0x3] }
 0xa84   : > { %3677 = vrot.lane.b32.xlu0 %v3674_v20, %s6980_s29  ;;  %v3624_v20 = vperm.slane %v6458_v2, 0  ;;  %v4110_v2 = vperm.slane %v6466_v38, 0  ;;  %v8159_v38 = vpop.permute.xlu2 %3481 }
 0xa85   : > { %12804 = vst [vmem:[#allocation136_spill] sm:$0xff] %v8159_v38  ;;  %v6635_v38 = vunpack.i.h.bf16 %v7997_v58 }
 0xa89   : > { %3554 = vrot.lane.b32.xlu2 %v3539_v15, %s12478_s9  ;;  %v4012_v15 = vperm.slane %v8114_v43, 0 }
 0xa8c   : > { %4014 = vrot.lane.b32.xlu0 %v4012_v15, %s12478_s9  ;;  %v8134_v15 = vld [vmem:[%s12409_s11 + $0x6] ss:$8 sm:$0x3] }
 0xa91   : > { %3577 = vrot.lane.b32.xlu2 %v3575_v50, %s6980_s29  ;;  %v3915_v50 = vperm.slane %v3912_v37, 1 }
 0xa94   : > { %4163 = vrot.lane.b32.xlu0 %v4160_v14, %s12480_s23  ;;  %v6472_v14 = vld [vmem:[%s12411_s13 + $0x20] ss:$8 sm:$0x3] }
 0xa95   : > { %v4405_v32 = vperm.slane %v6472_v14, 1  ;;  %v4404_v59 = vperm.slane %v6472_v14, 0 }
 0xa99   : > { %3769 = vrot.lane.b32.xlu2 %v3767_v33, %s6981_s0  ;;  %v4355_v33 = vperm.slane %v8127_v30, 0 }
 0xa9c   : > { %4357 = vrot.lane.b32.xlu0 %v4355_v33, %s12491_s17 }
 0xaa1   : > { %3918 = vrot.lane.b32.xlu2 %v3915_v50, %s12478_s9  ;;  %v3817_v50 = vperm.slane %v8134_v15, 1 }
 0xaa4   : > { %4408 = vrot.lane.b32.xlu0 %v4405_v32, %s6979_s3 }
 0xaa9   : > { %3626 = vrot.lane.b32.xlu2 %v3624_v20, %s6980_s29  ;;  %v8147_v20 = vld [vmem:[%s12409_s11 + $0x11] ss:$8 sm:$0x3] }
 0xaaa   : > { %v4209_v33 = vperm.slane %v8147_v20, 1 }
 0xab1   : > { %3820 = vrot.lane.b32.xlu2 %v3817_v50, %s6981_s0  ;;  %v8155_v50 = vld [vmem:[%s12411_s13 + $0x13] ss:$8 sm:$0x3] }
 0xab2   : > { %v3866_v32 = vperm.slane %v8155_v50, 1 }
 0xab9   : > { %4112 = vrot.lane.b32.xlu2 %v4110_v2, %s12480_s23  ;;  %v4159_v2 = vperm.slane %v6467_v44, 0  ;;  %v8177_v44 = vld [vmem:[%s12411_s13 + $0x21] ss:$8 sm:$0x3] }
 0xac1   : > { %4212 = vrot.lane.b32.xlu2 %v4209_v33, %s6986_s21  ;;  %v4258_v33 = vperm.slane %v8165_v31, 1 }
 0xac9   : > { %3675 = vrot.lane.b32.xlu2 %v3673_v11, %s6980_s29 }
 0xad1   : > { %3869 = vrot.lane.b32.xlu2 %v3866_v32, %s6981_s0 }
 0xad9   : > { %4161 = vrot.lane.b32.xlu2 %v4159_v2, %s12480_s23 }
 0xadb   : > { %v8167_v11 = vpop.permute.xlu2 %3548 }
 0xadc   : > { %12805 = vst [vmem:[#allocation137_spill] sm:$0xff] %v8167_v11  ;;  %v4454_v11 = vperm.slane %v8177_v44, 1 }
 0xae1   : > { %4261 = vrot.lane.b32.xlu2 %v4258_v33, %s6986_s21 }
 0xae3   : > { %v8171_v19 = vpop.permute.xlu2 %3554 }
 0xae4   : > { %12806 = vst [vmem:[#allocation138_spill] sm:$0xff] %v8171_v19 }
 0xae9   : > { %4406 = vrot.lane.b32.xlu2 %v4404_v59, %s6979_s3  ;;  %v1074_v59 = vsel %vm1072_vm11, %v7991_v22, %v7989_v10 }
 0xaea   : > { %v8197_v19 = vadd.f32 %v1074_v59, %v7955_v40 }
 0xaeb   : > { %v8179_v32 = vpop.permute.xlu2 %3577 }
 0xaec   : > { %12807 = vst [vmem:[#allocation139_spill] sm:$0xff] %v8179_v32  ;;  %v3585_v2 = vmul.f32 %v8179_v32, %v7737_v60  ;;  %v3588_v33 = vmul.f32 %v8179_v32, %v7754_v6  ;;  %v6634_v32 = vunpack.i.l.bf16 %v7997_v58 }
 0xaee   : > { %3597 = vrot.lane.b32.xlu1 %v3585_v2, %s6981_s0  ;;  %v3914_v2 = vperm.slane %v3912_v37, 0  ;;  %v1100_v59 = vsel %vm1072_vm11, %v6634_v32, %v6635_v38  ;;  %v1101_v37 = vsel %vm1072_vm11, %v6635_v38, %v6634_v32  ;;  %v3816_v32 = vperm.slane %v8134_v15, 0 }
 0xaef   : > { %v8226_v58 = vmax.f32 %v7976_v23, %v1100_v59  ;;  %v8249_v59 = vld [vmem:[%s12411_s13 + $0x23] ss:$8 sm:$0x3] }
 0xaf1   : > { %4457 = vrot.lane.b32.xlu2 %v4454_v11, %s6980_s29 }
 0xaf3   : > { %v8187_v14 = vpop.permute.xlu2 %3769 }
 0xaf4   : > { %12808 = vst [vmem:[#allocation140_spill] sm:$0xff] %v8187_v14  ;;  %v1073_v14 = vsel %vm1072_vm11, %v7989_v10, %v7991_v22  ;;  %v4062_v10 = vperm.slane %v8066_v3, 1  ;;  %v8223_v22 = vmax.f32 %v7973_v42, %v1101_v37  ;;  %v8237_v3 = vld [vmem:[#allocation2 + $0x20] sm:$0xff]  ;;  %v4517_v37 = vperm.slane %v8249_v59, 0 }
 0xaf5   : > { %v8211_v40 = vadd.f32 %v1073_v14, %v7968_v45 }
 0xaf6   : > { %3603 = vrot.lane.b32.xlu1 %v3588_v33, %s6981_s0  ;;  %v8219_v33 = vpop.permute.xlu0 %3579  ;;  %v6636_v38 = vpack.i.bf16 %v8226_v58, %v8223_v22 }
 0xaf7   : > { %12810 = vst [vmem:[#allocation142_spill] sm:$0xff] %v8219_v33  ;;  %v1146_v33 = vld [vmem:[%s12819_s24 + $0xe8] sm:$0xff] }
 0xaf9   : > { %1077 = vrot.lane.b32.xlu2 %v8197_v19, %s6986_s21 }
 0xafb   : > { %v8201_v11 = vpop.permute.xlu2 %3918 }
 0xafc   : > { %12809 = vst [vmem:[#allocation141_spill] sm:$0xff] %v8201_v11 }
 0xafe   : > { %3916 = vrot.lane.b32.xlu1 %v3914_v2, %s12478_s9  ;;  %v8239_v42 = vpop.permute.xlu0 %3771  ;;  %v3964_v2 = vperm.slane %v8081_v35, 1  ;;  %v3926_v35 = vmul.f32 %v8201_v11, %v8237_v3 }
 0xaff   : > { %12813 = vst [vmem:[#allocation145_spill] sm:$0xff] %v8239_v42  ;;  %v3779_v23 = vmul.f32 %v8239_v42, %v8237_v3 }
 0xb01   : > { %1079 = vrot.lane.b32.xlu2 %v8211_v40, %s6986_s21 }
 0xb03   : > { %v8228_v45 = vpop.permute.xlu2 %3626 }
 0xb04   : > { %12811 = vst [vmem:[#allocation143_spill] sm:$0xff] %v8228_v45 }
 0xb06   : > { %4065 = vrot.lane.b32.xlu1 %v4062_v10, %s12480_s23  ;;  %v4208_v10 = vperm.slane %v8147_v20, 0 }
 0xb09   : > { %6637 = vrot.lane.b32.xlu2 %v6636_v38, %s6986_s21 }
 0xb0b   : > { %v8235_v14 = vpop.permute.xlu2 %3820 }
 0xb0c   : > { %12812 = vst [vmem:[#allocation144_spill] sm:$0xff] %v8235_v14 }
 0xb0e   : > { %3818 = vrot.lane.b32.xlu1 %v3816_v32, %s6981_s0  ;;  %v4307_v32 = vperm.slane %v8099_v17, 1  ;;  %v1132_v17 = vld [vmem:[%s12819_s24 + $0x78] sm:$0xff] }
 0xb0f   : > { %1153 = vmatpush.msrb.mxu0 %v1132_v17  ;;  %v1129_v17 = vld [vmem:[%s12819_s24 + $0x60] sm:$0xff] }
 0xb11   : > { %3793 = vrot.lane.b32.xlu2 %v3779_v23, %s6980_s29  ;;  %v8267_v23 = vld [vmem:[%s12411_s13 + $0x24] ss:$8 sm:$0x3] }
 0xb12   : > { %v4566_v20 = vperm.slane %v8267_v23, 0 }
 0xb13   : > { %v8251_v15 = vpop.permute.xlu2 %4112 }
 0xb14   : > { %12814 = vst [vmem:[#allocation146_spill] sm:$0xff] %v8251_v15  ;;  %v1148_v15 = vld [vmem:[%s12819_s24 + $0xf8] sm:$0xff] }
 0xb15   : > { %1173 = vmatpush.msrb.mxu1 %v1148_v15 }
 0xb16   : > { %3967 = vrot.lane.b32.xlu1 %v3964_v2, %s12478_s9 }
 0xb19   : > { %4519 = vrot.lane.b32.xlu2 %v4517_v37, %s6981_s0  ;;  %v8272_v37 = vpop.permute.xlu0 %4063 }
 0xb1a   : > { %12817 = vst [vmem:[#allocation149_spill] sm:$0xff] %v8272_v37  ;;  %v1130_v37 = vld [vmem:[%s12819_s24 + $0x68] sm:$0xff] }
 0xb1b   : > { %v8257_v38 = vpop.permute.xlu2 %4212 }
 0xb1c   : > { %12815 = vst [vmem:[#allocation147_spill] sm:$0xff] %v8257_v38 }
 0xb1e   : > { %4210 = vrot.lane.b32.xlu1 %v4208_v10, %s6986_s21  ;;  %v3865_v10 = vperm.slane %v8155_v50, 0  ;;  %v1147_v50 = vld [vmem:[%s12819_s24 + $0xf0] sm:$0xff] }
 0xb1f   : > { %1174 = vmatpush.msrb.mxu1 %v1147_v50  ;;  %v1127_v50 = vld [vmem:[%s12819_s24 + $0x50] sm:$0xff] }
 0xb21   : > { %3940 = vrot.lane.b32.xlu2 %v3926_v35, %s6979_s3  ;;  %1175 = vmatpush.msrb.mxu1 %v1146_v33  ;;  %v1143_v33 = vld [vmem:[%s12819_s24 + $0xd0] sm:$0xff] }
 0xb23   : > { %v8269_v2 = vpop.permute.xlu2 %3675 }
 0xb24   : > { %12816 = vst [vmem:[#allocation148_spill] sm:$0xff] %v8269_v2 }
 0xb26   : > { %4310 = vrot.lane.b32.xlu1 %v4307_v32, %s12491_s17  ;;  %v1131_v32 = vld [vmem:[%s12819_s24 + $0x70] sm:$0xff] }
 0xb27   : > { %1154 = vmatpush.msrb.mxu0 %v1131_v32  ;;  %v1128_v32 = vld [vmem:[%s12819_s24 + $0x58] sm:$0xff] }
 0xb29   : > { %4568 = vrot.lane.b32.xlu2 %v4566_v20, %s12478_s9  ;;  %v3634_v20 = vmul.f32 %v8228_v45, %v7737_v60  ;;  %v4013_v60 = vperm.slane %v8114_v43, 1  ;;  %1155 = vmatpush.msrb.mxu0 %v1130_v37  ;;  %v1144_v37 = vld [vmem:[%s12819_s24 + $0xd8] sm:$0xff] }
 0xb2b   : > { %v8277_v35 = vpop.permute.xlu2 %3869  ;;  %1156 = vmatpush.msrb.mxu0 %v1129_v17  ;;  %v1126_v17 = vld [vmem:[%s12819_s24 + $0x48] sm:$0xff] }
 0xb2c   : > { %12818 = vst [vmem:[#allocation150_spill] sm:$0xff] %v8277_v35 }
 0xb2d   : > { %1157 = vmatpush.msrb.mxu0 %v1128_v32  ;;  %v4257_v32 = vperm.slane %v8165_v31, 0  ;;  %v1124_v31 = vld [vmem:[%s12819_s24 + $0x38] sm:$0xff] }
 0xb2e   : > { %3867 = vrot.lane.b32.xlu1 %v3865_v10, %s6981_s0  ;;  %v8294_v10 = vpop.permute.xlu0 %3628 }
 0xb2f   : > { %12820 = vst [vmem:[#allocation151_spill] sm:$0xff] %v8294_v10  ;;  %v1145_v10 = vld [vmem:[%s12819_s24 + $0xe0] sm:$0xff]  ;;  %1158 = vmatpush.msrb.mxu0 %v1127_v50 }
 0xb30   : > { %1176 = vmatpush.msrb.mxu1 %v1145_v10  ;;  %v1142_v10 = vld [vmem:[%s12819_s24 + $0xc8] sm:$0xff] }
 0xb31   : > { %3646 = vrot.lane.b32.xlu2 %v3634_v20, %s6981_s0  ;;  %v8312_v20 = vld [vmem:[#allocation2 + $0xe0] sm:$0xff]  ;;  %1159 = vmatpush.msrb.mxu0 %v1126_v17  ;;  %v1123_v17 = vld [vmem:[%s12819_s24 + $0x30] sm:$0xff] }
 0xb32   : > { %v3782_v43 = vmul.f32 %v8239_v42, %v8312_v20  ;;  %1177 = vmatpush.msrb.mxu1 %v1144_v37  ;;  %v1125_v37 = vld [vmem:[%s12819_s24 + $0x40] sm:$0xff]  ;;  %v3929_v50 = vmul.f32 %v8201_v11, %v8312_v20 }
 0xb33   : > { %v8304_v15 = vpop.permute.xlu2 %4161  ;;  %1160 = vmatpush.msrb.mxu0 %v1125_v37  ;;  %v4356_v37 = vperm.slane %v8127_v30, 1  ;;  %v1137_v30 = vld [vmem:[%s12819_s24 + $0xa0] sm:$0xff] }
 0xb34   : > { %12821 = vst [vmem:[#allocation152_spill] sm:$0xff] %v8304_v15  ;;  %1178 = vmatpush.msrb.mxu1 %v1143_v33  ;;  %v1140_v33 = vld [vmem:[%s12819_s24 + $0xb8] sm:$0xff] }
 0xb35   : > { %1161 = vmatpush.msrb.mxu0 %v1124_v31 }
 0xb36   : > { %4016 = vrot.lane.b32.xlu1 %v4013_v60, %s12478_s9  ;;  %v8336_v60 = vpop.permute.xlu0 %3965  ;;  %1179 = vmatpush.msrb.mxu1 %v1142_v10  ;;  %v1139_v10 = vld [vmem:[%s12819_s24 + $0xb0] sm:$0xff]  ;;  %s6262_s9 = scalar_lea.hbm %s13379_s25, %s6503_s28  ;;  %s6909_s28 = scalar_lea.hbm %s13379_s25, 64 }
 0xb37   : > { %12822 = vst [vmem:[#allocation153_spill] sm:$0xff] %v8336_v60  ;;  %1162 = vmatpush.msrb.mxu0 %v1123_v17  ;;  %v1120_v17 = vld [vmem:[%s12819_s24 + $0x18] sm:$0xff]  ;;  %s6265_s15 = sshll.u32 %s6262_s9, 4  ;;  %s6266_s15 = int_to_ptr.hbm [resolvable:$true] %s6265_s15 }
 0xb39   : > { %3799 = vrot.lane.b32.xlu2 %v3782_v43, %s6980_s29  ;;  %v1141_v43 = vld [vmem:[%s12819_s24 + $0xc0] sm:$0xff] }
 0xb3a   : > { %1180 = vmatpush.msrb.mxu1 %v1141_v43  ;;  %v1138_v43 = vld [vmem:[%s12819_s24 + $0xa8] sm:$0xff] }
 0xb3b   : > { %v8339_v15 = vpop.permute.xlu2 %4261 }
 0xb3c   : > { %12823 = vst [vmem:[#allocation154_spill] sm:$0xff] %v8339_v15  ;;  %1181 = vmatpush.msrb.mxu1 %v1140_v33  ;;  %v1121_v33 = vld [vmem:[%s12819_s24 + $0x20] sm:$0xff] }
 0xb3e   : > { %4259 = vrot.lane.b32.xlu1 %v4257_v32, %s6986_s21  ;;  %v1122_v32 = vld [vmem:[%s12819_s24 + $0x28] sm:$0xff]  ;;  %1182 = vmatpush.msrb.mxu1 %v1139_v10  ;;  %v8372_v60 = vpop.permute.xlu0 %4114  ;;  %v1136_v10 = vld [vmem:[%s12819_s24 + $0x98] sm:$0xff] }
 0xb3f   : > { %12825 = vst [vmem:[#allocation156_spill] sm:$0xff] %v8372_v60  ;;  %1163 = vmatpush.msrb.mxu0 %v1122_v32  ;;  %v1119_v32 = vld [vmem:[%s12819_s24 + $0x10] sm:$0xff] }
 0xb40   : > { %1183 = vmatpush.msrb.mxu1 %v1138_v43  ;;  %v1135_v43 = vld [vmem:[%s12819_s24 + $0x90] sm:$0xff] }
 0xb41   : > { %3946 = vrot.lane.b32.xlu2 %v3929_v50, %s6979_s3  ;;  %v4122_v50 = vmul.f32 %v8372_v60, %v8237_v3  ;;  %1164 = vmatpush.msrb.mxu0 %v1121_v33  ;;  %v4453_v33 = vperm.slane %v8177_v44, 0 }
 0xb42   : > { %1184 = vmatpush.msrb.mxu1 %v1137_v30  ;;  %v1134_v30 = vld [vmem:[%s12819_s24 + $0x88] sm:$0xff] }
 0xb43   : > { %v8370_v31 = vpop.permute.xlu2 %4406  ;;  %1165 = vmatpush.msrb.mxu0 %v1120_v17 }
 0xb44   : > { %12824 = vst [vmem:[#allocation155_spill] sm:$0xff] %v8370_v31  ;;  %1185 = vmatpush.msrb.mxu1 %v1136_v10  ;;  %v1117_v10 = vld [vmem:[%s12819_s24] sm:$0xff] }
 0xb45   : > { %1166 = vmatpush.msrb.mxu0 %v1119_v32  ;;  %v1133_v31 = vld [vmem:[%s12819_s24 + $0x80] sm:$0xff] }
 0xb46   : > { %4359 = vrot.lane.b32.xlu1 %v4356_v37, %s12491_s17  ;;  %v1118_v37 = vld [vmem:[%s12819_s24 + $0x8] sm:$0xff]  ;;  %1186 = vmatpush.msrb.mxu1 %v1135_v43 }
 0xb47   : > { %1167 = vmatpush.msrb.mxu0 %v1118_v37 }
 0xb48   : > { %1187 = vmatpush.msrb.mxu1 %v1134_v30 }
 0xb49   : > { %4136 = vrot.lane.b32.xlu2 %v4122_v50, %s12491_s17  ;;  %1168 = vmatpush.msrb.mxu0 %v1117_v10  ;;  %v8412_v50 = vpop.permute.xlu1 %3530 }
 0xb4a   : > { %1188 = vmatpush.msrb.mxu1 %v1133_v31  ;;  %12827 = vst [vmem:[#allocation158_spill] sm:$0xff] %v8412_v50 }
 0xb4b   : > { %v8403_v17 = vpop.permute.xlu2 %4457 }
 0xb4c   : > { %12826 = vst [vmem:[#allocation157_spill] sm:$0xff] %v8403_v17 }
 0xb4e   : > { %4455 = vrot.lane.b32.xlu1 %v4453_v33, %s6980_s29 }
 0xb53   : > { %v1078_v44 = vpop.permute.xlu2 %1077 }
 0xb5b   : > { %v1080_v32 = vpop.permute.xlu2 %1079 }
 0xb5c   : > { %v1082_v43 = vsel %vm1081_vm12, %v1078_v44, %v1080_v32  ;;  %v1083_v17 = vsel %vm1081_vm12, %v1080_v32, %v1078_v44 }
 0xb5d   : > { %v1084_v11 = vadd.f32 %v1083_v17, %v8197_v19  ;;  %v1085_v37 = vadd.f32 %v1082_v43, %v8211_v40 }
 0xb5f   : > { %v1086_v56 = vadd.f32 %v1085_v37, %v1084_v11  ;;  %v6668_v37 = vld [vmem:[#allocation2 + $0x38] sm:$0xff] }
 0xb60   : > { %v8417_v42 = vpop.permute.xlu1 %3597 }
 0xb61   : > { %12828 = vst [vmem:[#allocation159_spill] sm:$0xff] %v8417_v42  ;;  %v1087_v34 = vmul.f32 0.00390625, %v1086_v56 }
 0xb63   : > { %v6638_v30 = vpop.permute.xlu2 %6637  ;;  %v1113_v19 = vperm.slane %v1087_v34, 0 }
 0xb64   : > { %v6640_v9 = vunpack.i.h.bf16 %v6638_v30  ;;  %v6639_v33 = vunpack.i.l.bf16 %v6638_v30  ;;  %v3683_v30 = vmul.f32 %v6668_v37, %v8269_v2 }
 0xb66   : > { %v1108_v10 = vsel %vm1081_vm12, %v6639_v33, %v6640_v9  ;;  %v1109_v31 = vsel %vm1081_vm12, %v6640_v9, %v6639_v33  ;;  %v8447_v33 = vpop.permute.xlu0 %4308 }
 0xb67   : > { %v1110_v50 = vmax.f32 %v8223_v22, %v1109_v31  ;;  %v1111_v39 = vmax.f32 %v8226_v58, %v1108_v10  ;;  %v3828_v22 = vmul.f32 %v8235_v14, %v8237_v3  ;;  %v3637_v58 = vmul.f32 %v8228_v45, %v7754_v6  ;;  %12834 = vst [vmem:[#allocation165_spill] sm:$0xff] %v8447_v33 }
 0xb68   : > { %v8421_v61 = vpop.permute.xlu1 %3603  ;;  %v4220_v6 = vmul.f32 %v8257_v38, %v8237_v3  ;;  %v4223_v10 = vmul.f32 %v8257_v38, %v8312_v20 }
 0xb69   : > { %12829 = vst [vmem:[#allocation160_spill] sm:$0xff] %v8421_v61  ;;  %v1112_v44 = vmax.f32 %v1110_v50, %v1111_v39 }
 0xb6b   : > { %v1114_v17 = vperm.slane %v1112_v44, 0  ;;  %v3831_v44 = vmul.f32 %v8235_v14, %v8312_v20 }
 0xb6d   : > { %v1116_v40 = vsel %vm1115_vm13, %v1113_v19, %v1114_v17  ;;  %v3877_v19 = vmul.f32 %v8277_v35, %v8237_v3 }
 0xb6e   : > { %1169 = vmatmul.f32.vlgmr.msrb.gmra.mxu0 %v1116_v40  ;;  %1189 = vmatmul.f32.vlgmr.msrb.gmra.mxu1 %v1116_v40  ;;  %v8457_v31 = vpop.permute.xlu0 %3677 }
 0xb6f   : > { %12835 = vst [vmem:[#allocation166_spill] sm:$0xff] %v8457_v31 }
 0xb70   : > { %v8424_v11 = vpop.permute.xlu1 %3916 }
 0xb71   : > { %12830 = vst [vmem:[#allocation161_spill] sm:$0xff] %v8424_v11 }
 0xb76   : > { %v8467_v17 = vpop.permute.xlu0 %4014 }
 0xb77   : > { %12837 = vst [vmem:[#allocation168_spill] sm:$0xff] %v8467_v17  ;;  %v12912_v17 = vld [vmem:[#allocation31_spill] sm:$0xff] }
 0xb78   : > { %v8426_v32 = vpop.permute.xlu1 %4065 }
 0xb79   : > { %12831 = vst [vmem:[#allocation162_spill] sm:$0xff] %v8426_v32  ;;  %v4073_v56 = vmul.f32 %v8426_v32, %v8237_v3  ;;  %v4076_v43 = vmul.f32 %v8426_v32, %v8312_v20 }
 0xb7b   : > { %4087 = vrot.lane.b32.xlu1 %v4073_v56, %s12491_s17 }
 0xb80   : > { %v8431_v9 = vpop.permute.xlu1 %3818 }
 0xb81   : > { %12832 = vst [vmem:[#allocation163_spill] sm:$0xff] %v8431_v9 }
 0xb83   : > { %3842 = vrot.lane.b32.xlu1 %v3828_v22, %s6980_s29  ;;  %v6669_v22 = vld [vmem:[#allocation2 + $0xa0] sm:$0xff] }
 0xb88   : > { %v8436_v34 = vpop.permute.xlu1 %3967 }
 0xb89   : > { %12833 = vst [vmem:[#allocation164_spill] sm:$0xff] %v8436_v34  ;;  %v3978_v50 = vmul.f32 %v8436_v34, %v8312_v20 }
 0xb8b   : > { %3652 = vrot.lane.b32.xlu1 %v3637_v58, %s6981_s0  ;;  %3995 = vrot.lane.b32.xlu2 %v3978_v50, %s6979_s3  ;;  %v3686_v58 = vmul.f32 %v6669_v22, %v8269_v2  ;;  %v4125_v50 = vmul.f32 %v8372_v60, %v8312_v20 }
 0xb90   : > { %v8459_v39 = vpop.permute.xlu1 %4210 }
 0xb91   : > { %12836 = vst [vmem:[#allocation167_spill] sm:$0xff] %v8459_v39 }
 0xb93   : > { %4093 = vrot.lane.b32.xlu1 %v4076_v43, %s12491_s17  ;;  %3695 = vrot.lane.b32.xlu2 %v3683_v30, %s6981_s0  ;;  %v8478_v43 = vpop.permute.xlu0 %4163  ;;  %v1208_v30 = vld [vmem:[%s12403_s5 + $0x70] sm:$0xff] }
 0xb94   : > { %12840 = vst [vmem:[#allocation170_spill] sm:$0xff] %v8478_v43  ;;  %v4171_v37 = vmul.f32 %v8478_v43, %v8237_v3  ;;  %1228 = vmatpush.msrb.mxu2 %v1208_v30  ;;  %v1202_v30 = vld [vmem:[%s12403_s5 + $0x40] sm:$0xff] }
 0xb98   : > { %v8469_v40 = vpop.permute.xlu1 %4310 }
 0xb99   : > { %12838 = vst [vmem:[#allocation169_spill] sm:$0xff] %v8469_v40  ;;  %v4318_v56 = vmul.f32 %v8469_v40, %v8237_v3 }
 0xb9b   : > { %4234 = vrot.lane.b32.xlu1 %v4220_v6, %s6986_s21  ;;  %4240 = vrot.lane.b32.xlu2 %v4223_v10, %s6986_s21  ;;  %v1209_v6 = vld [vmem:[%s12403_s5 + $0x78] sm:$0xff]  ;;  %v1206_v10 = vld [vmem:[%s12403_s5 + $0x60] sm:$0xff] }
 0xb9c   : > { %1248 = vmatpush.msrb.mxu3 %v1209_v6  ;;  %1229 = vmatpush.msrb.mxu2 %v1206_v10  ;;  %v1203_v6 = vld [vmem:[%s12403_s5 + $0x48] sm:$0xff]  ;;  %v1200_v10 = vld [vmem:[%s12403_s5 + $0x30] sm:$0xff] }
 0xba3   : > { %3848 = vrot.lane.b32.xlu1 %v3831_v44, %s6980_s29  ;;  %3891 = vrot.lane.b32.xlu2 %v3877_v19, %s6980_s29  ;;  %v8492_v44 = vpop.permute.xlu1 %3867  ;;  %v1207_v19 = vld [vmem:[%s12403_s5 + $0x68] sm:$0xff] }
 0xba4   : > { %12841 = vst [vmem:[#allocation171_spill] sm:$0xff] %v8492_v44  ;;  %1249 = vmatpush.msrb.mxu3 %v1207_v19  ;;  %v4269_v19 = vmul.f32 %v8339_v15, %v8237_v3 }
 0xbab   : > { %4332 = vrot.lane.b32.xlu1 %v4318_v56, %s12839_s2  ;;  %3701 = vrot.lane.b32.xlu2 %v3686_v58, %s6981_s0  ;;  %v4321_v56 = vmul.f32 %v8469_v40, %v8312_v20  ;;  %v8501_v22 = vpop.permute.xlu1 %4016 }
 0xbac   : > { %12842 = vst [vmem:[#allocation172_spill] sm:$0xff] %v8501_v22  ;;  %v4024_v58 = vmul.f32 %v8501_v22, %v8237_v3 }
 0xbb3   : > { %4142 = vrot.lane.b32.xlu1 %v4125_v50, %s12491_s17  ;;  %4185 = vrot.lane.b32.xlu2 %v4171_v37, %s12491_s17  ;;  %v1204_v50 = vld [vmem:[%s12403_s5 + $0x50] sm:$0xff]  ;;  %v1205_v37 = vld [vmem:[%s12403_s5 + $0x58] sm:$0xff]  ;;  %s12845_s17 = smov 32  }
 0xbb4   : > { %1230 = vmatpush.msrb.mxu2 %v1204_v50  ;;  %1250 = vmatpush.msrb.mxu3 %v1205_v37  ;;  %v1198_v50 = vld [vmem:[%s12403_s5 + $0x20] sm:$0xff]  ;;  %v1199_v37 = vld [vmem:[%s12403_s5 + $0x28] sm:$0xff] }
 0xbb6   : > { %1231 = vmatpush.msrb.mxu2 %v1202_v30  ;;  %1251 = vmatpush.msrb.mxu3 %v1203_v6  ;;  %v1196_v30 = vld [vmem:[%s12403_s5 + $0x10] sm:$0xff]  ;;  %v1197_v6 = vld [vmem:[%s12403_s5 + $0x18] sm:$0xff] }
 0xbb8   : > { %1232 = vmatpush.msrb.mxu2 %v1200_v10  ;;  %v1194_v10 = vld [vmem:[%s12403_s5] sm:$0xff] }
 0xbba   : > { %1233 = vmatpush.msrb.mxu2 %v1198_v50 }
 0xbbb   : > { %4338 = vrot.lane.b32.xlu1 %v4321_v56, %s12839_s2  ;;  %v1201_v56 = vld [vmem:[%s12403_s5 + $0x38] sm:$0xff] }
 0xbbc   : > { %1252 = vmatpush.msrb.mxu3 %v1201_v56  ;;  %1234 = vmatpush.msrb.mxu2 %v1196_v30  ;;  %v3880_v56 = vmul.f32 %v8277_v35, %v8312_v20  ;;  %v4027_v30 = vmul.f32 %v8501_v22, %v8312_v20  ;;  %v3975_v20 = vmul.f32 %v8436_v34, %v8237_v3 }
 0xbbe   : > { %1253 = vmatpush.msrb.mxu3 %v1199_v37  ;;  %1235 = vmatpush.msrb.mxu2 %v1194_v10 }
 0xbc0   : > { %1254 = vmatpush.msrb.mxu3 %v1197_v6  ;;  %v6641_v6 = vld [vmem:[#allocation9] ss:$0 sm:$0xff] }
 0xbc3   : > { %4038 = vrot.lane.b32.xlu1 %v4024_v58, %s6979_s3  ;;  %v8527_v58 = vpop.permute.xlu1 %4259 }
 0xbc4   : > { %12843 = vst [vmem:[#allocation173_spill] sm:$0xff] %v8527_v58 }
 0xbcb   : > { %4283 = vrot.lane.b32.xlu1 %v4269_v19, %s6986_s21  ;;  %v1195_v19 = vld [vmem:[%s12403_s5 + $0x8] sm:$0xff]  ;;  %v8550_v50 = vpop.permute.xlu1 %4359 }
 0xbcc   : > { %1255 = vmatpush.msrb.mxu3 %v1195_v19  ;;  %12844 = vst [vmem:[#allocation174_spill] sm:$0xff] %v8550_v50  ;;  %v4367_v37 = vmul.f32 %v8550_v50, %v8237_v3 }
 0xbd3   : > { %3897 = vrot.lane.b32.xlu1 %v3880_v56, %s6980_s29  ;;  %v4518_v56 = vperm.slane %v8249_v59, 1  ;;  %v8574_v3 = vpop.permute.xlu1 %4455 }
 0xbd4   : > { %12848 = vst [vmem:[#allocation177_spill] sm:$0xff] %v8574_v3 }
 0xbd5   : > { %4521 = vrot.lane.b32.xlu0 %v4518_v56, %s6981_s0 }
 0xbdb   : > { %4381 = vrot.lane.b32.xlu1 %v4367_v37, %s12839_s2  ;;  %v4567_v37 = vperm.slane %v8267_v23, 1 }
 0xbdd   : > { %4570 = vrot.lane.b32.xlu0 %v4567_v37, %s12845_s17 }
 0xbe3   : > { %4044 = vrot.lane.b32.xlu1 %v4027_v30, %s6979_s3 }
 0xbe5   : > { %3989 = vrot.lane.b32.xlu0 %v3975_v20, %s6979_s3 }
 0xbeb   : > { %v1170_v43 = vpop.f32.mrf.mxu0  ;;  %v1190_v35 = vpop.f32.mrf.mxu1 }
 0xbec   : > { %v1171_v61 = vadd.f32 %v6641_v6, %v1170_v43 }
 0xbee   : > { %v1191_v10 = vadd.f32 %v1190_v35, %v1171_v61  ;;  %v1210_v61 = vld [vmem:[%s12404_s6] sm:$0x3]  ;;  %v8570_v35 = vpop.permute.xlu2 %3793 }
 0xbef   : > { %12846 = vst [vmem:[#allocation175_spill] sm:$0xff] %v8570_v35  ;;  %v1212_v43 = vperm.slane %v1210_v61, 0  ;;  %v1213_v30 = vperm.slane %v1210_v61, 1  ;;  %v8578_v61 = vpop.permute.xlu1 %4087 }
 0xbf0   : > { %v1193_v19 = vmax.f32 %v1191_v10, 0.0  ;;  %12850 = vst [vmem:[#allocation179_spill] sm:$0xff] %v8578_v61 }
 0xbf2   : > { %6419 = vmatmul.msk.f32.vlgmr.msrb.gmra.mxu2 %vm1216_vm14, %v1193_v19  ;;  %6420 = vmatmul.msk.f32.vlgmr.msrb.gmra.mxu3 %vm1216_vm14, %v1193_v19 }
 0xbf6   : > { %v8572_v37 = vpop.permute.xlu2 %4519 }
 0xbf7   : > { %12847 = vst [vmem:[#allocation176_spill] sm:$0xff] %v8572_v37  ;;  %v8582_v40 = vpop.permute.xlu1 %3842 }
 0xbf8   : > { %12852 = vst [vmem:[#allocation181_spill] sm:$0xff] %v8582_v40 }
 0xbfe   : > { %v8576_v35 = vpop.permute.xlu2 %3940 }
 0xbff   : > { %12849 = vst [vmem:[#allocation178_spill] sm:$0xff] %v8576_v35 }
 0xc06   : > { %v8580_v31 = vpop.permute.xlu2 %4568 }
 0xc07   : > { %12851 = vst [vmem:[#allocation180_spill] sm:$0xff] %v8580_v31 }
 0xc0e   : > { %v8584_v40 = vpop.permute.xlu2 %3646 }
 0xc0f   : > { %12853 = vst [vmem:[#allocation182_spill] sm:$0xff] %v8584_v40 }
 0xc75   : > { %v1237_v59 = vpop.f32.mrf.mxu2  ;;  %v1257_v6 = vpop.f32.mrf.mxu3 }
 0xc76   : > { %v1238_v10 = vadd.f32 %v1237_v59, %v1212_v43  ;;  %v1258_v19 = vadd.f32 %v1257_v6, %v1213_v30 }
 0xc78   : > { %v6421_v23 = vmul.f32 -1.442695, %v1238_v10  ;;  %v6422_v56 = vmul.f32 -1.442695, %v1258_v19 }
 0xc7a   : > { %6658 = vpow2.f32 %v6421_v23 }
 0xc7b   : > { %6660 = vpow2.f32 %v6422_v56 }
 0xc80   : > { %v6659_v20 = vpop.eup %6658 }
 0xc81   : > { %v6661_v50 = vpop.eup %6660  ;;  %v1266_v2 = vadd.f32 1.0, %v6659_v20 }
 0xc82   : > { %v1267_v42 = vadd.f32 1.0, %v6661_v50 }
 0xc83   : > { %6662 = vrcp.f32 %v1266_v2  ;;  %v1279_v19 = vand.u32 2147483648, %v1266_v2  ;;  %v1277_v37 = vand.u32 2147483647, %v1266_v2  ;;  %vm1273_vm5 = vweird.f32 %v1266_v2 }
 0xc84   : > { %6664 = vrcp.f32 %v1267_v42  ;;  %v1294_v3 = vand.u32 2147483648, %v1267_v42  ;;  %v1292_v20 = vand.u32 2147483647, %v1267_v42  ;;  %vm1288_vm7 = vweird.f32 %v1267_v42 }
 0xc85   : > { %v1280_v61 = vor.u32 1.1754944e-38, %v1279_v19  ;;  %vm1278_vm10 = vcmp.eq.f32.partialorder %v1277_v37, 8.507059e+37 }
 0xc86   : > { %vm1293_vm12 = vcmp.eq.f32.partialorder %v1292_v20, 8.507059e+37  ;;  %v1424_v20 = vsel %vm1423_vm9, %v7276_v36, %v7294_v48 }
 0xc89   : > { %v6663_v43 = vpop.eup %6662 }
 0xc8a   : > { %v6665_v30 = vpop.eup %6664  ;;  %v1269_v59 = vmul.f32 %v6663_v43, %v1266_v2  ;;  %vm1274_vm15 = vweird.f32 %v6663_v43 }
 0xc8b   : > { %v1284_v6 = vmul.f32 %v6665_v30, %v1267_v42  ;;  %vm1289_vm4 = vweird.f32 %v6665_v30  ;;  %vm1275_vm6 = vmor %vm1273_vm5, %vm1274_vm15  ;;  %vm1473_vm15 = vcmask 130048   ;;  %vm3080_vm5 = vcmask 392192  }
 0xc8c   : > { %v1270_v10 = vsub.f32 1.0, %v1269_v59  ;;  %vm1290_vm11 = vmor %vm1288_vm7, %vm1289_vm4  ;;  %vm1401_vm4 = vcmask 261120   ;;  %vm4642_vm7 = vcmask 1042432  }
 0xc8d   : > { %v1285_v23 = vsub.f32 1.0, %v1284_v6  ;;  %v1295_v6 = vor.u32 1.1754944e-38, %v1294_v3 }
 0xc8e   : > { %v1271_v56 = vmul.f32 %v6663_v43, %v1270_v10 }
 0xc8f   : > { %v1286_v50 = vmul.f32 %v6665_v30, %v1285_v23 }
 0xc90   : > { %v1272_v35 = vadd.f32 %v6663_v43, %v1271_v56  ;;  %v8586_v56 = vpop.permute.xlu1 %3652 }
 0xc91   : > { %v1287_v44 = vadd.f32 %v6665_v30, %v1286_v50  ;;  %12854 = vst [vmem:[#allocation183_spill] sm:$0xff] %v8586_v56  ;;  %v8646_v50 = vld [vmem:[#allocation2 + $0x80] sm:$0xff] }
 0xc92   : > { %v1276_v59 = vsel %vm1275_vm6, %v6663_v43, %v1272_v35  ;;  %v1990_v35 = vsel %vm1345_vm8, %v7340_v13, %v7430_v28  ;;  %v1429_v36 = vmul.f32 %v1424_v20, %v8646_v50  ;;  %vm3114_vm6 = vcmask 654336  }
 0xc93   : > { %v1281_v10 = vsel %vm1278_vm10, %v1280_v61, %v1276_v59  ;;  %v1291_v39 = vsel %vm1290_vm11, %v6665_v30, %v1287_v44  ;;  %vm4843_vm10 = vcmask 1044480  }
 0xc94   : > { %v1300_v38 = vrot.slane %v1281_v10, 4  ;;  %v1296_v31 = vsel %vm1293_vm12, %v1295_v6, %v1291_v39  ;;  %v2039_v39 = vsel %vm1423_vm9, %v7351_v18, %v7533_v5 }
 0xc95   : > { %v1301_v23 = vrot.slane %v1296_v31, 4 }
 0xc96   : > { %v1304_v60 = vadd.f32 %v1300_v38, %v1281_v10 }
 0xc97   : > { %v1305_v33 = vadd.f32 %v1301_v23, %v1296_v31 }
 0xc98   : > { %v1306_v34 = vperm.slane %v1304_v60, 0 }
 0xc99   : > { %v1307_v2 = vperm.slane %v1305_v33, 0 }
 0xc9a   : > { %v8589_v42 = vmul.f32 %v1306_v34, %v7729_v16  ;;  %v8608_v13 = vmul.f32 %v1306_v34, %v7731_v41  ;;  %v8613_v16 = vpop.permute.xlu2 %3799  ;;  %v2103_v41 = vsel %vm1473_vm15, %v7432_v29, %v7363_v25  ;;  %v1346_v25 = vsel %vm1345_vm8, %v7292_v47, %v7290_v46 }
 0xc9b   : > { %v8598_v38 = vmul.f32 %v1307_v2, %v7757_v57  ;;  %v8611_v18 = vmul.f32 %v1307_v2, %v7759_v51  ;;  %12859 = vst [vmem:[#allocation188_spill] sm:$0xff] %v8613_v16  ;;  %v8615_v57 = vpop.permute.xlu1 %4093 }
 0xc9c   : > { %12855 = vst [vmem:[#allocation184_spill] sm:$0xff] %v8589_v42  ;;  %v2044_v60 = vmul.f32 %v2039_v39, %v8589_v42  ;;  %v1995_v33 = vmul.f32 %v1990_v35, %v8589_v42  ;;  %v2047_v44 = vmul.f32 %v2039_v39, %v8608_v13  ;;  %v1998_v37 = vmul.f32 %v1990_v35, %v8608_v13 }
 0xc9d   : > { %12856 = vst [vmem:[#allocation185_spill] sm:$0xff] %v8598_v38  ;;  %v1996_v31 = vmul.f32 %v7430_v28, %v8598_v38  ;;  %v1999_v3 = vmul.f32 %v7430_v28, %v8611_v18  ;;  %v2156_v51 = vmul.f32 %v7556_v21, %v8589_v42  ;;  %v2045_v34 = vmul.f32 %v7533_v5, %v8598_v38 }
 0xc9e   : > { %2057 = vrot.lane.b32.xlu0 %v2044_v60, %s6981_s0  ;;  %2008 = vrot.lane.b32.xlu1 %v1995_v33, %s12845_s17  ;;  %12857 = vst [vmem:[#allocation186_spill] sm:$0xff] %v8608_v13  ;;  %v2108_v28 = vmul.f32 %v2103_v41, %v8598_v38  ;;  %v2159_v30 = vmul.f32 %v7556_v21, %v8608_v13  ;;  %v1449_v33 = vrot.slane %v1429_v36, 6 }
 0xc9f   : > { %2010 = vrot.lane.b32.xlu2 %v1996_v31, %s12845_s17  ;;  %12858 = vst [vmem:[#allocation187_spill] sm:$0xff] %v8611_v18  ;;  %v2048_v19 = vmul.f32 %v7533_v5, %v8611_v18  ;;  %v2111_v6 = vmul.f32 %v2103_v41, %v8611_v18  ;;  %v1354_v10 = vmul.f32 %v1346_v25, %v8589_v42 }
 0xca0   : > { %12860 = vst [vmem:[#allocation189_spill] sm:$0xff] %v8615_v57  ;;  %v1432_v47 = vmul.f32 %v1424_v20, %v8589_v42  ;;  %v1351_v5 = vmul.f32 %v1346_v25, %v8646_v50  ;;  %v2107_v60 = vmul.f32 %v7432_v29, %v8589_v42 }
 0xca1   : > { %v1378_v2 = vrot.slane %v1354_v10, 6  ;;  %v8686_v10 = vld [vmem:[#allocation2 + $0x110] sm:$0xff] }
 0xca2   : > { %v8631_v61 = vpop.permute.xlu2 %3946  ;;  %v1450_v35 = vrot.slane %v1432_v47, 6  ;;  %v1377_v39 = vrot.slane %v1351_v5, 6  ;;  %v1606_v47 = vmul.f32 %v7304_v53, %v8646_v50 }
 0xca3   : > { %12861 = vst [vmem:[#allocation190_spill] sm:$0xff] %v8631_v61  ;;  %v8634_v43 = vpop.permute.xlu1 %4234 }
 0xca4   : > { %12862 = vst [vmem:[#allocation191_spill] sm:$0xff] %v8634_v43  ;;  %v1379_v31 = vsel %vm1373_vm0, %v1377_v39, %v1378_v2 }
 0xca6   : > { %2063 = vrot.lane.b32.xlu0 %v2047_v44, %s6981_s0  ;;  %2014 = vrot.lane.b32.xlu1 %v1998_v37, %s12845_s17  ;;  %v1357_v44 = vmul.f32 %v1346_v25, %v8608_v13  ;;  %v1451_v37 = vsel %vm1373_vm0, %v1449_v33, %v1450_v35 }
 0xca7   : > { %2016 = vrot.lane.b32.xlu2 %v1999_v3, %s12845_s17  ;;  %v1435_v3 = vmul.f32 %v1424_v20, %v8608_v13 }
 0xcaa   : > { %v8651_v59 = vpop.permute.xlu2 %4136 }
 0xcab   : > { %12863 = vst [vmem:[#allocation192_spill] sm:$0xff] %v8651_v59  ;;  %v8660_v23 = vpop.permute.xlu1 %3848 }
 0xcac   : > { %12864 = vst [vmem:[#allocation193_spill] sm:$0xff] %v8660_v23 }
 0xcae   : > { %2168 = vrot.lane.b32.xlu0 %v2156_v51, %s6979_s3  ;;  %2059 = vrot.lane.b32.xlu1 %v2045_v34, %s6981_s0  ;;  %v1385_v51 = vrot.slane %v1357_v44, 6 }
 0xcaf   : > { %2121 = vrot.lane.b32.xlu2 %v2108_v28, %s6980_s29  ;;  %v1457_v28 = vrot.slane %v1435_v3, 6 }
 0xcb0   : > { %v1386_v25 = vsel %vm1373_vm0, %v1378_v2, %v1385_v51 }
 0xcb1   : > { %v1458_v20 = vsel %vm1373_vm0, %v1450_v35, %v1457_v28  ;;  %v2152_v35 = vsel %vm1401_vm4, %v7556_v21, %v7460_v55  ;;  %v1612_v55 = vmul.f32 %v7304_v53, %v8608_v13 }
 0xcb2   : > { %v8671_v41 = vpop.permute.xlu2 %3995  ;;  %v2157_v33 = vmul.f32 %v2152_v35, %v8598_v38 }
 0xcb3   : > { %12865 = vst [vmem:[#allocation194_spill] sm:$0xff] %v8671_v41  ;;  %v8674_v34 = vpop.permute.xlu1 %4332  ;;  %v1633_v51 = vrot.slane %v1612_v55, 6 }
 0xcb4   : > { %12866 = vst [vmem:[#allocation195_spill] sm:$0xff] %v8674_v34 }
 0xcb6   : > { %2174 = vrot.lane.b32.xlu0 %v2159_v30, %s6979_s3  ;;  %2065 = vrot.lane.b32.xlu1 %v2048_v19, %s6981_s0  ;;  %v2110_v30 = vmul.f32 %v7432_v29, %v8608_v13  ;;  %v1433_v19 = vmul.f32 %v7294_v48, %v8598_v38  ;;  %v1430_v29 = vmul.f32 %v7294_v48, %v8686_v10 }
 0xcb7   : > { %2127 = vrot.lane.b32.xlu2 %v2111_v6, %s6980_s29  ;;  %v1609_v6 = vmul.f32 %v7304_v53, %v8589_v42 }
 0xcb8   : > { %v1453_v36 = vrot.slane %v1433_v19, 6  ;;  %v1452_v39 = vrot.slane %v1430_v29, 6  ;;  %v1355_v19 = vmul.f32 %v7290_v46, %v8598_v38 }
 0xcb9   : > { %v1625_v2 = vrot.slane %v1609_v6, 6 }
 0xcba   : > { %v8693_v5 = vpop.permute.xlu2 %3695  ;;  %v1454_v44 = vsel %vm1373_vm0, %v1452_v39, %v1453_v36  ;;  %v1381_v39 = vrot.slane %v1355_v19, 6 }
 0xcbb   : > { %12867 = vst [vmem:[#allocation196_spill] sm:$0xff] %v8693_v5  ;;  %v1634_v29 = vsel %vm1373_vm0, %v1625_v2, %v1633_v51  ;;  %v1358_v51 = vmul.f32 %v7290_v46, %v8611_v18 }
 0xcbe   : > { %2119 = vrot.lane.b32.xlu1 %v2107_v60, %s6980_s29  ;;  %1391 = vrot.lane.b32.xlu0 %v1379_v31, %s12845_s17  ;;  %v8698_v60 = vpop.permute.xlu1 %4142  ;;  %v1624_v31 = vrot.slane %v1606_v47, 6 }
 0xcbf   : > { %1463 = vrot.lane.b32.xlu2 %v1451_v37, %s6981_s0  ;;  %12868 = vst [vmem:[#allocation197_spill] sm:$0xff] %v8698_v60  ;;  %v1436_v37 = vmul.f32 %v7294_v48, %v8611_v18  ;;  %v1672_v48 = vsel %vm1345_vm8, %v7322_v1, %v7318_v62  ;;  %v1352_v1 = vmul.f32 %v7290_v46, %v8686_v10 }
 0xcc0   : > { %v1626_v3 = vsel %vm1373_vm0, %v1624_v31, %v1625_v2  ;;  %v1680_v47 = vmul.f32 %v1672_v48, %v8589_v42  ;;  %v1683_v19 = vmul.f32 %v1672_v48, %v8608_v13  ;;  %v1532_v46 = vsel %vm1473_vm15, %v7296_v49, %v7302_v52 }
 0xcc1   : > { %v1459_v21 = vrot.slane %v1436_v37, 6 }
 0xcc2   : > { %v8710_v28 = vpop.permute.xlu2 %4240  ;;  %v1699_v31 = vrot.slane %v1680_v47, 7 }
 0xcc3   : > { %12869 = vst [vmem:[#allocation198_spill] sm:$0xff] %v8710_v28 }
 0xcc6   : > { %2125 = vrot.lane.b32.xlu1 %v2110_v30, %s6980_s29  ;;  %1397 = vrot.lane.b32.xlu0 %v1386_v25, %s12845_s17  ;;  %v2160_v30 = vmul.f32 %v2152_v35, %v8611_v18  ;;  %v1460_v25 = vsel %vm1373_vm0, %v1453_v36, %v1459_v21  ;;  %v8721_v6 = vpop.permute.xlu1 %4338  ;;  %v1536_v36 = vmul.f32 %v7296_v49, %v8646_v50 }
 0xcc7   : > { %1469 = vrot.lane.b32.xlu2 %v1458_v20, %s6981_s0  ;;  %v1539_v20 = vmul.f32 %v7296_v49, %v8589_v42  ;;  %12870 = vst [vmem:[#allocation199_spill] sm:$0xff] %v8721_v6  ;;  %v1677_v35 = vmul.f32 %v1672_v48, %v8646_v50  ;;  %v1540_v48 = vmul.f32 %v1532_v46, %v8598_v38 }
 0xcc8   : > { %v1554_v37 = vrot.slane %v1536_v36, 6  ;;  %v1602_v36 = vsel %vm1401_vm4, %v7304_v53, %v7306_v54  ;;  %v1537_v53 = vmul.f32 %v1532_v46, %v8686_v10 }
 0xcc9   : > { %v1698_v2 = vrot.slane %v1677_v35, 7  ;;  %v1607_v54 = vmul.f32 %v1602_v36, %v8686_v10 }
 0xcce   : > { %2170 = vrot.lane.b32.xlu1 %v2157_v33, %s6979_s3  ;;  %1465 = vrot.lane.b32.xlu0 %v1454_v44, %s6981_s0  ;;  %v1555_v33 = vrot.slane %v1539_v20, 6  ;;  %v1380_v44 = vrot.slane %v1352_v1, 6  ;;  %v8746_v20 = vpop.permute.xlu1 %4038  ;;  %v1706_v1 = vrot.slane %v1683_v19, 7 }
 0xccf   : > { %1639 = vrot.lane.b32.xlu2 %v1626_v3, %s6979_s3  ;;  %v8733_v3 = vpop.permute.xlu2 %3891  ;;  %12872 = vst [vmem:[#allocation201_spill] sm:$0xff] %v8746_v20 }
 0xcd0   : > { %12871 = vst [vmem:[#allocation200_spill] sm:$0xff] %v8733_v3  ;;  %v1382_v55 = vsel %vm1373_vm0, %v1380_v44, %v1381_v39  ;;  %v1556_v21 = vsel %vm1373_vm0, %v1554_v37, %v1555_v33  ;;  %v1610_v37 = vmul.f32 %v1602_v36, %v8598_v38 }
 0xcd6   : > { %2176 = vrot.lane.b32.xlu1 %v2160_v30, %s6979_s3  ;;  %1471 = vrot.lane.b32.xlu0 %v1460_v25, %s6981_s0  ;;  %v1542_v30 = vmul.f32 %v7296_v49, %v8608_v13  ;;  %v1700_v25 = vsel %vm1694_vm1, %v1698_v2, %v1699_v31  ;;  %v8758_v2 = vpop.permute.xlu0 %4357  ;;  %v1752_v49 = vmul.f32 %v7425_v26, %v8598_v38 }
 0xcd7   : > { %1645 = vrot.lane.b32.xlu2 %v1634_v29, %s6979_s3  ;;  %v1387_v29 = vrot.slane %v1358_v51, 6  ;;  %12873 = vst [vmem:[#allocation202_spill] sm:$0xff] %v8758_v2  ;;  %v8765_v52 = vpop.permute.xlu2 %3701  ;;  %v8772_v51 = vpop.permute.xlu1 %4283 }
 0xcd8   : > { %v1563_v47 = vrot.slane %v1542_v30, 6  ;;  %12874 = vst [vmem:[#allocation203_spill] sm:$0xff] %v8765_v52  ;;  %v1557_v30 = vrot.slane %v1537_v53, 6 }
 0xcd9   : > { %v1388_v35 = vsel %vm1373_vm0, %v1381_v39, %v1387_v29  ;;  %v1749_v39 = vmul.f32 %v7425_v26, %v8686_v10  ;;  %12875 = vst [vmem:[#allocation204_spill] sm:$0xff] %v8772_v51  ;;  %v1684_v51 = vmul.f32 %v7318_v62, %v8611_v18 }
 0xcda   : > { %v1564_v44 = vsel %vm1373_vm0, %v1555_v33, %v1563_v47  ;;  %v1558_v33 = vrot.slane %v1540_v48, 6  ;;  %v1755_v48 = vmul.f32 %v7425_v26, %v8611_v18 }
 0xcdb   : > { %v1771_v19 = vrot.slane %v1749_v39, 7 }
 0xcdc   : > { %v1559_v29 = vsel %vm1373_vm0, %v1557_v30, %v1558_v33 }
 0xcde   : > { %1393 = vrot.lane.b32.xlu1 %v1382_v55, %s12845_s17  ;;  %1569 = vrot.lane.b32.xlu0 %v1556_v21, %s6980_s29  ;;  %v1707_v55 = vsel %vm1694_vm1, %v1699_v31, %v1706_v1  ;;  %v1628_v21 = vrot.slane %v1610_v37, 6  ;;  %v1772_v31 = vrot.slane %v1752_v49, 7  ;;  %v1543_v1 = vmul.f32 %v1532_v46, %v8611_v18 }
 0xcdf   : > { %1712 = vrot.lane.b32.xlu2 %v1700_v25, %s12845_s17  ;;  %v1627_v25 = vrot.slane %v1607_v54, 6  ;;  %v8784_v37 = vpop.permute.xlu2 %4185  ;;  %v1778_v46 = vrot.slane %v1755_v48, 7  ;;  %v8791_v54 = vpop.permute.xlu1 %3897 }
 0xce0   : > { %12876 = vst [vmem:[#allocation205_spill] sm:$0xff] %v8784_v37  ;;  %v1565_v49 = vrot.slane %v1543_v1, 6 }
 0xce1   : > { %v1629_v47 = vsel %vm1373_vm0, %v1627_v25, %v1628_v21  ;;  %12878 = vst [vmem:[#allocation207_spill] sm:$0xff] %v8791_v54 }
 0xce2   : > { %v1566_v39 = vsel %vm1373_vm0, %v1558_v33, %v1565_v49  ;;  %v1678_v33 = vmul.f32 %v7318_v62, %v8686_v10 }
 0xce4   : > { %v1701_v49 = vrot.slane %v1678_v33, 7 }
 0xce6   : > { %1399 = vrot.lane.b32.xlu1 %v1388_v35, %s12845_s17  ;;  %1575 = vrot.lane.b32.xlu0 %v1564_v44, %s6980_s29  ;;  %v1613_v35 = vmul.f32 %v1602_v36, %v8611_v18  ;;  %v1773_v44 = vsel %vm1694_vm1, %v1771_v19, %v1772_v31  ;;  %v1743_v36 = vsel %vm1423_vm9, %v7320_v63, %v7425_v26 }
 0xce7   : > { %1718 = vrot.lane.b32.xlu2 %v1707_v55, %s12845_s17  ;;  %v8786_v55 = vpop.permute.xlu0 %4408  ;;  %v1751_v25 = vmul.f32 %v1743_v36, %v8589_v42  ;;  %v1681_v19 = vmul.f32 %v7318_v62, %v8598_v38  ;;  %v1857_v63 = vmul.f32 %v7330_v7, %v8589_v42  ;;  %v1748_v26 = vmul.f32 %v1743_v36, %v8646_v50 }
 0xce8   : > { %12877 = vst [vmem:[#allocation206_spill] sm:$0xff] %v8786_v55  ;;  %v1635_v53 = vrot.slane %v1613_v35, 6  ;;  %v1850_v62 = vsel %vm1473_vm15, %v7330_v7, %v7332_v8 }
 0xce9   : > { %v1702_v35 = vrot.slane %v1681_v19, 7  ;;  %v1768_v48 = vrot.slane %v1748_v26, 7  ;;  %v1860_v19 = vmul.f32 %v7330_v7, %v8608_v13 }
 0xcea   : > { %v1636_v30 = vsel %vm1373_vm0, %v1628_v21, %v1635_v53 }
 0xcee   : > { %1571 = vrot.lane.b32.xlu1 %v1559_v29, %s6980_s29  ;;  %1641 = vrot.lane.b32.xlu0 %v1629_v47, %s6979_s3  ;;  %v1779_v29 = vsel %vm1694_vm1, %v1772_v31, %v1778_v46  ;;  %v1854_v47 = vmul.f32 %v7330_v7, %v8646_v50  ;;  %v1769_v31 = vrot.slane %v1751_v25, 7  ;;  %v8813_v46 = vpop.permute.xlu1 %4381 }
 0xcef   : > { %1784 = vrot.lane.b32.xlu2 %v1773_v44, %s6981_s0  ;;  %v8807_v21 = vpop.permute.xlu0 %4521  ;;  %v1873_v44 = vrot.slane %v1857_v63, 7  ;;  %12880 = vst [vmem:[#allocation209_spill] sm:$0xff] %v8813_v46  ;;  %v1861_v46 = vmul.f32 %v1850_v62, %v8611_v18 }
 0xcf0   : > { %12879 = vst [vmem:[#allocation208_spill] sm:$0xff] %v8807_v21  ;;  %v1872_v53 = vrot.slane %v1854_v47, 7  ;;  %v1881_v47 = vrot.slane %v1860_v19, 7 }
 0xcf2   : > { %v1874_v25 = vsel %vm1694_vm1, %v1872_v53, %v1873_v44 }
 0xcf6   : > { %1577 = vrot.lane.b32.xlu1 %v1566_v39, %s6980_s29  ;;  %1647 = vrot.lane.b32.xlu0 %v1636_v30, %s6979_s3  ;;  %v1770_v39 = vsel %vm1694_vm1, %v1768_v48, %v1769_v31  ;;  %v1703_v30 = vsel %vm1694_vm1, %v1701_v49, %v1702_v35  ;;  %v1920_v48 = vsel %vm1401_vm4, %v7428_v27, %v7338_v12  ;;  %v8844_v7 = vpop.permute.xlu1 %4044 }
 0xcf7   : > { %1790 = vrot.lane.b32.xlu2 %v1779_v29, %s6981_s0  ;;  %v1754_v29 = vmul.f32 %v1743_v36, %v8608_v13  ;;  %v8826_v63 = vpop.permute.xlu0 %4570  ;;  %v1708_v36 = vrot.slane %v1684_v51, 7  ;;  %v1882_v51 = vsel %vm1694_vm1, %v1873_v44, %v1881_v47  ;;  %12883 = vst [vmem:[#allocation212_spill] sm:$0xff] %v8844_v7  ;;  %v1928_v8 = vmul.f32 %v1920_v48, %v8598_v38 }
 0xcf8   : > { %12881 = vst [vmem:[#allocation210_spill] sm:$0xff] %v8826_v63  ;;  %v1924_v12 = vmul.f32 %v7428_v27, %v8646_v50 }
 0xcf9   : > { %v8811_v1 = vpop.permute.xlu2 %2010  ;;  %v1776_v33 = vrot.slane %v1754_v29, 7  ;;  %v1709_v53 = vsel %vm1694_vm1, %v1702_v35, %v1708_v36  ;;  %v1925_v29 = vmul.f32 %v1920_v48, %v8686_v10 }
 0xcfa   : > { %v1942_v36 = vrot.slane %v1924_v12, 7 }
 0xcfb   : > { %v1777_v49 = vsel %vm1694_vm1, %v1769_v31, %v1776_v33  ;;  %v1855_v31 = vmul.f32 %v1850_v62, %v8686_v10  ;;  %v1946_v33 = vrot.slane %v1928_v8, 7 }
 0xcfd   : > { %v1875_v47 = vrot.slane %v1855_v31, 7  ;;  %v1883_v31 = vrot.slane %v1861_v46, 7 }
 0xcfe   : > { %1782 = vrot.lane.b32.xlu1 %v1770_v39, %s6981_s0  ;;  %1714 = vrot.lane.b32.xlu0 %v1703_v30, %s12845_s17  ;;  %v1927_v39 = vmul.f32 %v7428_v27, %v8589_v42  ;;  %v1858_v30 = vmul.f32 %v1850_v62, %v8598_v38  ;;  %v12886_v62 = vld [vmem:[#allocation43_spill] sm:$0xff] }
 0xcff   : > { %1887 = vrot.lane.b32.xlu2 %v1874_v25, %s6980_s29  ;;  %v8851_v35 = vpop.permute.xlu0 %3989 }
 0xd00   : > { %12884 = vst [vmem:[#allocation213_spill] sm:$0xff] %v8851_v35  ;;  %v1943_v44 = vrot.slane %v1927_v39, 7  ;;  %v1876_v19 = vrot.slane %v1858_v30, 7  ;;  %v1931_v39 = vmul.f32 %v1920_v48, %v8611_v18 }
 0xd01   : > { %v8828_v26 = vpop.permute.xlu2 %2016 }
 0xd02   : > { %12882 = vst [vmem:[#allocation211_spill] sm:$0xff] %v8828_v26  ;;  %v1877_v7 = vsel %vm1694_vm1, %v1875_v47, %v1876_v19  ;;  %v12887_v47 = vld [vmem:[#allocation71_spill] sm:$0xff] }
 0xd06   : > { %1788 = vrot.lane.b32.xlu1 %v1777_v49, %s6981_s0  ;;  %1720 = vrot.lane.b32.xlu0 %v1709_v53, %s12845_s17  ;;  %v1945_v49 = vrot.slane %v1925_v29, 7  ;;  %v1930_v53 = vmul.f32 %v7428_v27, %v8608_v13  ;;  %v1953_v29 = vrot.slane %v1931_v39, 7 }
 0xd07   : > { %1893 = vrot.lane.b32.xlu2 %v1882_v51, %s6980_s29  ;;  %v1944_v51 = vsel %vm1694_vm1, %v1942_v36, %v1943_v44  ;;  %v2201_v36 = vsel %vm1345_vm8, %v12886_v62, %v7558_v24 }
 0xd08   : > { %v1947_v54 = vsel %vm1694_vm1, %v1945_v49, %v1946_v33  ;;  %v1951_v27 = vrot.slane %v1930_v53, 7  ;;  %v12888_v49 = vld [vmem:[#allocation48_spill] sm:$0xff]  ;;  %v2210_v53 = vmul.f32 %v7558_v24, %v8611_v18  ;;  %v2206_v46 = vmul.f32 %v2201_v36, %v8589_v42 }
 0xd09   : > { %v8854_v25 = vpop.permute.xlu2 %2121  ;;  %v2209_v39 = vmul.f32 %v2201_v36, %v8608_v13  ;;  %v1954_v62 = vsel %vm1694_vm1, %v1946_v33, %v1953_v29  ;;  %v8898_v29 = vld [vmem:[#allocation2 + $0xc0] sm:$0xff] }
 0xd0a   : > { %v1952_v48 = vsel %vm1694_vm1, %v1943_v44, %v1951_v27  ;;  %v2231_v52 = vrot.slane %v2210_v53, 1  ;;  %v2227_v20 = vrot.slane %v2206_v46, 1  ;;  %12891 = vst [vmem:[#allocation48_spill] sm:$0xff] %v8898_v29 }
 0xd0e   : > { %1957 = vrot.lane.b32.xlu1 %v1944_v51, %s6979_s3  ;;  %1889 = vrot.lane.b32.xlu0 %v1877_v7, %s6980_s29  ;;  %v2272_v7 = vsel %vm1423_vm9, %v12888_v49, %v12887_v47  ;;  %v1884_v51 = vsel %vm1694_vm1, %v1876_v19, %v1883_v31 }
 0xd0f   : > { %1959 = vrot.lane.b32.xlu2 %v1947_v54, %s6979_s3  ;;  %v2207_v54 = vmul.f32 %v7558_v24, %v8598_v38  ;;  %v2277_v44 = vmul.f32 %v2272_v7, %v8589_v42  ;;  %v2280_v27 = vmul.f32 %v2272_v7, %v8608_v13 }
 0xd10   : > { %v8866_v30 = vpop.permute.xlu0 %2057  ;;  %v8868_v8 = vpop.permute.xlu1 %2008 }
 0xd11   : > { %v8870_v12 = vpop.permute.xlu2 %2127  ;;  %v2230_v37 = vrot.slane %v2207_v54, 1  ;;  %v2297_v3 = vrot.slane %v2277_v44, 1  ;;  %v2298_v33 = vrot.slane %v2280_v27, 1  ;;  %v2213_v54 = vmul.f32 %v7558_v24, %v8898_v29  ;;  %v12893_v44 = vld [vmem:[#allocation49_spill] sm:$0xff] }
 0xd12   : > { %12885 = vst [vmem:[#allocation214_spill] sm:$0xff] %v8870_v12 }
 0xd13   : > { %v2232_v6 = vsel %vm2223_vm2, %v2230_v37, %v2231_v52  ;;  %v2299_v28 = vsel %vm2223_vm2, %v2297_v3, %v2298_v33  ;;  %v12894_v3 = vld [vmem:[#allocation61_spill] sm:$0xff] }
 0xd14   : > { %v2379_v27 = vsel %vm1473_vm15, %v12894_v3, %v12893_v44  ;;  %v2383_v35 = vmul.f32 %v12894_v3, %v8589_v42 }
 0xd15   : > { %v2387_v41 = vmul.f32 %v2379_v27, %v8611_v18  ;;  %v2390_v63 = vmul.f32 %v2379_v27, %v8898_v29 }
 0xd16   : > { %1963 = vrot.lane.b32.xlu1 %v1952_v48, %s6979_s3  ;;  %1895 = vrot.lane.b32.xlu0 %v1884_v51, %s6980_s29  ;;  %v2228_v48 = vrot.slane %v2209_v39, 1  ;;  %v8900_v51 = vld [vmem:[#allocation2 + $0xd8] sm:$0xff]  ;;  %v2401_v21 = vrot.slane %v2383_v35, 1 }
 0xd17   : > { %1965 = vrot.lane.b32.xlu2 %v1954_v62, %s6979_s3  ;;  %12892 = vst [vmem:[#allocation215_spill] sm:$0xff] %v8900_v51  ;;  %v2212_v53 = vmul.f32 %v2201_v36, %v8900_v51  ;;  %v2283_v37 = vmul.f32 %v2272_v7, %v8900_v51  ;;  %v2278_v7 = vmul.f32 %v12887_v47, %v8598_v38 }
 0xd18   : > { %v8892_v19 = vpop.permute.xlu0 %2063  ;;  %v8894_v31 = vpop.permute.xlu1 %2014  ;;  %v2229_v62 = vsel %vm2223_vm2, %v2227_v20, %v2228_v48  ;;  %v2389_v35 = vmul.f32 %v12894_v3, %v8900_v51 }
 0xd19   : > { %12889 = vst [vmem:[#allocation43_spill] sm:$0xff] %v8892_v19  ;;  %v8896_v49 = vpop.permute.xlu2 %1463  ;;  %v2305_v5 = vrot.slane %v2283_v37, 1  ;;  %v2300_v60 = vrot.slane %v2278_v7, 1 }
 0xd1a   : > { %12890 = vst [vmem:[#allocation71_spill] sm:$0xff] %v8894_v31 }
 0xd1b   : > { %v2306_v44 = vsel %vm2223_vm2, %v2298_v33, %v2305_v5 }
 0xd1e   : > { %2243 = vrot.lane.b32.xlu1 %v2232_v6, %s12845_s17  ;;  %2241 = vrot.lane.b32.xlu0 %v2229_v62, %s12845_s17  ;;  %v2237_v6 = vrot.slane %v2213_v54, 1  ;;  %v2235_v62 = vrot.slane %v2212_v53, 1  ;;  %v2281_v54 = vmul.f32 %v12887_v47, %v8611_v18 }
 0xd1f   : > { %2311 = vrot.lane.b32.xlu2 %v2299_v28, %s6981_s0  ;;  %v2384_v28 = vmul.f32 %v2379_v27, %v8598_v38  ;;  %v12899_v27 = vld [vmem:[#allocation64_spill] sm:$0xff] }
 0xd20   : > { %v8911_v46 = vpop.permute.xlu0 %2168  ;;  %v8913_v39 = vpop.permute.xlu1 %2059  ;;  %v2238_v24 = vsel %vm2223_vm2, %v2231_v52, %v2237_v6  ;;  %v2236_v36 = vsel %vm2223_vm2, %v2228_v48, %v2235_v62  ;;  %v12895_v52 = vld [vmem:[#allocation72_spill] sm:$0xff]  ;;  %v2301_v5 = vrot.slane %v2281_v54, 1  ;;  %v2412_v54 = vrot.slane %v2390_v63, 1 }
 0xd21   : > { %v8916_v20 = vpop.permute.xlu2 %1469  ;;  %v2453_v53 = vmul.f32 %v12895_v52, %v8589_v42  ;;  %v2456_v48 = vmul.f32 %v12895_v52, %v8608_v13  ;;  %v2404_v34 = vrot.slane %v2384_v28, 1  ;;  %v2386_v63 = vmul.f32 %v12894_v3, %v8608_v13 }
 0xd22   : > { %v2302_v43 = vsel %vm2223_vm2, %v2300_v60, %v2301_v5 }
 0xd23   : > { %v2471_v33 = vrot.slane %v2453_v53, 1 }
 0xd26   : > { %2249 = vrot.lane.b32.xlu1 %v2238_v24, %s12845_s17  ;;  %2247 = vrot.lane.b32.xlu0 %v2236_v36, %s12845_s17  ;;  %v2405_v24 = vrot.slane %v2387_v41, 1  ;;  %v2472_v36 = vrot.slane %v2456_v48, 1  ;;  %v2284_v41 = vmul.f32 %v12887_v47, %v8898_v29  ;;  %v2519_v48 = vsel %vm1345_vm8, %v12899_v27, %v7695_v4 }
 0xd27   : > { %2317 = vrot.lane.b32.xlu2 %v2306_v44, %s6981_s0 }
 0xd28   : > { %v8937_v37 = vpop.permute.xlu0 %2174  ;;  %v8939_v6 = vpop.permute.xlu1 %2065  ;;  %v2406_v23 = vsel %vm2223_vm2, %v2404_v34, %v2405_v24  ;;  %v2473_v44 = vsel %vm2223_vm2, %v2471_v33, %v2472_v36  ;;  %v2459_v34 = vmul.f32 %v12895_v52, %v8900_v51  ;;  %v2307_v53 = vrot.slane %v2284_v41, 1 }
 0xd29   : > { %12896 = vst [vmem:[#allocation49_spill] sm:$0xff] %v8937_v37  ;;  %v8941_v62 = vpop.permute.xlu2 %1639  ;;  %v2413_v59 = vsel %vm2223_vm2, %v2405_v24, %v2412_v54 }
 0xd2a   : > { %12897 = vst [vmem:[#allocation61_spill] sm:$0xff] %v8939_v6  ;;  %v2480_v47 = vrot.slane %v2459_v34, 1  ;;  %v2308_v57 = vsel %vm2223_vm2, %v2301_v5, %v2307_v53  ;;  %v2524_v34 = vmul.f32 %v2519_v48, %v8589_v42 }
 0xd2c   : > { %v2481_v41 = vsel %vm2223_vm2, %v2472_v36, %v2480_v47  ;;  %v2545_v61 = vrot.slane %v2524_v34, 2 }
 0xd2e   : > { %2418 = vrot.lane.b32.xlu1 %v2406_v23, %s6980_s29  ;;  %2313 = vrot.lane.b32.xlu0 %v2302_v43, %s6981_s0  ;;  %v12898_v23 = vld [vmem:[#allocation69_spill] sm:$0xff] }
 0xd2f   : > { %2486 = vrot.lane.b32.xlu2 %v2473_v44, %s6979_s3  ;;  %v2590_v43 = vsel %vm1423_vm9, %v12898_v23, %v7707_v0  ;;  %v2527_v23 = vmul.f32 %v2519_v48, %v8608_v13 }
 0xd30   : > { %v8952_v28 = vpop.permute.xlu1 %2119  ;;  %v8954_v7 = vpop.permute.xlu0 %1391  ;;  %v2595_v33 = vmul.f32 %v2590_v43, %v8589_v42  ;;  %v2598_v44 = vmul.f32 %v2590_v43, %v8608_v13  ;;  %v2601_v16 = vmul.f32 %v2590_v43, %v8900_v51 }
 0xd31   : > { %v8958_v60 = vpop.permute.xlu2 %1645  ;;  %v2546_v36 = vrot.slane %v2527_v23, 2  ;;  %v2410_v23 = vrot.slane %v2389_v35, 1  ;;  %v1402_v22 = vsel %vm1401_vm4, %v12912_v17, %v8954_v7 }
 0xd32   : > { %v2615_v53 = vrot.slane %v2595_v33, 2  ;;  %v2616_v27 = vrot.slane %v2598_v44, 2  ;;  %v2530_v44 = vmul.f32 %v2519_v48, %v8900_v51  ;;  %v2623_v34 = vrot.slane %v2601_v16, 2 }
 0xd34   : > { %v2624_v43 = vsel %vm2541_vm3, %v2616_v27, %v2623_v34 }
 0xd36   : > { %2424 = vrot.lane.b32.xlu1 %v2413_v59, %s6980_s29  ;;  %2319 = vrot.lane.b32.xlu0 %v2308_v57, %s6981_s0  ;;  %v2402_v59 = vrot.slane %v2386_v63, 1  ;;  %v2617_v57 = vsel %vm2541_vm3, %v2615_v53, %v2616_v27  ;;  %v2599_v27 = vmul.f32 %v7707_v0, %v8611_v18 }
 0xd37   : > { %2492 = vrot.lane.b32.xlu2 %v2481_v41, %s6979_s3  ;;  %v2547_v41 = vsel %vm2541_vm3, %v2545_v61, %v2546_v36  ;;  %v12901_v61 = vld [vmem:[#allocation63_spill] sm:$0xff] }
 0xd38   : > { %v8980_v24 = vpop.permute.xlu1 %2125  ;;  %v8982_v5 = vpop.permute.xlu0 %1397  ;;  %v2403_v47 = vsel %vm2223_vm2, %v2401_v21, %v2402_v59  ;;  %v2449_v53 = vsel %vm1401_vm4, %v12895_v52, %v12901_v61  ;;  %v2596_v52 = vmul.f32 %v7707_v0, %v8598_v38 }
 0xd39   : > { %12900 = vst [vmem:[#allocation72_spill] sm:$0xff] %v8980_v24  ;;  %v8984_v54 = vpop.permute.xlu2 %1712  ;;  %v2454_v40 = vmul.f32 %v2449_v53, %v8598_v38  ;;  %v2457_v16 = vmul.f32 %v2449_v53, %v8611_v18 }
 0xd3a   : > { %v2618_v55 = vrot.slane %v2596_v52, 2 }
 0xd3b   : > { %v2474_v61 = vrot.slane %v2454_v40, 1 }
 0xd3e   : > { %2629 = vrot.lane.b32.xlu1 %v2617_v57, %s6981_s0  ;;  %2416 = vrot.lane.b32.xlu0 %v2403_v47, %s6980_s29  ;;  %v2553_v57 = vrot.slane %v2530_v44, 2  ;;  %v12902_v47 = vld [vmem:[#allocation76_spill] sm:$0xff] }
 0xd3f   : > { %2559 = vrot.lane.b32.xlu2 %v2547_v41, %s12845_s17  ;;  %v2771_v3 = vmul.f32 %v12902_v47, %v8589_v42  ;;  %v2411_v41 = vsel %vm2223_vm2, %v2402_v59, %v2410_v23  ;;  %v2774_v48 = vmul.f32 %v12902_v47, %v8608_v13  ;;  %v2777_v40 = vmul.f32 %v12902_v47, %v8900_v51 }
 0xd40   : > { %v8995_v33 = vpop.permute.xlu0 %1465  ;;  %v9000_v21 = vpop.permute.xlu1 %2170  ;;  %v2554_v35 = vsel %vm2541_vm3, %v2546_v36, %v2553_v57  ;;  %v2619_v36 = vrot.slane %v2599_v27, 2 }
 0xd41   : > { %v8998_v63 = vpop.permute.xlu2 %1718  ;;  %v2789_v34 = vrot.slane %v2771_v3, 2  ;;  %v2790_v23 = vrot.slane %v2774_v48, 2  ;;  %v2460_v3 = vmul.f32 %v2449_v53, %v8898_v29  ;;  %v2798_v27 = vrot.slane %v2777_v40, 2  ;;  %v12904_v40 = vld [vmem:[#allocation77_spill] sm:$0xff] }
 0xd42   : > { %v2528_v53 = vmul.f32 %v7695_v4, %v8611_v18 }
 0xd46   : > { %2635 = vrot.lane.b32.xlu1 %v2624_v43, %s6981_s0  ;;  %2422 = vrot.lane.b32.xlu0 %v2411_v41, %s6980_s29  ;;  %v2475_v43 = vrot.slane %v2457_v16, 1  ;;  %v2791_v41 = vsel %vm2541_vm3, %v2789_v34, %v2790_v23  ;;  %v2602_v16 = vmul.f32 %v7707_v0, %v8898_v29  ;;  %v2482_v34 = vrot.slane %v2460_v3, 1 }
 0xd47   : > { %2565 = vrot.lane.b32.xlu2 %v2554_v35, %s12845_s17  ;;  %v2620_v35 = vsel %vm2541_vm3, %v2618_v55, %v2619_v36  ;;  %v2799_v55 = vsel %vm2541_vm3, %v2790_v23, %v2798_v27  ;;  %v2701_v3 = vmul.f32 %v12904_v40, %v8589_v42  ;;  %v2704_v23 = vmul.f32 %v12904_v40, %v8608_v13 }
 0xd48   : > { %v9021_v59 = vpop.permute.xlu0 %1471  ;;  %v9025_v57 = vpop.permute.xlu1 %2176  ;;  %v2476_v56 = vsel %vm2223_vm2, %v2474_v61, %v2475_v43  ;;  %v2625_v61 = vrot.slane %v2602_v16, 2 }
 0xd49   : > { %v9023_v44 = vpop.permute.xlu2 %1784  ;;  %12903 = vst [vmem:[#allocation69_spill] sm:$0xff] %v9025_v57  ;;  %v2719_v2 = vrot.slane %v2701_v3, 2 }
 0xd4a   : > { %v2626_v0 = vsel %vm2541_vm3, %v2619_v36, %v2625_v61 }
 0xd4e   : > { %2804 = vrot.lane.b32.xlu1 %v2791_v41, %s6979_s3  ;;  %2488 = vrot.lane.b32.xlu0 %v2476_v56, %s6979_s3  ;;  %v2483_v56 = vsel %vm2223_vm2, %v2475_v43, %v2482_v34  ;;  %v2525_v41 = vmul.f32 %v7695_v4, %v8598_v38  ;;  %v2549_v34 = vrot.slane %v2528_v53, 2 }
 0xd4f   : > { %2631 = vrot.lane.b32.xlu2 %v2620_v35, %s6981_s0 }
 0xd50   : > { %v9036_v48 = vpop.permute.xlu0 %1569  ;;  %v9048_v35 = vpop.permute.xlu1 %1393  ;;  %v2548_v27 = vrot.slane %v2525_v41, 2  ;;  %v2707_v41 = vmul.f32 %v12904_v40, %v8900_v51 }
 0xd51   : > { %v9040_v52 = vpop.permute.xlu2 %1790  ;;  %v1403_v51 = vsel %vm1401_vm4, %v8954_v7, %v9048_v35 }
 0xd52   : > { %v2550_v36 = vsel %vm2541_vm3, %v2548_v27, %v2549_v34  ;;  %v2728_v27 = vrot.slane %v2707_v41, 2 }
 0xd56   : > { %2810 = vrot.lane.b32.xlu1 %v2799_v55, %s6979_s3  ;;  %2494 = vrot.lane.b32.xlu0 %v2483_v56, %s6979_s3  ;;  %v2720_v55 = vrot.slane %v2704_v23, 2  ;;  %v2531_v56 = vmul.f32 %v7695_v4, %v8898_v29  ;;  %v12905_v23 = vld [vmem:[#allocation70_spill] sm:$0xff] }
 0xd57   : > { %2637 = vrot.lane.b32.xlu2 %v2626_v0, %s6981_s0 }
 0xd58   : > { %v9058_v43 = vpop.permute.xlu0 %1575  ;;  %v2721_v61 = vsel %vm2541_vm3, %v2719_v2, %v2720_v55  ;;  %v9068_v0 = vpop.permute.xlu1 %1399  ;;  %v2555_v3 = vrot.slane %v2531_v56, 2  ;;  %v2697_v2 = vsel %vm1473_vm15, %v12904_v40, %v12905_v23  ;;  %v2729_v45 = vsel %vm2541_vm3, %v2720_v55, %v2728_v27 }
 0xd59   : > { %v9060_v16 = vpop.permute.xlu2 %1887  ;;  %v2702_v9 = vmul.f32 %v2697_v2, %v8598_v38  ;;  %v2705_v32 = vmul.f32 %v2697_v2, %v8611_v18  ;;  %v2708_v27 = vmul.f32 %v2697_v2, %v8898_v29 }
 0xd5a   : > { %v2556_v4 = vsel %vm2541_vm3, %v2549_v34, %v2555_v3 }
 0xd5b   : > { %v2723_v34 = vrot.slane %v2705_v32, 2 }
 0xd5e   : > { %2561 = vrot.lane.b32.xlu0 %v2550_v36, %s12845_s17  ;;  %v12906_v36 = vld [vmem:[#allocation80_spill] sm:$0xff] }
 0xd5f   : > { %2734 = vrot.lane.b32.xlu2 %v2721_v61, %s6980_s29  ;;  %v2767_v61 = vsel %vm1401_vm4, %v12902_v47, %v12906_v36  ;;  %v2722_v47 = vrot.slane %v2702_v9, 2  ;;  %v2730_v9 = vrot.slane %v2708_v27, 2 }
 0xd60   : > { %v9070_v14 = vpop.permute.xlu0 %1641  ;;  %v2772_v56 = vmul.f32 %v2767_v61, %v8598_v38  ;;  %v2775_v11 = vmul.f32 %v2767_v61, %v8611_v18  ;;  %v1572_v3 = vpop.permute.xlu1 %1571 }
 0xd61   : > { %v9074_v53 = vpop.permute.xlu2 %1893  ;;  %v2724_v58 = vsel %vm2541_vm3, %v2722_v47, %v2723_v34 }
 0xd62   : > { %v2792_v23 = vrot.slane %v2772_v56, 2  ;;  %v2793_v36 = vrot.slane %v2775_v11, 2  ;;  %v2731_v11 = vsel %vm2541_vm3, %v2723_v34, %v2730_v9  ;;  %v6424_v34 = vld [vmem:[%s12405_s7 + $0x2] ss:$8 sm:$0x3] }
 0xd63   : > { %v1489_v9 = vperm.slane %v6424_v34, 0 }
 0xd64   : > { %v2794_v55 = vsel %vm2541_vm3, %v2792_v23, %v2793_v36 }
 0xd65   : > { %v9146_v24 = vmul.f32 %v1489_v9, %v8589_v42 }
 0xd66   : > { %2567 = vrot.lane.b32.xlu0 %v2556_v4, %s12845_s17  ;;  %v2778_v4 = vmul.f32 %v2767_v61, %v8898_v29  ;;  %v1493_v29 = vmul.f32 %v1489_v9, %v8646_v50 }
 0xd67   : > { %2740 = vrot.lane.b32.xlu2 %v2729_v45, %s6980_s29  ;;  %v12536_v26 = vrot.slane %v9146_v24, 6 }
 0xd68   : > { %v9090_v40 = vpop.permute.xlu0 %1647  ;;  %v9102_v32 = vpop.permute.xlu1 %1577  ;;  %v2800_v56 = vrot.slane %v2778_v4, 2  ;;  %v1505_v19 = vrot.slane %v1493_v29, 6  ;;  %v1581_v29 = vsel %vm1423_vm9, %v9036_v48, %v1572_v3 }
 0xd69   : > { %v9092_v41 = vpop.permute.xlu2 %1959 }
 0xd6a   : > { %v2801_v47 = vsel %vm2541_vm3, %v2793_v36, %v2800_v56  ;;  %v9128_v36 = vld [vmem:[%s12406_s8] sm:$0x3] }
 0xd6b   : > { %v1360_v56 = vperm.slane %v9128_v36, 0  ;;  %v1361_v37 = vperm.slane %v9128_v36, 1 }
 0xd6d   : > { %v1410_v12 = vadd.f32 %v1402_v22, %v1360_v56  ;;  %v1411_v17 = vadd.f32 %v1403_v51, %v1361_v37  ;;  %v1475_v22 = vsel %vm1473_vm15, %v8896_v49, %v8995_v33  ;;  %v1507_v51 = vsel %vm1373_vm0, %v1505_v19, %v12536_v26  ;;  %v12916_v33 = vld [vmem:[#allocation36_spill] sm:$0xff] }
 0xd6e   : > { %2736 = vrot.lane.b32.xlu0 %v2724_v58, %s6980_s29 }
 0xd6f   : > { %2806 = vrot.lane.b32.xlu2 %v2794_v55, %s6979_s3 }
 0xd70   : > { %v1715_v45 = vpop.permute.xlu0 %1714  ;;  %v9112_v23 = vpop.permute.xlu1 %1782 }
 0xd71   : > { %v9100_v15 = vpop.permute.xlu2 %1965 }
 0xd72   : > { %12907 = vst [vmem:[#allocation64_spill] sm:$0xff] %v9100_v15  ;;  %v1483_v15 = vadd.f32 %v1475_v22, %v1411_v17 }
 0xd76   : > { %2742 = vrot.lane.b32.xlu0 %v2731_v11, %s6980_s29 }
 0xd77   : > { %2812 = vrot.lane.b32.xlu2 %v2801_v47, %s6979_s3 }
 0xd78   : > { %v9108_v58 = vpop.permute.xlu0 %1720  ;;  %v9118_v27 = vpop.permute.xlu1 %1788 }
 0xd79   : > { %v9110_v2 = vpop.permute.xlu2 %2311 }
 0xd7a   : > { %12908 = vst [vmem:[#allocation63_spill] sm:$0xff] %v9110_v2 }
 0xd80   : > { %v9114_v61 = vpop.permute.xlu0 %1889  ;;  %v9139_v57 = vpop.permute.xlu1 %1957 }
 0xd81   : > { %v9116_v55 = vpop.permute.xlu2 %2317 }
 0xd82   : > { %12909 = vst [vmem:[#allocation76_spill] sm:$0xff] %v9116_v55  ;;  %v1490_v55 = vperm.slane %v6424_v34, 1  ;;  %v12913_v34 = vld [vmem:[#allocation50_spill] sm:$0xff] }
 0xd83   : > { %v1474_v36 = vsel %vm1473_vm15, %v12913_v34, %v8896_v49  ;;  %v6429_v34 = vld [vmem:[%s12405_s7 + $0x7] ss:$8 sm:$0x3] }
 0xd84   : > { %v9150_v6 = vmul.f32 %v1490_v55, %v8598_v38  ;;  %v1482_v7 = vadd.f32 %v1474_v36, %v1410_v12  ;;  %v9179_v19 = vperm.slane %v6429_v34, 0 }
 0xd86   : > { %v12538_v2 = vrot.slane %v9150_v6, 6  ;;  %v1519_v12 = vadd.f32 %v1507_v51, %v1482_v7  ;;  %v1651_v7 = vsel %vm1345_vm8, %v8941_v62, %v9070_v14  ;;  %v9186_v51 = vperm.slane %v6429_v34, 1  ;;  %v12918_v62 = vld [vmem:[#allocation54_spill] sm:$0xff] }
 0xd87   : > { %v1722_v34 = vsel %vm1401_vm4, %v12918_v62, %v8984_v54 }
 0xd88   : > { %v9120_v4 = vpop.permute.xlu0 %1895  ;;  %v9172_v36 = vpop.permute.xlu1 %1963  ;;  %v1589_v22 = vadd.f32 %v1581_v29, %v1519_v12  ;;  %v9197_v29 = vmul.f32 %v9179_v19, %v8589_v42 }
 0xd89   : > { %v9131_v11 = vpop.permute.xlu2 %2486 }
 0xd8a   : > { %12910 = vst [vmem:[#allocation77_spill] sm:$0xff] %v9131_v11  ;;  %v1494_v11 = vmul.f32 %v1490_v55, %v8686_v10 }
 0xd8c   : > { %v1508_v31 = vrot.slane %v1494_v11, 6  ;;  %v1582_v11 = vsel %vm1423_vm9, %v1572_v3, %v12916_v33  ;;  %v1811_v3 = vmul.f32 %v9179_v19, %v8646_v50  ;;  %v12919_v33 = vld [vmem:[#allocation37_spill] sm:$0xff]  ;;  %v9211_v50 = vmul.f32 %v9186_v51, %v8598_v38 }
 0xd8e   : > { %v1510_v49 = vsel %vm1373_vm0, %v1508_v31, %v12538_v2 }
 0xd8f   : > { %v1520_v17 = vadd.f32 %v1510_v49, %v1483_v15  ;;  %v1723_v15 = vsel %vm1401_vm4, %v8984_v54, %v1715_v45  ;;  %v1812_v45 = vmul.f32 %v9186_v51, %v8686_v10  ;;  %v1823_v54 = vrot.slane %v1811_v3, 7 }
 0xd90   : > { %v9133_v47 = vpop.permute.xlu0 %2241  ;;  %v1497_v10 = vmul.f32 %v1489_v9, %v8608_v13  ;;  %v1498_v3 = vmul.f32 %v1490_v55, %v8611_v18  ;;  %v12921_v9 = vld [vmem:[#allocation51_spill] sm:$0xff] }
 0xd91   : > { %12911 = vst [vmem:[#allocation70_spill] sm:$0xff] %v9133_v47  ;;  %v9162_v47 = vpop.permute.xlu2 %2492  ;;  %v1590_v26 = vadd.f32 %v1582_v11, %v1520_v17 }
 0xd92   : > { %12915 = vst [vmem:[#allocation31_spill] sm:$0xff] %v9162_v47  ;;  %v1659_v47 = vadd.f32 %v1651_v7, %v1589_v22  ;;  %v9216_v22 = vpop.permute.xlu1 %2243  ;;  %v1824_v7 = vrot.slane %v9197_v29, 7 }
 0xd94   : > { %v1730_v11 = vadd.f32 %v1722_v34, %v1659_v47  ;;  %v1793_v47 = vsel %vm1473_vm15, %v9112_v23, %v9023_v44  ;;  %v1511_v44 = vrot.slane %v1497_v10, 6 }
 0xd98   : > { %v9156_v35 = vpop.permute.xlu0 %2247 }
 0xd99   : > { %12914 = vst [vmem:[#allocation80_spill] sm:$0xff] %v9156_v35  ;;  %v12917_v35 = vld [vmem:[#allocation52_spill] sm:$0xff]  ;;  %v9199_v49 = vpop.permute.xlu2 %2559 }
 0xd9a   : > { %v1652_v31 = vsel %vm1345_vm8, %v9070_v14, %v12917_v35  ;;  %v1792_v14 = vsel %vm1473_vm15, %v12919_v33, %v9112_v23  ;;  %v12920_v35 = vld [vmem:[#allocation33_spill] sm:$0xff] }
 0xd9b   : > { %v1660_v12 = vadd.f32 %v1652_v31, %v1590_v26  ;;  %v1404_v26 = vsel %vm1401_vm4, %v12920_v35, %v8982_v5  ;;  %v1405_v31 = vsel %vm1401_vm4, %v8982_v5, %v9068_v0  ;;  %v1800_v62 = vadd.f32 %v1792_v14, %v1730_v11 }
 0xd9c   : > { %v1412_v2 = vadd.f32 %v1404_v26, %v1360_v56  ;;  %v1413_v35 = vadd.f32 %v1405_v31, %v1361_v37  ;;  %v1825_v5 = vsel %vm1694_vm1, %v1823_v54, %v1824_v7  ;;  %v1899_v0 = vsel %vm1423_vm9, %v9060_v16, %v9114_v61  ;;  %v12922_v37 = vld [vmem:[#allocation56_spill] sm:$0xff] }
 0xd9d   : > { %v1731_v17 = vadd.f32 %v1723_v15, %v1660_v12  ;;  %v1826_v15 = vrot.slane %v1812_v45, 7  ;;  %v1827_v12 = vrot.slane %v9211_v50, 7  ;;  %v1476_v56 = vsel %vm1473_vm15, %v12921_v9, %v8916_v20  ;;  %v12926_v9 = vld [vmem:[#allocation40_spill] sm:$0xff] }
 0xd9e   : > { %v1837_v23 = vadd.f32 %v1825_v5, %v1800_v62  ;;  %v1484_v14 = vadd.f32 %v1476_v56, %v1412_v2  ;;  %v1900_v45 = vsel %vm1423_vm9, %v9114_v61, %v12922_v37  ;;  %v1477_v26 = vsel %vm1473_vm15, %v8916_v20, %v9021_v59  ;;  %v9256_v61 = vpop.permute.xlu1 %2249 }
 0xd9f   : > { %v1801_v34 = vadd.f32 %v1793_v47, %v1731_v17  ;;  %v1828_v55 = vsel %vm1694_vm1, %v1826_v15, %v1827_v12  ;;  %v1513_v16 = vrot.slane %v1498_v3, 6  ;;  %v1485_v31 = vadd.f32 %v1477_v26, %v1413_v35  ;;  %v12928_v26 = vld [vmem:[#allocation53_spill] sm:$0xff] }
 0xda0   : > { %v9181_v48 = vpop.permute.xlu0 %2313  ;;  %v1907_v17 = vadd.f32 %v1899_v0, %v1837_v23  ;;  %v12923_v2 = vrot.slane %v9146_v24, 6  ;;  %v1583_v62 = vsel %vm1423_vm9, %v9058_v43, %v9102_v32  ;;  %v1969_v59 = vsel %vm1345_vm8, %v9139_v57, %v9092_v41  ;;  %v12927_v23 = vld [vmem:[#allocation32_spill] sm:$0xff] }
 0xda1   : > { %v1838_v11 = vadd.f32 %v1828_v55, %v1801_v34  ;;  %v9248_v54 = vpop.permute.xlu2 %2565  ;;  %v12924_v3 = vrot.slane %v9150_v6, 6  ;;  %v12925_v34 = vld [vmem:[#allocation38_spill] sm:$0xff]  ;;  %v1970_v56 = vsel %vm1345_vm8, %v9092_v41, %v12926_v9  ;;  %v2018_v57 = vsel %vm1401_vm4, %v12927_v23, %v8868_v8 }
 0xda2   : > { %v1512_v10 = vsel %vm1373_vm0, %v12923_v2, %v1511_v44  ;;  %v1584_v35 = vsel %vm1423_vm9, %v9102_v32, %v12925_v34  ;;  %v1977_v5 = vadd.f32 %v1969_v59, %v1907_v17  ;;  %v9278_v6 = vld [vmem:[%s12405_s7 + $0x14] ss:$8 sm:$0x3]  ;;  %v1653_v32 = vsel %vm1345_vm8, %v8958_v60, %v9090_v40 }
 0xda3   : > { %v1908_v47 = vadd.f32 %v1900_v45, %v1838_v11  ;;  %v1521_v20 = vadd.f32 %v1512_v10, %v1484_v14  ;;  %v1514_v24 = vsel %vm1373_vm0, %v12924_v3, %v1513_v16  ;;  %v2019_v41 = vsel %vm1401_vm4, %v8868_v8, %v8811_v1  ;;  %v12929_v1 = vld [vmem:[#allocation29_spill] sm:$0xff] }
 0xda4   : > { %v1522_v43 = vadd.f32 %v1514_v24, %v1485_v31  ;;  %v2026_v55 = vadd.f32 %v2018_v57, %v1977_v5  ;;  %v1815_v45 = vmul.f32 %v9179_v19, %v8608_v13  ;;  %v1654_v16 = vsel %vm1345_vm8, %v9090_v40, %v12928_v26  ;;  %v12930_v40 = vld [vmem:[#allocation55_spill] sm:$0xff] }
 0xda5   : > { %v1591_v0 = vadd.f32 %v1583_v62, %v1521_v20  ;;  %v1978_v44 = vadd.f32 %v1970_v56, %v1908_v47  ;;  %v1725_v11 = vsel %vm1401_vm4, %v8998_v63, %v9108_v58  ;;  %v2082_v60 = vperm.slane %v9278_v6, 0  ;;  %v12931_v58 = vld [vmem:[#allocation39_spill] sm:$0xff] }
 0xda6   : > { %v1592_v14 = vadd.f32 %v1584_v35, %v1522_v43  ;;  %v2067_v8 = vsel %vm1473_vm15, %v12929_v1, %v8866_v30  ;;  %v1816_v10 = vmul.f32 %v9186_v51, %v8611_v18  ;;  %v1724_v62 = vsel %vm1401_vm4, %v12930_v40, %v8998_v63  ;;  %v9311_v3 = vpop.permute.xlu1 %2418  ;;  %v12933_v26 = vld [vmem:[#allocation35_spill] sm:$0xff]  ;;  %v12936_v40 = vld [vmem:[#allocation64_spill] sm:$0xff] }
 0xda7   : > { %v1661_v37 = vadd.f32 %v1653_v32, %v1591_v0  ;;  %v2027_v17 = vadd.f32 %v2019_v41, %v1978_v44  ;;  %v1794_v47 = vsel %vm1473_vm15, %v12931_v58, %v9118_v27  ;;  %v2075_v20 = vadd.f32 %v2067_v8, %v2026_v55  ;;  %v12932_v41 = vld [vmem:[#allocation57_spill] sm:$0xff]  ;;  %v12935_v8 = vld [vmem:[#allocation46_spill] sm:$0xff] }
 0xda8   : > { %v9223_v33 = vpop.permute.xlu0 %2319  ;;  %v1662_v19 = vadd.f32 %v1654_v16, %v1592_v14  ;;  %v2083_v59 = vperm.slane %v9278_v6, 1  ;;  %v2068_v24 = vsel %vm1473_vm15, %v8866_v30, %v8913_v39  ;;  %v1829_v5 = vrot.slane %v1815_v45, 7  ;;  %v6439_v30 = vld [vmem:[%s12405_s7 + $0x21] ss:$8 sm:$0x3]  ;;  %v12950_v6 = vld [vmem:[#allocation214_spill] sm:$0xff] }
 0xda9   : > { %v9295_v31 = vpop.permute.xlu2 %2631  ;;  %v1732_v34 = vadd.f32 %v1724_v62, %v1661_v37  ;;  %v2076_v51 = vadd.f32 %v2068_v24, %v2027_v17  ;;  %v2086_v63 = vmul.f32 %v2082_v60, %v8589_v42  ;;  %v1795_v0 = vsel %vm1473_vm15, %v9118_v27, %v9040_v52 }
 0xdaa   : > { %v1733_v35 = vadd.f32 %v1725_v11, %v1662_v19  ;;  %v1831_v9 = vrot.slane %v1816_v10, 7  ;;  %v2087_v56 = vmul.f32 %v2083_v59, %v8598_v38  ;;  %v1830_v23 = vsel %vm1694_vm1, %v1824_v7, %v1829_v5 }
 0xdab   : > { %v1802_v43 = vadd.f32 %v1794_v47, %v1732_v34  ;;  %v2090_v44 = vadd.f32 %v2086_v63, %v2075_v20  ;;  %v1901_v57 = vsel %vm1423_vm9, %v9074_v53, %v9120_v4  ;;  %v2131_v14 = vsel %vm1423_vm9, %v8952_v28, %v8854_v25  ;;  %v12937_v47 = vld [vmem:[#allocation44_spill] sm:$0xff] }
 0xdac   : > { %v1803_v39 = vadd.f32 %v1795_v0, %v1733_v35  ;;  %v2091_v52 = vadd.f32 %v2087_v56, %v2076_v51  ;;  %v9339_v55 = vperm.slane %v6439_v30, 1  ;;  %v1832_v29 = vsel %vm1694_vm1, %v1827_v12, %v1831_v9  ;;  %v12938_v35 = vld [vmem:[#allocation41_spill] sm:$0xff]  ;;  %v12940_v56 = vld [vmem:[#allocation71_spill] sm:$0xff] }
 0xdad   : > { %v1839_v32 = vadd.f32 %v1830_v23, %v1802_v43  ;;  %v1902_v7 = vsel %vm1423_vm9, %v9120_v4, %v12932_v41  ;;  %v2139_v37 = vadd.f32 %v2131_v14, %v2090_v44  ;;  %v9349_v45 = vperm.slane %v6439_v30, 0  ;;  %v12934_v4 = vld [vmem:[#allocation70_spill] sm:$0xff]  ;;  %v12943_v41 = vld [vmem:[#allocation211_spill] sm:$0xff] }
 0xdae   : > { %v2132_v28 = vsel %vm1423_vm9, %v8854_v25, %v12933_v26  ;;  %v1840_v16 = vadd.f32 %v1832_v29, %v1803_v39  ;;  %v9354_v1 = vpop.permute.xlu1 %2424  ;;  %v2180_v50 = vsel %vm1345_vm8, %v8911_v46, %v9000_v21  ;;  %v2251_v19 = vsel %vm1401_vm4, %v12935_v8, %v12934_v4  ;;  %v12941_v44 = vld [vmem:[#allocation34_spill] sm:$0xff] }
 0xdaf   : > { %v1909_v11 = vadd.f32 %v1901_v57, %v1839_v32  ;;  %v2140_v17 = vadd.f32 %v2132_v28, %v2091_v52  ;;  %v2341_v10 = vmul.f32 %v9339_v55, %v8598_v38  ;;  %v1971_v25 = vsel %vm1345_vm8, %v9172_v36, %v12936_v40  ;;  %v12942_v57 = vld [vmem:[#allocation58_spill] sm:$0xff] }
 0xdb0   : > { %v9258_v15 = vpop.permute.xlu0 %2416  ;;  %v1910_v12 = vadd.f32 %v1902_v7, %v1840_v16  ;;  %v2188_v62 = vadd.f32 %v2180_v50, %v2139_v37  ;;  %v9369_v58 = vmul.f32 %v9339_v55, %v8611_v18  ;;  %v2340_v46 = vmul.f32 %v9349_v45, %v8589_v42  ;;  %v12944_v16 = vld [vmem:[#allocation43_spill] sm:$0xff] }
 0xdb1   : > { %v9347_v53 = vpop.permute.xlu2 %2637  ;;  %v2181_v20 = vsel %vm1345_vm8, %v9000_v21, %v12937_v47  ;;  %v1979_v24 = vadd.f32 %v1971_v25, %v1909_v11  ;;  %v2252_v34 = vsel %vm1401_vm4, %v12934_v4, %v9216_v22  ;;  %v9381_v36 = vmul.f32 %v9349_v45, %v8608_v13  ;;  %v12939_v21 = vld [vmem:[#allocation63_spill] sm:$0xff]  ;;  %v12945_v11 = vld [vmem:[#allocation30_spill] sm:$0xff] }
 0xdb2   : > { %v1972_v51 = vsel %vm1345_vm8, %v12936_v40, %v12938_v35  ;;  %v2189_v5 = vadd.f32 %v2181_v20, %v2140_v17  ;;  %v2259_v63 = vadd.f32 %v2251_v19, %v2188_v62  ;;  %v2322_v9 = vsel %vm1473_vm15, %v12939_v21, %v9181_v48  ;;  %v12946_v40 = vld [vmem:[#allocation61_spill] sm:$0xff] }
 0xdb3   : > { %v1980_v0 = vadd.f32 %v1972_v51, %v1910_v12  ;;  %v2020_v22 = vsel %vm1401_vm4, %v12941_v44, %v12940_v56  ;;  %v2355_v39 = vrot.slane %v2341_v10, 1  ;;  %v2356_v23 = vrot.slane %v9369_v58, 1  ;;  %v6444_v12 = vld [vmem:[%s12405_s7 + $0x26] ss:$8 sm:$0x3] }
 0xdb4   : > { %v2260_v30 = vadd.f32 %v2252_v34, %v2189_v5  ;;  %v2321_v52 = vsel %vm1473_vm15, %v12942_v57, %v12939_v21  ;;  %v2028_v14 = vadd.f32 %v2020_v22, %v1979_v24  ;;  %v2352_v32 = vrot.slane %v2340_v46, 1  ;;  %v12947_v34 = vld [vmem:[#allocation77_spill] sm:$0xff]  ;;  %v12948_v21 = vld [vmem:[#allocation60_spill] sm:$0xff] }
 0xdb5   : > { %v2353_v29 = vrot.slane %v9381_v36, 1  ;;  %v2021_v48 = vsel %vm1401_vm4, %v12940_v56, %v12943_v41  ;;  %v2329_v7 = vadd.f32 %v2321_v52, %v2259_v63  ;;  %v2069_v17 = vsel %vm1473_vm15, %v12945_v11, %v12944_v16  ;;  %v12949_v56 = vld [vmem:[#allocation65_spill] sm:$0xff]  ;;  %v12952_v41 = vld [vmem:[#allocation67_spill] sm:$0xff] }
 0xdb6   : > { %v2330_v37 = vadd.f32 %v2322_v9, %v2260_v30  ;;  %v2029_v28 = vadd.f32 %v2021_v48, %v1980_v0  ;;  %v2630_v50 = vpop.permute.xlu1 %2629  ;;  %v2077_v4 = vadd.f32 %v2069_v17, %v2028_v14  ;;  %v2357_v8 = vsel %vm2223_vm2, %v2355_v39, %v2356_v23  ;;  %v12968_v36 = vld [vmem:[#allocation87_spill] sm:$0xff] }
 0xdb7   : > { %v2354_v19 = vsel %vm2223_vm2, %v2352_v32, %v2353_v29  ;;  %v2428_v10 = vsel %vm1423_vm9, %v9258_v15, %v9311_v3  ;;  %v2070_v25 = vsel %vm1473_vm15, %v12944_v16, %v12946_v40  ;;  %v2088_v24 = vmul.f32 %v2082_v60, %v8608_v13  ;;  %v12955_v40 = vld [vmem:[#allocation215_spill] sm:$0xff] }
 0xdb8   : > { %v9297_v2 = vpop.permute.xlu0 %2422  ;;  %v2367_v62 = vadd.f32 %v2357_v8, %v2330_v37  ;;  %v2366_v46 = vadd.f32 %v2354_v19, %v2329_v7  ;;  %v2078_v20 = vadd.f32 %v2070_v25, %v2029_v28  ;;  %v9428_v51 = vperm.slane %v6444_v12, 0  ;;  %v12953_v28 = vld [vmem:[#allocation42_spill] sm:$0xff]  ;;  %v12954_v19 = vld [vmem:[#allocation48_spill] sm:$0xff] }
 0xdb9   : > { %v9402_v26 = vpop.permute.xlu2 %2734  ;;  %v9430_v15 = vperm.slane %v6444_v12, 1  ;;  %v2089_v63 = vmul.f32 %v2083_v59, %v8611_v18  ;;  %v2092_v0 = vadd.f32 %v2088_v24, %v2077_v4  ;;  %v2429_v9 = vsel %vm1423_vm9, %v9311_v3, %v12948_v21  ;;  %v12951_v59 = vld [vmem:[#allocation72_spill] sm:$0xff]  ;;  %v12959_v24 = vld [vmem:[#allocation47_spill] sm:$0xff] }
 0xdba   : > { %v2436_v5 = vadd.f32 %v2428_v10, %v2366_v46  ;;  %v2437_v44 = vadd.f32 %v2429_v9, %v2367_v62  ;;  %v2658_v57 = vmul.f32 %v9428_v51, %v8589_v42  ;;  %v2133_v52 = vsel %vm1423_vm9, %v12951_v59, %v12950_v6  ;;  %v12956_v62 = vld [vmem:[#allocation69_spill] sm:$0xff] }
 0xdbb   : > { %v2093_v30 = vadd.f32 %v2089_v63, %v2078_v20  ;;  %v2659_v32 = vmul.f32 %v9430_v15, %v8598_v38  ;;  %v2569_v48 = vsel %vm1401_vm4, %v12952_v41, %v9199_v49  ;;  %v2141_v7 = vadd.f32 %v2133_v52, %v2092_v0  ;;  %v12957_v46 = vld [vmem:[#allocation49_spill] sm:$0xff]  ;;  %v12958_v20 = vld [vmem:[#allocation80_spill] sm:$0xff] }
 0xdbc   : > { %v9461_v37 = vmul.f32 %v9430_v15, %v8611_v18  ;;  %v2134_v16 = vsel %vm1423_vm9, %v12950_v6, %v12953_v28  ;;  %v2345_v10 = vmul.f32 %v9339_v55, %v12954_v19  ;;  %v2670_v25 = vrot.slane %v2658_v57, 2  ;;  %v12960_v0 = vld [vmem:[#allocation73_spill] sm:$0xff]  ;;  %v12962_v57 = vld [vmem:[#allocation76_spill] sm:$0xff] }
 0xdbd   : > { %v2142_v8 = vadd.f32 %v2134_v16, %v2093_v30  ;;  %v2639_v21 = vsel %vm1473_vm15, %v12960_v0, %v2630_v50  ;;  %v2640_v55 = vsel %vm1473_vm15, %v2630_v50, %v9295_v31  ;;  %v12961_v9 = vld [vmem:[#allocation45_spill] sm:$0xff]  ;;  %v2324_v6 = vsel %vm1473_vm15, %v12962_v57, %v9223_v33  ;;  %v12967_v0 = vld [vmem:[#allocation79_spill] sm:$0xff] }
 0xdbe   : > { %v9466_v11 = vpop.permute.xlu1 %2635  ;;  %v2360_v31 = vrot.slane %v2345_v10, 1  ;;  %v13089_v18 = vld [vmem:[#allocation189_spill] sm:$0xff] }
 0xdc0   : > { %v9334_v27 = vpop.permute.xlu0 %2488 }
 0xdc1   : > { %v2498_v35 = vsel %vm1345_vm8, %v12947_v34, %v9334_v27  ;;  %v2499_v60 = vsel %vm1345_vm8, %v9334_v27, %v12949_v56  ;;  %v9448_v14 = vpop.permute.xlu2 %2740  ;;  %v9454_v27 = vmul.f32 %v9428_v51, %v8608_v13  ;;  %v2253_v34 = vsel %vm1401_vm4, %v12959_v24, %v12958_v20 }
 0xdc2   : > { %v2506_v22 = vadd.f32 %v2498_v35, %v2436_v5  ;;  %v2507_v3 = vadd.f32 %v2499_v60, %v2437_v44  ;;  %v2673_v5 = vrot.slane %v2659_v32, 2  ;;  %v2183_v56 = vsel %vm1345_vm8, %v12956_v62, %v12961_v9  ;;  %v12969_v9 = vld [vmem:[#allocation96_spill] sm:$0xff] }
 0xdc3   : > { %v2671_v35 = vrot.slane %v9454_v27, 2  ;;  %v2254_v60 = vsel %vm1401_vm4, %v12958_v20, %v9256_v61  ;;  %v2191_v30 = vadd.f32 %v2183_v56, %v2142_v8  ;;  %v12970_v56 = vld [vmem:[#allocation62_spill] sm:$0xff] }
 0xdc4   : > { %v2577_v17 = vadd.f32 %v2569_v48, %v2506_v22 }
 0xdc5   : > { %v2262_v59 = vadd.f32 %v2254_v60, %v2191_v30  ;;  %v2672_v50 = vsel %vm2541_vm3, %v2670_v25, %v2671_v35  ;;  %v2431_v60 = vsel %vm1423_vm9, %v9354_v1, %v12970_v56  ;;  %v12987_v56 = vld [vmem:[#allocation173_spill] sm:$0xff] }
 0xdc6   : > { %v2647_v22 = vadd.f32 %v2639_v21, %v2577_v17  ;;  %v12964_v17 = vld [vmem:[#allocation75_spill] sm:$0xff]  ;;  %v2805_v8 = vpop.permute.xlu1 %2804 }
 0xdc7   : > { %v2332_v16 = vadd.f32 %v2324_v6, %v2262_v59  ;;  %v12972_v59 = vld [vmem:[#allocation68_spill] sm:$0xff] }
 0xdc8   : > { %v9386_v43 = vpop.permute.xlu0 %2494  ;;  %v2684_v48 = vadd.f32 %v2672_v50, %v2647_v22 }
 0xdc9   : > { %v2807_v41 = vpop.permute.xlu2 %2806 }
 0xdd0   : > { %v2562_v47 = vpop.permute.xlu0 %2561 }
 0xdd1   : > { %v2570_v39 = vsel %vm1401_vm4, %v9199_v49, %v2562_v47  ;;  %v2344_v49 = vmul.f32 %v9349_v45, %v12955_v40  ;;  %v2182_v47 = vsel %vm1345_vm8, %v12957_v46, %v12956_v62  ;;  %v2674_v45 = vrot.slane %v9461_v37, 2  ;;  %v12965_v46 = vld [vmem:[#allocation81_spill] sm:$0xff] }
 0xdd2   : > { %v2578_v12 = vadd.f32 %v2570_v39, %v2507_v3  ;;  %v2190_v63 = vadd.f32 %v2182_v47, %v2141_v7  ;;  %v12963_v3 = vld [vmem:[#allocation59_spill] sm:$0xff]  ;;  %v2361_v62 = vsel %vm2223_vm2, %v2356_v23, %v2360_v31  ;;  %v2817_v47 = vsel %vm1345_vm8, %v2807_v41, %v12965_v46 }
 0xdd3   : > { %v2675_v52 = vsel %vm2541_vm3, %v2673_v5, %v2674_v45  ;;  %v2323_v61 = vsel %vm1473_vm15, %v12963_v3, %v12962_v57  ;;  %v2358_v32 = vrot.slane %v2344_v49, 1  ;;  %v2816_v49 = vsel %vm1345_vm8, %v2805_v8, %v2807_v41  ;;  %v12966_v23 = vld [vmem:[#allocation31_spill] sm:$0xff]  ;;  %v12973_v3 = vld [vmem:[#allocation74_spill] sm:$0xff] }
 0xdd4   : > { %v2648_v44 = vadd.f32 %v2640_v55, %v2578_v12  ;;  %v2261_v39 = vadd.f32 %v2253_v34, %v2190_v63  ;;  %v2369_v58 = vadd.f32 %v2361_v62, %v2332_v16  ;;  %v2500_v63 = vsel %vm1345_vm8, %v12966_v23, %v9386_v43  ;;  %v12974_v16 = vld [vmem:[#allocation78_spill] sm:$0xff]  ;;  %v12978_v62 = vld [vmem:[#allocation100_spill] sm:$0xff] }
 0xdd5   : > { %v2359_v20 = vsel %vm2223_vm2, %v2353_v29, %v2358_v32  ;;  %v2662_v31 = vmul.f32 %v9428_v51, %v12955_v40  ;;  %v12975_v8 = vld [vmem:[#allocation82_spill] sm:$0xff] }
 0xdd6   : > { %v2685_v7 = vadd.f32 %v2675_v52, %v2648_v44  ;;  %v2331_v28 = vadd.f32 %v2323_v61, %v2261_v39  ;;  %v12971_v44 = vld [vmem:[#allocation66_spill] sm:$0xff]  ;;  %v2439_v30 = vadd.f32 %v2431_v60, %v2369_v58  ;;  %v2641_v61 = vsel %vm1473_vm15, %v12973_v3, %v9466_v11 }
 0xdd7   : > { %v2501_v22 = vsel %vm1345_vm8, %v9386_v43, %v12971_v44  ;;  %v2663_v43 = vmul.f32 %v9430_v15, %v12954_v19  ;;  %v2676_v32 = vrot.slane %v2662_v31, 2  ;;  %v2813_v19 = vpop.permute.xlu2 %2812 }
 0xdd8   : > { %v2568_v4 = vpop.permute.xlu0 %2567  ;;  %v2368_v5 = vadd.f32 %v2359_v20, %v2331_v28  ;;  %v2509_v6 = vadd.f32 %v2501_v22, %v2439_v30  ;;  %v2819_v27 = vsel %vm1345_vm8, %v2813_v19, %v12975_v8  ;;  %v12981_v20 = vld [vmem:[#allocation99_spill] sm:$0xff] }
 0xdd9   : > { %v2572_v57 = vsel %vm1401_vm4, %v9248_v54, %v2568_v4  ;;  %v2642_v4 = vsel %vm1473_vm15, %v9466_v11, %v9347_v53  ;;  %v2678_v41 = vrot.slane %v2663_v43, 2  ;;  %v2677_v51 = vsel %vm2541_vm3, %v2671_v35, %v2676_v32  ;;  %v2811_v11 = vpop.permute.xlu1 %2810  ;;  %v12997_v8 = vld [vmem:[#allocation119_spill] sm:$0xff] }
 0xdda   : > { %v2580_v52 = vadd.f32 %v2572_v57, %v2509_v6  ;;  %v12989_v57 = vld [vmem:[#allocation108_spill] sm:$0xff] }
 0xddb   : > { %v2679_v15 = vsel %vm2541_vm3, %v2674_v45, %v2678_v41 }
 0xde0   : > { %v2737_v37 = vpop.permute.xlu0 %2736 }
 0xde1   : > { %v2746_v33 = vsel %vm1423_vm9, %v9402_v26, %v2737_v37  ;;  %v2747_v12 = vsel %vm1423_vm9, %v2737_v37, %v12964_v17  ;;  %v2430_v26 = vsel %vm1423_vm9, %v9297_v2, %v9354_v1  ;;  %v2571_v1 = vsel %vm1401_vm4, %v12972_v59, %v9248_v54 }
 0xde2   : > { %v2754_v10 = vadd.f32 %v2746_v33, %v2684_v48  ;;  %v2755_v25 = vadd.f32 %v2747_v12, %v2685_v7  ;;  %v2438_v55 = vadd.f32 %v2430_v26, %v2368_v5  ;;  %v2650_v48 = vadd.f32 %v2642_v4, %v2580_v52  ;;  %v12982_v5 = vld [vmem:[#allocation90_spill] sm:$0xff]  ;;  %v12991_v52 = vld [vmem:[#allocation107_spill] sm:$0xff] }
 0xde3   : > { %v2818_v12 = vsel %vm1345_vm8, %v2811_v11, %v2813_v19  ;;  %v2983_v23 = vsel %vm1473_vm15, %v12982_v5, %v12969_v9  ;;  %v12993_v4 = vld [vmem:[#allocation111_spill] sm:$0xff] }
 0xde4   : > { %v9516_v24 = vadd.f32 %v2816_v49, %v2754_v10  ;;  %v9518_v34 = vadd.f32 %v2817_v47, %v2755_v25  ;;  %v2508_v39 = vadd.f32 %v2500_v63, %v2438_v55  ;;  %v2687_v37 = vadd.f32 %v2679_v15, %v2650_v48  ;;  %v12979_v49 = vld [vmem:[#allocation93_spill] sm:$0xff]  ;;  %v12980_v47 = vld [vmem:[#allocation104_spill] sm:$0xff]  ;;  %v12994_v48 = vld [vmem:[#allocation103_spill] sm:$0xff] }
 0xde5   : > { %v3032_v46 = vsel %vm1401_vm4, %v12979_v49, %v12978_v62  ;;  %v3081_v26 = vsel %vm3080_vm5, %v12981_v20, %v12980_v47  ;;  %v13000_v49 = vld [vmem:[#allocation115_spill] sm:$0xff] }
 0xde6   : > { %v2871_v21 = vmul.f32 %v12967_v0, %v9516_v24  ;;  %v2925_v29 = vmul.f32 %v12968_v36, %v9516_v24  ;;  %v2989_v2 = vmul.f32 %v12969_v9, %v9518_v34  ;;  %v2579_v50 = vadd.f32 %v2571_v1, %v2508_v39 }
 0xde7   : > { %v3037_v58 = vmul.f32 %v3032_v46, %v9516_v24  ;;  %v3086_v63 = vmul.f32 %v3081_v26, %v9516_v24  ;;  %v3087_v39 = vmul.f32 %v12980_v47, %v9518_v34  ;;  %v3142_v6 = vmul.f32 %v12989_v57, %v9518_v34 }
 0xde8   : > { %2939 = vrot.lane.b32.xlu1 %v2925_v29, %s6981_s0  ;;  %3003 = vrot.lane.b32.xlu0 %v2989_v2, %s6980_s29  ;;  %v2649_v54 = vadd.f32 %v2641_v61, %v2579_v50  ;;  %v2743_v7 = vpop.permute.xlu0 %2742  ;;  %v2988_v29 = vmul.f32 %v2983_v23, %v9516_v24  ;;  %v12986_v2 = vld [vmem:[#allocation154_spill] sm:$0xff]  ;;  %v3038_v59 = vmul.f32 %v12978_v62, %v9518_v34  ;;  %v12990_v50 = vld [vmem:[#allocation112_spill] sm:$0xff] }
 0xde9   : > { %2890 = vrot.lane.b32.xlu2 %v2871_v21, %s12845_s17  ;;  %v2748_v28 = vsel %vm1423_vm9, %v9448_v14, %v2743_v7  ;;  %v2749_v53 = vsel %vm1423_vm9, %v2743_v7, %v12974_v16  ;;  %v12984_v21 = vld [vmem:[#allocation168_spill] sm:$0xff]  ;;  %v3185_v3 = vsel %vm1216_vm14, %v12991_v52, %v12990_v50  ;;  %v13003_v52 = vld [vmem:[#allocation94_spill] sm:$0xff] }
 0xdea   : > { %v2686_v40 = vadd.f32 %v2677_v51, %v2649_v54  ;;  %v2757_v17 = vadd.f32 %v2749_v53, %v2687_v37  ;;  %v12992_v61 = vld [vmem:[#allocation116_spill] sm:$0xff]  ;;  %v3190_v41 = vmul.f32 %v3185_v3, %v9516_v24  ;;  %v3136_v54 = vsel %vm3080_vm5, %v12994_v48, %v12989_v57 }
 0xdeb   : > { %v3234_v32 = vsel %vm1216_vm14, %v12993_v4, %v12992_v61  ;;  %v3141_v51 = vmul.f32 %v3136_v54, %v9516_v24  ;;  %v3240_v37 = vmul.f32 %v12992_v61, %v9518_v34  ;;  %v3191_v53 = vmul.f32 %v12990_v50, %v9518_v34 }
 0xdec   : > { %v2756_v33 = vadd.f32 %v2748_v28, %v2686_v40  ;;  %v9566_v45 = vadd.f32 %v2819_v27, %v2757_v17  ;;  %v3239_v7 = vmul.f32 %v3234_v32, %v9516_v24  ;;  %v12995_v28 = vld [vmem:[#allocation120_spill] sm:$0xff] }
 0xded   : > { %v3288_v16 = vmul.f32 %v12995_v28, %v9518_v34 }
 0xdee   : > { %v9564_v35 = vadd.f32 %v2818_v12, %v2756_v33  ;;  %12977 = vst [vmem:[#allocation36_spill] sm:$0xff] %v9566_v45  ;;  %v2992_v25 = vmul.f32 %v12969_v9, %v9566_v45  ;;  %v9603_v9 = vsel %vm1216_vm14, %v12987_v56, %v12986_v2  ;;  %v3090_v1 = vmul.f32 %v12980_v47, %v9566_v45  ;;  %v12996_v12 = vld [vmem:[#allocation124_spill] sm:$0xff] }
 0xdef   : > { %v9608_v60 = vmul.f32 %v9603_v9, %v9566_v45  ;;  %v3145_v31 = vmul.f32 %v12989_v57, %v9566_v45  ;;  %v3041_v43 = vmul.f32 %v12978_v62, %v9566_v45  ;;  %v3243_v11 = vmul.f32 %v12992_v61, %v9566_v45 }
 0xdf0   : > { %12976 = vst [vmem:[#allocation50_spill] sm:$0xff] %v9564_v35  ;;  %v2874_v10 = vmul.f32 %v12967_v0, %v9564_v35  ;;  %v2928_v14 = vmul.f32 %v12968_v36, %v9564_v35  ;;  %3009 = vrot.lane.b32.xlu0 %v2992_v25, %s6980_s29  ;;  %v12983_v0 = vld [vmem:[#allocation172_spill] sm:$0xff]  ;;  %v3040_v44 = vmul.f32 %v3032_v46, %v9564_v35 }
 0xdf1   : > { %v9591_v36 = vsel %vm1401_vm4, %v12984_v21, %v12983_v0  ;;  %12988 = vst [vmem:[#allocation52_spill] sm:$0xff] %v9608_v60  ;;  %v3089_v22 = vmul.f32 %v3081_v26, %v9564_v35  ;;  %v2991_v30 = vmul.f32 %v2983_v23, %v9564_v35  ;;  %v3193_v15 = vmul.f32 %v3185_v3, %v9564_v35  ;;  %v13001_v0 = vld [vmem:[#allocation132_spill] sm:$0xff] }
 0xdf2   : > { %2945 = vrot.lane.b32.xlu1 %v2928_v14, %s6981_s0  ;;  %2896 = vrot.lane.b32.xlu2 %v2874_v10, %s12845_s17  ;;  %v9597_v55 = vmul.f32 %v9591_v36, %v9566_v45  ;;  %v3242_v19 = vmul.f32 %v3234_v32, %v9564_v35  ;;  %v3144_v40 = vmul.f32 %v3136_v54, %v9564_v35  ;;  %v12998_v10 = vld [vmem:[#allocation128_spill] sm:$0xff]  ;;  %v12999_v14 = vld [vmem:[#allocation123_spill] sm:$0xff] }
 0xdf3   : > { %v3291_v33 = vmul.f32 %v12995_v28, %v9566_v45  ;;  %v3194_v17 = vmul.f32 %v12990_v50, %v9566_v45  ;;  %v3336_v27 = vsel %vm3114_vm6, %v12997_v8, %v12996_v12  ;;  %v3385_v25 = vsel %vm3114_vm6, %v12999_v14, %v12998_v10 }
 0xdf4   : > { %v3341_v62 = vmul.f32 %v3336_v27, %v9516_v24  ;;  %v3282_v46 = vsel %vm3114_vm6, %v13000_v49, %v12995_v28  ;;  %v3390_v47 = vmul.f32 %v3385_v25, %v9516_v24  ;;  %v3344_v26 = vmul.f32 %v3336_v27, %v9564_v35  ;;  %v13007_v28 = vld [vmem:[#allocation135_spill] sm:$0xff] }
 0xdf5   : > { %v3287_v20 = vmul.f32 %v3282_v46, %v9516_v24  ;;  %v3290_v5 = vmul.f32 %v3282_v46, %v9564_v35  ;;  %v3394_v50 = vmul.f32 %v12998_v10, %v9566_v45  ;;  %v3443_v61 = vmul.f32 %v13001_v0, %v9566_v45  ;;  %v13010_v46 = vld [vmem:[#allocation85_spill] sm:$0xff] }
 0xdf8   : > { %3104 = vrot.lane.b32.xlu0 %v3086_v63, %s12985_s19  ;;  %v3391_v63 = vmul.f32 %v12998_v10, %v9518_v34 }
 0xdfa   : > { %3050 = vrot.lane.b32.xlu1 %v3037_v58, %s6979_s3  ;;  %3001 = vrot.lane.b32.xlu2 %v2988_v29, %s6980_s29  ;;  %v3393_v58 = vmul.f32 %v3385_v25, %v9564_v35  ;;  %v3440_v29 = vmul.f32 %v13001_v0, %v9518_v34  ;;  %v13009_v25 = vld [vmem:[#allocation83_spill] sm:$0xff] }
 0xe00   : > { %3110 = vrot.lane.b32.xlu0 %v3089_v22, %s12985_s19  ;;  %v3342_v22 = vmul.f32 %v12996_v12, %v9518_v34 }
 0xe02   : > { %3056 = vrot.lane.b32.xlu1 %v3040_v44, %s6979_s3  ;;  %3007 = vrot.lane.b32.xlu2 %v2991_v30, %s6980_s29  ;;  %v9698_v44 = vld [vmem:[#allocation12] sm:$0x3] }
 0xe03   : > { %v2877_v30 = vperm.slane %v9698_v44, 1  ;;  %v2876_v10 = vperm.slane %v9698_v44, 0 }
 0xe08   : > { %3156 = vrot.lane.b32.xlu0 %v3142_v6, %s12985_s19  ;;  %v9711_v6 = vld [vmem:[%s12411_s13 + $0x2] ss:$8 sm:$0x3] }
 0xe0a   : > { %3106 = vrot.lane.b32.xlu1 %v3087_v39, %s12985_s19  ;;  %3052 = vrot.lane.b32.xlu2 %v3038_v59, %s6979_s3  ;;  %v13002_v39 = vld [vmem:[#allocation84_spill] sm:$0xff]  ;;  %v2963_v59 = vperm.slane %v9711_v6, 1 }
 0xe0c   : > { %v2967_v32 = vmul.f32 %v2963_v59, %v9516_v24 }
 0xe10   : > { %3162 = vrot.lane.b32.xlu0 %v3145_v31, %s12985_s19 }
 0xe12   : > { %3112 = vrot.lane.b32.xlu1 %v3090_v1, %s12985_s19  ;;  %3058 = vrot.lane.b32.xlu2 %v3041_v43, %s6979_s3 }
 0xe18   : > { %3252 = vrot.lane.b32.xlu0 %v3239_v7, %s6986_s21 }
 0xe1a   : > { %3203 = vrot.lane.b32.xlu1 %v3190_v41, %s6986_s21  ;;  %3154 = vrot.lane.b32.xlu2 %v3141_v51, %s12985_s19  ;;  %v3345_v41 = vmul.f32 %v12996_v12, %v9566_v45  ;;  %v13004_v51 = vld [vmem:[#allocation136_spill] sm:$0xff] }
 0xe20   : > { %3258 = vrot.lane.b32.xlu0 %v3242_v19, %s6986_s21 }
 0xe22   : > { %3209 = vrot.lane.b32.xlu1 %v3193_v15, %s6986_s21  ;;  %3160 = vrot.lane.b32.xlu2 %v3144_v40, %s12985_s19  ;;  %v13005_v15 = vld [vmem:[#allocation131_spill] sm:$0xff] }
 0xe23   : > { %v3483_v19 = vsel %vm1345_vm8, %v13005_v15, %v13004_v51 }
 0xe24   : > { %v3491_v14 = vmul.f32 %v3483_v19, %v9564_v35 }
 0xe28   : > { %3307 = vrot.lane.b32.xlu0 %v3288_v16, %s12839_s2 }
 0xe2a   : > { %3254 = vrot.lane.b32.xlu1 %v3240_v37, %s6986_s21  ;;  %3205 = vrot.lane.b32.xlu2 %v3191_v53, %s6986_s21  ;;  %v13006_v37 = vld [vmem:[#allocation158_spill] sm:$0xff]  ;;  %v3488_v53 = vmul.f32 %v3483_v19, %v9516_v24  ;;  %v13016_v19 = vld [vmem:[#allocation89_spill] sm:$0xff] }
 0xe2b   : > { %v3532_v16 = vsel %vm1345_vm8, %v13007_v28, %v13006_v37 }
 0xe2c   : > { %v3537_v12 = vmul.f32 %v3532_v16, %v9516_v24  ;;  %v3540_v49 = vmul.f32 %v3532_v16, %v9564_v35 }
 0xe30   : > { %3313 = vrot.lane.b32.xlu0 %v3291_v33, %s12839_s2  ;;  %v13008_v33 = vld [vmem:[#allocation127_spill] sm:$0xff] }
 0xe32   : > { %3260 = vrot.lane.b32.xlu1 %v3243_v11, %s6986_s21  ;;  %3211 = vrot.lane.b32.xlu2 %v3194_v17, %s6986_s21  ;;  %v3434_v17 = vsel %vm1345_vm8, %v13008_v33, %v13001_v0 }
 0xe33   : > { %v3439_v8 = vmul.f32 %v3434_v17, %v9516_v24 }
 0xe38   : > { %3403 = vrot.lane.b32.xlu0 %v3390_v47, %s12839_s2 }
 0xe3a   : > { %3354 = vrot.lane.b32.xlu1 %v3341_v62, %s12839_s2  ;;  %3305 = vrot.lane.b32.xlu2 %v3287_v20, %s12839_s2  ;;  %v2898_v62 = vsel %vm1401_vm4, %v13009_v25, %v13002_v39  ;;  %v3442_v20 = vmul.f32 %v3434_v17, %v9564_v35 }
 0xe40   : > { %3409 = vrot.lane.b32.xlu0 %v3393_v58, %s12839_s2  ;;  %v13011_v58 = vld [vmem:[#allocation88_spill] sm:$0xff] }
 0xe42   : > { %3360 = vrot.lane.b32.xlu1 %v3344_v26, %s12839_s2  ;;  %3311 = vrot.lane.b32.xlu2 %v3290_v5, %s12839_s2  ;;  %v2962_v26 = vperm.slane %v9711_v6, 0  ;;  %v2947_v5 = vsel %vm1473_vm15, %v13011_v58, %v13003_v52  ;;  %v13019_v58 = vld [vmem:[#allocation92_spill] sm:$0xff] }
 0xe43   : > { %v2891_v23 = vpop.permute.xlu2 %2890 }
 0xe44   : > { %v2899_v57 = vsel %vm1401_vm4, %v13002_v39, %v2891_v23  ;;  %v2906_v23 = vadd.f32 %v2898_v62, %v2876_v10 }
 0xe45   : > { %v2907_v31 = vadd.f32 %v2899_v57, %v2877_v30  ;;  %v6670_v57 = vld [vmem:[#allocation2 + $0x38] sm:$0xff] }
 0xe46   : > { %v2955_v39 = vadd.f32 %v2947_v5, %v2906_v23  ;;  %v2966_v6 = vmul.f32 %v6670_v57, %v2962_v26  ;;  %v3492_v23 = vmul.f32 %v13004_v51, %v9566_v45 }
 0xe48   : > { %3454 = vrot.lane.b32.xlu0 %v3440_v29, %s12845_s17  ;;  %v13012_v29 = vld [vmem:[#allocation95_spill] sm:$0xff] }
 0xe4a   : > { %3405 = vrot.lane.b32.xlu1 %v3391_v63, %s12839_s2  ;;  %3356 = vrot.lane.b32.xlu2 %v3342_v22, %s12839_s2 }
 0xe4c   : > { %v2897_v1 = vpop.permute.xlu2 %2896 }
 0xe4d   : > { %v2901_v47 = vsel %vm1401_vm4, %v13010_v46, %v2897_v1 }
 0xe4e   : > { %v2909_v63 = vadd.f32 %v2901_v47, %v2877_v30  ;;  %v13013_v30 = vld [vmem:[#allocation86_spill] sm:$0xff]  ;;  %v13018_v47 = vld [vmem:[#allocation140_spill] sm:$0xff] }
 0xe50   : > { %3460 = vrot.lane.b32.xlu0 %v3443_v61, %s12845_s17  ;;  %v13014_v61 = vld [vmem:[#allocation142_spill] sm:$0xff] }
 0xe52   : > { %3411 = vrot.lane.b32.xlu1 %v3394_v50, %s12839_s2  ;;  %3362 = vrot.lane.b32.xlu2 %v3345_v41, %s12839_s2  ;;  %v3538_v50 = vmul.f32 %v13006_v37, %v9518_v34 }
 0xe54   : > { %v3002_v7 = vpop.permute.xlu2 %3001 }
 0xe58   : > { %3550 = vrot.lane.b32.xlu0 %v3537_v12, %s12845_s17 }
 0xe5a   : > { %v2940_v43 = vpop.permute.xlu1 %2939  ;;  %v3004_v54 = vpop.permute.xlu0 %3003  ;;  %3501 = vrot.lane.b32.xlu1 %v3488_v53, %s12845_s17  ;;  %3452 = vrot.lane.b32.xlu2 %v3439_v8, %s12845_s17  ;;  %v13017_v53 = vld [vmem:[#allocation97_spill] sm:$0xff] }
 0xe5b   : > { %v2948_v3 = vsel %vm1473_vm15, %v13003_v52, %v2940_v43  ;;  %v3012_v40 = vsel %vm1423_vm9, %v3002_v7, %v3004_v54  ;;  %v2969_v43 = vmul.f32 %v2963_v59, %v9564_v35  ;;  %v3489_v54 = vmul.f32 %v13004_v51, %v9518_v34  ;;  %v13021_v51 = vld [vmem:[#allocation145_spill] sm:$0xff] }
 0xe5c   : > { %v2956_v4 = vadd.f32 %v2948_v3, %v2907_v31  ;;  %v3008_v27 = vpop.permute.xlu2 %3007  ;;  %v2900_v3 = vsel %vm1401_vm4, %v13013_v30, %v13010_v46  ;;  %v2970_v59 = vadd.f32 %v2966_v6, %v2955_v39  ;;  %v9803_v57 = vsel %vm1473_vm15, %v13018_v47, %v13021_v51  ;;  %v13022_v6 = vld [vmem:[#allocation105_spill] sm:$0xff] }
 0xe5d   : > { %v2908_v28 = vadd.f32 %v2900_v3, %v2876_v10  ;;  %v3541_v10 = vmul.f32 %v13006_v37, %v9566_v45  ;;  %v3013_v5 = vsel %vm1423_vm9, %v13019_v58, %v3008_v27  ;;  %v13024_v30 = vld [vmem:[#allocation161_spill] sm:$0xff] }
 0xe5e   : > { %v2971_v48 = vadd.f32 %v2967_v32, %v2956_v4  ;;  %v3587_v4 = vmul.f32 %v13014_v61, %v9518_v34  ;;  %v13015_v32 = vld [vmem:[#allocation91_spill] sm:$0xff]  ;;  %v3924_v3 = vmul.f32 %v13024_v30, %v9516_v24  ;;  %v13030_v51 = vld [vmem:[#allocation113_spill] sm:$0xff] }
 0xe5f   : > { %v3011_v41 = vsel %vm1423_vm9, %v13015_v32, %v3002_v7 }
 0xe60   : > { %v3020_v11 = vadd.f32 %v3012_v40, %v2971_v48  ;;  %3556 = vrot.lane.b32.xlu0 %v3540_v49, %s12845_s17  ;;  %v2949_v40 = vsel %vm1473_vm15, %v13016_v19, %v13012_v29  ;;  %v3019_v16 = vadd.f32 %v3011_v41, %v2970_v59  ;;  %v13025_v59 = vld [vmem:[#allocation141_spill] sm:$0xff]  ;;  %v13026_v19 = vld [vmem:[#allocation106_spill] sm:$0xff] }
 0xe61   : > { %v2957_v8 = vadd.f32 %v2949_v40, %v2908_v28 }
 0xe62   : > { %3507 = vrot.lane.b32.xlu1 %v3491_v14, %s12845_s17  ;;  %3458 = vrot.lane.b32.xlu2 %v3442_v20, %s12845_s17  ;;  %v3010_v22 = vpop.permute.xlu0 %3009  ;;  %v6671_v14 = vld [vmem:[#allocation2 + $0xa0] sm:$0xff]  ;;  %v3777_v20 = vmul.f32 %v13018_v47, %v9516_v24 }
 0xe63   : > { %v3014_v48 = vsel %vm1423_vm9, %v3008_v27, %v3010_v22  ;;  %v2968_v25 = vmul.f32 %v6671_v14, %v2962_v26 }
 0xe64   : > { %v2946_v0 = vpop.permute.xlu1 %2945  ;;  %v3053_v31 = vpop.permute.xlu2 %3052 }
 0xe65   : > { %v2950_v44 = vsel %vm1473_vm15, %v13012_v29, %v2946_v0  ;;  %v13020_v0 = vld [vmem:[#allocation98_spill] sm:$0xff] }
 0xe66   : > { %v2958_v1 = vadd.f32 %v2950_v44, %v2909_v63  ;;  %v2972_v63 = vadd.f32 %v2968_v25, %v2957_v8 }
 0xe68   : > { %v2973_v52 = vadd.f32 %v2969_v43, %v2958_v1  ;;  %3601 = vrot.lane.b32.xlu0 %v3587_v4, %s6981_s0  ;;  %v3021_v26 = vadd.f32 %v3013_v5, %v2972_v63 }
 0xe6a   : > { %v3022_v15 = vadd.f32 %v3014_v48, %v2973_v52  ;;  %3552 = vrot.lane.b32.xlu1 %v3538_v50, %s12845_s17  ;;  %3503 = vrot.lane.b32.xlu2 %v3489_v54, %s12845_s17  ;;  %v9782_v12 = vpop.permute.xlu0 %3104  ;;  %v13023_v50 = vld [vmem:[#allocation139_spill] sm:$0xff] }
 0xe6b   : > { %v3581_v52 = vsel %vm1423_vm9, %v13023_v50, %v13014_v61 }
 0xe6c   : > { %v3051_v7 = vpop.permute.xlu1 %3050  ;;  %v3059_v46 = vpop.permute.xlu2 %3058  ;;  %v3586_v4 = vmul.f32 %v3581_v52, %v9516_v24  ;;  %v3589_v5 = vmul.f32 %v3581_v52, %v9564_v35 }
 0xe6d   : > { %v3060_v33 = vsel %vm1345_vm8, %v13017_v53, %v3051_v7  ;;  %v3061_v17 = vsel %vm1345_vm8, %v3051_v7, %v3053_v31  ;;  %v3778_v31 = vmul.f32 %v9803_v57, %v9518_v34  ;;  %v13027_v53 = vld [vmem:[#allocation149_spill] sm:$0xff] }
 0xe6e   : > { %v3068_v62 = vadd.f32 %v3060_v33, %v3019_v16  ;;  %v3069_v49 = vadd.f32 %v3061_v17, %v3020_v11  ;;  %v4071_v33 = vmul.f32 %v13027_v53, %v9516_v24  ;;  %v13028_v17 = vld [vmem:[#allocation151_spill] sm:$0xff] }
 0xe6f   : > { %v3636_v8 = vmul.f32 %v13028_v17, %v9518_v34 }
 0xe70   : > { %3789 = vrot.lane.b32.xlu0 %v3777_v20, %s6980_s29  ;;  %v13029_v20 = vld [vmem:[#allocation143_spill] sm:$0xff] }
 0xe71   : > { %v3630_v58 = vsel %vm1423_vm9, %v13029_v20, %v13028_v17  ;;  %v3781_v20 = vmul.f32 %v9803_v57, %v9566_v45 }
 0xe72   : > { %3558 = vrot.lane.b32.xlu1 %v3541_v10, %s12845_s17  ;;  %3509 = vrot.lane.b32.xlu2 %v3492_v23, %s12845_s17  ;;  %v9798_v44 = vpop.permute.xlu0 %3110  ;;  %v3635_v63 = vmul.f32 %v3630_v58, %v9516_v24 }
 0xe74   : > { %v3057_v11 = vpop.permute.xlu1 %3056  ;;  %v3155_v39 = vpop.permute.xlu2 %3154 }
 0xe75   : > { %v3062_v37 = vsel %vm1345_vm8, %v13020_v0, %v3057_v11  ;;  %v3063_v29 = vsel %vm1345_vm8, %v3057_v11, %v3059_v46  ;;  %v3164_v1 = vsel %vm3114_vm6, %v13022_v6, %v3155_v39  ;;  %v9836_v46 = vld [vmem:[%s12410_s12] sm:$0x3]  ;;  %v3927_v11 = vmul.f32 %v13024_v30, %v9564_v35 }
 0xe76   : > { %v3070_v27 = vadd.f32 %v3062_v37, %v3021_v26  ;;  %v3071_v22 = vadd.f32 %v3063_v29, %v3022_v15  ;;  %v3172_v43 = vadd.f32 %v3164_v1, %v3068_v62  ;;  %v3920_v15 = vsel %vm1401_vm4, %v13024_v30, %v13025_v59  ;;  %v13031_v1 = vld [vmem:[#allocation162_spill] sm:$0xff] }
 0xe77   : > { %v3925_v16 = vmul.f32 %v3920_v15, %v9518_v34  ;;  %v3093_v23 = vperm.slane %v9836_v46, 1  ;;  %v3780_v30 = vmul.f32 %v13018_v47, %v9564_v35  ;;  %v13032_v59 = vld [vmem:[#allocation114_spill] sm:$0xff] }
 0xe78   : > { %3936 = vrot.lane.b32.xlu0 %v3924_v3, %s6979_s3 }
 0xe7a   : > { %3791 = vrot.lane.b32.xlu1 %v3778_v31, %s6980_s29  ;;  %3599 = vrot.lane.b32.xlu2 %v3586_v4, %s6981_s0  ;;  %v3157_v41 = vpop.permute.xlu0 %3156  ;;  %v9857_v31 = vsel %vm3080_vm5, %v13027_v53, %v13031_v1  ;;  %v4074_v4 = vmul.f32 %v13027_v53, %v9564_v35  ;;  %v13033_v53 = vld [vmem:[#allocation163_spill] sm:$0xff]  ;;  %v13038_v1 = vld [vmem:[#allocation109_spill] sm:$0xff] }
 0xe7b   : > { %v3165_v54 = vsel %vm3114_vm6, %v3155_v39, %v3157_v41  ;;  %v4072_v52 = vmul.f32 %v9857_v31, %v9518_v34 }
 0xe7c   : > { %v3107_v32 = vpop.permute.xlu1 %3106  ;;  %v3161_v48 = vpop.permute.xlu2 %3160  ;;  %v3173_v28 = vadd.f32 %v3165_v54, %v3069_v49 }
 0xe7d   : > { %v3166_v40 = vsel %vm3114_vm6, %v13026_v19, %v3161_v48  ;;  %v3116_v26 = vsel %vm3114_vm6, %v9782_v12, %v3107_v32 }
 0xe7e   : > { %v3174_v7 = vadd.f32 %v3166_v40, %v3070_v27  ;;  %v3124_v0 = vadd.f32 %v3116_v26, %v3093_v23 }
 0xe80   : > { %4083 = vrot.lane.b32.xlu0 %v4071_v33, %s12985_s19  ;;  %v3826_v33 = vmul.f32 %v13033_v53, %v9516_v24 }
 0xe82   : > { %3938 = vrot.lane.b32.xlu1 %v3925_v16, %s6979_s3  ;;  %3650 = vrot.lane.b32.xlu2 %v3636_v8, %s6981_s0  ;;  %v3163_v25 = vpop.permute.xlu0 %3162  ;;  %v3590_v16 = vmul.f32 %v13014_v61, %v9566_v45  ;;  %v3638_v8 = vmul.f32 %v3630_v58, %v9564_v35  ;;  %v3928_v58 = vmul.f32 %v3920_v15, %v9566_v45 }
 0xe83   : > { %v3167_v49 = vsel %vm3114_vm6, %v3161_v48, %v3163_v25 }
 0xe84   : > { %v3113_v14 = vpop.permute.xlu1 %3112  ;;  %v3206_v62 = vpop.permute.xlu2 %3205  ;;  %v3175_v10 = vadd.f32 %v3167_v49, %v3071_v22 }
 0xe85   : > { %v3118_v3 = vsel %vm3114_vm6, %v9798_v44, %v3113_v14 }
 0xe86   : > { %v3126_v32 = vadd.f32 %v3118_v3, %v3093_v23 }
 0xe88   : > { %3648 = vrot.lane.b32.xlu0 %v3635_v63, %s6981_s0 }
 0xe8a   : > { %3605 = vrot.lane.b32.xlu1 %v3589_v5, %s6981_s0  ;;  %3942 = vrot.lane.b32.xlu2 %v3927_v11, %s6979_s3  ;;  %v3253_v27 = vpop.permute.xlu0 %3252  ;;  %v13034_v5 = vld [vmem:[#allocation146_spill] sm:$0xff]  ;;  %v3092_v11 = vperm.slane %v9836_v46, 0  ;;  %v13037_v46 = vld [vmem:[#allocation153_spill] sm:$0xff] }
 0xe8b   : > { %v3262_v6 = vsel %vm1216_vm14, %v13030_v51, %v3253_v27  ;;  %v4120_v23 = vmul.f32 %v13034_v5, %v9516_v24 }
 0xe8c   : > { %v3204_v37 = vpop.permute.xlu1 %3203  ;;  %v3212_v39 = vpop.permute.xlu2 %3211  ;;  %v9859_v50 = vadd.f32 %v3262_v6, %v3172_v43 }
 0xe8d   : > { %v3214_v29 = vsel %vm1216_vm14, %v3204_v37, %v3206_v62 }
 0xe8e   : > { %v3222_v22 = vadd.f32 %v3214_v29, %v3124_v0  ;;  %v13035_v29 = vld [vmem:[#allocation144_spill] sm:$0xff] }
 0xe90   : > { %3795 = vrot.lane.b32.xlu0 %v3780_v30, %s6980_s29  ;;  %v3829_v30 = vmul.f32 %v13033_v53, %v9564_v35 }
 0xe92   : > { %4085 = vrot.lane.b32.xlu1 %v4072_v52, %s12985_s19  ;;  %4089 = vrot.lane.b32.xlu2 %v4074_v4, %s12985_s19  ;;  %v3259_v48 = vpop.permute.xlu0 %3258  ;;  %v3213_v52 = vsel %vm1216_vm14, %v13038_v1, %v3204_v37 }
 0xe93   : > { %v3264_v19 = vsel %vm1216_vm14, %v13032_v59, %v3259_v48 }
 0xe94   : > { %v3210_v43 = vpop.permute.xlu1 %3209  ;;  %v3306_v47 = vpop.permute.xlu2 %3305  ;;  %v9877_v40 = vadd.f32 %v3264_v19, %v3174_v7 }
 0xe95   : > { %v3216_v41 = vsel %vm1216_vm14, %v3210_v43, %v3212_v39  ;;  %v13036_v39 = vld [vmem:[#allocation101_spill] sm:$0xff] }
 0xe96   : > { %v9873_v54 = vadd.f32 %v3216_v41, %v3126_v32  ;;  %v3115_v51 = vsel %vm3114_vm6, %v13036_v39, %v9782_v12  ;;  %v13039_v32 = vld [vmem:[#allocation121_spill] sm:$0xff] }
 0xe97   : > { %v3123_v3 = vadd.f32 %v3115_v51, %v3092_v11  ;;  %v13045_v39 = vld [vmem:[#allocation117_spill] sm:$0xff] }
 0xe98   : > { %3838 = vrot.lane.b32.xlu0 %v3826_v33, %s6980_s29 }
 0xe99   : > { %v3221_v4 = vadd.f32 %v3213_v52, %v3123_v3 }
 0xe9a   : > { %3607 = vrot.lane.b32.xlu1 %v3590_v16, %s6981_s0  ;;  %3654 = vrot.lane.b32.xlu2 %v3638_v8, %s6981_s0  ;;  %v3308_v62 = vpop.permute.xlu0 %3307  ;;  %v13041_v8 = vld [vmem:[#allocation164_spill] sm:$0xff] }
 0xe9b   : > { %v9893_v61 = vsel %vm3080_vm5, %v3306_v47, %v3308_v62 }
 0xe9c   : > { %v3255_v14 = vpop.permute.xlu1 %3254  ;;  %v9890_v49 = vpop.permute.xlu2 %3311 }
 0xe9d   : > { %v3263_v25 = vsel %vm1216_vm14, %v3253_v27, %v3255_v14  ;;  %v9914_v27 = vsel %vm1473_vm15, %v13033_v53, %v13035_v29  ;;  %v13040_v53 = vld [vmem:[#allocation125_spill] sm:$0xff]  ;;  %v9942_v14 = vsel %vm1401_vm4, %v13037_v46, %v13041_v8 }
 0xe9e   : > { %v9888_v7 = vadd.f32 %v3263_v25, %v3173_v28  ;;  %v3827_v6 = vmul.f32 %v9914_v27, %v9518_v34  ;;  %v13042_v25 = vld [vmem:[#allocation102_spill] sm:$0xff] }
 0xe9f   : > { %v3117_v62 = vsel %vm3114_vm6, %v13042_v25, %v9798_v44  ;;  %v3976_v25 = vmul.f32 %v13037_v46, %v9564_v35 }
 0xea0   : > { %3944 = vrot.lane.b32.xlu0 %v3928_v58, %s6979_s3  ;;  %v3974_v58 = vmul.f32 %v9942_v14, %v9518_v34  ;;  %v3125_v44 = vadd.f32 %v3117_v62, %v3092_v11 }
 0xea2   : > { %3797 = vrot.lane.b32.xlu1 %v3781_v20, %s6980_s29  ;;  %4132 = vrot.lane.b32.xlu2 %v4120_v23, %s12985_s19  ;;  %v3314_v26 = vpop.permute.xlu0 %3313  ;;  %v2854_v20 = vld [vmem:[%s12408_s10] sm:$0x3]  ;;  %v4075_v23 = vmul.f32 %v9857_v31, %v9566_v45  ;;  %v13046_v31 = vld [vmem:[#allocation122_spill] sm:$0xff] }
 0xea3   : > { %v9909_v15 = vsel %vm3080_vm5, %v9890_v49, %v3314_v26  ;;  %v13044_v26 = vld [vmem:[#allocation165_spill] sm:$0xff]  ;;  %v3293_v29 = vperm.slane %v2854_v20, 0  ;;  %v3294_v8 = vperm.slane %v2854_v20, 1 }
 0xea4   : > { %v3261_v28 = vpop.permute.xlu1 %3260  ;;  %v3357_v57 = vpop.permute.xlu2 %3356 }
 0xea5   : > { %v3265_v63 = vsel %vm1216_vm14, %v3259_v48, %v3261_v28  ;;  %v13043_v28 = vld [vmem:[#allocation110_spill] sm:$0xff] }
 0xea6   : > { %v9905_v0 = vadd.f32 %v3265_v63, %v3175_v10  ;;  %v3973_v10 = vmul.f32 %v13037_v46, %v9516_v24  ;;  %v3215_v63 = vsel %vm1216_vm14, %v13043_v28, %v3210_v43 }
 0xea7   : > { %v3223_v51 = vadd.f32 %v3215_v63, %v3125_v44  ;;  %v13051_v44 = vld [vmem:[#allocation147_spill] sm:$0xff] }
 0xea8   : > { %3985 = vrot.lane.b32.xlu0 %v3973_v10, %s6979_s3 }
 0xeaa   : > { %3840 = vrot.lane.b32.xlu1 %v3827_v6, %s6980_s29  ;;  %3844 = vrot.lane.b32.xlu2 %v3829_v30, %s6980_s29  ;;  %v3404_v59 = vpop.permute.xlu0 %3403 }
 0xeab   : > { %v3413_v33 = vsel %vm3080_vm5, %v13040_v53, %v3404_v59  ;;  %v3639_v53 = vmul.f32 %v13028_v17, %v9566_v45  ;;  %v3324_v17 = vadd.f32 %v9893_v61, %v3294_v8 }
 0xeac   : > { %v3355_v12 = vpop.permute.xlu1 %3354  ;;  %v3363_v16 = vpop.permute.xlu2 %3362 }
 0xead   : > { %v3364_v41 = vsel %vm3080_vm5, %v13039_v32, %v3355_v12  ;;  %v3365_v48 = vsel %vm3080_vm5, %v3355_v12, %v3357_v57  ;;  %v4316_v57 = vmul.f32 %v13044_v26, %v9516_v24  ;;  %v13048_v12 = vld [vmem:[#allocation129_spill] sm:$0xff] }
 0xeae   : > { %v9933_v19 = vadd.f32 %v3364_v41, %v3221_v4  ;;  %v9935_v37 = vadd.f32 %v3365_v48, %v3222_v22  ;;  %v9951_v22 = vadd.f32 %v3413_v33, %v9859_v50  ;;  %v3315_v50 = vsel %vm3080_vm5, %v13045_v39, %v3306_v47  ;;  %v13047_v47 = vld [vmem:[#allocation126_spill] sm:$0xff]  ;;  %v13049_v48 = vld [vmem:[#allocation156_spill] sm:$0xff]  ;;  %v13052_v39 = vld [vmem:[#allocation167_spill] sm:$0xff] }
 0xeaf   : > { %v3323_v52 = vadd.f32 %v3315_v50, %v3293_v29  ;;  %v13053_v50 = vld [vmem:[#allocation130_spill] sm:$0xff] }
 0xeb0   : > { %4091 = vrot.lane.b32.xlu0 %v4075_v23, %s12985_s19 }
 0xeb2   : > { %3987 = vrot.lane.b32.xlu1 %v3974_v58, %s6979_s3  ;;  %4328 = vrot.lane.b32.xlu2 %v4316_v57, %s12839_s2  ;;  %v3410_v1 = vpop.permute.xlu0 %3409 }
 0xeb3   : > { %v3415_v4 = vsel %vm3080_vm5, %v13047_v47, %v3410_v1 }
 0xeb4   : > { %v3361_v6 = vpop.permute.xlu1 %3360  ;;  %v3453_v3 = vpop.permute.xlu2 %3452  ;;  %v9979_v41 = vadd.f32 %v3415_v4, %v9877_v40  ;;  %v13050_v40 = vld [vmem:[#allocation118_spill] sm:$0xff] }
 0xeb5   : > { %v3366_v10 = vsel %vm3080_vm5, %v13046_v31, %v3361_v6  ;;  %v3367_v43 = vsel %vm3080_vm5, %v3361_v6, %v3363_v16  ;;  %v3462_v32 = vsel %vm1401_vm4, %v13048_v12, %v3453_v3  ;;  %v4116_v16 = vsel %vm3080_vm5, %v13034_v5, %v13049_v48 }
 0xeb6   : > { %v9969_v11 = vadd.f32 %v3366_v10, %v3223_v51  ;;  %v9972_v30 = vadd.f32 %v3367_v43, %v9873_v54  ;;  %v9986_v33 = vadd.f32 %v3462_v32, %v3323_v52  ;;  %v4121_v54 = vmul.f32 %v4116_v16, %v9518_v34 }
 0xeb7   : > { %v3317_v62 = vsel %vm3080_vm5, %v13050_v40, %v9890_v49  ;;  %v10006_v49 = vsel %vm1216_vm14, %v13052_v39, %v13051_v44  ;;  %v3326_v10 = vadd.f32 %v9909_v15, %v3294_v8  ;;  %v4124_v32 = vmul.f32 %v4116_v16, %v9566_v45  ;;  %v13055_v15 = vld [vmem:[#allocation133_spill] sm:$0xff] }
 0xeb8   : > { %4134 = vrot.lane.b32.xlu0 %v4121_v54, %s12985_s19  ;;  %v3325_v20 = vadd.f32 %v3317_v62, %v3293_v29  ;;  %v4219_v61 = vmul.f32 %v10006_v49, %v9518_v34  ;;  %v4221_v29 = vmul.f32 %v13052_v39, %v9564_v35  ;;  %v3830_v48 = vmul.f32 %v9914_v27, %v9566_v45  ;;  %v13056_v62 = vld [vmem:[#allocation137_spill] sm:$0xff] }
 0xeba   : > { %3656 = vrot.lane.b32.xlu1 %v3639_v53, %s6981_s0  ;;  %3991 = vrot.lane.b32.xlu2 %v3976_v25, %s6979_s3  ;;  %v3455_v28 = vpop.permute.xlu0 %3454  ;;  %v13054_v53 = vld [vmem:[#allocation171_spill] sm:$0xff] }
 0xebb   : > { %v3463_v57 = vsel %vm1401_vm4, %v3453_v3, %v3455_v28  ;;  %v3875_v54 = vmul.f32 %v13054_v53, %v9516_v24 }
 0xebc   : > { %v3406_v58 = vpop.permute.xlu1 %3405  ;;  %v3459_v46 = vpop.permute.xlu2 %3458  ;;  %v10010_v6 = vadd.f32 %v3463_v57, %v3324_v17  ;;  %v10059_v57 = vld [vmem:[#allocation10 + $0x3] ss:$8 sm:$0x3] }
 0xebd   : > { %v3414_v23 = vsel %vm3080_vm5, %v3404_v59, %v3406_v58  ;;  %v3464_v51 = vsel %vm1401_vm4, %v13053_v50, %v3459_v46  ;;  %v13061_v50 = vld [vmem:[#allocation134_spill] sm:$0xff] }
 0xebe   : > { %v10000_v63 = vadd.f32 %v3414_v23, %v9888_v7  ;;  %v10014_v59 = vadd.f32 %v3464_v51, %v3325_v20  ;;  %v4218_v7 = vmul.f32 %v13052_v39, %v9516_v24  ;;  %v13058_v23 = vld [vmem:[#allocation169_spill] sm:$0xff]  ;;  %v13059_v20 = vld [vmem:[#allocation166_spill] sm:$0xff]  ;;  %v3722_v39 = vperm.slane %v10059_v57, 0 }
 0xebf   : > { %v4312_v28 = vsel %vm3114_vm6, %v13044_v26, %v13058_v23 }
 0xec0   : > { %4230 = vrot.lane.b32.xlu0 %v4218_v7, %s6986_s21 }
 0xec2   : > { %4232 = vrot.lane.b32.xlu1 %v4219_v61, %s6986_s21  ;;  %4236 = vrot.lane.b32.xlu2 %v4221_v29, %s6986_s21  ;;  %v3461_v52 = vpop.permute.xlu0 %3460 }
 0xec3   : > { %v3465_v4 = vsel %vm1401_vm4, %v3459_v46, %v3461_v52  ;;  %v3685_v46 = vmul.f32 %v13059_v20, %v9518_v34 }
 0xec4   : > { %v3412_v31 = vpop.permute.xlu1 %3411  ;;  %v3504_v47 = vpop.permute.xlu2 %3503  ;;  %v10029_v12 = vadd.f32 %v3465_v4, %v3326_v10 }
 0xec5   : > { %v3416_v43 = vsel %vm3080_vm5, %v3410_v1, %v3412_v31 }
 0xec6   : > { %v10026_v3 = vadd.f32 %v3416_v43, %v9905_v0  ;;  %v13062_v43 = vld [vmem:[#allocation138_spill] sm:$0xff] }
 0xec8   : > { %3846 = vrot.lane.b32.xlu0 %v3830_v48, %s6980_s29  ;;  %v4320_v48 = vmul.f32 %v4312_v28, %v9566_v45 }
 0xeca   : > { %4140 = vrot.lane.b32.xlu1 %v4124_v32, %s12985_s19  ;;  %3887 = vrot.lane.b32.xlu2 %v3875_v54, %s6980_s29  ;;  %v3551_v25 = vpop.permute.xlu0 %3550 }
 0xecb   : > { %v3560_v58 = vsel %vm1401_vm4, %v13056_v62, %v3551_v25 }
 0xecc   : > { %v3502_v0 = vpop.permute.xlu1 %3501  ;;  %v3510_v40 = vpop.permute.xlu2 %3509  ;;  %v10051_v17 = vadd.f32 %v3560_v58, %v9951_v22 }
 0xecd   : > { %v3511_v1 = vsel %vm1401_vm4, %v13055_v15, %v3502_v0  ;;  %v3512_v8 = vsel %vm1401_vm4, %v3502_v0, %v3504_v47  ;;  %v13063_v47 = vld [vmem:[#allocation159_spill] sm:$0xff]  ;;  %v3878_v0 = vmul.f32 %v13054_v53, %v9564_v35 }
 0xece   : > { %v10043_v16 = vadd.f32 %v3511_v1, %v9933_v19  ;;  %v10046_v27 = vadd.f32 %v3512_v8, %v9935_v37  ;;  %13057 = vst [vmem:[#allocation54_spill] sm:$0xff] %v10051_v17  ;;  %v4317_v19 = vmul.f32 %v4312_v28, %v9518_v34  ;;  %v13060_v37 = vld [vmem:[#allocation152_spill] sm:$0xff]  ;;  %v4023_v28 = vmul.f32 %v9591_v36, %v9518_v34 }
 0xecf   : > { %v4169_v44 = vmul.f32 %v13060_v37, %v9516_v24  ;;  %v10346_v17 = vld [vmem:[#allocation13 + $0x3] ss:$8 sm:$0x3] }
 0xed0   : > { %4330 = vrot.lane.b32.xlu0 %v4317_v19, %s12839_s2  ;;  %v13066_v19 = vld [vmem:[#allocation202_spill] sm:$0xff] }
 0xed2   : > { %3699 = vrot.lane.b32.xlu1 %v3685_v46, %s6981_s0  ;;  %4181 = vrot.lane.b32.xlu2 %v4169_v44, %s12985_s19  ;;  %v3557_v7 = vpop.permute.xlu0 %3556  ;;  %v4123_v46 = vmul.f32 %v13034_v5, %v9564_v35  ;;  %v13068_v5 = vld [vmem:[#allocation148_spill] sm:$0xff] }
 0xed3   : > { %v3562_v52 = vsel %vm1401_vm4, %v13062_v43, %v3557_v7 }
 0xed4   : > { %v3508_v22 = vpop.permute.xlu1 %3507  ;;  %v3600_v10 = vpop.permute.xlu2 %3599  ;;  %v10081_v32 = vadd.f32 %v3562_v52, %v9979_v41  ;;  %v3723_v41 = vperm.slane %v10059_v57, 1  ;;  %v13069_v52 = vld [vmem:[#allocation175_spill] sm:$0xff] }
 0xed5   : > { %v3513_v51 = vsel %vm1401_vm4, %v13061_v50, %v3508_v22  ;;  %v3514_v61 = vsel %vm1401_vm4, %v3508_v22, %v3510_v40  ;;  %v3609_v4 = vsel %vm1473_vm15, %v13063_v47, %v3600_v10 }
 0xed6   : > { %v10071_v29 = vadd.f32 %v3513_v51, %v9969_v11  ;;  %v10074_v31 = vadd.f32 %v3514_v61, %v9972_v30  ;;  %13064 = vst [vmem:[#allocation37_spill] sm:$0xff] %v10081_v32  ;;  %v3617_v54 = vadd.f32 %v3609_v4, %v9986_v33  ;;  %v3726_v11 = vmul.f32 %v3722_v39, %v9516_v24 }
 0xed7   : > { %v3977_v30 = vmul.f32 %v9942_v14, %v9566_v45  ;;  %v3727_v23 = vmul.f32 %v3723_v41, %v9518_v34  ;;  %v10123_v51 = vsel %vm1423_vm9, %v13068_v5, %v13059_v20  ;;  %v3688_v61 = vmul.f32 %v13059_v20, %v9566_v45 }
 0xed8   : > { %v3730_v15 = vadd.f32 %v3726_v11, %v3617_v54  ;;  %v4268_v11 = vmul.f32 %v9603_v9, %v9518_v34  ;;  %v4319_v5 = vmul.f32 %v13044_v26, %v9564_v35 }
 0xed9   : > { %3993 = vrot.lane.b32.xlu0 %v3977_v30, %s6979_s3  ;;  %v4222_v30 = vmul.f32 %v10006_v49, %v9566_v45  ;;  %v13072_v49 = vld [vmem:[#allocation183_spill] sm:$0xff] }
 0xeda   : > { %4336 = vrot.lane.b32.xlu1 %v4320_v48, %s12839_s2  ;;  %3893 = vrot.lane.b32.xlu2 %v3878_v0, %s6980_s29  ;;  %v3602_v8 = vpop.permute.xlu0 %3601  ;;  %v13070_v0 = vld [vmem:[#allocation155_spill] sm:$0xff] }
 0xedb   : > { %v3610_v62 = vsel %vm1473_vm15, %v3600_v10, %v3602_v8  ;;  %v3684_v10 = vmul.f32 %v10123_v51, %v9516_v24  ;;  %v13071_v8 = vld [vmem:[#allocation178_spill] sm:$0xff] }
 0xedc   : > { %v3553_v33 = vpop.permute.xlu1 %3552  ;;  %v3651_v14 = vpop.permute.xlu2 %3650  ;;  %v3618_v58 = vadd.f32 %v3610_v62, %v10010_v6 }
 0xedd   : > { %v3561_v1 = vsel %vm1401_vm4, %v3551_v25, %v3553_v33  ;;  %v4414_v33 = vmul.f32 %v13070_v0, %v9516_v24 }
 0xede   : > { %v10098_v40 = vadd.f32 %v3561_v1, %v10000_v63  ;;  %v3731_v25 = vadd.f32 %v3727_v23, %v3618_v58  ;;  %v4365_v63 = vmul.f32 %v13066_v19, %v9516_v24 }
 0xee0   : > { %13065 = vst [vmem:[#allocation33_spill] sm:$0xff] %v10098_v40 }
 0xee1   : > { %4138 = vrot.lane.b32.xlu0 %v4123_v46, %s12985_s19 }
 0xee2   : > { %4036 = vrot.lane.b32.xlu1 %v4023_v28, %s6979_s3  ;;  %4377 = vrot.lane.b32.xlu2 %v4365_v63, %s12839_s2  ;;  %v3790_v22 = vpop.permute.xlu0 %3789  ;;  %v13074_v63 = vld [vmem:[#allocation206_spill] sm:$0xff] }
 0xee4   : > { %v3559_v6 = vpop.permute.xlu1 %3558  ;;  %v10118_v36 = vpop.permute.xlu2 %3942 }
 0xee5   : > { %v3563_v44 = vsel %vm1401_vm4, %v3557_v7, %v3559_v6  ;;  %v4025_v7 = vmul.f32 %v12984_v21, %v9564_v35 }
 0xee6   : > { %v10116_v50 = vadd.f32 %v3563_v44, %v10026_v3 }
 0xee8   : > { %13067 = vst [vmem:[#allocation51_spill] sm:$0xff] %v10116_v50  ;;  %v13088_v50 = vld [vmem:[#allocation213_spill] sm:$0xff] }
 0xee9   : > { %3697 = vrot.lane.b32.xlu0 %v3684_v10, %s6981_s0 }
 0xeea   : > { %3705 = vrot.lane.b32.xlu1 %v3688_v61, %s6981_s0  ;;  %4040 = vrot.lane.b32.xlu2 %v4025_v7, %s6979_s3  ;;  %v3937_v4 = vpop.permute.xlu0 %3936  ;;  %v4172_v61 = vmul.f32 %v13060_v37, %v9564_v35 }
 0xeec   : > { %v3792_v3 = vpop.permute.xlu1 %3791  ;;  %v10137_v54 = vpop.permute.xlu2 %4089 }
 0xeed   : > { %v3801_v43 = vsel %vm1423_vm9, %v3790_v22, %v3792_v3  ;;  %v3802_v47 = vsel %vm1423_vm9, %v3792_v3, %v13069_v52  ;;  %v10164_v22 = vld [vmem:[%s12409_s11 + $0x5] ss:$8 sm:$0x3] }
 0xeee   : > { %v3809_v20 = vadd.f32 %v3801_v43, %v3730_v15  ;;  %v3810_v48 = vadd.f32 %v3802_v47, %v3731_v25  ;;  %v10156_v25 = vld [vmem:[#allocation2 + $0x20] sm:$0xff]  ;;  %v3737_v10 = vperm.slane %v10164_v22, 0  ;;  %v12541_v7 = vperm.slane %v10164_v22, 1  ;;  %v13076_v47 = vld [vmem:[#allocation182_spill] sm:$0xff] }
 0xeef   : > { %13073 = vst [vmem:[#allocation56_spill] sm:$0xff] %v10156_v25  ;;  %v4416_v6 = vmul.f32 %v10156_v25, %v13074_v63  ;;  %v13075_v3 = vld [vmem:[#allocation160_spill] sm:$0xff] }
 0xef1   : > { %4238 = vrot.lane.b32.xlu0 %v4222_v30, %s6986_s21 }
 0xef2   : > { %4281 = vrot.lane.b32.xlu1 %v4268_v11, %s6986_s21  ;;  %4426 = vrot.lane.b32.xlu2 %v4414_v33, %s12845_s17  ;;  %v4084_v58 = vpop.permute.xlu0 %4083  ;;  %v3741_v33 = vmul.f32 %v3737_v10, %v9516_v24 }
 0xef4   : > { %v3939_v1 = vpop.permute.xlu1 %3938  ;;  %v10151_v28 = vpop.permute.xlu2 %3654 }
 0xef5   : > { %v3948_v15 = vsel %vm1345_vm8, %v3937_v4, %v3939_v1  ;;  %v3949_v62 = vsel %vm1345_vm8, %v3939_v1, %v13071_v8  ;;  %v3660_v46 = vsel %vm1473_vm15, %v13072_v49, %v10151_v28  ;;  %v3742_v1 = vmul.f32 %v12541_v7, %v9518_v34 }
 0xef6   : > { %v3956_v9 = vadd.f32 %v3948_v15, %v3809_v20  ;;  %v3957_v23 = vadd.f32 %v3949_v62, %v3810_v48  ;;  %v3668_v44 = vadd.f32 %v3660_v46, %v10071_v29  ;;  %v3728_v48 = vmul.f32 %v3722_v39, %v9564_v35  ;;  %v13077_v15 = vld [vmem:[#allocation170_spill] sm:$0xff]  ;;  %v13079_v46 = vld [vmem:[#allocation177_spill] sm:$0xff] }
 0xef9   : > { %4334 = vrot.lane.b32.xlu0 %v4319_v5, %s12839_s2 }
 0xefa   : > { %4430 = vrot.lane.b32.xlu1 %v4416_v6, %s12845_s17  ;;  %4187 = vrot.lane.b32.xlu2 %v4172_v61, %s12985_s19  ;;  %v3649_v52 = vpop.permute.xlu0 %3648  ;;  %v4463_v6 = vmul.f32 %v13079_v46, %v9516_v24 }
 0xefb   : > { %v3658_v4 = vsel %vm1473_vm15, %v13076_v47, %v3649_v52  ;;  %v3659_v20 = vsel %vm1473_vm15, %v3649_v52, %v3651_v14  ;;  %v13078_v14 = vld [vmem:[#allocation150_spill] sm:$0xff]  ;;  %v13081_v47 = vld [vmem:[#allocation157_spill] sm:$0xff] }
 0xefc   : > { %v3606_v29 = vpop.permute.xlu1 %3605  ;;  %v3666_v11 = vadd.f32 %v3658_v4, %v10043_v16  ;;  %v3667_v30 = vadd.f32 %v3659_v20, %v10046_v27  ;;  %v10197_v62 = vsel %vm1473_vm15, %v13054_v53, %v13078_v14  ;;  %v13080_v53 = vld [vmem:[#allocation179_spill] sm:$0xff]  ;;  %v4465_v4 = vmul.f32 %v10156_v25, %v13081_v47  ;;  %v4133_v60 = vpop.permute.xlu2 %4132 }
 0xefd   : > { %v3611_v43 = vsel %vm1473_vm15, %v13075_v3, %v3606_v29  ;;  %v3876_v16 = vmul.f32 %v10197_v62, %v9518_v34  ;;  %v4022_v20 = vmul.f32 %v12984_v21, %v9516_v24  ;;  %v13082_v21 = vld [vmem:[#allocation174_spill] sm:$0xff] }
 0xefe   : > { %v3619_v26 = vadd.f32 %v3611_v43, %v10014_v59  ;;  %v10190_v59 = vld [vmem:[#allocation2 + $0xe0] sm:$0xff]  ;;  %v3745_v27 = vadd.f32 %v3741_v33, %v3666_v11  ;;  %v3746_v49 = vadd.f32 %v3742_v1, %v3667_v30  ;;  %v3729_v30 = vmul.f32 %v3723_v41, %v9566_v45 }
 0xeff   : > { %v4174_v8 = vmul.f32 %v10190_v59, %v13077_v15  ;;  %v10230_v33 = vsel %vm3114_vm6, %v13066_v19, %v13082_v21  ;;  %v3743_v1 = vmul.f32 %v3737_v10, %v9564_v35  ;;  %v13083_v10 = vld [vmem:[#allocation188_spill] sm:$0xff] }
 0xf00   : > { %v3732_v39 = vadd.f32 %v3728_v48, %v3619_v26  ;;  %v4270_v48 = vmul.f32 %v12987_v56, %v9564_v35 }
 0xf01   : > { %3889 = vrot.lane.b32.xlu0 %v3876_v16, %s6980_s29  ;;  %v10237_v16 = vadd.f32 %v3743_v1, %v3668_v44 }
 0xf02   : > { %4191 = vrot.lane.b32.xlu1 %v4174_v8, %s12985_s19  ;;  %4475 = vrot.lane.b32.xlu2 %v4463_v6, %s6981_s0  ;;  %v3796_v43 = vpop.permute.xlu0 %3795  ;;  %v4369_v8 = vmul.f32 %v10230_v33, %v9566_v45 }
 0xf04   : > { %v4086_v5 = vpop.permute.xlu1 %4085 }
 0xf05   : > { %v4095_v61 = vsel %vm3114_vm6, %v4084_v58, %v4086_v5  ;;  %v4096_v3 = vsel %vm3114_vm6, %v4086_v5, %v13080_v53  ;;  %v13084_v53 = vld [vmem:[#allocation190_spill] sm:$0xff] }
 0xf06   : > { %v10209_v52 = vadd.f32 %v4095_v61, %v3956_v9  ;;  %v10211_v26 = vadd.f32 %v4096_v3, %v3957_v23  ;;  %v10254_v3 = vsel %vm3080_vm5, %v13060_v37, %v13077_v15  ;;  %v10268_v37 = vld [vmem:[#allocation2 + $0xc8] sm:$0xff] }
 0xf09   : > { %4034 = vrot.lane.b32.xlu0 %v4022_v20, %s6979_s3 }
 0xf0a   : > { %4479 = vrot.lane.b32.xlu1 %v4465_v4, %s6981_s0  ;;  %4285 = vrot.lane.b32.xlu2 %v4270_v48, %s6986_s21  ;;  %v3839_v23 = vpop.permute.xlu0 %3838  ;;  %v13085_v48 = vld [vmem:[#allocation176_spill] sm:$0xff] }
 0xf0c   : > { %v3608_v58 = vpop.permute.xlu1 %3607 }
 0xf0d   : > { %v3612_v9 = vsel %vm1473_vm15, %v3606_v29, %v3608_v58  ;;  %v3687_v29 = vmul.f32 %v10123_v51, %v9564_v35  ;;  %v4527_v58 = vmul.f32 %v13085_v48, %v9518_v34 }
 0xf0e   : > { %v3620_v11 = vadd.f32 %v3612_v9, %v10029_v12  ;;  %v4272_v12 = vmul.f32 %v10190_v59, %v12986_v2 }
 0xf10   : > { %v3733_v14 = vadd.f32 %v3729_v30, %v3620_v11 }
 0xf11   : > { %3703 = vrot.lane.b32.xlu0 %v3687_v29, %s6981_s0  ;;  %v13087_v29 = vld [vmem:[#allocation208_spill] sm:$0xff] }
 0xf12   : > { %4385 = vrot.lane.b32.xlu1 %v4369_v8, %s12839_s2  ;;  %4289 = vrot.lane.b32.xlu2 %v4272_v12, %s6986_s21  ;;  %v3945_v5 = vpop.permute.xlu0 %3944  ;;  %v4529_v12 = vmul.f32 %v13087_v29, %v10268_v37 }
 0xf13   : > { %v3950_v44 = vsel %vm1345_vm8, %v10118_v36, %v3945_v5  ;;  %v3951_v2 = vsel %vm1345_vm8, %v3945_v5, %v13084_v53  ;;  %v4170_v36 = vmul.f32 %v10254_v3, %v9518_v34 }
 0xf14   : > { %v3798_v57 = vpop.permute.xlu1 %3797 }
 0xf15   : > { %v3803_v41 = vsel %vm1423_vm9, %v3796_v43, %v3798_v57  ;;  %v3804_v6 = vsel %vm1423_vm9, %v3798_v57, %v13083_v10  ;;  %v4370_v43 = vmul.f32 %v10190_v59, %v13082_v21  ;;  %v13086_v21 = vld [vmem:[#allocation181_spill] sm:$0xff]  ;;  %v4624_v10 = vld [vmem:[#allocation13] ss:$8 sm:$0x3] }
 0xf16   : > { %v3811_v61 = vadd.f32 %v3803_v41, %v3732_v39  ;;  %v3812_v51 = vadd.f32 %v3804_v6, %v3733_v14  ;;  %v10261_v39 = vld [vmem:[%s12416_s18] sm:$0x3]  ;;  %v4419_v14 = vmul.f32 %v10190_v59, %v13074_v63  ;;  %v4662_v6 = vld [vmem:[#allocation13 + $0x1] ss:$8 sm:$0x3]  ;;  %v10281_v5 = vperm.slane %v4624_v10, 0 }
 0xf17   : > { %v12540_v15 = vperm.slane %v10261_v39, 0  ;;  %v12539_v9 = vperm.slane %v10261_v39, 1 }
 0xf18   : > { %v3958_v4 = vadd.f32 %v3950_v44, %v3811_v61  ;;  %v3959_v20 = vadd.f32 %v3951_v2, %v3812_v51  ;;  %v10283_v61 = vperm.slane %v4624_v10, 1  ;;  %v10285_v51 = vperm.slane %v4662_v6, 0  ;;  %v10299_v2 = vld [vmem:[#allocation2 + $0x80] sm:$0xff] }
 0xf19   : > { %4183 = vrot.lane.b32.xlu0 %v4170_v36, %s12985_s19  ;;  %v2838_v44 = vadd.f32 %v12540_v15, %v9516_v24  ;;  %v2839_v53 = vadd.f32 %v12539_v9, %v9518_v34  ;;  %v4630_v36 = vmul.f32 %v10281_v5, %v10299_v2 }
 0xf1a   : > { %4387 = vrot.lane.b32.xlu1 %v4370_v43, %s12839_s2  ;;  %4539 = vrot.lane.b32.xlu2 %v4527_v58, %s6980_s29  ;;  %v3986_v8 = vpop.permute.xlu0 %3985  ;;  %v10301_v43 = vld [vmem:[#allocation2 + $0x110] sm:$0xff] }
 0xf1b   : > { %v4631_v58 = vmul.f32 %v10283_v61, %v10301_v43 }
 0xf1c   : > { %v3841_v11 = vpop.permute.xlu1 %3840 }
 0xf1d   : > { %v3850_v30 = vsel %vm1423_vm9, %v3839_v23, %v3841_v11  ;;  %v3851_v1 = vsel %vm1423_vm9, %v3841_v11, %v13086_v21  ;;  %v10287_v23 = vperm.slane %v4662_v6, 1  ;;  %v10309_v11 = vmul.f32 %v10281_v5, %v10209_v52 }
 0xf1e   : > { %v3858_v57 = vadd.f32 %v3850_v30, %v3745_v27  ;;  %v3859_v41 = vadd.f32 %v3851_v1, %v3746_v49  ;;  %v4267_v27 = vmul.f32 %v12987_v56, %v9516_v24  ;;  %v4417_v49 = vmul.f32 %v13070_v0, %v9564_v35 }
 0xf1f   : > { %v10313_v56 = vmul.f32 %v10283_v61, %v10211_v26  ;;  %v4668_v30 = vmul.f32 %v10285_v51, %v10299_v2  ;;  %v4669_v21 = vmul.f32 %v10287_v23, %v10301_v43  ;;  %v10322_v1 = vmul.f32 %v10285_v51, %v10209_v52 }
 0xf20   : > { %v10326_v10 = vmul.f32 %v10287_v23, %v10211_v26  ;;  %v4643_v6 = vrot.slane %v4630_v36, 5  ;;  %v12546_v9 = vrot.slane %v10309_v11, 5 }
 0xf21   : > { %4279 = vrot.lane.b32.xlu0 %v4267_v27, %s6986_s21  ;;  %v12548_v15 = vrot.slane %v10313_v56, 5  ;;  %v4680_v13 = vrot.slane %v4668_v30, 6  ;;  %v4683_v42 = vrot.slane %v4669_v21, 6 }
 0xf22   : > { %4543 = vrot.lane.b32.xlu1 %v4529_v12, %s6980_s29  ;;  %v4646_v12 = vrot.slane %v4631_v58, 5  ;;  %4432 = vrot.lane.b32.xlu2 %v4417_v49, %s12845_s17  ;;  %v4092_v27 = vpop.permute.xlu0 %4091  ;;  %v4645_v36 = vsel %vm4642_vm7, %v4643_v6, %v12546_v9  ;;  %v4699_v58 = vld [vmem:[#allocation13 + $0x2] ss:$8 sm:$0x3] }
 0xf23   : > { %v4097_v21 = vsel %vm3114_vm6, %v10137_v54, %v4092_v27  ;;  %v4657_v6 = vadd.f32 %v4645_v36, %v2838_v44  ;;  %v10358_v54 = vperm.slane %v4699_v58, 1  ;;  %v12549_v44 = vperm.slane %v10346_v17, 0 }
 0xf24   : > { %v3988_v7 = vpop.permute.xlu1 %3987  ;;  %v4648_v49 = vsel %vm4642_vm7, %v4646_v12, %v12548_v15  ;;  %v13090_v12 = vrot.slane %v10322_v1, 6 }
 0xf25   : > { %v3997_v38 = vsel %vm1345_vm8, %v3986_v8, %v3988_v7  ;;  %v3998_v32 = vsel %vm1345_vm8, %v3988_v7, %v13088_v50  ;;  %v4098_v8 = vsel %vm3114_vm6, %v4092_v27, %v13089_v18  ;;  %v10348_v50 = vadd.f32 %v4097_v21, %v3958_v4  ;;  %v13091_v18 = vld [vmem:[#allocation180_spill] sm:$0xff] }
 0xf26   : > { %v4005_v40 = vadd.f32 %v3997_v38, %v3858_v57  ;;  %v4006_v30 = vadd.f32 %v3998_v32, %v3859_v41  ;;  %v10350_v7 = vadd.f32 %v4098_v8, %v3959_v20  ;;  %v4658_v9 = vadd.f32 %v4648_v49, %v2839_v53 }
 0xf27   : > { %v4682_v38 = vsel %vm1373_vm0, %v4680_v13, %v13090_v12  ;;  %v12547_v32 = vrot.slane %v10326_v10, 6  ;;  %v10356_v57 = vperm.slane %v4699_v58, 0  ;;  %v4576_v41 = vmul.f32 %v13091_v18, %v9518_v34 }
 0xf28   : > { %v3879_v4 = vmul.f32 %v10197_v62, %v9566_v45  ;;  %v4694_v20 = vadd.f32 %v4682_v38, %v4657_v6  ;;  %v4706_v27 = vmul.f32 %v10358_v54, %v10301_v43 }
 0xf29   : > { %v4685_v13 = vsel %vm1373_vm0, %v4683_v42, %v12547_v32  ;;  %v4705_v53 = vmul.f32 %v10356_v57, %v10299_v2  ;;  %v10375_v36 = vmul.f32 %v10356_v57, %v10209_v52 }
 0xf2a   : > { %4436 = vrot.lane.b32.xlu1 %v4419_v14, %s12845_s17  ;;  %3895 = vrot.lane.b32.xlu0 %v3879_v4, %s6980_s29  ;;  %v4695_v62 = vadd.f32 %v4685_v13, %v4658_v9  ;;  %v10380_v14 = vmul.f32 %v10358_v54, %v10211_v26  ;;  %v4720_v21 = vrot.slane %v4706_v27, 7  ;;  %v4135_v12 = vpop.permute.xlu0 %4134  ;;  %v13092_v9 = vperm.slane %v10164_v22, 1  ;;  %v13093_v27 = vld [vmem:[#allocation192_spill] sm:$0xff] }
 0xf2b   : > { %4588 = vrot.lane.b32.xlu2 %v4576_v41, %s6979_s3  ;;  %v4717_v49 = vrot.slane %v4705_v53, 7  ;;  %v12550_v58 = vrot.slane %v10375_v36, 7  ;;  %v4742_v41 = vmul.f32 %v12549_v44, %v10209_v52  ;;  %v4144_v53 = vsel %vm3114_vm6, %v4133_v60, %v4135_v12  ;;  %v13094_v44 = vld [vmem:[#allocation210_spill] sm:$0xff] }
 0xf2c   : > { %v3657_v42 = vpop.permute.xlu1 %3656  ;;  %v3744_v38 = vmul.f32 %v13092_v9, %v9566_v45  ;;  %v12551_v4 = vrot.slane %v10380_v14, 7  ;;  %v4145_v32 = vsel %vm3114_vm6, %v4135_v12, %v13093_v27  ;;  %v4578_v8 = vmul.f32 %v13094_v44, %v10268_v37 }
 0xf2d   : > { %v3661_v6 = vsel %vm1473_vm15, %v10151_v28, %v3657_v42  ;;  %v4719_v28 = vsel %vm1694_vm1, %v4717_v49, %v12550_v58  ;;  %v4152_v42 = vadd.f32 %v4144_v53, %v4005_v40  ;;  %v4153_v22 = vadd.f32 %v4145_v32, %v4006_v30  ;;  %v2853_v30 = vld [vmem:[#allocation2 + $0x60] sm:$0xff]  ;;  %v13100_v53 = vld [vmem:[#allocation191_spill] sm:$0xff] }
 0xf2e   : > { %v3669_v13 = vadd.f32 %v3661_v6, %v10074_v31  ;;  %v4722_v9 = vsel %vm1694_vm1, %v4720_v21, %v12551_v4  ;;  %v4731_v15 = vadd.f32 %v4719_v28, %v4694_v20  ;;  %v13095_v6 = vperm.slane %v10346_v17, 1  ;;  %v3845_v20 = vpop.permute.xlu2 %3844  ;;  %v4751_v21 = vld [vmem:[#allocation13 + $0x4] ss:$8 sm:$0x3] }
 0xf2f   : > { %v4732_v60 = vadd.f32 %v4722_v9, %v4695_v62  ;;  %v4366_v49 = vmul.f32 %v10230_v33, %v9518_v34  ;;  %v4466_v32 = vmul.f32 %v13079_v46, %v9564_v35  ;;  %v4523_v62 = vsel %vm1473_vm15, %v13085_v48, %v13087_v29  ;;  %v4825_v9 = vld [vmem:[#allocation13 + $0x6] ss:$8 sm:$0x3] }
 0xf30   : > { %v10406_v31 = vadd.f32 %v3744_v38, %v3669_v13  ;;  %v4743_v12 = vmul.f32 %v13095_v6, %v10211_v26  ;;  %v10413_v40 = vadd.f32 %v4742_v41, %v4731_v15  ;;  %v10427_v33 = vsel %vm1345_vm8, %v13070_v0, %v13074_v63  ;;  %v4788_v13 = vld [vmem:[#allocation13 + $0x5] ss:$8 sm:$0x3]  ;;  %v10445_v0 = vld [vmem:[%s12411_s13 + $0x12] ss:$8 sm:$0x3] }
 0xf31   : > { %13096 = vst [vmem:[#allocation38_spill] sm:$0xff] %v10427_v33  ;;  %v4468_v15 = vmul.f32 %v10190_v59, %v13081_v47  ;;  %v10439_v38 = vsel %vm1401_vm4, %v13091_v18, %v13094_v44  ;;  %v10448_v63 = vmul.f32 %v13087_v29, %v2853_v30  ;;  %v10452_v27 = vperm.slane %v4751_v21, 0  ;;  %v4622_v18 = vld [vmem:[#allocation2 + $0xd8] sm:$0xff] }
 0xf32   : > { %4592 = vrot.lane.b32.xlu1 %v4578_v8, %s6979_s3  ;;  %v10418_v37 = vadd.f32 %v4743_v12, %v4732_v60  ;;  %4379 = vrot.lane.b32.xlu0 %v4366_v49, %s12839_s2  ;;  %v10434_v8 = vsel %vm1423_vm9, %v13079_v46, %v13081_v47  ;;  %13098 = vst [vmem:[#allocation32_spill] sm:$0xff] %v10439_v38  ;;  %v4231_v47 = vpop.permute.xlu0 %4230  ;;  %v4754_v28 = vperm.slane %v4751_v21, 1  ;;  %v10499_v48 = vperm.slane %v4825_v9, 0 }
 0xf33   : > { %13097 = vst [vmem:[#allocation40_spill] sm:$0xff] %v10434_v8  ;;  %4481 = vrot.lane.b32.xlu2 %v4466_v32, %s6981_s0  ;;  %v10455_v60 = vmul.f32 %v10156_v25, %v4523_v62  ;;  %v4531_v6 = vmul.f32 %v10190_v59, %v4523_v62  ;;  %v4623_v32 = vld [vmem:[#allocation2 + $0xc0] sm:$0xff]  ;;  %v4580_v29 = vmul.f32 %v10190_v59, %v10439_v38 }
 0xf34   : > { %v4233_v41 = vpop.permute.xlu1 %4232  ;;  %13099 = vst [vmem:[#allocation53_spill] sm:$0xff] %v10445_v0  ;;  %v10469_v4 = vmul.f32 %v13094_v44, %v2853_v30  ;;  %v4415_v62 = vmul.f32 %v10427_v33, %v9518_v34  ;;  %v10479_v59 = vmul.f32 %v10452_v27, %v10209_v52  ;;  %v13102_v44 = vperm.slane %v10261_v39, 0 }
 0xf35   : > { %v4243_v46 = vsel %vm1216_vm14, %v4233_v41, %v13100_v53  ;;  %13101 = vst [vmem:[#allocation29_spill] sm:$0xff] %v10455_v60  ;;  %v4242_v49 = vsel %vm1216_vm14, %v4231_v47, %v4233_v41  ;;  %v10465_v53 = vperm.slane %v4788_v13, 0  ;;  %v10475_v41 = vmul.f32 %v10434_v8, %v9518_v34 }
 0xf36   : > { %v10458_v12 = vadd.f32 %v4243_v46, %v4153_v22  ;;  %v10463_v58 = vadd.f32 %v4242_v49, %v4152_v42  ;;  %v4791_v22 = vperm.slane %v4788_v13, 1  ;;  %v4828_v46 = vperm.slane %v4825_v9, 1  ;;  %v4329_v9 = vpop.permute.xlu2 %4328 }
 0xf37   : > { %v10482_v42 = vmul.f32 %v4754_v28, %v10211_v26  ;;  %v10484_v47 = vmul.f32 %v4754_v28, %v4623_v32  ;;  %v10489_v30 = vadd.f32 %v13102_v44, %v9564_v35  ;;  %v13103_v13 = vperm.slane %v10261_v39, 1 }
 0xf38   : > { %v10496_v21 = vmul.f32 %v10254_v3, %v9566_v45  ;;  %v10503_v8 = vmul.f32 %v13066_v19, %v9564_v35  ;;  %v10509_v39 = vmul.f32 %v10465_v53, %v10209_v52  ;;  %v13104_v3 = vperm.slane %v10445_v0, 0 }
 0xf39   : > { %v2841_v49 = vadd.f32 %v13103_v13, %v9566_v45  ;;  %v10519_v19 = vmul.f32 %v4791_v22, %v10211_v26  ;;  %v10521_v13 = vmul.f32 %v4791_v22, %v4623_v32  ;;  %v10524_v35 = vmul.f32 %v4828_v46, %v4623_v32  ;;  %v13106_v45 = vld [vmem:[#allocation193_spill] sm:$0xff] }
 0xf3a   : > { %4547 = vrot.lane.b32.xlu1 %v4531_v6, %s6980_s29  ;;  %4042 = vrot.lane.b32.xlu0 %v9597_v55, %s6979_s3  ;;  %v10515_v6 = vmul.f32 %v13104_v3, %v9516_v24  ;;  %v4832_v55 = vmul.f32 %v4828_v46, %v10211_v26  ;;  %v3847_v25 = vpop.permute.xlu0 %3846  ;;  %v10527_v44 = vmul.f32 %v10452_v27, %v4622_v18  ;;  %v4772_v24 = vrot.slane %v10482_v42, 1 }
 0xf3b   : > { %4485 = vrot.lane.b32.xlu2 %v4468_v15, %s6981_s0  ;;  %v4777_v3 = vrot.slane %v10484_v47, 1  ;;  %v3852_v33 = vsel %vm1423_vm9, %v3845_v20, %v3847_v25  ;;  %v3853_v60 = vsel %vm1423_vm9, %v3847_v25, %v13106_v45  ;;  %v10538_v26 = vmul.f32 %v10465_v53, %v4622_v18 }
 0xf3c   : > { %13105 = vst [vmem:[#allocation55_spill] sm:$0xff] %v10515_v6  ;;  %v10532_v15 = vpop.permute.xlu1 %4140  ;;  %v10542_v32 = vmul.f32 %v10499_v48, %v10209_v52  ;;  %v10545_v38 = vadd.f32 %v3852_v33, %v10237_v16  ;;  %v10548_v42 = vadd.f32 %v3853_v60, %v10406_v31  ;;  %v10552_v20 = vmul.f32 %v10499_v48, %v4622_v18  ;;  %v13107_v52 = vld [vmem:[#allocation197_spill] sm:$0xff] }
 0xf3d   : > { %v4809_v45 = vrot.slane %v10519_v19, 2  ;;  %v4814_v25 = vrot.slane %v10521_v13, 2  ;;  %v4847_v6 = vrot.slane %v4832_v55, 3  ;;  %v4852_v0 = vrot.slane %v10524_v35, 3 }
 0xf3e   : > { %v10560_v16 = vsel %vm3114_vm6, %v10532_v15, %v13107_v52  ;;  %v4635_v31 = vmul.f32 %v10283_v61, %v10350_v7  ;;  %v4673_v33 = vmul.f32 %v10287_v23, %v10350_v7  ;;  %v4710_v18 = vmul.f32 %v10358_v54, %v10350_v7 }
 0xf3f   : > { %v4760_v60 = vmul.f32 %v4754_v28, %v10350_v7  ;;  %v4797_v35 = vmul.f32 %v4791_v22, %v10350_v7  ;;  %v4834_v19 = vmul.f32 %v4828_v46, %v10350_v7  ;;  %v10574_v13 = vmul.f32 %v10281_v5, %v10348_v50 }
 0xf40   : > { %v4651_v61 = vrot.slane %v4635_v31, 5  ;;  %v4688_v55 = vrot.slane %v4673_v33, 6  ;;  %v4725_v23 = vrot.slane %v4710_v18, 7  ;;  %v13108_v54 = vperm.slane %v10346_v17, 1 }
 0xf41   : > { %v4773_v28 = vrot.slane %v4760_v60, 1  ;;  %v4848_v22 = vrot.slane %v4834_v19, 3  ;;  %v13109_v5 = vrot.slane %v10313_v56, 5  ;;  %v13111_v33 = vrot.slane %v10380_v14, 7 }
 0xf42   : > { %4596 = vrot.lane.b32.xlu1 %v4580_v29, %s6979_s3  ;;  %4428 = vrot.lane.b32.xlu0 %v4415_v62, %s12845_s17  ;;  %v4745_v52 = vmul.f32 %v13108_v54, %v10350_v7  ;;  %v4810_v29 = vrot.slane %v4797_v35, 2  ;;  %v4331_v46 = vpop.permute.xlu0 %4330  ;;  %v13110_v62 = vrot.slane %v10326_v10, 6  ;;  %v13112_v35 = vld [vmem:[#allocation195_spill] sm:$0xff]  ;;  %v10598_v10 = vld [vmem:[#allocation15 + $0x1] ss:$8 sm:$0x3] }
 0xf43   : > { %4549 = vrot.lane.b32.xlu2 %v10448_v63, %s6980_s29  ;;  %v4652_v47 = vsel %vm4642_vm7, %v13109_v5, %v4651_v61  ;;  %v4726_v7 = vsel %vm1694_vm1, %v13111_v33, %v4725_v23  ;;  %v3992_v63 = vpop.permute.xlu2 %3991  ;;  %v4340_v60 = vsel %vm3080_vm5, %v4329_v9, %v4331_v46  ;;  %v4341_v19 = vsel %vm3080_vm5, %v4331_v46, %v13112_v35  ;;  %v10596_v61 = vld [vmem:[#allocation15] ss:$8 sm:$0x3]  ;;  %v10607_v5 = vld [vmem:[#allocation15 + $0x2] ss:$8 sm:$0x3] }
 0xf44   : > { %v4689_v31 = vsel %vm1373_vm0, %v13110_v62, %v4688_v55  ;;  %v4660_v54 = vadd.f32 %v4652_v47, %v2841_v49  ;;  %v4774_v56 = vsel %vm2223_vm2, %v4772_v24, %v4773_v28  ;;  %v10601_v55 = vadd.f32 %v4340_v60, %v10463_v58  ;;  %v10609_v9 = vld [vmem:[#allocation15 + $0x3] ss:$8 sm:$0x3] }
 0xf45   : > { %v10604_v14 = vadd.f32 %v4341_v19, %v10458_v12  ;;  %v4784_v23 = vadd.f32 %v4774_v56, %v10418_v37  ;;  %v10613_v49 = vmul.f32 %v10285_v51, %v10348_v50  ;;  %v4778_v47 = vsel %vm2223_vm2, %v4773_v28, %v4777_v3 }
 0xf46   : > { %v4697_v24 = vadd.f32 %v4689_v31, %v4660_v54  ;;  %v4811_v46 = vsel %vm2541_vm3, %v4809_v45, %v4810_v29  ;;  %v4849_v58 = vsel %vm4843_vm10, %v4847_v6, %v4848_v22  ;;  %v4815_v12 = vsel %vm2541_vm3, %v4810_v29, %v4814_v25  ;;  %v10632_v45 = vld [vmem:[#allocation15 + $0x4] ss:$8 sm:$0x3] }
 0xf47   : > { %v4821_v62 = vadd.f32 %v4811_v46, %v4784_v23  ;;  %v10620_v37 = vperm.slane %v10596_v61, 1  ;;  %v10623_v33 = vperm.slane %v10598_v10, 1  ;;  %v4853_v51 = vsel %vm4843_vm10, %v4848_v22, %v4852_v0 }
 0xf48   : > { %v4734_v60 = vadd.f32 %v4726_v7, %v4697_v24  ;;  %v10627_v31 = vperm.slane %v10607_v5, 1  ;;  %v10630_v3 = vperm.slane %v10609_v9, 1  ;;  %v10658_v23 = vperm.slane %v10632_v45, 1 }
 0xf49   : > { %13113 = vst [vmem:[#allocation39_spill] sm:$0xff] %v10623_v33  ;;  %v4859_v6 = vadd.f32 %v4849_v58, %v4821_v62  ;;  %v4881_v25 = vmul.f32 %v10620_v37, %v10301_v43  ;;  %v10640_v28 = vmul.f32 %v10620_v37, %v10604_v14  ;;  %v4918_v0 = vmul.f32 %v10623_v33, %v10301_v43 }
 0xf4a   : > { %13114 = vst [vmem:[#allocation57_spill] sm:$0xff] %v10627_v31  ;;  %4189 = vrot.lane.b32.xlu0 %v10496_v21, %s12985_s19  ;;  %v4749_v29 = vadd.f32 %v4745_v52, %v4734_v60  ;;  %v10648_v22 = vmul.f32 %v10623_v33, %v10604_v14  ;;  %v4955_v21 = vmul.f32 %v10627_v31, %v10301_v43  ;;  %v13115_v52 = vld [vmem:[#allocation194_spill] sm:$0xff] }
 0xf4b   : > { %4598 = vrot.lane.b32.xlu2 %v10469_v4, %s6979_s3  ;;  %v10654_v7 = vmul.f32 %v10627_v31, %v10604_v14  ;;  %v3994_v35 = vpop.permute.xlu0 %3993  ;;  %v4895_v19 = vrot.slane %v4881_v25, 3  ;;  %v4896_v54 = vrot.slane %v10640_v28, 3  ;;  %v4932_v56 = vrot.slane %v4918_v0, 4  ;;  %v10669_v18 = vpop.permute.xlu2 %4236  ;;  %v13135_v28 = vld [vmem:[#allocation36_spill] sm:$0xff] }
 0xf4c   : > { %v3999_v4 = vsel %vm1345_vm8, %v3992_v63, %v3994_v35  ;;  %v4000_v24 = vsel %vm1345_vm8, %v3994_v35, %v13115_v52  ;;  %v4786_v46 = vadd.f32 %v4778_v47, %v4749_v29  ;;  %v4933_v58 = vrot.slane %v10648_v22, 4  ;;  %v10675_v29 = vld [vmem:[#allocation15 + $0x5] ss:$8 sm:$0x3] }
 0xf4d   : > { %v4007_v62 = vadd.f32 %v3999_v4, %v10545_v38  ;;  %v4008_v60 = vadd.f32 %v4000_v24, %v10548_v42  ;;  %v4897_v25 = vsel %vm4843_vm10, %v4895_v19, %v4896_v54  ;;  %v4969_v0 = vrot.slane %v4955_v21, 5 }
 0xf4e   : > { %v4823_v31 = vadd.f32 %v4815_v12, %v4786_v46  ;;  %v4907_v33 = vadd.f32 %v4897_v25, %v4859_v6  ;;  %v4934_v63 = vsel %vm1115_vm13, %v4932_v56, %v4933_v58  ;;  %v4970_v47 = vrot.slane %v10654_v7, 5 }
 0xf4f   : > { %v10678_v38 = vadd.f32 %v10560_v16, %v4008_v60  ;;  %v4992_v42 = vmul.f32 %v10630_v3, %v10301_v43  ;;  %v10684_v21 = vmul.f32 %v10630_v3, %v10604_v14  ;;  %v5029_v12 = vmul.f32 %v10658_v23, %v10301_v43 }
 0xf50   : > { %v10688_v6 = vadd.f32 %v4853_v51, %v4823_v31  ;;  %v4944_v35 = vadd.f32 %v4934_v63, %v4907_v33  ;;  %v4971_v19 = vsel %vm4642_vm7, %v4969_v0, %v4970_v47  ;;  %v10695_v16 = vmul.f32 %v10658_v23, %v10604_v14 }
 0xf51   : > { %v5006_v56 = vrot.slane %v4992_v42, 6  ;;  %v5007_v4 = vrot.slane %v10684_v21, 6  ;;  %v5043_v52 = vrot.slane %v5029_v12, 7  ;;  %v5062_v43 = vperm.slane %v10675_v29, 1 }
 0xf52   : > { %4477 = vrot.lane.b32.xlu0 %v10475_v41, %s6981_s0  ;;  %v4981_v51 = vadd.f32 %v4971_v19, %v4944_v35  ;;  %v5044_v33 = vrot.slane %v10695_v16, 7  ;;  %v13116_v31 = vrot.slane %v10574_v13, 5  ;;  %v13117_v24 = vrot.slane %v10309_v11, 5 }
 0xf53   : > { %v4686_v60 = vrot.slane %v10613_v49, 6  ;;  %v4844_v25 = vrot.slane %v10542_v32, 3  ;;  %v4139_v41 = vpop.permute.xlu0 %4138  ;;  %v5008_v0 = vsel %vm1373_vm0, %v5006_v56, %v5007_v4  ;;  %v5066_v63 = vmul.f32 %v5062_v43, %v10604_v14 }
 0xf54   : > { %v4650_v46 = vsel %vm4642_vm7, %v13117_v24, %v13116_v31  ;;  %v4146_v11 = vsel %vm3114_vm6, %v4139_v41, %v10532_v15  ;;  %v5018_v13 = vadd.f32 %v5008_v0, %v4981_v51  ;;  %v5045_v49 = vsel %vm1694_vm1, %v5043_v52, %v5044_v33 }
 0xf55   : > { %v4659_v42 = vadd.f32 %v4650_v46, %v10489_v30  ;;  %v13118_v32 = vrot.slane %v10322_v1, 6  ;;  %v10724_v35 = vadd.f32 %v4146_v11, %v4007_v62  ;;  %v4709_v56 = vmul.f32 %v10356_v57, %v10348_v50 }
 0xf56   : > { %v13119_v30 = vperm.slane %v10346_v17, 0  ;;  %v5055_v15 = vadd.f32 %v5045_v49, %v5018_v13  ;;  %v4759_v51 = vmul.f32 %v10452_v27, %v10348_v50  ;;  %v4775_v52 = vrot.slane %v10527_v44, 1  ;;  %v3700_v44 = vpop.permute.xlu1 %3699 }
 0xf57   : > { %v4687_v12 = vsel %vm1373_vm0, %v13118_v32, %v4686_v60  ;;  %v4796_v1 = vmul.f32 %v10465_v53, %v10348_v50  ;;  %v4723_v24 = vrot.slane %v4709_v56, 7  ;;  %v4812_v62 = vrot.slane %v10538_v26, 2  ;;  %v10740_v60 = vpop.permute.xlu2 %3887  ;;  %v13120_v53 = vld [vmem:[#allocation52_spill] sm:$0xff] }
 0xf58   : > { %v4696_v19 = vadd.f32 %v4687_v12, %v4659_v42  ;;  %v4744_v31 = vmul.f32 %v13119_v30, %v10348_v50  ;;  %v4833_v46 = vmul.f32 %v10499_v48, %v10348_v50  ;;  %v4850_v57 = vrot.slane %v10552_v20, 3 }
 0xf59   : > { %v10742_v17 = vadd.f32 %v5066_v63, %v5055_v15  ;;  %v4770_v41 = vrot.slane %v4759_v51, 1  ;;  %v4807_v0 = vrot.slane %v4796_v1, 2  ;;  %v10745_v27 = vperm.slane %v10596_v61, 0  ;;  %v13125_v51 = vld [vmem:[#allocation54_spill] sm:$0xff]  ;;  %v13126_v1 = vld [vmem:[#allocation33_spill] sm:$0xff] }
 0xf5a   : > { %4287 = vrot.lane.b32.xlu0 %v13120_v53, %s6986_s21  ;;  %v13121_v26 = vrot.slane %v10375_v36, 7  ;;  %v4845_v48 = vrot.slane %v4833_v46, 3  ;;  %v10753_v50 = vperm.slane %v10598_v10, 0  ;;  %v10756_v20 = vperm.slane %v10607_v5, 0 }
 0xf5b   : > { %v13122_v11 = vrot.slane %v10479_v59, 1  ;;  %v4776_v13 = vsel %vm2223_vm2, %v4770_v41, %v4775_v52  ;;  %v13123_v49 = vrot.slane %v10509_v39, 2  ;;  %v3698_v32 = vpop.permute.xlu0 %3697  ;;  %v4813_v10 = vsel %vm2541_vm3, %v4807_v0, %v4812_v62 }
 0xf5c   : > { %v4724_v42 = vsel %vm1694_vm1, %v13121_v26, %v4723_v24  ;;  %v4846_v56 = vsel %vm4843_vm10, %v4844_v25, %v4845_v48  ;;  %v4851_v5 = vsel %vm4843_vm10, %v4845_v48, %v4850_v57  ;;  %v3708_v30 = vsel %vm1473_vm15, %v3698_v32, %v3700_v44 }
 0xf5d   : > { %v4733_v63 = vadd.f32 %v4724_v42, %v4696_v19  ;;  %v4771_v61 = vsel %vm2223_vm2, %v13122_v11, %v4770_v41  ;;  %v4808_v36 = vsel %vm2541_vm3, %v13123_v49, %v4807_v0  ;;  %v13124_v19 = vld [vmem:[#allocation196_spill] sm:$0xff]  ;;  %v4880_v39 = vmul.f32 %v10745_v27, %v10299_v2 }
 0xf5e   : > { %v4783_v12 = vadd.f32 %v4771_v61, %v10413_v40  ;;  %v3707_v59 = vsel %vm1473_vm15, %v13124_v19, %v3698_v32  ;;  %v3716_v24 = vadd.f32 %v3708_v30, %v13126_v1  ;;  %v10778_v62 = vmul.f32 %v10745_v27, %v10601_v55  ;;  %v4337_v19 = vpop.permute.xlu1 %4336 }
 0xf5f   : > { %v4748_v15 = vadd.f32 %v4744_v31, %v4733_v63  ;;  %v3715_v52 = vadd.f32 %v3707_v59, %v13125_v51  ;;  %v4892_v46 = vrot.slane %v4880_v39, 3  ;;  %v4917_v57 = vmul.f32 %v10753_v50, %v10299_v2  ;;  %v13129_v51 = vld [vmem:[#allocation198_spill] sm:$0xff] }
 0xf60   : > { %v4820_v40 = vadd.f32 %v4808_v36, %v4783_v12  ;;  %v10784_v31 = vmul.f32 %v10753_v50, %v10601_v55  ;;  %v4893_v0 = vrot.slane %v10778_v62, 3  ;;  %v4954_v44 = vmul.f32 %v10756_v20, %v10299_v2  ;;  %v10802_v36 = vpop.permute.xlu2 %4181 }
 0xf61   : > { %v4785_v25 = vadd.f32 %v4776_v13, %v4748_v15  ;;  %v10791_v53 = vmul.f32 %v10756_v20, %v10601_v55  ;;  %v4929_v42 = vrot.slane %v4917_v57, 4  ;;  %v4987_v63 = vperm.slane %v10609_v9, 0  ;;  %v13127_v9 = vld [vmem:[#allocation53_spill] sm:$0xff] }
 0xf62   : > { %v4858_v41 = vadd.f32 %v4846_v56, %v4820_v40  ;;  %v4930_v48 = vrot.slane %v10784_v31, 4  ;;  %4383 = vrot.lane.b32.xlu0 %v10503_v8, %s12839_s2  ;;  %v4894_v11 = vsel %vm4843_vm10, %v4892_v46, %v4893_v0  ;;  %v4966_v61 = vrot.slane %v4954_v44, 5  ;;  %v5222_v31 = vld [vmem:[#allocation15 + $0x12] ss:$8 sm:$0x3] }
 0xf63   : > { %v4822_v26 = vadd.f32 %v4813_v10, %v4785_v25  ;;  %v4967_v13 = vrot.slane %v10791_v53, 5  ;;  %v5024_v49 = vperm.slane %v10632_v45, 0  ;;  %v4991_v10 = vmul.f32 %v4987_v63, %v10299_v2  ;;  %v4239_v59 = vpop.permute.xlu0 %4238  ;;  %v13139_v53 = vld [vmem:[#allocation200_spill] sm:$0xff] }
 0xf64   : > { %v4906_v12 = vadd.f32 %v4894_v11, %v4858_v41  ;;  %v13128_v56 = vperm.slane %v13127_v9, 1  ;;  %v4931_v30 = vsel %vm1115_vm13, %v4929_v42, %v4930_v48  ;;  %v4244_v39 = vsel %vm1216_vm14, %v10669_v18, %v4239_v59 }
 0xf65   : > { %v10804_v32 = vadd.f32 %v4851_v5, %v4822_v26  ;;  %v4968_v45 = vsel %vm4642_vm7, %v4966_v61, %v4967_v13  ;;  %v10817_v5 = vmul.f32 %v4987_v63, %v10601_v55  ;;  %v5028_v15 = vmul.f32 %v5024_v49, %v10299_v2  ;;  %v13130_v26 = vld [vmem:[#allocation199_spill] sm:$0xff] }
 0xf66   : > { %v3757_v8 = vmul.f32 %v13128_v56, %v9518_v34  ;;  %v4245_v1 = vsel %vm1216_vm14, %v4239_v59, %v13129_v51  ;;  %v4943_v40 = vadd.f32 %v4931_v30, %v4906_v12  ;;  %v5003_v25 = vrot.slane %v4991_v10, 6  ;;  %v13131_v61 = vld [vmem:[#allocation55_spill] sm:$0xff]  ;;  %v13134_v51 = vld [vmem:[#allocation29_spill] sm:$0xff] }
 0xf67   : > { %v4252_v46 = vadd.f32 %v4244_v39, %v10724_v35  ;;  %v4253_v57 = vadd.f32 %v4245_v1, %v10678_v38  ;;  %v5004_v41 = vrot.slane %v10817_v5, 6  ;;  %v5030_v44 = vmul.f32 %v5024_v49, %v10601_v55  ;;  %v13132_v5 = vld [vmem:[#allocation39_spill] sm:$0xff] }
 0xf68   : > { %v4343_v42 = vsel %vm3080_vm5, %v4337_v19, %v13130_v26  ;;  %v4980_v2 = vadd.f32 %v4968_v45, %v4943_v40  ;;  %v5040_v11 = vrot.slane %v5028_v15, 7  ;;  %v3760_v18 = vadd.f32 %v13131_v61, %v3715_v52  ;;  %v13133_v45 = vld [vmem:[#allocation57_spill] sm:$0xff] }
 0xf69   : > { %v10831_v56 = vadd.f32 %v4343_v42, %v4253_v57  ;;  %v5005_v12 = vsel %vm1373_vm0, %v5003_v25, %v5004_v41  ;;  %v5041_v10 = vrot.slane %v5030_v44, 7  ;;  %v3761_v59 = vadd.f32 %v3757_v8, %v3716_v24  ;;  %v10850_v42 = vpop.permute.xlu2 %3893 }
 0xf6a   : > { %v5017_v35 = vadd.f32 %v5005_v12, %v4980_v2  ;;  %v12565_v38 = vperm.slane %v10675_v29, 0  ;;  %4541 = vrot.lane.b32.xlu0 %v13134_v51, %s6980_s29 }
 0xf6b   : > { %v4885_v30 = vmul.f32 %v10620_v37, %v10831_v56  ;;  %v4922_v39 = vmul.f32 %v13132_v5, %v10831_v56  ;;  %v4959_v15 = vmul.f32 %v13133_v45, %v10831_v56  ;;  %v4996_v52 = vmul.f32 %v10630_v3, %v10831_v56  ;;  %v4335_v57 = vpop.permute.xlu0 %4334 }
 0xf6c   : > { %v5042_v24 = vsel %vm1694_vm1, %v5040_v11, %v5041_v10  ;;  %v5065_v44 = vmul.f32 %v12565_v38, %v10601_v55  ;;  %v4342_v26 = vsel %vm3080_vm5, %v4335_v57, %v4337_v19  ;;  %v13137_v57 = vld [vmem:[#allocation32_spill] sm:$0xff] }
 0xf6d   : > { %v4900_v8 = vrot.slane %v4885_v30, 3  ;;  %v4937_v1 = vrot.slane %v4922_v39, 4  ;;  %v4974_v40 = vrot.slane %v4959_v15, 5  ;;  %v5011_v25 = vrot.slane %v4996_v52, 6 }
 0xf6e   : > { %v5054_v37 = vadd.f32 %v5042_v24, %v5017_v35  ;;  %v10867_v35 = vadd.f32 %v4342_v26, %v4252_v46  ;;  %v5148_v24 = vld [vmem:[#allocation15 + $0x10] ss:$8 sm:$0x3] }
 0xf6f   : > { %v4901_v3 = vsel %vm4843_vm10, %v4896_v54, %v4900_v8  ;;  %v4938_v2 = vsel %vm1115_vm13, %v4933_v58, %v4937_v1  ;;  %v4975_v11 = vsel %vm4642_vm7, %v4970_v47, %v4974_v40  ;;  %v5012_v61 = vsel %vm1373_vm0, %v5007_v4, %v5011_v25  ;;  %v13136_v54 = vld [vmem:[#allocation38_spill] sm:$0xff]  ;;  %v4037_v8 = vpop.permute.xlu1 %4036 }
 0xf70   : > { %v4909_v19 = vadd.f32 %v4901_v3, %v10688_v6  ;;  %v10865_v12 = vadd.f32 %v5065_v44, %v5054_v37  ;;  %v4418_v30 = vmul.f32 %v13136_v54, %v13135_v28  ;;  %v4884_v58 = vmul.f32 %v10745_v27, %v10867_v35  ;;  %v5074_v27 = vld [vmem:[#allocation15 + $0x6] ss:$8 sm:$0x3] }
 0xf71   : > { %v4921_v7 = vmul.f32 %v10753_v50, %v10867_v35  ;;  %v4958_v47 = vmul.f32 %v10756_v20, %v10867_v35  ;;  %v4995_v21 = vmul.f32 %v4987_v63, %v10867_v35  ;;  %v5032_v6 = vmul.f32 %v5024_v49, %v10867_v35  ;;  %v5111_v49 = vld [vmem:[#allocation15 + $0x7] ss:$8 sm:$0x3]  ;;  %v10902_v3 = vpop.permute.xlu2 %4377 }
 0xf72   : > { %v4946_v22 = vadd.f32 %v4938_v2, %v4909_v19  ;;  %4434 = vrot.lane.b32.xlu0 %v4418_v30, %s12845_s17  ;;  %v4898_v46 = vrot.slane %v4884_v58, 3  ;;  %v10900_v26 = vperm.slane %v5074_v27, 1  ;;  %v10904_v2 = vperm.slane %v5111_v49, 1  ;;  %s13157_s17 = sld [smem:[#allocation223_spill]] }
 0xf73   : > { %v4935_v5 = vrot.slane %v4921_v7, 4  ;;  %v4972_v39 = vrot.slane %v4958_v47, 5  ;;  %v5009_v45 = vrot.slane %v4995_v21, 6  ;;  %v5046_v15 = vrot.slane %v5032_v6, 7  ;;  %v3890_v52 = vpop.permute.xlu0 %3889 }
 0xf74   : > { %v4983_v4 = vadd.f32 %v4975_v11, %v4946_v22  ;;  %v4899_v50 = vsel %vm4843_vm10, %v4893_v0, %v4898_v46  ;;  %v3899_v62 = vsel %vm1423_vm9, %v10740_v60, %v3890_v52  ;;  %v5185_v0 = vld [vmem:[#allocation15 + $0x11] ss:$8 sm:$0x3]  ;;  %v13140_v60 = vld [vmem:[#allocation201_spill] sm:$0xff]  ;;  %v10912_v19 = vperm.slane %v5222_v31, 1 }
 0xf75   : > { %v4936_v20 = vsel %vm1115_vm13, %v4930_v48, %v4935_v5  ;;  %v4973_v63 = vsel %vm4642_vm7, %v4967_v13, %v4972_v39  ;;  %v4908_v1 = vadd.f32 %v4899_v50, %v10804_v32  ;;  %v5010_v40 = vsel %vm1373_vm0, %v5004_v41, %v5009_v45  ;;  %v13138_v48 = vld [vmem:[#allocation56_spill] sm:$0xff]  ;;  %v13143_v50 = vld [vmem:[#allocation50_spill] sm:$0xff] }
 0xf76   : > { %v10880_v51 = vadd.f32 %v5012_v61, %v4983_v4  ;;  %v5047_v25 = vsel %vm1694_vm1, %v5041_v10, %v5046_v15  ;;  %v4577_v37 = vmul.f32 %v13138_v48, %v13137_v57  ;;  %v3900_v13 = vsel %vm1423_vm9, %v3890_v52, %v13139_v53  ;;  %v13141_v39 = vld [vmem:[#allocation40_spill] sm:$0xff] }
 0xf77   : > { %v3907_v44 = vadd.f32 %v3899_v62, %v3760_v18  ;;  %v4945_v32 = vadd.f32 %v4936_v20, %v4908_v1  ;;  %v3908_v41 = vadd.f32 %v3900_v13, %v3761_v59  ;;  %v10906_v10 = vperm.slane %v5148_v24, 1  ;;  %v13142_v15 = vld [vmem:[#allocation176_spill] sm:$0xff] }
 0xf78   : > { %v4047_v11 = vsel %vm1345_vm8, %v4037_v8, %v13140_v60  ;;  %v10910_v61 = vperm.slane %v5185_v0, 1  ;;  %v5081_v59 = vmul.f32 %v10900_v26, %v10604_v14  ;;  %v5118_v58 = vmul.f32 %v10904_v2, %v10604_v14 }
 0xf79   : > { %v4982_v54 = vadd.f32 %v4973_v63, %v4945_v32  ;;  %v10915_v18 = vadd.f32 %v4047_v11, %v3908_v41  ;;  %v5155_v7 = vmul.f32 %v10906_v10, %v10604_v14  ;;  %v5229_v6 = vmul.f32 %v10912_v19, %v10604_v14  ;;  %v10950_v53 = vpop.permute.xlu2 %4040  ;;  %v3706_v11 = vpop.permute.xlu1 %3705 }
 0xf7a   : > { %4590 = vrot.lane.b32.xlu0 %v4577_v37, %s6979_s3  ;;  %v5192_v21 = vmul.f32 %v10910_v61, %v10604_v14  ;;  %v10928_v4 = vperm.slane %v5074_v27, 0  ;;  %v4467_v45 = vmul.f32 %v13141_v39, %v13135_v28  ;;  %v4530_v52 = vmul.f32 %v13142_v15, %v13135_v28 }
 0xf7b   : > { %v5019_v30 = vadd.f32 %v5010_v40, %v4982_v54  ;;  %v4035_v22 = vpop.permute.xlu0 %4034  ;;  %v13144_v20 = vperm.slane %v13127_v9, 0  ;;  %v13145_v14 = vperm.slane %v13127_v9, 1  ;;  %v5095_v1 = vrot.slane %v5081_v59, 1 }
 0xf7c   : > { %v4046_v47 = vsel %vm1345_vm8, %v4035_v22, %v4037_v8  ;;  %v10941_v8 = vperm.slane %v5111_v49, 0  ;;  %v5132_v40 = vrot.slane %v5118_v58, 2  ;;  %v5206_v62 = vrot.slane %v5192_v21, 4 }
 0xf7d   : > { %v10930_v46 = vadd.f32 %v5047_v25, %v5019_v30  ;;  %v10932_v5 = vadd.f32 %v4046_v47, %v3907_v44  ;;  %v3758_v63 = vmul.f32 %v13144_v20, %v13143_v50  ;;  %v3759_v27 = vmul.f32 %v13145_v14, %v13135_v28 }
 0xf7e   : > { %v5169_v25 = vrot.slane %v5155_v7, 3  ;;  %v5243_v57 = vrot.slane %v5229_v6, 5  ;;  %v5080_v48 = vmul.f32 %v10928_v4, %v10601_v55  ;;  %v10948_v37 = vperm.slane %v5148_v24, 0  ;;  %v13146_v7 = vld [vmem:[#allocation203_spill] sm:$0xff]  ;;  %v13147_v6 = vld [vmem:[#allocation37_spill] sm:$0xff] }
 0xf7f   : > { %v10955_v49 = vmul.f32 %v10900_v26, %v10831_v56  ;;  %v10959_v9 = vmul.f32 %v10904_v2, %v10831_v56  ;;  %v10963_v13 = vmul.f32 %v10906_v10, %v10831_v56  ;;  %v10967_v24 = vmul.f32 %v10910_v61, %v10831_v56 }
 0xf80   : > { %v10971_v44 = vmul.f32 %v10912_v19, %v10831_v56  ;;  %v5117_v32 = vmul.f32 %v10941_v8, %v10601_v55  ;;  %v10975_v41 = vperm.slane %v5185_v0, 0  ;;  %v10977_v60 = vperm.slane %v5222_v31, 0 }
 0xf81   : > { %v5096_v30 = vrot.slane %v10955_v49, 1  ;;  %v5133_v22 = vrot.slane %v10959_v9, 2  ;;  %v5170_v59 = vrot.slane %v10963_v13, 3  ;;  %v5207_v58 = vrot.slane %v10967_v24, 4 }
 0xf82   : > { %4483 = vrot.lane.b32.xlu0 %v4467_v45, %s6981_s0  ;;  %v12566_v0 = vrot.slane %v10971_v44, 5  ;;  %v5154_v31 = vmul.f32 %v10948_v37, %v10601_v55  ;;  %v13148_v45 = vld [vmem:[#allocation51_spill] sm:$0xff]  ;;  %v13153_v13 = vperm.slane %v10675_v29, 0 }
 0xf83   : > { %v3704_v54 = vpop.permute.xlu0 %3703  ;;  %v5097_v50 = vsel %vm2223_vm2, %v5095_v1, %v5096_v30  ;;  %v5134_v20 = vsel %vm2541_vm3, %v5132_v40, %v5133_v22  ;;  %v11013_v40 = vmul.f32 %v10928_v4, %v10867_v35 }
 0xf84   : > { %v3709_v47 = vsel %vm1473_vm15, %v13146_v7, %v3704_v54  ;;  %v3710_v21 = vsel %vm1473_vm15, %v3704_v54, %v3706_v11  ;;  %v5107_v14 = vadd.f32 %v5097_v50, %v10742_v17  ;;  %v5171_v11 = vsel %vm4843_vm10, %v5169_v25, %v5170_v59 }
 0xf85   : > { %v3717_v39 = vadd.f32 %v3709_v47, %v13147_v6  ;;  %v3718_v15 = vadd.f32 %v3710_v21, %v13148_v45  ;;  %v5208_v54 = vsel %vm1115_vm13, %v5206_v62, %v5207_v58  ;;  %v5245_v7 = vsel %vm4642_vm7, %v5243_v57, %v12566_v0 }
 0xf86   : > { %v11017_v17 = vmul.f32 %v10941_v8, %v10867_v35  ;;  %v5144_v25 = vadd.f32 %v5134_v20, %v5107_v14  ;;  %v11021_v62 = vmul.f32 %v10948_v37, %v10867_v35  ;;  %v5129_v21 = vrot.slane %v5117_v32, 2 }
 0xf87   : > { %v11007_v47 = vadd.f32 %v3758_v63, %v3717_v39  ;;  %v11009_v1 = vadd.f32 %v3759_v27, %v3718_v15  ;;  %v5093_v63 = vrot.slane %v11013_v40, 1  ;;  %v5092_v27 = vrot.slane %v5080_v48, 1  ;;  %v11027_v39 = vpop.permute.xlu2 %4426 }
 0xf88   : > { %v5181_v57 = vadd.f32 %v5171_v11, %v5144_v25  ;;  %v5191_v6 = vmul.f32 %v10975_v41, %v10601_v55  ;;  %v12567_v15 = vrot.slane %v11017_v17, 2  ;;  %v5166_v50 = vrot.slane %v5154_v31, 3  ;;  %v13149_v11 = vld [vmem:[#allocation205_spill] sm:$0xff] }
 0xf89   : > { %v5167_v20 = vrot.slane %v11021_v62, 3  ;;  %v5228_v14 = vmul.f32 %v10977_v60, %v10601_v55  ;;  %v5094_v25 = vsel %vm2223_vm2, %v5092_v27, %v5093_v63  ;;  %v11046_v0 = vmul.f32 %v10975_v41, %v10867_v35 }
 0xf8a   : > { %4545 = vrot.lane.b32.xlu0 %v4530_v52, %s6980_s29  ;;  %v5218_v32 = vadd.f32 %v5208_v54, %v5181_v57  ;;  %v11050_v55 = vmul.f32 %v10977_v60, %v10867_v35  ;;  %v5106_v54 = vadd.f32 %v5094_v25, %v10865_v12  ;;  %v13150_v57 = vld [vmem:[#allocation180_spill] sm:$0xff]  ;;  %v13155_v29 = vrot.slane %v11017_v17, 2  ;;  %s6903_s29 = sshra.s32 %s6266_s15, 4  ;;  %s6904_s29 = int_to_ptr.hbm [resolvable:$true] %s6903_s29 }
 0xf8b   : > { %v4184_v45 = vpop.permute.xlu0 %4183  ;;  %v4579_v27 = vmul.f32 %v13150_v57, %v13135_v28  ;;  %s6905_s21 = scalar_lea.hbm %s6904_s29, 32  ;;  %p6910_p4 = scmp.lt.s32.totalorder %s6904_s29, %s13379_s25 }
 0xf8c   : > { %v4193_v52 = vsel %vm3114_vm6, %v10802_v36, %v4184_v45  ;;  %v4194_v48 = vsel %vm3114_vm6, %v4184_v45, %v13149_v11  ;;  %v11052_v36 = vadd.f32 %v5245_v7, %v5218_v32  ;;  %v11057_v45 = vld [vmem:[#allocation2 + $0xc0] sm:$0xff]  ;;  %v5203_v7 = vrot.slane %v5191_v6, 4  ;;  %p6906_p1 = scmp.ne.s32.totalorder %s6904_s29, %s6905_s21  ;;  %p6911_p7 = scmp.lt.s32.totalorder %s6909_s28, %s6905_s21 }
 0xf8d   : > { %v4201_v38 = vadd.f32 %v4193_v52, %v10932_v5  ;;  %v11042_v31 = vadd.f32 %v4194_v48, %v10915_v18  ;;  %v5131_v18 = vsel %vm2541_vm3, %v5129_v21, %v12567_v15  ;;  %v5168_v5 = vsel %vm4843_vm10, %v5166_v50, %v5167_v20  ;;  %v11072_v21 = vpop.permute.xlu1 %4281 }
 0xf8e   : > { %v5033_v52 = vmul.f32 %v10658_v23, %v10831_v56  ;;  %v5143_v12 = vadd.f32 %v5131_v18, %v5106_v54  ;;  %v5204_v11 = vrot.slane %v11046_v0, 4  ;;  %v5240_v48 = vrot.slane %v5228_v14, 5  ;;  %p6907_p2 = pnand %p6906_p1, %p7126_p5  ;;  %p6912_p8 = por %p6911_p7, %p6910_p4 }
 0xf8f   : > { %v5241_v32 = vrot.slane %v11050_v55, 5  ;;  %v5085_v25 = vmul.f32 %v11057_v45, %v10900_v26  ;;  %v11082_v54 = vpop.permute.xlu2 %4187  ;;  %v5196_v16 = vmul.f32 %v11057_v45, %v10910_v61 }
 0xf90   : > { %v5180_v15 = vadd.f32 %v5168_v5, %v5143_v12  ;;  %v5205_v23 = vsel %vm1115_vm13, %v5203_v7, %v5204_v11  ;;  %v5048_v50 = vrot.slane %v5033_v52, 7  ;;  %v5068_v52 = vmul.f32 %v5062_v43, %v10831_v56  ;;  %p6908_p3 = pneg %p6907_p2 }
 0xf91   : > { %v5242_v6 = vsel %vm4642_vm7, %v5240_v48, %v5241_v32  ;;  %v5100_v7 = vrot.slane %v5085_v25, 1  ;;  %v5122_v48 = vmul.f32 %v11057_v45, %v10904_v2  ;;  %v5233_v43 = vmul.f32 %v11057_v45, %v10912_v19  ;;  %v13151_v2 = vld [vmem:[#allocation207_spill] sm:$0xff] }
 0xf92   : > { %4594 = vrot.lane.b32.xlu0 %v4579_v27, %s6979_s3  ;;  %v5217_v26 = vadd.f32 %v5205_v23, %v5180_v15  ;;  %v5049_v5 = vsel %vm1694_vm1, %v5044_v33, %v5048_v50  ;;  %v5270_v33 = vld [vmem:[#allocation2 + $0xd8] sm:$0xff]  ;;  %v5211_v19 = vrot.slane %v5196_v16, 4  ;;  %s13381_s3 = sand.u32 1, %s6959_s30   ;;  %p6913_p9 = pnand %p6912_p8, %p6908_p3 }
 0xf93   : > { %v4280_v57 = vpop.permute.xlu0 %4279  ;;  %v5057_v12 = vadd.f32 %v5049_v5, %v10880_v51  ;;  %v5101_v51 = vsel %vm2223_vm2, %v5096_v30, %v5100_v7  ;;  %v5248_v7 = vrot.slane %v5233_v43, 5  ;;  %v5195_v24 = vmul.f32 %v5270_v33, %v10975_v41  ;;  %s6251_s1 = scalar_lea.sflag [#allocation6], %s13381_s3 }
 0xf94   : > { %v4291_v14 = vsel %vm1216_vm14, %v4280_v57, %v11072_v21  ;;  %v11086_v18 = vadd.f32 %v5242_v6, %v5217_v26  ;;  %v5137_v57 = vrot.slane %v5122_v48, 2  ;;  %v5084_v26 = vmul.f32 %v5270_v33, %v10928_v4 }
 0xf95   : > { %v11084_v27 = vadd.f32 %v4291_v14, %v4201_v38  ;;  %v5159_v38 = vmul.f32 %v11057_v45, %v10906_v10  ;;  %v5072_v15 = vadd.f32 %v5068_v52, %v5057_v12  ;;  %v11110_v50 = vpop.permute.xlu1 %4430  ;;  %v13152_v4 = vrot.slane %v10971_v44, 5 }
 0xf96   : > { %v5138_v49 = vsel %vm2541_vm3, %v5133_v22, %v5137_v57  ;;  %v5098_v52 = vrot.slane %v5084_v26, 1  ;;  %v5158_v22 = vmul.f32 %v5270_v33, %v10948_v37  ;;  %v5232_v44 = vmul.f32 %v5270_v33, %v10977_v60 }
 0xf97   : > { %v5174_v25 = vrot.slane %v5159_v38, 3  ;;  %v5109_v6 = vadd.f32 %v5101_v51, %v5072_v15  ;;  %v5249_v38 = vsel %vm4642_vm7, %v13152_v4, %v5248_v7  ;;  %v5209_v51 = vrot.slane %v5195_v24, 4  ;;  %v11215_v24 = vld [vmem:[#allocation4 + $0x1e0] sm:$0xff] }
 0xf98   : > { %v5099_v37 = vsel %vm2223_vm2, %v5093_v63, %v5098_v52  ;;  %v5172_v57 = vrot.slane %v5158_v22, 3  ;;  %v5246_v40 = vrot.slane %v5232_v44, 5 }
 0xf99   : > { %v5146_v30 = vadd.f32 %v5138_v49, %v5109_v6  ;;  %v5175_v5 = vsel %vm4843_vm10, %v5170_v59, %v5174_v25  ;;  %v5067_v59 = vmul.f32 %v13153_v13, %v10867_v35  ;;  %v5210_v17 = vsel %vm1115_vm13, %v5204_v11, %v5209_v51 }
 0xf9a   : > { %v5247_v62 = vsel %vm4642_vm7, %v5241_v32, %v5246_v40 }
 0xf9b   : > { %v5183_v12 = vadd.f32 %v5175_v5, %v5146_v30 }
 0xf9c   : > { %v3896_v23 = vpop.permute.xlu0 %3895 }
 0xf9d   : > { %v3901_v56 = vsel %vm1423_vm9, %v10850_v42, %v3896_v23  ;;  %v3902_v10 = vsel %vm1423_vm9, %v3896_v23, %v13151_v2  ;;  %v4476_v42 = vpop.permute.xlu2 %4475  ;;  %v11142_v16 = vpop.permute.xlu1 %4191 }
 0xf9e   : > { %v3909_v61 = vadd.f32 %v3901_v56, %v11007_v47  ;;  %v11114_v14 = vadd.f32 %v3902_v10, %v11009_v1  ;;  %v5121_v47 = vmul.f32 %v5270_v33, %v10941_v8  ;;  %v5212_v1 = vsel %vm1115_vm13, %v5207_v58, %v5211_v19 }
 0xf9f   : > { %v5220_v9 = vadd.f32 %v5212_v1, %v5183_v12  ;;  %v5071_v58 = vadd.f32 %v5067_v59, %v10930_v46  ;;  %v5173_v46 = vsel %vm4843_vm10, %v5167_v20, %v5172_v57  ;;  %v11211_v59 = vld [vmem:[#allocation4 + $0x1f0] sm:$0xff]  ;;  %v13160_v57 = vld [vmem:[#allocation209_spill] sm:$0xff] }
 0xfa0   : > { %v5135_v8 = vrot.slane %v5121_v47, 2  ;;  %6077 = vmatpush.msra.mxu3 %v11211_v59 }
 0xfa1   : > { %v11134_v15 = vadd.f32 %v5249_v38, %v5220_v9  ;;  %v5108_v23 = vadd.f32 %v5099_v37, %v5071_v58  ;;  %v5263_v38 = vld [vmem:[#allocation2 + $0x48] sm:$0xff]  ;;  %v13159_v58 = vld [vmem:[#allocation204_spill] sm:$0xff] }
 0xfa2   : > { %v5136_v35 = vsel %vm2541_vm3, %v13155_v29, %v5135_v8  ;;  %v11213_v8 = vld [vmem:[#allocation4 + $0x1f8] sm:$0xff]  ;;  %v4292_v37 = vsel %vm1216_vm14, %v11072_v21, %v13159_v58  ;;  %v11226_v29 = vld [vmem:[#allocation2 + $0x110] sm:$0xff]  ;;  %6078 = vmatpush.msra.mxu3 %v11215_v24 }
 0xfa3   : > { %13154 = vst [vmem:[#allocation35_spill] sm:$0xff] %v11134_v15  ;;  %v5145_v41 = vadd.f32 %v5136_v35, %v5108_v23  ;;  %6123 = vmatpush.msra.mxu1 %v11213_v8  ;;  %v11224_v23 = vld [vmem:[#allocation4 + $0x1e8] sm:$0xff]  ;;  %v4300_v35 = vadd.f32 %v4292_v37, %v11042_v31  ;;  %v11267_v37 = vld [vmem:[#allocation4 + $0x1d0] sm:$0xff] }
 0xfa4   : > { %v4380_v48 = vpop.permute.xlu0 %4379  ;;  %6079 = vmatpush.msra.mxu3 %v11267_v37 }
 0xfa5   : > { %v11147_v25 = vpop.permute.xlu2 %4285  ;;  %v5182_v43 = vadd.f32 %v5173_v46, %v5145_v41  ;;  %v4389_v2 = vsel %vm3080_vm5, %v10902_v3, %v4380_v48  ;;  %v4480_v10 = vpop.permute.xlu1 %4479  ;;  %v11183_v3 = vld [vmem:[%s12411_s13 + $0x22] ss:$8 sm:$0x3]  ;;  %v4390_v44 = vsel %vm3080_vm5, %v4380_v48, %v13160_v57  ;;  %6124 = vmatpush.msra.mxu1 %v11224_v23  ;;  %v6477_v48 = vld [vmem:[%s13157_s17 + $0x1] ss:$8 sm:$0x3] }
 0xfa6   : > { %v12569_v30 = vperm.slane %v11183_v3, 0  ;;  %v4398_v41 = vadd.f32 %v4390_v44, %v4300_v35  ;;  %v12570_v46 = vperm.slane %v11183_v3, 1  ;;  %v11269_v57 = vld [vmem:[#allocation4 + $0x1d8] sm:$0xff]  ;;  %v11271_v44 = vld [vmem:[#allocation4 + $0x1c0] sm:$0xff] }
 0xfa7   : > { %v5219_v56 = vadd.f32 %v5210_v17, %v5182_v43  ;;  %6125 = vmatpush.msra.mxu1 %v11269_v57  ;;  %6080 = vmatpush.msra.mxu3 %v11271_v44 }
 0xfa8   : > { %v4506_v5 = vmul.f32 %v12569_v30, %v9518_v34  ;;  %v11334_v30 = vld [vmem:[#allocation4 + $0xd0] sm:$0xff] }
 0xfa9   : > { %v11165_v20 = vadd.f32 %v5247_v62, %v5219_v56  ;;  %v11247_v56 = vperm.slane %v6477_v48, 1  ;;  %v5262_v62 = vld [vmem:[#allocation2 + $0x10] sm:$0xff] }
 0xfab   : > { %13156 = vst [vmem:[#allocation70_spill] sm:$0xff] %v11165_v20  ;;  %v11274_v35 = vmul.f32 %v11247_v56, %v5263_v38 }
 0xfac   : > { %v11152_v63 = vpop.permute.xlu0 %4042  ;;  %13163 = vst [vmem:[#allocation41_spill] sm:$0xff] %v11247_v56 }
 0xfad   : > { %v4048_v60 = vsel %vm1345_vm8, %v10950_v53, %v11152_v63  ;;  %v11169_v6 = vpop.permute.xlu2 %4289  ;;  %v4397_v53 = vadd.f32 %v4389_v2, %v11084_v27  ;;  %v11174_v49 = vpop.permute.xlu1 %4385 }
 0xfae   : > { %v11160_v33 = vadd.f32 %v4048_v60, %v3909_v61 }
 0xfb4   : > { %v4429_v0 = vpop.permute.xlu0 %4428 }
 0xfb5   : > { %v4438_v11 = vsel %vm1401_vm4, %v11027_v39, %v4429_v0  ;;  %v11178_v32 = vpop.permute.xlu2 %4539  ;;  %v11187_v26 = vpop.permute.xlu1 %4387  ;;  %v4439_v51 = vsel %vm1401_vm4, %v4429_v0, %v11110_v50 }
 0xfb6   : > { %v4446_v61 = vadd.f32 %v4438_v11, %v4397_v53  ;;  %v4447_v60 = vadd.f32 %v4439_v51, %v4398_v41  ;;  %v11249_v53 = vld [vmem:[#allocation2 + $0x80] sm:$0xff]  ;;  %v11278_v51 = vmul.f32 %v11247_v56, %v11226_v29  ;;  %v11294_v41 = vld [vmem:[#allocation4 + $0xf0] sm:$0xff] }
 0xfb7   : > { %6054 = vmatpush.msra.mxu2 %v11294_v41  ;;  %v6675_v56 = vld [vmem:[#allocation2 + $0xe0] sm:$0xff] }
 0xfb8   : > { %13166 = vst [vmem:[#allocation71_spill] sm:$0xff] %v11278_v51 }
 0xfbc   : > { %v11176_v55 = vpop.permute.xlu0 %4189 }
 0xfbd   : > { %v11192_v7 = vpop.permute.xlu2 %4432  ;;  %v4544_v1 = vpop.permute.xlu1 %4543  ;;  %v4195_v58 = vsel %vm3114_vm6, %v11082_v54, %v11176_v55  ;;  %v4196_v54 = vsel %vm3114_vm6, %v11176_v55, %v11142_v16  ;;  %v11300_v16 = vld [vmem:[#allocation4 + $0xf8] sm:$0xff] }
 0xfbe   : > { %v11302_v55 = vld [vmem:[#allocation4 + $0x1b8] sm:$0xff]  ;;  %6100 = vmatpush.msra.mxu0 %v11300_v16 }
 0xfc4   : > { %v4478_v19 = vpop.permute.xlu0 %4477 }
 0xfc5   : > { %v4487_v27 = vsel %vm1473_vm15, %v4476_v42, %v4478_v19  ;;  %v11198_v9 = vpop.permute.xlu2 %4588  ;;  %v11202_v22 = vpop.permute.xlu1 %4436  ;;  %v5274_v42 = vld [vmem:[%s13157_s17] ss:$8 sm:$0x3]  ;;  %v4488_v31 = vsel %vm1473_vm15, %v4478_v19, %v4480_v10  ;;  %v11256_v19 = vperm.slane %v6477_v48, 0 }
 0xfc6   : > { %v4495_v39 = vadd.f32 %v4487_v27, %v4446_v61  ;;  %v11209_v13 = vperm.slane %v5274_v42, 1  ;;  %v11243_v50 = vperm.slane %v5274_v42, 0  ;;  %v4496_v11 = vadd.f32 %v4488_v31, %v4447_v60  ;;  %v6674_v61 = vld [vmem:[#allocation2 + $0x20] sm:$0xff]  ;;  %v11296_v31 = vld [vmem:[#allocation4 + $0x1b0] sm:$0xff] }
 0xfc7   : > { %v4507_v27 = vmul.f32 %v6674_v61, %v12570_v46  ;;  %13164 = vst [vmem:[#allocation63_spill] sm:$0xff] %v11256_v19  ;;  %6081 = vmatpush.msra.mxu3 %v11296_v31 }
 0xfc8   : > { %v11194_v12 = vadd.f32 %v4506_v5, %v4495_v39  ;;  %13158 = vst [vmem:[#allocation46_spill] sm:$0xff] %v11209_v13  ;;  %v5281_v21 = vmul.f32 %v11209_v13, %v5263_v38  ;;  %v11240_v40 = vmul.f32 %v11209_v13, %v11226_v29  ;;  %v13165_v39 = vld [vmem:[#allocation212_spill] sm:$0xff]  ;;  %v11262_v42 = vmul.f32 %v11243_v50, %v5262_v62  ;;  %v11292_v38 = vld [vmem:[#allocation4 + $0x1c8] sm:$0xff] }
 0xfc9   : > { %13162 = vst [vmem:[#allocation44_spill] sm:$0xff] %v11243_v50  ;;  %v4049_v5 = vsel %vm1345_vm8, %v11152_v63, %v13165_v39  ;;  %v11282_v63 = vmul.f32 %v11243_v50, %v11249_v53  ;;  %v4511_v61 = vadd.f32 %v4507_v27, %v4496_v11  ;;  %v4203_v39 = vadd.f32 %v4195_v58, %v11160_v33  ;;  %v11320_v11 = vld [vmem:[#allocation4 + $0xe8] sm:$0xff] }
 0xfca   : > { %13161 = vst [vmem:[#allocation64_spill] sm:$0xff] %v11240_v40  ;;  %v5295_v2 = vrot.slane %v5281_v21, 6  ;;  %v12568_v10 = vrot.slane %v11240_v40, 6  ;;  %v4057_v60 = vadd.f32 %v4049_v5, %v11114_v14  ;;  %6126 = vmatpush.msra.mxu1 %v11292_v38  ;;  %v5292_v27 = vrot.slane %v11262_v42, 6  ;;  %6101 = vmatpush.msra.mxu0 %v11320_v11 }
 0xfcb   : > { %13167 = vst [vmem:[#allocation34_spill] sm:$0xff] %v11282_v63  ;;  %v13172_v50 = vrot.slane %v11282_v63, 6  ;;  %v11404_v63 = vld [vmem:[#allocation4 + $0xa0] sm:$0xff]  ;;  %v13176_v13 = vperm.slane %v11183_v3, 1 }
 0xfcc   : > { %v11196_v47 = vpop.permute.xlu0 %4287  ;;  %6127 = vmatpush.msra.mxu1 %v11302_v55 }
 0xfcd   : > { %v11207_v4 = vpop.permute.xlu2 %4481  ;;  %v4593_v43 = vpop.permute.xlu1 %4592  ;;  %v4294_v14 = vsel %vm1216_vm14, %v11196_v47, %v11169_v6  ;;  %v11330_v6 = vld [vmem:[#allocation4 + $0x1a0] sm:$0xff] }
 0xfce   : > { %6082 = vmatpush.msra.mxu3 %v11330_v6 }
 0xfd4   : > { %v11200_v52 = vpop.permute.xlu0 %4383 }
 0xfd5   : > { %v11251_v0 = vpop.permute.xlu2 %4485 }
 0xfdc   : > { %v4542_v34 = vpop.permute.xlu0 %4541 }
 0xfdd   : > { %v4551_v21 = vsel %vm1423_vm9, %v11178_v32, %v4542_v34  ;;  %v4552_v48 = vsel %vm1423_vm9, %v4542_v34, %v4544_v1  ;;  %v11304_v32 = vld [vmem:[#allocation4 + $0xe0] sm:$0xff]  ;;  %v11309_v1 = vsel %vm1373_vm0, %v5295_v2, %v12568_v10  ;;  %v11312_v34 = vmul.f32 %v11256_v19, %v5262_v62  ;;  %v11332_v10 = vld [vmem:[#allocation4 + $0x1a8] sm:$0xff] }
 0xfde   : > { %v11325_v2 = vmul.f32 %v11256_v19, %v11249_v53  ;;  %v4204_v62 = vadd.f32 %v4196_v54, %v4057_v60  ;;  %v4559_v5 = vadd.f32 %v4551_v21, %v11194_v12  ;;  %v4560_v33 = vadd.f32 %v4552_v48, %v4511_v61  ;;  %6055 = vmatpush.msra.mxu2 %v11304_v32  ;;  %v11345_v48 = vld [vmem:[#allocation4 + $0xd8] sm:$0xff]  ;;  %v11347_v60 = vld [vmem:[#allocation4 + $0xc0] sm:$0xff]  ;;  %v11349_v61 = vpop.permute.xlu1 %4547  ;;  %v11386_v19 = vld [vmem:[#allocation4 + $0x188] sm:$0xff] }
 0xfdf   : > { %v4293_v54 = vsel %vm1216_vm14, %v11147_v25, %v11196_v47  ;;  %v11357_v25 = vld [vmem:[#allocation4 + $0x190] sm:$0xff]  ;;  %v11359_v47 = vld [vmem:[#allocation4 + $0x198] sm:$0xff]  ;;  %6128 = vmatpush.msra.mxu1 %v11332_v10  ;;  %6102 = vmatpush.msra.mxu0 %v11345_v48  ;;  %13171 = vst [vmem:[#allocation30_spill] sm:$0xff] %v11386_v19 }
 0xfe0   : > { %13168 = vst [vmem:[#allocation58_spill] sm:$0xff] %v11325_v2  ;;  %v4302_v46 = vadd.f32 %v4294_v14, %v4204_v62  ;;  %6056 = vmatpush.msra.mxu2 %v11334_v30  ;;  %v4391_v14 = vsel %vm3080_vm5, %v11200_v52, %v11174_v49  ;;  %v11372_v62 = vld [vmem:[#allocation4 + $0xc8] sm:$0xff]  ;;  %v11384_v52 = vld [vmem:[#allocation4 + $0x180] sm:$0xff]  ;;  %6083 = vmatpush.msra.mxu3 %v11357_v25  ;;  %v13175_v15 = vrot.slane %v11325_v2, 7 }
 0xfe1   : > { %6129 = vmatpush.msra.mxu1 %v11359_v47  ;;  %6103 = vmatpush.msra.mxu0 %v11372_v62  ;;  %v11474_v2 = vld [vmem:[#allocation4 + $0x148] sm:$0xff] }
 0xfe2   : > { %6057 = vmatpush.msra.mxu2 %v11347_v60  ;;  %6084 = vmatpush.msra.mxu3 %v11384_v52  ;;  %13188 = vst [vmem:[#allocation69_spill] sm:$0xff] %v11474_v2 }
 0xfe3   : > { %6130 = vmatpush.msra.mxu1 %v11386_v19  ;;  %v4509_v19 = vmul.f32 %v6675_v56, %v13176_v13  ;;  %v11446_v13 = vld [vmem:[#allocation4 + $0x98] sm:$0xff]  ;;  %v11448_v56 = vld [vmem:[#allocation4 + $0x80] sm:$0xff] }
 0xfe4   : > { %v11245_v17 = vpop.permute.xlu0 %4434  ;;  %13180 = vst [vmem:[#allocation65_spill] sm:$0xff] %v11446_v13 }
 0xfe5   : > { %13181 = vst [vmem:[#allocation214_spill] sm:$0xff] %v11448_v56 }
 0xfec   : > { %v4591_v58 = vpop.permute.xlu0 %4590 }
 0xfed   : > { %v4600_v12 = vsel %vm1345_vm8, %v11198_v9, %v4591_v58  ;;  %v4601_v21 = vsel %vm1345_vm8, %v4591_v58, %v4593_v43  ;;  %v5332_v9 = vrot.slane %v11274_v35, 7  ;;  %v11365_v43 = vld [vmem:[%s13157_s17 + $0x2] ss:$8 sm:$0x3]  ;;  %v5329_v35 = vrot.slane %v11312_v34, 7  ;;  %v11402_v58 = vld [vmem:[#allocation4 + $0xb8] sm:$0xff] }
 0xfee   : > { %v11351_v42 = vadd.f32 %v4600_v12, %v4559_v5  ;;  %v11353_v20 = vadd.f32 %v4601_v21, %v4560_v33  ;;  %13170 = vst [vmem:[#allocation43_spill] sm:$0xff] %v11365_v43  ;;  %v11374_v5 = vld [vmem:[#allocation4 + $0xb0] sm:$0xff]  ;;  %v11379_v12 = vpop.permute.xlu2 %4549  ;;  %v4301_v21 = vadd.f32 %v4293_v54, %v4203_v39  ;;  %v5294_v33 = vsel %vm1373_vm0, %v5292_v27, %v13172_v50 }
 0xfef   : > { %v4392_v34 = vsel %vm3080_vm5, %v11174_v49, %v11187_v26  ;;  %v4440_v39 = vsel %vm1401_vm4, %v11192_v7, %v11245_v17  ;;  %v4441_v54 = vsel %vm1401_vm4, %v11245_v17, %v11202_v22  ;;  %6058 = vmatpush.msra.mxu2 %v11374_v5  ;;  %v11408_v49 = vld [vmem:[#allocation4 + $0x170] sm:$0xff]  ;;  %v11410_v26 = vld [vmem:[#allocation4 + $0x178] sm:$0xff]  ;;  %v5307_v7 = vadd.f32 %v11309_v1, %v11052_v36  ;;  %v11417_v17 = vld [vmem:[#allocation4 + $0xa8] sm:$0xff] }
 0xff0   : > { %13169 = vst [vmem:[#allocation211_spill] sm:$0xff] %v11351_v42  ;;  %v4399_v50 = vadd.f32 %v4391_v14, %v4301_v21  ;;  %v4400_v27 = vadd.f32 %v4392_v34, %v4302_v46  ;;  %v11419_v46 = vld [vmem:[#allocation4 + $0x90] sm:$0xff]  ;;  %v13174_v14 = vrot.slane %v11278_v51, 7  ;;  %v5306_v34 = vadd.f32 %v5294_v33, %v11086_v18  ;;  %6104 = vmatpush.msra.mxu0 %v11402_v58  ;;  %v11435_v18 = vld [vmem:[#allocation4 + $0x168] sm:$0xff] }
 0xff1   : > { %5258 = vst [vmem:[#allocation2 + $0x8] sm:$0xff] %v11351_v42  ;;  %v5331_v36 = vsel %vm1694_vm1, %v5329_v35, %v13175_v15  ;;  %v12583_v1 = vperm.slane %v11365_v43, 0  ;;  %6059 = vmatpush.msra.mxu2 %v11404_v63  ;;  %v13179_v35 = vperm.slane %v11183_v3, 0  ;;  %6085 = vmatpush.msra.mxu3 %v11408_v49  ;;  %v11476_v51 = vld [vmem:[#allocation4 + $0x130] sm:$0xff] }
 0xff2   : > { %13173 = vst [vmem:[#allocation61_spill] sm:$0xff] %v11419_v46  ;;  %v5334_v21 = vsel %vm1694_vm1, %v5332_v9, %v13174_v14  ;;  %v4448_v22 = vadd.f32 %v4440_v39, %v4399_v50  ;;  %v4449_v40 = vadd.f32 %v4441_v54, %v4400_v27  ;;  %v11433_v9 = vld [vmem:[#allocation4 + $0x160] sm:$0xff]  ;;  %6131 = vmatpush.msra.mxu1 %v11410_v26  ;;  %v11463_v27 = vld [vmem:[#allocation4 + $0x88] sm:$0xff] }
 0xff3   : > { %13177 = vst [vmem:[#allocation77_spill] sm:$0xff] %v11433_v9  ;;  %v4508_v39 = vmul.f32 %v13179_v35, %v13135_v28  ;;  %6105 = vmatpush.msra.mxu0 %v11417_v17  ;;  %6060 = vmatpush.msra.mxu2 %v11419_v46  ;;  %v13184_v28 = vperm.slane %v11365_v43, 1  ;;  %v5343_v14 = vadd.f32 %v5331_v36, %v5306_v34  ;;  %v11492_v34 = vld [vmem:[%s13157_s17 + $0x3] ss:$8 sm:$0x3] }
 0xff4   : > { %v4484_v42 = vpop.permute.xlu0 %4483  ;;  %13178 = vst [vmem:[#allocation60_spill] sm:$0xff] %v11435_v18  ;;  %6086 = vmatpush.msra.mxu3 %v11433_v9  ;;  %6132 = vmatpush.msra.mxu1 %v11435_v18  ;;  %v11478_v18 = vld [vmem:[#allocation4 + $0x78] sm:$0xff] }
 0xff5   : > { %v4489_v15 = vsel %vm1473_vm15, %v11207_v4, %v4484_v42  ;;  %v4490_v33 = vsel %vm1473_vm15, %v4484_v42, %v11251_v0  ;;  %v11452_v4 = vld [vmem:[#allocation4 + $0x150] sm:$0xff]  ;;  %v11454_v0 = vld [vmem:[#allocation4 + $0x158] sm:$0xff]  ;;  %v5355_v3 = vmul.f32 %v13184_v28, %v11226_v29  ;;  %v11461_v42 = vld [vmem:[#allocation4 + $0x140] sm:$0xff]  ;;  %13186 = vst [vmem:[#allocation48_spill] sm:$0xff] %v11463_v27  ;;  %6106 = vmatpush.msra.mxu0 %v11446_v13 }
 0xff6   : > { %v4497_v54 = vadd.f32 %v4489_v15, %v4448_v22  ;;  %v4498_v50 = vadd.f32 %v4490_v33, %v4449_v40  ;;  %13182 = vst [vmem:[#allocation72_spill] sm:$0xff] %v11452_v4  ;;  %v11465_v40 = vld [vmem:[#allocation4 + $0x70] sm:$0xff]  ;;  %v5344_v22 = vadd.f32 %v5334_v21, %v5307_v7  ;;  %v5354_v15 = vmul.f32 %v12583_v1, %v11249_v53  ;;  %v11470_v33 = vpop.permute.xlu1 %4596  ;;  %v11487_v21 = vld [vmem:[#allocation4 + $0x60] sm:$0xff]  ;;  %v4599_v36 = vpop.permute.xlu2 %4598 }
 0xff7   : > { %13183 = vst [vmem:[#allocation67_spill] sm:$0xff] %v11454_v0  ;;  %6061 = vmatpush.msra.mxu2 %v11448_v56  ;;  %v4554_v7 = vsel %vm1423_vm9, %v11349_v61, %v11379_v12  ;;  %6087 = vmatpush.msra.mxu3 %v11452_v4  ;;  %v11496_v12 = vld [vmem:[#allocation4 + $0x120] sm:$0xff]  ;;  %v4603_v43 = vsel %vm1345_vm8, %v11470_v33, %v4599_v36  ;;  %v11580_v9 = vld [vmem:[%s13157_s17 + $0x10] ss:$8 sm:$0x3] }
 0xff8   : > { %13185 = vst [vmem:[#allocation42_spill] sm:$0xff] %v11461_v42  ;;  %v4513_v35 = vadd.f32 %v4509_v19, %v4498_v50  ;;  %v4512_v28 = vadd.f32 %v4508_v39, %v4497_v54  ;;  %6133 = vmatpush.msra.mxu1 %v11454_v0  ;;  %v11485_v19 = vld [vmem:[#allocation4 + $0x138] sm:$0xff]  ;;  %6107 = vmatpush.msra.mxu0 %v11463_v27  ;;  %v11498_v54 = vld [vmem:[#allocation4 + $0x68] sm:$0xff]  ;;  %v11501_v50 = vperm.slane %v11492_v34, 1 }
 0xff9   : > { %13187 = vst [vmem:[#allocation215_spill] sm:$0xff] %v11465_v40  ;;  %6062 = vmatpush.msra.mxu2 %v11465_v40  ;;  %v11506_v1 = vld [vmem:[%s13157_s17 + $0x4] ss:$8 sm:$0x3]  ;;  %6088 = vmatpush.msra.mxu3 %v11461_v42  ;;  %v5359_v40 = vadd.f32 %v5355_v3, %v5344_v22  ;;  %v11524_v4 = vadd.f32 %v5354_v15, %v5343_v14  ;;  %v11532_v3 = vld [vmem:[#allocation4 + $0x58] sm:$0xff] }
 0xffa   : > { %13189 = vst [vmem:[#allocation49_spill] sm:$0xff] %v11476_v51  ;;  %v4562_v39 = vadd.f32 %v4554_v7, %v4513_v35  ;;  %6134 = vmatpush.msra.mxu1 %v11474_v2  ;;  %v11512_v35 = vld [vmem:[#allocation4 + $0x128] sm:$0xff]  ;;  %v11514_v7 = vld [vmem:[#allocation4 + $0x50] sm:$0xff]  ;;  %v11517_v0 = vperm.slane %v11506_v1, 1  ;;  %6108 = vmatpush.msra.mxu0 %v11478_v18  ;;  %v5370_v22 = vmul.f32 %v11501_v50, %v11226_v29 }
 0xffb   : > { %13190 = vst [vmem:[#allocation80_spill] sm:$0xff] %v11478_v18  ;;  %v11522_v27 = vld [vmem:[%s13157_s17 + $0x5] ss:$8 sm:$0x3]  ;;  %6063 = vmatpush.msra.mxu2 %v11487_v21  ;;  %v11530_v2 = vld [vmem:[#allocation4 + $0x110] sm:$0xff]  ;;  %v11538_v56 = vmul.f32 %v11501_v50, %v11353_v20  ;;  %6089 = vmatpush.msra.mxu3 %v11476_v51 }
 0xffc   : > { %13191 = vst [vmem:[#allocation47_spill] sm:$0xff] %v11485_v19  ;;  %v11526_v36 = vadd.f32 %v4603_v43, %v4562_v39  ;;  %v4546_v42 = vpop.permute.xlu0 %4545  ;;  %v11541_v14 = vperm.slane %v11522_v27, 1  ;;  %v11546_v43 = vld [vmem:[%s13157_s17 + $0x6] ss:$8 sm:$0x3]  ;;  %6135 = vmatpush.msra.mxu1 %v11485_v19  ;;  %v11552_v39 = vld [vmem:[#allocation4 + $0x118] sm:$0xff]  ;;  %v11560_v18 = vmul.f32 %v11517_v0, %v11353_v20  ;;  %6109 = vmatpush.msra.mxu0 %v11498_v54 }
 0xffd   : > { %13192 = vst [vmem:[#allocation73_spill] sm:$0xff] %v11487_v21  ;;  %v4553_v15 = vsel %vm1423_vm9, %v4546_v42, %v11349_v61  ;;  %v11554_v21 = vld [vmem:[#allocation4 + $0x40] sm:$0xff]  ;;  %6064 = vmatpush.msra.mxu2 %v11514_v7  ;;  %v5384_v51 = vrot.slane %v5370_v22, 1  ;;  %6090 = vmatpush.msra.mxu3 %v11496_v12 }
 0xffe   : > { %13193 = vst [vmem:[#allocation45_spill] sm:$0xff] %v11496_v12  ;;  %v11568_v61 = vld [vmem:[%s13157_s17 + $0x7] ss:$8 sm:$0x3]  ;;  %v4561_v42 = vadd.f32 %v4553_v15, %v4512_v28  ;;  %6136 = vmatpush.msra.mxu1 %v11512_v35  ;;  %v11589_v22 = vmul.f32 %v11541_v14, %v11353_v20  ;;  %6110 = vmatpush.msra.mxu0 %v11532_v3 }
 0xfff   : > { %13194 = vst [vmem:[#allocation76_spill] sm:$0xff] %v11498_v54  ;;  %v11572_v19 = vld [vmem:[#allocation4 + $0x100] sm:$0xff]  ;;  %v11584_v28 = vld [vmem:[#allocation4 + $0x48] sm:$0xff]  ;;  %v11596_v54 = vld [vmem:[%s13157_s17 + $0x11] ss:$8 sm:$0x3]  ;;  %6065 = vmatpush.msra.mxu2 %v11554_v21  ;;  %6091 = vmatpush.msra.mxu3 %v11530_v2 }
0x1000   : > { %13195 = vst [vmem:[#allocation59_spill] sm:$0xff] %v11501_v50  ;;  %v5407_v50 = vmul.f32 %v11517_v0, %v11226_v29  ;;  %v11610_v46 = vperm.slane %v11568_v61, 1  ;;  %6137 = vmatpush.msra.mxu1 %v11552_v39  ;;  %6111 = vmatpush.msra.mxu0 %v11584_v28 }
0x1001   : > { %13196 = vst [vmem:[#allocation75_spill] sm:$0xff] %v11512_v35  ;;  %v11600_v35 = vld [vmem:[#allocation4 + $0x108] sm:$0xff]  ;;  %6092 = vmatpush.msra.mxu3 %v11572_v19 }
0x1002   : > { %13197 = vst [vmem:[#allocation81_spill] sm:$0xff] %v11514_v7  ;;  %v5421_v15 = vrot.slane %v5407_v50, 2  ;;  %v13211_v50 = vrot.slane %v11538_v56, 1  ;;  %6138 = vmatpush.msra.mxu1 %v11600_v35 }
0x1003   : > { %13198 = vst [vmem:[#allocation31_spill] sm:$0xff] %v11517_v0  ;;  %v5444_v0 = vmul.f32 %v11541_v14, %v11226_v29  ;;  %6177 = vmatpush.msrb.mxu3 %v11211_v59  ;;  %v11677_v59 = vld [vmem:[%s13157_s17 + $0x16] ss:$8 sm:$0x3] }
0x1004   : > { %13199 = vst [vmem:[#allocation79_spill] sm:$0xff] %v11524_v4  ;;  %v11563_v4 = vperm.slane %v11546_v43, 1  ;;  %v5386_v7 = vsel %vm2223_vm2, %v5384_v51, %v13211_v50  ;;  %v13214_v51 = vrot.slane %v11560_v18, 2  ;;  %v12616_v50 = vrot.slane %v11589_v22, 3  ;;  %6223 = vmatpush.msrb.mxu1 %v11213_v8 }
0x1005   : > { %13200 = vst [vmem:[#allocation87_spill] sm:$0xff] %v11530_v2  ;;  %v11629_v2 = vmul.f32 %v11610_v46, %v11353_v20  ;;  %6178 = vmatpush.msrb.mxu3 %v11215_v24 }
0x1006   : > { %13201 = vst [vmem:[#allocation96_spill] sm:$0xff] %v11532_v3  ;;  %v5481_v13 = vmul.f32 %v11563_v4, %v11226_v29  ;;  %v11607_v12 = vmul.f32 %v11563_v4, %v11353_v20  ;;  %v11615_v3 = vld [vmem:[%s13157_s17 + $0x12] ss:$8 sm:$0x3]  ;;  %6224 = vmatpush.msrb.mxu1 %v11224_v23 }
0x1007   : > { %13202 = vst [vmem:[#allocation62_spill] sm:$0xff] %v11538_v56  ;;  %v5396_v56 = vadd.f32 %v5386_v7, %v5359_v40  ;;  %v11632_v40 = vperm.slane %v11580_v9, 1  ;;  %6179 = vmatpush.msrb.mxu3 %v11267_v37 }
0x1008   : > { %13203 = vst [vmem:[#allocation66_spill] sm:$0xff] %v11541_v14  ;;  %v5458_v14 = vrot.slane %v5444_v0, 3  ;;  %v5423_v0 = vsel %vm2541_vm3, %v5421_v15, %v13214_v51  ;;  %v11640_v15 = vperm.slane %v11596_v54, 1  ;;  %6225 = vmatpush.msrb.mxu1 %v11269_v57 }
0x1009   : > { %13204 = vst [vmem:[#allocation68_spill] sm:$0xff] %v11554_v21  ;;  %v5433_v7 = vadd.f32 %v5423_v0, %v5396_v56  ;;  %v11646_v21 = vld [vmem:[%s13157_s17 + $0x13] ss:$8 sm:$0x3]  ;;  %v12619_v0 = vrot.slane %v11629_v2, 5  ;;  %6180 = vmatpush.msrb.mxu3 %v11271_v44  ;;  %v11766_v44 = vld [vmem:[#allocation4 + $0x8] sm:$0xff] }
0x100a   : > { %13205 = vst [vmem:[#allocation74_spill] sm:$0xff] %v11560_v18  ;;  %v4595_v18 = vpop.permute.xlu0 %4594  ;;  %v11709_v24 = vperm.slane %v11646_v21, 1  ;;  %6226 = vmatpush.msrb.mxu1 %v11292_v38 }
0x100b   : > { %13206 = vst [vmem:[#allocation78_spill] sm:$0xff] %v11563_v4  ;;  %v5495_v4 = vrot.slane %v5481_v13, 4  ;;  %v5460_v13 = vsel %vm4843_vm10, %v5458_v14, %v12616_v50  ;;  %v5555_v14 = vmul.f32 %v11632_v40, %v11226_v29  ;;  %v11657_v50 = vld [vmem:[%s13157_s17 + $0x14] ss:$8 sm:$0x3]  ;;  %v4602_v51 = vsel %vm1345_vm8, %v4595_v18, %v11470_v33  ;;  %6181 = vmatpush.msrb.mxu3 %v11296_v31 }
0x100c   : > { %13207 = vst [vmem:[#allocation82_spill] sm:$0xff] %v11568_v61  ;;  %v5518_v61 = vmul.f32 %v11610_v46, %v11226_v29  ;;  %v11679_v8 = vadd.f32 %v4602_v51, %v4561_v42  ;;  %v11712_v23 = vperm.slane %v11657_v50, 1  ;;  %6227 = vmatpush.msrb.mxu1 %v11302_v55 }
0x100d   : > { %13208 = vst [vmem:[#allocation100_spill] sm:$0xff] %v11572_v19  ;;  %v5569_v33 = vrot.slane %v5555_v14, 6  ;;  %v13223_v14 = vperm.slane %v11615_v3, 1  ;;  %6182 = vmatpush.msrb.mxu3 %v11330_v6 }
0x100e   : > { %13209 = vst [vmem:[#allocation93_spill] sm:$0xff] %v11589_v22  ;;  %v5532_v56 = vrot.slane %v5518_v61, 5  ;;  %v11672_v61 = vld [vmem:[%s13157_s17 + $0x15] ss:$8 sm:$0x3]  ;;  %6228 = vmatpush.msrb.mxu1 %v11332_v10 }
0x100f   : > { %13210 = vst [vmem:[#allocation104_spill] sm:$0xff] %v11600_v35  ;;  %v11695_v22 = vld [vmem:[#allocation4 + $0x38] sm:$0xff]  ;;  %6183 = vmatpush.msrb.mxu3 %v11357_v25 }
0x1010   : > { %13212 = vst [vmem:[#allocation99_spill] sm:$0xff] %v11607_v12  ;;  %v5534_v18 = vsel %vm4642_vm7, %v5532_v56, %v12619_v0  ;;  %v5629_v0 = vmul.f32 %v13223_v14, %v11353_v20  ;;  %6112 = vmatpush.msra.mxu0 %v11695_v22  ;;  %6229 = vmatpush.msrb.mxu1 %v11359_v47 }
0x1011   : > { %13213 = vst [vmem:[#allocation90_spill] sm:$0xff] %v11610_v46  ;;  %v13218_v46 = vrot.slane %v11607_v12, 4  ;;  %v5470_v12 = vadd.f32 %v5460_v13, %v5433_v7  ;;  %v11691_v7 = vld [vmem:[%s13157_s17 + $0x17] ss:$8 sm:$0x3]  ;;  %6184 = vmatpush.msrb.mxu3 %v11384_v52 }
0x1012   : > { %13215 = vst [vmem:[#allocation172_spill] sm:$0xff] %v11629_v2  ;;  %v11693_v13 = vld [vmem:[#allocation4 + $0x30] sm:$0xff]  ;;  %v11705_v2 = vld [vmem:[#allocation4 + $0x20] sm:$0xff] }
0x1013   : > { %13216 = vst [vmem:[#allocation168_spill] sm:$0xff] %v11632_v40  ;;  %v5497_v35 = vsel %vm1115_vm13, %v5495_v4, %v13218_v46  ;;  %v11665_v46 = vmul.f32 %v11632_v40, %v11353_v20  ;;  %v5592_v4 = vmul.f32 %v11640_v15, %v11226_v29  ;;  %v11686_v29 = vmul.f32 %v11640_v15, %v11353_v20 }
0x1014   : > { %13217 = vst [vmem:[#allocation154_spill] sm:$0xff] %v11640_v15  ;;  %v5507_v42 = vadd.f32 %v5497_v35, %v5470_v12  ;;  %6066 = vmatpush.msra.mxu2 %v11693_v13  ;;  %v11715_v12 = vperm.slane %v11672_v61, 1  ;;  %v11717_v35 = vld [vmem:[#allocation4 + $0x28] sm:$0xff]  ;;  %v11725_v15 = vperm.slane %v11677_v59, 1  ;;  %v11728_v40 = vperm.slane %v11691_v7, 1  ;;  %6185 = vmatpush.msrb.mxu3 %v11408_v49 }
0x1015   : > { %13219 = vst [vmem:[#allocation173_spill] sm:$0xff] %v11665_v46  ;;  %v12624_v51 = vrot.slane %v11665_v46, 6  ;;  %v5606_v56 = vrot.slane %v5592_v4, 7  ;;  %6113 = vmatpush.msra.mxu0 %v11717_v35  ;;  %v13231_v37 = vrot.slane %v11686_v29, 7  ;;  %v11747_v46 = vld [vmem:[#allocation4] sm:$0xff] }
0x1016   : > { %13220 = vst [vmem:[#allocation108_spill] sm:$0xff] %v11686_v29  ;;  %v5544_v4 = vadd.f32 %v5534_v18, %v5507_v42  ;;  %6067 = vmatpush.msra.mxu2 %v11705_v2  ;;  %v5644_v18 = vmul.f32 %v11709_v24, %v11353_v20  ;;  %v5681_v42 = vmul.f32 %v11712_v23, %v11353_v20  ;;  %v13239_v49 = vld [vmem:[#allocation77_spill] sm:$0xff] }
0x1017   : > { %13221 = vst [vmem:[#allocation112_spill] sm:$0xff] %v11691_v7  ;;  %v5571_v14 = vsel %vm1373_vm0, %v5569_v33, %v12624_v51  ;;  %v5608_v57 = vsel %vm1694_vm1, %v5606_v56, %v13231_v37  ;;  %v11741_v33 = vmul.f32 %v11709_v24, %v11526_v36  ;;  %v11745_v51 = vld [vmem:[#allocation4 + $0x18] sm:$0xff]  ;;  %v11752_v56 = vmul.f32 %v11712_v23, %v11526_v36 }
0x1018   : > { %13222 = vst [vmem:[#allocation107_spill] sm:$0xff] %v11695_v22  ;;  %v11732_v22 = vld [vmem:[#allocation4 + $0x10] sm:$0xff]  ;;  %v5718_v37 = vmul.f32 %v11715_v12, %v11353_v20  ;;  %v11758_v29 = vmul.f32 %v11715_v12, %v11526_v36  ;;  %6114 = vmatpush.msra.mxu0 %v11745_v51  ;;  %v11792_v38 = vmul.f32 %v11725_v15, %v11526_v36 }
0x1019   : > { %13224 = vst [vmem:[#allocation116_spill] sm:$0xff] %v11705_v2  ;;  %6068 = vmatpush.msra.mxu2 %v11732_v22  ;;  %v5755_v2 = vmul.f32 %v11725_v15, %v11353_v20  ;;  %6186 = vmatpush.msrb.mxu3 %v13239_v49 }
0x101a   : > { %13225 = vst [vmem:[#allocation111_spill] sm:$0xff] %v11709_v24  ;;  %v11763_v24 = vld [vmem:[%s13157_s17 + $0x20] ss:$8 sm:$0x3]  ;;  %v5732_v19 = vrot.slane %v5718_v37, 3  ;;  %6115 = vmatpush.msra.mxu0 %v11766_v44 }
0x101b   : > { %13226 = vst [vmem:[#allocation103_spill] sm:$0xff] %v11712_v23  ;;  %v5695_v23 = vrot.slane %v5681_v42, 2  ;;  %v11783_v42 = vld [vmem:[%s13157_s17 + $0x22] ss:$8 sm:$0x3]  ;;  %6069 = vmatpush.msra.mxu2 %v11747_v46 }
0x101c   : > { %13227 = vst [vmem:[#allocation120_spill] sm:$0xff] %v11715_v12  ;;  %v11774_v12 = vld [vmem:[%s13157_s17 + $0x21] ss:$8 sm:$0x3]  ;;  %6200 = vmatpush.msrb.mxu0 %v11300_v16 }
0x101d   : > { %13228 = vst [vmem:[#allocation124_spill] sm:$0xff] %v11717_v35  ;;  %v5581_v35 = vadd.f32 %v5571_v14, %v5544_v4  ;;  %v5658_v4 = vrot.slane %v5644_v18, 1  ;;  %v12636_v14 = vrot.slane %v11741_v33, 1  ;;  %v12640_v18 = vrot.slane %v11758_v29, 3  ;;  %6154 = vmatpush.msrb.mxu2 %v11294_v41 }
0x101e   : > { %13229 = vst [vmem:[#allocation119_spill] sm:$0xff] %v11725_v15  ;;  %v11799_v37 = vld [vmem:[%s13157_s17 + $0x23] ss:$8 sm:$0x3]  ;;  %v11816_v41 = vperm.slane %v11763_v24, 1  ;;  %6201 = vmatpush.msrb.mxu0 %v11320_v11 }
0x101f   : > { %13230 = vst [vmem:[#allocation128_spill] sm:$0xff] %v11732_v22  ;;  %v5618_v7 = vadd.f32 %v5608_v57, %v5581_v35  ;;  %v12641_v22 = vrot.slane %v11752_v56, 2  ;;  %v5769_v35 = vrot.slane %v5755_v2, 4  ;;  %v5792_v57 = vmul.f32 %v11728_v40, %v11353_v20  ;;  %6155 = vmatpush.msrb.mxu2 %v11304_v32  ;;  %v11844_v11 = vld [vmem:[%s13157_s17 + $0x24] ss:$8 sm:$0x3] }
0x1020   : > { %13232 = vst [vmem:[#allocation123_spill] sm:$0xff] %v11741_v33  ;;  %v5734_v2 = vsel %vm4843_vm10, %v5732_v19, %v12640_v18  ;;  %v12639_v33 = vrot.slane %v11792_v38, 4  ;;  %v11826_v16 = vperm.slane %v11799_v37, 1  ;;  %v5829_v32 = vmul.f32 %v11816_v41, %v11353_v20  ;;  %6202 = vmatpush.msrb.mxu0 %v11345_v48 }
0x1021   : > { %13233 = vst [vmem:[#allocation115_spill] sm:$0xff] %v11745_v51  ;;  %v5660_v51 = vsel %vm2223_vm2, %v5658_v4, %v12636_v14  ;;  %v5633_v31 = vadd.f32 %v5629_v0, %v5618_v7  ;;  %v5697_v4 = vsel %vm2541_vm3, %v5695_v23, %v12641_v22  ;;  %v11811_v14 = vmul.f32 %v11728_v40, %v11526_v36 }
0x1022   : > { %v5806_v15 = vrot.slane %v5792_v57, 5  ;;  %v11819_v0 = vperm.slane %v11774_v12, 1  ;;  %v12642_v23 = vperm.slane %v11783_v42, 1  ;;  %v5771_v57 = vsel %vm1115_vm13, %v5769_v35, %v12639_v33  ;;  %6156 = vmatpush.msrb.mxu2 %v11334_v30  ;;  %6203 = vmatpush.msrb.mxu0 %v11372_v62 }
0x1023   : > { %v5670_v19 = vadd.f32 %v5660_v51, %v5633_v31  ;;  %v12646_v7 = vrot.slane %v11811_v14, 5  ;;  %v11837_v55 = vmul.f32 %v11816_v41, %v11526_v36  ;;  %v5843_v18 = vrot.slane %v5829_v32, 6 }
0x1024   : > { %v5866_v51 = vmul.f32 %v11819_v0, %v11353_v20  ;;  %v11852_v31 = vmul.f32 %v11819_v0, %v11526_v36  ;;  %v11857_v33 = vmul.f32 %v12642_v23, %v11526_v36  ;;  %6157 = vmatpush.msrb.mxu2 %v11347_v60  ;;  %v11868_v23 = vmul.f32 %v11826_v16, %v11057_v45 }
0x1025   : > { %v5707_v6 = vadd.f32 %v5697_v4, %v5670_v19  ;;  %v5808_v35 = vsel %vm4642_vm7, %v5806_v15, %v12646_v7  ;;  %v12645_v22 = vrot.slane %v11837_v55, 6  ;;  %v5918_v4 = vmul.f32 %v11826_v16, %v11526_v36  ;;  %6204 = vmatpush.msrb.mxu0 %v11402_v58 }
0x1026   : > { %v5880_v30 = vrot.slane %v5866_v51, 7  ;;  %v12643_v19 = vrot.slane %v11852_v31, 7  ;;  %13234 = vst [vmem:[#allocation132_spill] sm:$0xff] %v11868_v23  ;;  %v11871_v48 = vperm.slane %v11844_v11, 1  ;;  %v11879_v60 = vperm.slane %v11492_v34, 0  ;;  %6158 = vmatpush.msrb.mxu2 %v11374_v5  ;;  %v13236_v5 = vld [vmem:[#allocation211_spill] sm:$0xff] }
0x1027   : > { %v5744_v15 = vadd.f32 %v5734_v2, %v5707_v6  ;;  %v5845_v10 = vsel %vm1373_vm0, %v5843_v18, %v12645_v22  ;;  %v5932_v32 = vrot.slane %v5918_v4, 1  ;;  %v11882_v2 = vperm.slane %v11506_v1, 0  ;;  %v13237_v6 = vld [vmem:[#allocation30_spill] sm:$0xff]  ;;  %6205 = vmatpush.msrb.mxu0 %v11417_v17  ;;  %v13247_v22 = vld [vmem:[#allocation67_spill] sm:$0xff] }
0x1028   : > { %v5882_v25 = vsel %vm1694_vm1, %v5880_v30, %v12643_v19  ;;  %v12644_v62 = vrot.slane %v11868_v23, 1  ;;  %v5955_v18 = vmul.f32 %v11871_v48, %v11526_v36  ;;  %v11896_v1 = vmul.f32 %v11871_v48, %v11057_v45  ;;  %6230 = vmatpush.msrb.mxu1 %v13237_v6  ;;  %6159 = vmatpush.msrb.mxu2 %v11404_v63  ;;  %v13238_v63 = vld [vmem:[#allocation61_spill] sm:$0xff]  ;;  %v13256_v23 = vld [vmem:[#allocation47_spill] sm:$0xff] }
0x1029   : > { %v5781_v51 = vadd.f32 %v5771_v57, %v5744_v15  ;;  %v5369_v47 = vmul.f32 %v11879_v60, %v11249_v53  ;;  %v11902_v34 = vmul.f32 %v11879_v60, %v13236_v5  ;;  %v5406_v57 = vmul.f32 %v11882_v2, %v11249_v53 }
0x102a   : > { %13235 = vst [vmem:[#allocation84_spill] sm:$0xff] %v11896_v1  ;;  %v5934_v58 = vsel %vm2223_vm2, %v5932_v32, %v12644_v62  ;;  %v11912_v45 = vmul.f32 %v11882_v2, %v13236_v5  ;;  %v5969_v52 = vrot.slane %v5955_v18, 2  ;;  %6231 = vmatpush.msrb.mxu1 %v11410_v26  ;;  %v11924_v6 = vperm.slane %v11546_v43, 0  ;;  %6160 = vmatpush.msrb.mxu2 %v13238_v63  ;;  %v13240_v26 = vld [vmem:[#allocation82_spill] sm:$0xff]  ;;  %v13242_v43 = vld [vmem:[#allocation60_spill] sm:$0xff] }
0x102b   : > { %v5818_v30 = vadd.f32 %v5808_v35, %v5781_v51  ;;  %v5381_v4 = vrot.slane %v5369_v47, 1  ;;  %v12648_v15 = vrot.slane %v11902_v34, 1  ;;  %v5418_v19 = vrot.slane %v5406_v57, 2  ;;  %v13244_v62 = vld [vmem:[#allocation214_spill] sm:$0xff] }
0x102c   : > { %v12647_v32 = vrot.slane %v11912_v45, 2  ;;  %v11921_v51 = vperm.slane %v11522_v27, 0  ;;  %v12649_v18 = vrot.slane %v11896_v1, 2  ;;  %v11936_v47 = vperm.slane %v11580_v9, 0  ;;  %v13241_v27 = vld [vmem:[#allocation65_spill] sm:$0xff]  ;;  %6232 = vmatpush.msrb.mxu1 %v13242_v43  ;;  %6161 = vmatpush.msrb.mxu2 %v13244_v62  ;;  %v13255_v1 = vld [vmem:[#allocation76_spill] sm:$0xff] }
0x102d   : > { %v5855_v35 = vadd.f32 %v5845_v10, %v5818_v30  ;;  %v5383_v17 = vsel %vm2223_vm2, %v5381_v4, %v12648_v15  ;;  %v11933_v10 = vperm.slane %v13240_v26, 0  ;;  %6206 = vmatpush.msrb.mxu0 %v13241_v27  ;;  %v13243_v30 = vld [vmem:[#allocation79_spill] sm:$0xff]  ;;  %v5480_v26 = vmul.f32 %v11924_v6, %v11249_v53 }
0x102e   : > { %v5395_v63 = vadd.f32 %v5383_v17, %v13243_v30  ;;  %v5420_v49 = vsel %vm2541_vm3, %v5418_v19, %v12647_v32  ;;  %v5443_v4 = vmul.f32 %v11921_v51, %v11249_v53  ;;  %v11949_v9 = vmul.f32 %v11921_v51, %v13236_v5  ;;  %v13245_v19 = vld [vmem:[#allocation72_spill] sm:$0xff]  ;;  %6233 = vmatpush.msrb.mxu1 %v13247_v22 }
0x102f   : > { %v5892_v57 = vadd.f32 %v5882_v25, %v5855_v35  ;;  %v11955_v25 = vmul.f32 %v11924_v6, %v13236_v5  ;;  %v5517_v35 = vmul.f32 %v11933_v10, %v11249_v53  ;;  %6187 = vmatpush.msrb.mxu3 %v13245_v19  ;;  %v11963_v43 = vmul.f32 %v11933_v10, %v13236_v5  ;;  %v13246_v30 = vld [vmem:[#allocation48_spill] sm:$0xff] }
0x1030   : > { %v5432_v27 = vadd.f32 %v5420_v49, %v5395_v63  ;;  %v5455_v62 = vrot.slane %v5443_v4, 3  ;;  %6207 = vmatpush.msrb.mxu0 %v13246_v30  ;;  %v5971_v7 = vsel %vm2541_vm3, %v5969_v52, %v12649_v18  ;;  %v12657_v32 = vrot.slane %v11949_v9, 3  ;;  %v13250_v4 = vld [vmem:[#allocation80_spill] sm:$0xff]  ;;  %v13251_v52 = vld [vmem:[#allocation69_spill] sm:$0xff] }
0x1031   : > { %v5907_v17 = vadd.f32 %v11857_v33, %v5892_v57  ;;  %v5492_v15 = vrot.slane %v5480_v26, 4  ;;  %v13248_v33 = vld [vmem:[#allocation215_spill] sm:$0xff]  ;;  %v13249_v57 = vld [vmem:[#allocation42_spill] sm:$0xff]  ;;  %v5554_v49 = vmul.f32 %v11936_v47, %v11249_v53  ;;  %v11978_v22 = vmul.f32 %v11936_v47, %v13236_v5  ;;  %6234 = vmatpush.msrb.mxu1 %v13251_v52 }
0x1032   : > { %6162 = vmatpush.msrb.mxu2 %v13248_v33  ;;  %6188 = vmatpush.msrb.mxu3 %v13249_v57  ;;  %v5457_v26 = vsel %vm4843_vm10, %v5455_v62, %v12657_v32  ;;  %v5529_v30 = vrot.slane %v5517_v35, 5  ;;  %v12656_v33 = vrot.slane %v11963_v43, 5  ;;  %v13253_v57 = vld [vmem:[#allocation49_spill] sm:$0xff] }
0x1033   : > { %v5944_v63 = vadd.f32 %v5934_v58, %v5907_v17  ;;  %6208 = vmatpush.msrb.mxu0 %v13250_v4  ;;  %v11987_v58 = vperm.slane %v11596_v54, 0  ;;  %v13252_v17 = vld [vmem:[#allocation73_spill] sm:$0xff]  ;;  %v5469_v19 = vadd.f32 %v5457_v26, %v5432_v27  ;;  %v13254_v4 = vrot.slane %v11955_v25, 4  ;;  %6235 = vmatpush.msrb.mxu1 %v13256_v23 }
0x1034   : > { %6163 = vmatpush.msrb.mxu2 %v13252_v17  ;;  %6189 = vmatpush.msrb.mxu3 %v13253_v57  ;;  %v5566_v35 = vrot.slane %v5554_v49, 6  ;;  %v12655_v62 = vrot.slane %v11978_v22, 6  ;;  %v13258_v27 = vld [vmem:[#allocation45_spill] sm:$0xff]  ;;  %v12009_v23 = vperm.slane %v11657_v50, 0  ;;  %v12652_v26 = vperm.slane %v11615_v3, 0  ;;  %v13259_v57 = vld [vmem:[#allocation96_spill] sm:$0xff] }
0x1035   : > { %v5981_v18 = vadd.f32 %v5971_v7, %v5944_v63  ;;  %v5494_v52 = vsel %vm1115_vm13, %v5492_v15, %v13254_v4  ;;  %6209 = vmatpush.msrb.mxu0 %v13255_v1  ;;  %v5591_v54 = vmul.f32 %v11987_v58, %v11249_v53  ;;  %v12001_v17 = vmul.f32 %v11987_v58, %v13236_v5  ;;  %v13257_v7 = vld [vmem:[#allocation81_spill] sm:$0xff]  ;;  %v13260_v4 = vld [vmem:[#allocation75_spill] sm:$0xff] }
0x1036   : > { %6164 = vmatpush.msrb.mxu2 %v13257_v7  ;;  %6190 = vmatpush.msrb.mxu3 %v13258_v27  ;;  %v5506_v15 = vadd.f32 %v5494_v52, %v5469_v19  ;;  %v12006_v1 = vperm.slane %v11646_v21, 0  ;;  %v5531_v53 = vsel %vm4642_vm7, %v5529_v30, %v12656_v33  ;;  %v12025_v19 = vperm.slane %v11672_v61, 0  ;;  %v13262_v30 = vld [vmem:[#allocation68_spill] sm:$0xff]  ;;  %v13264_v7 = vld [vmem:[#allocation87_spill] sm:$0xff] }
0x1037   : > { %6093 = vmatmul.f32.vlgmr.msra.gmra.mxu3 %v5981_v18  ;;  %6139 = vmatmul.f32.vlgmr.msra.gmra.mxu1 %v5981_v18  ;;  %v5603_v63 = vrot.slane %v5591_v54, 7  ;;  %v12653_v49 = vrot.slane %v12001_v17, 7  ;;  %v5568_v52 = vsel %vm1373_vm0, %v5566_v35, %v12655_v62  ;;  %v12033_v54 = vmul.f32 %v12009_v23, %v11679_v8  ;;  %v13279_v33 = vld [vmem:[#allocation115_spill] sm:$0xff] }
0x1038   : > { %6210 = vmatpush.msrb.mxu0 %v13259_v57  ;;  %6236 = vmatpush.msrb.mxu1 %v13260_v4  ;;  %v5543_v18 = vadd.f32 %v5531_v53, %v5506_v15  ;;  %v5643_v21 = vmul.f32 %v12006_v1, %v13236_v5  ;;  %v12022_v50 = vmul.f32 %v12006_v1, %v11679_v8  ;;  %v12040_v61 = vperm.slane %v11677_v59, 0  ;;  %v13266_v59 = vld [vmem:[#allocation100_spill] sm:$0xff] }
0x1039   : > { %6165 = vmatpush.msrb.mxu2 %v13262_v30  ;;  %13263 = vst [vmem:[#allocation136_spill] sm:$0xff] %v12033_v54  ;;  %6191 = vmatpush.msrb.mxu3 %v13264_v7  ;;  %v5680_v53 = vmul.f32 %v12009_v23, %v13236_v5  ;;  %v5605_v35 = vsel %vm1694_vm1, %v5603_v63, %v12653_v49  ;;  %v13268_v30 = vld [vmem:[#allocation112_spill] sm:$0xff]  ;;  %v12115_v62 = vperm.slane %v11799_v37, 0  ;;  %v13287_v37 = vld [vmem:[#allocation41_spill] sm:$0xff] }
0x103a   : > { %13261 = vst [vmem:[#allocation94_spill] sm:$0xff] %v12022_v50  ;;  %v5580_v27 = vadd.f32 %v5568_v52, %v5543_v18  ;;  %v12654_v15 = vrot.slane %v12022_v50, 1  ;;  %6211 = vmatpush.msrb.mxu0 %v11584_v28  ;;  %6237 = vmatpush.msrb.mxu1 %v11552_v39  ;;  %v5628_v57 = vmul.f32 %v12652_v26, %v13236_v5  ;;  %v5655_v4 = vrot.slane %v5643_v21, 1  ;;  %v13270_v21 = vld [vmem:[#allocation107_spill] sm:$0xff]  ;;  %v13271_v7 = vld [vmem:[#allocation104_spill] sm:$0xff]  ;;  %v13301_v50 = vld [vmem:[#allocation62_spill] sm:$0xff] }
0x103b   : > { %v12052_v18 = vmul.f32 %v12025_v19, %v11679_v8  ;;  %6166 = vmatpush.msrb.mxu2 %v11693_v13  ;;  %6192 = vmatpush.msrb.mxu3 %v13266_v59  ;;  %v5717_v39 = vmul.f32 %v12025_v19, %v13236_v5  ;;  %v12060_v63 = vmul.f32 %v12040_v61, %v11679_v8  ;;  %v12063_v52 = vperm.slane %v13268_v30, 0  ;;  %v13273_v59 = vld [vmem:[#allocation116_spill] sm:$0xff] }
0x103c   : > { %v5617_v28 = vadd.f32 %v5605_v35, %v5580_v27  ;;  %6212 = vmatpush.msrb.mxu0 %v13270_v21  ;;  %6238 = vmatpush.msrb.mxu1 %v13271_v7  ;;  %v5657_v13 = vsel %vm2223_vm2, %v5655_v4, %v12654_v15  ;;  %v12658_v27 = vrot.slane %v12033_v54, 2  ;;  %v12072_v35 = vperm.slane %v11763_v24, 0  ;;  %v13275_v7 = vld [vmem:[#allocation124_spill] sm:$0xff]  ;;  %13282 = vst [vmem:[#allocation86_spill] sm:$0xff] %v12115_v62 }
0x103d   : > { %13265 = vst [vmem:[#allocation131_spill] sm:$0xff] %v12052_v18  ;;  %6167 = vmatpush.msrb.mxu2 %v13273_v59  ;;  %v5692_v49 = vrot.slane %v5680_v53, 2  ;;  %v5754_v30 = vmul.f32 %v12040_v61, %v13236_v5  ;;  %v12079_v21 = vmul.f32 %v12063_v52, %v11679_v8  ;;  %v5791_v15 = vmul.f32 %v12063_v52, %v13236_v5 }
0x103e   : > { %13267 = vst [vmem:[#allocation158_spill] sm:$0xff] %v12060_v63  ;;  %v5632_v26 = vadd.f32 %v5628_v57, %v5617_v28  ;;  %6213 = vmatpush.msrb.mxu0 %v13275_v7  ;;  %v12087_v24 = vmul.f32 %v12072_v35, %v11679_v8  ;;  %v12090_v53 = vperm.slane %v11774_v12, 0  ;;  %v13278_v57 = vld [vmem:[#allocation128_spill] sm:$0xff]  ;;  %v5729_v59 = vrot.slane %v5717_v39, 3 }
0x103f   : > { %13269 = vst [vmem:[#allocation135_spill] sm:$0xff] %v12063_v52  ;;  %6168 = vmatpush.msrb.mxu2 %v13278_v57  ;;  %v5694_v7 = vsel %vm2541_vm3, %v5692_v49, %v12658_v27  ;;  %v5828_v4 = vmul.f32 %v12072_v35, %v13236_v5  ;;  %v5766_v39 = vrot.slane %v5754_v30, 4  ;;  %v13281_v49 = vrot.slane %v12052_v18, 3 }
0x1040   : > { %13272 = vst [vmem:[#allocation127_spill] sm:$0xff] %v12072_v35  ;;  %v5669_v28 = vadd.f32 %v5657_v13, %v5632_v26  ;;  %6214 = vmatpush.msrb.mxu0 %v13279_v33  ;;  %v12103_v12 = vmul.f32 %v12090_v53, %v11679_v8  ;;  %v5865_v33 = vmul.f32 %v12090_v53, %v13236_v5  ;;  %v5803_v27 = vrot.slane %v5791_v15, 5  ;;  %v13284_v13 = vld [vmem:[#allocation46_spill] sm:$0xff] }
0x1041   : > { %13274 = vst [vmem:[#allocation83_spill] sm:$0xff] %v12079_v21  ;;  %6169 = vmatpush.msrb.mxu2 %v11747_v46  ;;  %v5731_v57 = vsel %vm4843_vm10, %v5729_v59, %v13281_v49  ;;  %v13283_v30 = vrot.slane %v12060_v63, 4  ;;  %v5840_v15 = vrot.slane %v5828_v4, 6  ;;  %v12127_v49 = vperm.slane %v11844_v11, 0  ;;  %v12139_v4 = vld [vmem:[#allocation2 + $0xd8] sm:$0xff] }
0x1042   : > { %13276 = vst [vmem:[#allocation85_spill] sm:$0xff] %v12087_v24  ;;  %v5706_v26 = vadd.f32 %v5694_v7, %v5669_v28  ;;  %6215 = vmatpush.msrb.mxu0 %v11766_v44  ;;  %v5285_v44 = vmul.f32 %v13284_v13, %v11353_v20  ;;  %v5877_v32 = vrot.slane %v5865_v33, 7  ;;  %v13289_v13 = vrot.slane %v12087_v24, 6 }
0x1043   : > { %13277 = vst [vmem:[#allocation88_spill] sm:$0xff] %v12090_v53  ;;  %v5768_v28 = vsel %vm1115_vm13, %v5766_v39, %v13283_v30  ;;  %v13285_v53 = vrot.slane %v12079_v21, 5  ;;  %v13288_v39 = vperm.slane %v11783_v42, 0  ;;  %v12143_v11 = vmul.f32 %v12139_v4, %v12115_v62 }
0x1044   : > { %13280 = vst [vmem:[#allocation95_spill] sm:$0xff] %v12103_v12  ;;  %v5743_v46 = vadd.f32 %v5731_v57, %v5706_v26  ;;  %v5322_v26 = vmul.f32 %v13287_v37, %v11353_v20  ;;  %v5300_v7 = vrot.slane %v5285_v44, 6  ;;  %v5842_v21 = vsel %vm1373_vm0, %v5840_v15, %v13289_v13  ;;  %v13291_v44 = vld [vmem:[#allocation64_spill] sm:$0xff]  ;;  %v13293_v15 = vld [vmem:[#allocation59_spill] sm:$0xff] }
0x1045   : > { %v5805_v59 = vsel %vm4642_vm7, %v5803_v27, %v13285_v53  ;;  %13286 = vst [vmem:[#allocation142_spill] sm:$0xff] %v12127_v49  ;;  %v5902_v30 = vmul.f32 %v13288_v39, %v11679_v8  ;;  %v5917_v27 = vmul.f32 %v12115_v62, %v11679_v8  ;;  %v13292_v37 = vrot.slane %v13291_v44, 6 }
0x1046   : > { %v5780_v57 = vadd.f32 %v5768_v28, %v5743_v46  ;;  %v5337_v53 = vrot.slane %v5322_v26, 7  ;;  %v13290_v46 = vrot.slane %v12103_v12, 7  ;;  %v5374_v13 = vmul.f32 %v13293_v15, %v11526_v36  ;;  %v13294_v26 = vld [vmem:[#allocation35_spill] sm:$0xff]  ;;  %v13298_v15 = vld [vmem:[#allocation66_spill] sm:$0xff] }
0x1047   : > { %v5301_v39 = vsel %vm1373_vm0, %v13292_v37, %v5300_v7  ;;  %v5954_v24 = vmul.f32 %v12127_v49, %v11679_v8  ;;  %v12157_v62 = vmul.f32 %v12139_v4, %v12127_v49  ;;  %v5448_v63 = vmul.f32 %v13298_v15, %v11526_v36  ;;  %v13299_v49 = vld [vmem:[#allocation43_spill] sm:$0xff] }
0x1048   : > { %v5817_v33 = vadd.f32 %v5805_v59, %v5780_v57  ;;  %v5879_v28 = vsel %vm1694_vm1, %v5877_v32, %v13290_v46  ;;  %v5309_v59 = vadd.f32 %v5301_v39, %v13294_v26  ;;  %v13295_v57 = vld [vmem:[#allocation31_spill] sm:$0xff]  ;;  %v5389_v37 = vrot.slane %v5374_v13, 1 }
0x1049   : > { %v5411_v12 = vmul.f32 %v13295_v57, %v11526_v36  ;;  %v13296_v46 = vld [vmem:[#allocation71_spill] sm:$0xff]  ;;  %v5929_v18 = vrot.slane %v5917_v27, 1  ;;  %v13300_v52 = vperm.slane %v13299_v49, 1  ;;  %v13302_v57 = vrot.slane %v13301_v50, 1 }
0x104a   : > { %v5854_v32 = vadd.f32 %v5842_v21, %v5817_v33  ;;  %v13297_v44 = vrot.slane %v13296_v46, 7  ;;  %v5966_v46 = vrot.slane %v5954_v24, 2  ;;  %v5463_v35 = vrot.slane %v5448_v63, 3  ;;  %v13308_v24 = vld [vmem:[#allocation168_spill] sm:$0xff] }
0x104b   : > { %v5357_v39 = vmul.f32 %v13300_v52, %v11353_v20  ;;  %v5390_v21 = vsel %vm2223_vm2, %v13302_v57, %v5389_v37  ;;  %v5426_v33 = vrot.slane %v5411_v12, 2  ;;  %v13305_v20 = vrot.slane %v12143_v11, 1 }
0x104c   : > { %v5338_v7 = vsel %vm1694_vm1, %v13297_v44, %v5337_v53  ;;  %v5891_v26 = vadd.f32 %v5879_v28, %v5854_v32  ;;  %v13303_v53 = vld [vmem:[#allocation78_spill] sm:$0xff]  ;;  %v5967_v44 = vrot.slane %v12157_v62, 2 }
0x104d   : > { %v5346_v54 = vadd.f32 %v5338_v7, %v5309_v59  ;;  %v5485_v13 = vmul.f32 %v13303_v53, %v11526_v36  ;;  %v13304_v59 = vld [vmem:[#allocation90_spill] sm:$0xff]  ;;  %v5931_v52 = vsel %vm2223_vm2, %v5929_v18, %v13305_v20  ;;  %v5559_v53 = vmul.f32 %v13308_v24, %v11526_v36 }
0x104e   : > { %v5906_v15 = vadd.f32 %v5902_v30, %v5891_v26  ;;  %v5522_v7 = vmul.f32 %v13304_v59, %v11526_v36  ;;  %v13306_v32 = vld [vmem:[#allocation74_spill] sm:$0xff] }
0x104f   : > { %v5361_v27 = vadd.f32 %v5357_v39, %v5346_v54  ;;  %v13307_v12 = vrot.slane %v13306_v32, 2  ;;  %v5500_v57 = vrot.slane %v5485_v13, 4  ;;  %v5968_v54 = vsel %vm2541_vm3, %v5966_v46, %v5967_v44  ;;  %v13309_v39 = vld [vmem:[#allocation93_spill] sm:$0xff]  ;;  %v13314_v46 = vld [vmem:[#allocation172_spill] sm:$0xff] }
0x1050   : > { %v5943_v28 = vadd.f32 %v5931_v52, %v5906_v15  ;;  %v13310_v26 = vrot.slane %v13309_v39, 3  ;;  %v5574_v52 = vrot.slane %v5559_v53, 6 }
0x1051   : > { %v5398_v50 = vadd.f32 %v5390_v21, %v5361_v27  ;;  %v5427_v37 = vsel %vm2541_vm3, %v13307_v12, %v5426_v33  ;;  %v5537_v21 = vrot.slane %v5522_v7, 5  ;;  %v13311_v27 = vld [vmem:[#allocation154_spill] sm:$0xff]  ;;  %v13312_v33 = vld [vmem:[#allocation99_spill] sm:$0xff] }
0x1052   : > { %v5980_v30 = vadd.f32 %v5968_v54, %v5943_v28  ;;  %v5464_v18 = vsel %vm4843_vm10, %v13310_v26, %v5463_v35  ;;  %v5596_v15 = vmul.f32 %v13311_v27, %v11526_v36  ;;  %v13313_v13 = vrot.slane %v13312_v33, 4  ;;  %v13316_v35 = vld [vmem:[#allocation111_spill] sm:$0xff]  ;;  %v13317_v54 = vld [vmem:[#allocation44_spill] sm:$0xff] }
0x1053   : > { %v5435_v63 = vadd.f32 %v5427_v37, %v5398_v50  ;;  %v13315_v50 = vrot.slane %v13314_v46, 5  ;;  %v12201_v37 = vld [vmem:[#allocation2 + $0xc0] sm:$0xff] }
0x1054   : > { %6070 = vmatmul.f32.vlgmr.msra.gmra.mxu2 %v5980_v30  ;;  %6116 = vmatmul.f32.vlgmr.msra.gmra.mxu0 %v5980_v30  ;;  %v5501_v20 = vsel %vm1115_vm13, %v13313_v13, %v5500_v57  ;;  %v5611_v12 = vrot.slane %v5596_v15, 7  ;;  %v5648_v7 = vmul.f32 %v12201_v37, %v13316_v35  ;;  %v13318_v30 = vld [vmem:[#allocation63_spill] sm:$0xff]  ;;  %v13319_v57 = vld [vmem:[#allocation173_spill] sm:$0xff]  ;;  %v13322_v33 = vld [vmem:[#allocation108_spill] sm:$0xff] }
0x1055   : > { %v5472_v59 = vadd.f32 %v5464_v18, %v5435_v63  ;;  %v5538_v28 = vsel %vm4642_vm7, %v13315_v50, %v5537_v21  ;;  %v5284_v63 = vmul.f32 %v13317_v54, %v13236_v5  ;;  %v5321_v39 = vmul.f32 %v13318_v30, %v13236_v5  ;;  %v13321_v18 = vld [vmem:[#allocation103_spill] sm:$0xff]  ;;  %v13324_v46 = vld [vmem:[#allocation120_spill] sm:$0xff]  ;;  %v13326_v54 = vld [vmem:[#allocation34_spill] sm:$0xff] }
0x1056   : > { %v13320_v53 = vrot.slane %v13319_v57, 6  ;;  %v5685_v21 = vmul.f32 %v12201_v37, %v13321_v18  ;;  %v13323_v13 = vrot.slane %v13322_v33, 7  ;;  %v5722_v50 = vmul.f32 %v12201_v37, %v13324_v46  ;;  %v13329_v57 = vld [vmem:[#allocation70_spill] sm:$0xff] }
0x1057   : > { %v5509_v32 = vadd.f32 %v5501_v20, %v5472_v59  ;;  %v5298_v15 = vrot.slane %v5284_v63, 6  ;;  %v5335_v59 = vrot.slane %v5321_v39, 7  ;;  %v5373_v5 = vmul.f32 %v11879_v60, %v11679_v8 }
0x1058   : > { %v5575_v26 = vsel %vm1373_vm0, %v13320_v53, %v5574_v52  ;;  %v5612_v20 = vsel %vm1694_vm1, %v13323_v13, %v5611_v12  ;;  %v13325_v52 = vperm.slane %v11615_v3, 1  ;;  %v5410_v30 = vmul.f32 %v11882_v2, %v11679_v8  ;;  %v13332_v13 = vld [vmem:[#allocation123_spill] sm:$0xff] }
0x1059   : > { %v5546_v24 = vadd.f32 %v5538_v28, %v5509_v32  ;;  %v5663_v32 = vrot.slane %v5648_v7, 1  ;;  %v5700_v12 = vrot.slane %v5685_v21, 2  ;;  %v13328_v7 = vld [vmem:[#allocation119_spill] sm:$0xff]  ;;  %v5796_v18 = vmul.f32 %v12201_v37, %v11728_v40 }
0x105a   : > { %v5631_v35 = vmul.f32 %v13325_v52, %v11526_v36  ;;  %v5759_v39 = vmul.f32 %v12201_v37, %v13328_v7  ;;  %v13333_v2 = vrot.slane %v13332_v13, 1  ;;  %v6678_v52 = vld [vmem:[#allocation2 + $0x8] sm:$0xff]  ;;  %v13335_v40 = vrot.slane %v11902_v34, 1 }
0x105b   : > { %v5583_v27 = vadd.f32 %v5575_v26, %v5546_v24  ;;  %v13327_v24 = vrot.slane %v13326_v54, 6  ;;  %v5387_v26 = vrot.slane %v5373_v5, 1  ;;  %v13334_v5 = vperm.slane %v13299_v49, 0  ;;  %v5273_v49 = vld [vmem:[#allocation2] sm:$0xff] }
0x105c   : > { %v5664_v21 = vsel %vm2223_vm2, %v13333_v2, %v5663_v32  ;;  %v5774_v32 = vrot.slane %v5759_v39, 4  ;;  %v5521_v34 = vmul.f32 %v11933_v10, %v11679_v8  ;;  %v13339_v10 = vrot.slane %v11792_v38, 4 }
0x105d   : > { %v5620_v28 = vadd.f32 %v5612_v20, %v5583_v27  ;;  %v5299_v63 = vsel %vm1373_vm0, %v13327_v24, %v5298_v15  ;;  %v13330_v27 = vld [vmem:[#allocation58_spill] sm:$0xff]  ;;  %v5447_v15 = vmul.f32 %v11921_v51, %v11679_v8  ;;  %v5737_v20 = vrot.slane %v5722_v50, 3 }
0x105e   : > { %v5308_v53 = vadd.f32 %v5299_v63, %v13329_v57  ;;  %v13331_v36 = vrot.slane %v13330_v27, 7  ;;  %v5388_v54 = vsel %vm2223_vm2, %v13335_v40, %v5387_v26  ;;  %v5424_v24 = vrot.slane %v5410_v30, 2 }
0x105f   : > { %v5635_v60 = vadd.f32 %v5631_v35, %v5620_v28  ;;  %v5356_v28 = vmul.f32 %v6678_v52, %v13334_v5  ;;  %v13336_v51 = vrot.slane %v11752_v56, 2  ;;  %v5833_v50 = vmul.f32 %v12201_v37, %v11816_v41 }
0x1060   : > { %v5336_v33 = vsel %vm1694_vm1, %v13331_v36, %v5335_v59  ;;  %v5484_v59 = vmul.f32 %v11924_v6, %v11679_v8  ;;  %v13337_v30 = vrot.slane %v11758_v29, 3  ;;  %v5811_v6 = vrot.slane %v5796_v18, 5 }
0x1061   : > { %v5345_v46 = vadd.f32 %v5336_v33, %v5308_v53  ;;  %v5672_v35 = vadd.f32 %v5664_v21, %v5635_v60  ;;  %v5701_v63 = vsel %vm2541_vm3, %v13336_v51, %v5700_v12  ;;  %v5461_v53 = vrot.slane %v5447_v15, 3 }
0x1062   : > { %v5738_v26 = vsel %vm4843_vm10, %v13337_v30, %v5737_v20  ;;  %v5870_v56 = vmul.f32 %v12201_v37, %v11819_v0  ;;  %v13338_v60 = vrot.slane %v11912_v45, 2  ;;  %v5498_v27 = vrot.slane %v5484_v59, 4 }
0x1063   : > { %v5360_v7 = vadd.f32 %v5356_v28, %v5345_v46  ;;  %v5709_v57 = vadd.f32 %v5701_v63, %v5672_v35  ;;  %v5558_v36 = vmul.f32 %v11936_v47, %v11679_v8  ;;  %v5775_v29 = vsel %vm1115_vm13, %v13339_v10, %v5774_v32 }
0x1064   : > { %v5425_v41 = vsel %vm2541_vm3, %v13338_v60, %v5424_v24  ;;  %v5848_v33 = vrot.slane %v5833_v50, 6  ;;  %v5922_v18 = vmul.f32 %v11826_v16, %v5273_v49  ;;  %v13340_v0 = vrot.slane %v11949_v9, 3 }
0x1065   : > { %v5397_v12 = vadd.f32 %v5388_v54, %v5360_v7  ;;  %v5746_v39 = vadd.f32 %v5738_v26, %v5709_v57  ;;  %v5535_v45 = vrot.slane %v5521_v34, 5  ;;  %v5595_v21 = vmul.f32 %v11987_v58, %v11679_v8 }
0x1066   : > { %v5462_v2 = vsel %vm4843_vm10, %v13340_v0, %v5461_v53  ;;  %v13341_v20 = vrot.slane %v11811_v14, 5  ;;  %v5885_v38 = vrot.slane %v5870_v56, 7  ;;  %v5959_v46 = vmul.f32 %v11871_v48, %v5273_v49  ;;  %v13348_v53 = vld [vmem:[#allocation132_spill] sm:$0xff]  ;;  %v13356_v0 = vld [vmem:[#allocation135_spill] sm:$0xff] }
0x1067   : > { %v5434_v15 = vadd.f32 %v5425_v41, %v5397_v12  ;;  %v5783_v13 = vadd.f32 %v5775_v29, %v5746_v39  ;;  %v13342_v16 = vrot.slane %v11955_v25, 4  ;;  %v5572_v9 = vrot.slane %v5558_v36, 6 }
0x1068   : > { %v5812_v47 = vsel %vm4642_vm7, %v13341_v20, %v5811_v6  ;;  %v13343_v35 = vrot.slane %v11837_v55, 6  ;;  %v13344_v58 = vperm.slane %v11783_v42, 1  ;;  %v5937_v54 = vrot.slane %v5922_v18, 1  ;;  %v13354_v18 = vld [vmem:[#allocation94_spill] sm:$0xff] }
0x1069   : > { %v5471_v52 = vadd.f32 %v5462_v2, %v5434_v15  ;;  %v5820_v5 = vadd.f32 %v5812_v47, %v5783_v13  ;;  %v5499_v28 = vsel %vm1115_vm13, %v13342_v16, %v5498_v27  ;;  %v13345_v48 = vrot.slane %v11963_v43, 5  ;;  %v13359_v47 = vld [vmem:[#allocation127_spill] sm:$0xff] }
0x106a   : > { %v5849_v40 = vsel %vm1373_vm0, %v13343_v35, %v5848_v33  ;;  %v5905_v14 = vmul.f32 %v12201_v37, %v13344_v58  ;;  %v5609_v63 = vrot.slane %v5595_v21, 7  ;;  %v5647_v25 = vmul.f32 %v12139_v4, %v12006_v1  ;;  %v13363_v58 = vld [vmem:[#allocation158_spill] sm:$0xff] }
0x106b   : > { %v5508_v24 = vadd.f32 %v5499_v28, %v5471_v52  ;;  %v5857_v59 = vadd.f32 %v5849_v40, %v5820_v5  ;;  %v5536_v51 = vsel %vm4642_vm7, %v13345_v48, %v5535_v45  ;;  %v13346_v32 = vrot.slane %v11852_v31, 7  ;;  %v13360_v52 = vld [vmem:[#allocation131_spill] sm:$0xff] }
0x106c   : > { %v5974_v50 = vrot.slane %v5959_v46, 2  ;;  %v13347_v37 = vrot.slane %v11978_v22, 6  ;;  %v5684_v43 = vmul.f32 %v12139_v4, %v12009_v23  ;;  %v13349_v34 = vrot.slane %v13348_v53, 1  ;;  %v13351_v22 = vld [vmem:[#allocation84_spill] sm:$0xff] }
0x106d   : > { %v5886_v55 = vsel %vm1694_vm1, %v13346_v32, %v5885_v38  ;;  %v5545_v7 = vadd.f32 %v5536_v51, %v5508_v24  ;;  %v13350_v31 = vrot.slane %v12001_v17, 7  ;;  %v5661_v56 = vrot.slane %v5647_v25, 1  ;;  %v5272_v38 = vld [vmem:[#allocation2 + $0x100] sm:$0xff] }
0x106e   : > { %v5894_v49 = vadd.f32 %v5886_v55, %v5857_v59  ;;  %v5573_v57 = vsel %vm1373_vm0, %v13347_v37, %v5572_v9  ;;  %v5938_v30 = vsel %vm2223_vm2, %v13349_v34, %v5937_v54  ;;  %v5721_v12 = vmul.f32 %v12139_v4, %v12025_v19  ;;  %v13362_v9 = vld [vmem:[#allocation88_spill] sm:$0xff]  ;;  %v13365_v59 = vld [vmem:[#allocation86_spill] sm:$0xff]  ;;  %v13369_v37 = vld [vmem:[#allocation85_spill] sm:$0xff] }
0x106f   : > { %v5582_v26 = vadd.f32 %v5573_v57, %v5545_v7  ;;  %v5610_v6 = vsel %vm1694_vm1, %v13350_v31, %v5609_v63  ;;  %v13352_v39 = vrot.slane %v13351_v22, 2  ;;  %v13353_v23 = vperm.slane %v11615_v3, 0  ;;  %v13357_v3 = vld [vmem:[#allocation136_spill] sm:$0xff]  ;;  %v13366_v63 = vld [vmem:[#allocation83_spill] sm:$0xff] }
0x1070   : > { %v5909_v1 = vadd.f32 %v5905_v14, %v5894_v49  ;;  %v5698_v10 = vrot.slane %v5684_v43, 2  ;;  %v5758_v17 = vmul.f32 %v12139_v4, %v12040_v61  ;;  %v13355_v15 = vrot.slane %v13354_v18, 1  ;;  %v13375_v18 = vld [vmem:[#allocation185_spill] sm:$0xff] }
0x1071   : > { %v5975_v60 = vsel %vm2541_vm3, %v13352_v39, %v5974_v50  ;;  %v5619_v41 = vadd.f32 %v5610_v6, %v5582_v26  ;;  %v5630_v27 = vmul.f32 %v13353_v23, %v11679_v8  ;;  %v5735_v13 = vrot.slane %v5721_v12, 3  ;;  %v13368_v50 = vld [vmem:[#allocation142_spill] sm:$0xff] }
0x1072   : > { %v5946_v36 = vadd.f32 %v5938_v30, %v5909_v1  ;;  %v5662_v19 = vsel %vm2223_vm2, %v13355_v15, %v5661_v56  ;;  %v5795_v2 = vmul.f32 %v12139_v4, %v13356_v0  ;;  %v13358_v8 = vrot.slane %v13357_v3, 2  ;;  %v13372_v1 = vld [vmem:[#allocation95_spill] sm:$0xff] }
0x1073   : > { %v5634_v29 = vadd.f32 %v5630_v27, %v5619_v41  ;;  %v5772_v20 = vrot.slane %v5758_v17, 4  ;;  %v5832_v61 = vmul.f32 %v12139_v4, %v13359_v47  ;;  %v13361_v5 = vrot.slane %v13360_v52, 3  ;;  %v13378_v52 = vld [vmem:[#allocation186_spill] sm:$0xff] }
0x1074   : > { %v5983_v33 = vadd.f32 %v5975_v60, %v5946_v36  ;;  %v5699_v21 = vsel %vm2541_vm3, %v13358_v8, %v5698_v10  ;;  %v5809_v28 = vrot.slane %v5795_v2, 5  ;;  %v5869_v35 = vmul.f32 %v12139_v4, %v13362_v9 }
0x1075   : > { %v5671_v45 = vadd.f32 %v5662_v19, %v5634_v29  ;;  %v5736_v16 = vsel %vm4843_vm10, %v13361_v5, %v5735_v13  ;;  %v13364_v14 = vrot.slane %v13363_v58, 4  ;;  %v5846_v24 = vrot.slane %v5832_v61, 6 }
0x1076   : > { %6096 = vmatmul.f32.gmra.mxu3 %v5983_v33  ;;  %6142 = vmatmul.f32.gmra.mxu1 %v5983_v33  ;;  %v5921_v48 = vmul.f32 %v13365_v59, %v5272_v38  ;;  %v13367_v25 = vrot.slane %v13366_v63, 5  ;;  %v5883_v55 = vrot.slane %v5869_v35, 7  ;;  %v5958_v7 = vmul.f32 %v13368_v50, %v5272_v38 }
0x1077   : > { %v5708_v46 = vadd.f32 %v5699_v21, %v5671_v45  ;;  %v5773_v54 = vsel %vm1115_vm13, %v13364_v14, %v5772_v20  ;;  %v13370_v57 = vrot.slane %v13369_v37, 6  ;;  %v13371_v30 = vperm.slane %v11783_v42, 0  ;;  %v6048_v42 = vld [vmem:[#allocation7] sm:$0x3]  ;;  %v13377_v21 = vld [vmem:[#allocation187_spill] sm:$0xff] }
0x1078   : > { %v5810_v32 = vsel %vm4642_vm7, %v13367_v25, %v5809_v28  ;;  %v5935_v53 = vrot.slane %v5921_v48, 1  ;;  %v13373_v31 = vrot.slane %v13372_v1, 7  ;;  %v5972_v56 = vrot.slane %v5958_v7, 2 }
0x1079   : > { %v5745_v40 = vadd.f32 %v5736_v16, %v5708_v46  ;;  %v5847_v43 = vsel %vm1373_vm0, %v13370_v57, %v5846_v24  ;;  %v5904_v26 = vmul.f32 %v12139_v4, %v13371_v30  ;;  %v13374_v22 = vrot.slane %v12143_v11, 1 }
0x107a   : > { %v5884_v6 = vsel %vm1694_vm1, %v13373_v31, %v5883_v55  ;;  %v5973_v41 = vsel %vm2541_vm3, %v5967_v44, %v5972_v56  ;;  %v6051_v4 = vperm.slane %v6048_v42, 1  ;;  %v6050_v33 = vperm.slane %v6048_v42, 0  ;;  %v13376_v44 = vld [vmem:[#allocation184_spill] sm:$0xff] }
0x107b   : > { %v5782_v51 = vadd.f32 %v5773_v54, %v5745_v40  ;;  %v5936_v39 = vsel %vm2223_vm2, %v13374_v22, %v5935_v53 }
0x107d   : > { %v5819_v49 = vadd.f32 %v5810_v32, %v5782_v51 }
0x107f   : > { %v5856_v34 = vadd.f32 %v5847_v43, %v5819_v49 }
0x1081   : > { %v5893_v12 = vadd.f32 %v5884_v6, %v5856_v34 }
0x1083   : > { %v5908_v60 = vadd.f32 %v5904_v26, %v5893_v12 }
0x1085   : > { %v5945_v23 = vadd.f32 %v5936_v39, %v5908_v60 }
0x1087   : > { %v5982_v27 = vadd.f32 %v5973_v41, %v5945_v23 }
0x1089   : > { %6073 = vmatmul.f32.gmra.mxu2 %v5982_v27  ;;  %6119 = vmatmul.f32.gmra.mxu0 %v5982_v27 }
0x10b4   : > { %v6140_v17 = vpop.f32.mrf.mxu1 }
0x10ba   : > { %v6094_v62 = vpop.f32.mrf.mxu3 }
0x10d1   : > { %v6117_v36 = vpop.f32.mrf.mxu0 }
0x10d2   : > { %v6118_v10 = vadd.f32 %v6117_v36, %v6051_v4 }
0x10d4   : > { %v6141_v29 = vadd.f32 %v6140_v17, %v6118_v10 }
0x10d6   : > { %v6151_v11 = vmul.f32 %v6141_v29, %v13375_v18 }
0x10d7   : > { %v6071_v15 = vpop.f32.mrf.mxu2 }
0x10d8   : > { %v6072_v19 = vadd.f32 %v6071_v15, %v6050_v33  ;;  %6193 = vmatmul.f32.vlgmr.msrb.gmra.mxu3 %v6151_v11  ;;  %6239 = vmatmul.f32.vlgmr.msrb.gmra.mxu1 %v6151_v11 }
0x10da   : > { %v6095_v13 = vadd.f32 %v6094_v62, %v6072_v19 }
0x10dc   : > { %v6150_v0 = vmul.f32 %v6095_v13, %v13376_v44 }
0x10de   : > { %6170 = vmatmul.f32.vlgmr.msrb.gmra.mxu2 %v6150_v0  ;;  %6216 = vmatmul.f32.vlgmr.msrb.gmra.mxu0 %v6150_v0 }
0x10f3   : > { %v6143_v3 = vpop.f32.mrf.mxu1 }
0x10f9   : > { %v6097_v38 = vpop.f32.mrf.mxu3 }
0x1106   : > { %v6120_v2 = vpop.f32.mrf.mxu0 }
0x1107   : > { %v6121_v45 = vadd.f32 %v6120_v2, %v6051_v4 }
0x1109   : > { %v6144_v8 = vadd.f32 %v6143_v3, %v6121_v45 }
0x110b   : > { %v6153_v20 = vmul.f32 %v6144_v8, %v13377_v21 }
0x110c   : > { %v6074_v47 = vpop.f32.mrf.mxu2 }
0x110d   : > { %v6075_v61 = vadd.f32 %v6074_v47, %v6050_v33  ;;  %6196 = vmatmul.f32.gmra.mxu3 %v6153_v20  ;;  %6242 = vmatmul.f32.gmra.mxu1 %v6153_v20 }
0x110f   : > { %v6098_v46 = vadd.f32 %v6097_v38, %v6075_v61 }
0x1111   : > { %v6152_v5 = vmul.f32 %v6098_v46, %v13378_v52 }
0x1113   : > { %6173 = vmatmul.f32.gmra.mxu2 %v6152_v5  ;;  %6219 = vmatmul.f32.gmra.mxu0 %v6152_v5 }
0x1155   : > { %v6240_v9 = vpop.f32.mrf.mxu1 }
0x115b   : > { %v6217_v16 = vpop.f32.mrf.mxu0  ;;  %v6194_v14 = vpop.f32.mrf.mxu3 }
0x115c   : > { %v6218_v28 = vadd.f32 %v6217_v16, %v6051_v4 }
0x115e   : > { %v6241_v35 = vadd.f32 %v6240_v9, %v6218_v28 }
0x1160   : > { %6247 = vst [vmem:[%s7213_s20 + $0x8] sm:$0xff] %v6241_v35 }
0x1161   : > { %v6171_v40 = vpop.f32.mrf.mxu2 }
0x1162   : > { %v6172_v58 = vadd.f32 %v6171_v40, %v6050_v33 }
0x1164   : > { %v6195_v54 = vadd.f32 %v6194_v14, %v6172_v58 }
0x1166   : > { %6246 = vst [vmem:[%s7213_s20] sm:$0xff] %v6195_v54 }
0x118a   : > { %v6243_v48 = vpop.f32.mrf.mxu1 }
0x1190   : > { %v6220_v24 = vpop.f32.mrf.mxu0  ;;  %v6197_v32 = vpop.f32.mrf.mxu3 }
0x1191   : > { %v6221_v59 = vadd.f32 %v6220_v24, %v6051_v4 }
0x1193   : > { %v6244_v51 = vadd.f32 %v6243_v48, %v6221_v59 }
0x1195   : > { %6249 = vst [vmem:[%s7213_s20 + $0x18] sm:$0xff] %v6244_v51 }
0x1196   : > { %v6174_v63 = vpop.f32.mrf.mxu2 }
0x1197   : > { %v6175_v25 = vadd.f32 %v6174_v63, %v6050_v33 }
0x1199   : > { %v6198_v55 = vadd.f32 %v6197_v32, %v6175_v25 }
0x119b   : > { %6248 = vst [vmem:[%s7213_s20 + $0x10] sm:$0xff] %v6198_v55 }
0x119c   : > { %6916 = shalt.err (!%p6913_p9)
}
0x119d   : > { %s6987_s20 = smov 256  }
0x119e   : > { %6532 = dma.vmem_to_hbm [thread:$0]  (%p7126_p5), %s6264_s22, 512, %s6266_s15, %s6251_s1, %s6987_s20, %s6987_s20, %s6981_s0  }
0x119f PF: > { %s13382_s9 = sld [smem:[#allocation24_spill]] }
0x11a0   : > { %s13383_s3 = sld [smem:[#allocation22_spill]] }
0x11a5   : > { %p6574_p10 = scmp.ge.s32.totalorder %s13382_s9, 2 }
0x11a6   : > { %s6280_s2 = sand.u32 1, %s13383_s3  }
0x11a7   : > { %p6557_p11 = pnand %p6574_p10, %p7130_p6  ;;  %s6281_s19 = scalar_lea.sflag [#allocation6], %s6280_s2 }
0x11a9   : > { %p6558_p12 = pneg %p6557_p11 }
0x11ab   : > { %6950 = dma.done.wait (%p6558_p12), %s6281_s19, 512  }
0x11ac   : > { %6952 = vsyncadd (%p6558_p12), %s6281_s19, 4294966784  ;;  %s13385_s21 = sld [smem:[#allocation25_spill]]  ;;  %s13388_s0 = smov %s6959_s30 }
0x11ad   : > { %s13386_s29 = sld [smem:[#allocation23_spill]] }
0x11ae   : > { %s13387_s20 = sld [smem:[#allocation26_spill]] }
0x11b2   : > { %p33_p13 = scmp.ge.s32.totalorder %s13385_s21, 4  }
0x11b3   : > { %s13389_s30 = smov %s13386_s29 }
0x11b4   :  { %35 = sbr.rel (!%p33_p13) target bundleno = 17 (0x11), region = 260 }
0x11b9   :  { %6287 = vsyncpa [#allocation5], 1 }
0x11ba   :  { %6289 = vsyncpa [#allocation5 + $0x1], 1 }
0x11bb   :  { %6290 = vsyncpa [#allocation8], 1 }
0x11bc   :  { %6291 = vsyncpa [#allocation11], 1 }
0x11bd   :  { %6292 = vsyncpa [#allocation14], 1 }
0x11be   :  { %6293 = vsyncpa [#allocation6], 1 }
0x11bf   :  { %6295 = vsyncpa [#allocation6 + $0x1], 1 }

</bundles_post_ra>
